<compile_context>
chip_gen: v5e
topology: v5e:2x2
jax: 0.10.0
libtpu: 0.0.40
codegen_flags: <defaults>
</compile_context>

<pallas_src>
import functools

import jax
import jax.numpy as jnp
from jax import lax
from jax.experimental import pallas as pl
from jax.experimental.pallas import tpu as pltpu

# module indices into the stacked parameter tensors
_MSG, _DIFF, _CROSS, _DOWN, _CVE = 0, 1, 2, 3, 4
_MODULE_ORDER = ("mha_message", "mha_diff", "cross", "down", "mha_cve")
_LN_EPS = 1e-5


# ---------------------------------------------------------------------------
# Kernel 1: full per-batch-element forward pass (everything except CLIP loss).
# ---------------------------------------------------------------------------
def _branch_kernel(msg_ref, diff_ref, cve_ref, wq_ref, wkv_ref, wo_ref,
                   g_ref, b_ref, gh_out_ref, cve_out_ref, *,
                   n_head, d_k, d_v, n_down):
    f32, bf16 = jnp.float32, jnp.bfloat16
    W = n_head * (d_k + d_v)          # fused [K|V] width == zero-padded Q width

    # Per-head banded lane masks (trace-time constants).  They replace every
    # width-d_k lane slice / lane concat of a conventional per-head loop:
    #   qmask[h]: keeps only head h's Q lanes and folds in the softmax scale,
    #             so Q_h . K_h falls out of one full-width contraction
    #             (K lanes are laid out aligned with Q lanes).
    #   vmask[h]: keeps only head h's slot of the P @ [K|V] product, so the
    #             per-head outputs land pre-concatenated in the V lane region.
    lane = lax.broadcasted_iota(jnp.int32, (1, W), 1)
    scale = float(d_k) ** -0.5
    qmask = [jnp.where((lane >= h * d_k) & (lane < (h + 1) * d_k), scale, 0.0)
             for h in range(n_head)]
    voff = n_head * d_k
    vmask = [jnp.where((lane >= voff + h * d_v) & (lane < voff + (h + 1) * d_v),
                       1.0, 0.0)
             for h in range(n_head)]

    def mha(xq, xkv, mod, residual, layer_norm):
        # xq: (Lq, d_model) f32, xkv: (Lkv, d_model) f32.
        # Two lane-dense projection dots per call (bf16 operands, f32 accum):
        #   q  = xq  @ [Wq | 0 ]   -> (Lq , W)
        #   kv = xkv @ [Wk | Wv]   -> (Lkv, W)
        q = jnp.dot(xq.astype(bf16), wq_ref[mod], preferred_element_type=f32)
        kv = jnp.dot(xkv.astype(bf16), wkv_ref[mod], preferred_element_type=f32)
        kv_b = kv.astype(bf16)
        o = jnp.zeros((xq.shape[0], W), f32)
        for h in range(n_head):                     # static unroll, no slicing
            s = lax.dot_general((q * qmask[h]).astype(bf16), kv_b,
                                (((1,), (1,)), ((), ())),
                                preferred_element_type=f32)       # (Lq, Lkv)
            s = s - jnp.max(s, axis=-1, keepdims=True)
            p = jnp.exp(s)
            p = p * pl.reciprocal(jnp.sum(p, axis=-1, keepdims=True),
                                  approx=True)
            pv = jnp.dot(p.astype(bf16), kv_b,
                         preferred_element_type=f32)              # (Lq, W)
            o = o + pv * vmask[h]
        out = jnp.dot(o.astype(bf16), wo_ref[mod],
                      preferred_element_type=f32)                 # (Lq, d_out)
        if residual:
            out = out + xq
        if layer_norm:
            mu = jnp.mean(out, axis=-1, keepdims=True)
            var = jnp.mean((out - mu) * (out - mu), axis=-1, keepdims=True)
            out = (out - mu) * lax.rsqrt(var + _LN_EPS)
            out = out * g_ref[mod] + b_ref[mod]
        return out

    msg = msg_ref[0].astype(f32)      # (L_msg, d_model)
    diff = diff_ref[0].astype(f32)    # (L_diff, d_model)
    cve = cve_ref[0].astype(f32)      # (L_cve, d_model)

    # ---- github branch: msg / diff self-attn, cross-attn, 7x down-sample ----
    msg = mha(msg, msg, _MSG, True, True)
    diff = mha(diff, diff, _DIFF, True, True)
    cur = mha(msg, diff, _CROSS, False, False)       # q <- message, k/v <- diff

    length = cur.shape[0]
    for _ in range(n_down):
        half = length // 2
        # pairwise-mean query pooling as a 0.5-banded matmul, built per stage
        # at its exact shape (no slicing of a traced pooling matrix).
        rr = lax.broadcasted_iota(jnp.int32, (half, length), 0)
        cc = lax.broadcasted_iota(jnp.int32, (half, length), 1)
        pmat = jnp.where((cc == 2 * rr) | (cc == 2 * rr + 1),
                         0.5, 0.0).astype(bf16)
        q_ds = jnp.dot(pmat, cur.astype(bf16), preferred_element_type=f32)
        cur = mha(q_ds, cur, _DOWN, True, True)
        length = half
    gh_out_ref[...] = cur.reshape(gh_out_ref.shape).astype(gh_out_ref.dtype)

    # ---- cve branch ----
    cve = mha(cve, cve, _CVE, True, True)            # (L_cve=1, d_out)
    cve_out_ref[...] = cve.reshape(cve_out_ref.shape).astype(cve_out_ref.dtype)


# ---------------------------------------------------------------------------
# Kernel 2: tiny CLIP symmetric soft-target contrastive loss epilogue.
# ---------------------------------------------------------------------------
def _clip_loss_kernel(gh_ref, cve_ref, loss_ref, *, temperature):
    f32 = jnp.float32
    B = gh_ref.shape[0]
    d = gh_ref.shape[-1]
    gh = gh_ref[...].reshape(B, d).astype(f32)
    cve = cve_ref[...].reshape(B, d).astype(f32)

    def l2_normalize(x):
        nrm = jnp.sqrt(jnp.sum(x * x, axis=-1, keepdims=True))
        return x / jnp.maximum(nrm, 1e-12)

    gh_n = l2_normalize(gh)      # "image" embeddings
    cve_n = l2_normalize(cve)    # "text"  embeddings

    inv_t = 1.0 / temperature
    dn = (((1,), (1,)), ((), ()))
    logits = lax.dot_general(cve_n, gh_n, dn, preferred_element_type=f32) * inv_t
    gh_sim = lax.dot_general(gh_n, gh_n, dn, preferred_element_type=f32)
    cve_sim = lax.dot_general(cve_n, cve_n, dn, preferred_element_type=f32)

    t = (gh_sim + cve_sim) * (0.5 * temperature)
    t = t - jnp.max(t, axis=-1, keepdims=True)
    te = jnp.exp(t)
    targets = te / jnp.sum(te, axis=-1, keepdims=True)

    lsm_row = logits - jnp.max(logits, axis=-1, keepdims=True)
    lsm_row = lsm_row - jnp.log(jnp.sum(jnp.exp(lsm_row), axis=-1, keepdims=True))
    lsm_col = logits - jnp.max(logits, axis=0, keepdims=True)
    lsm_col = lsm_col - jnp.log(jnp.sum(jnp.exp(lsm_col), axis=0, keepdims=True))

    texts_loss = jnp.sum(-targets * lsm_row, axis=-1, keepdims=True)   # (B,1)
    images_loss = jnp.sum(-targets * lsm_col, axis=0, keepdims=True)   # (1,B)
    loss_ref[...] = jnp.mean((texts_loss + images_loss) * 0.5,
                             axis=(0, 1), keepdims=True).astype(loss_ref.dtype)


# ---------------------------------------------------------------------------
# Parameters (deterministic init) and forward-pass wrapper.
# ---------------------------------------------------------------------------
def _init_mha(key, d_model, n_head, d_k, d_v, d_out):
    k1, k2, k3, k4 = jax.random.split(key, 4)
    s = d_model ** -0.5
    return dict(
        wq=jax.random.normal(k1, (d_model, n_head * d_k), jnp.float32) * s,
        wk=jax.random.normal(k2, (d_model, n_head * d_k), jnp.float32) * s,
        wv=jax.random.normal(k3, (d_model, n_head * d_v), jnp.float32) * s,
        wo=jax.random.normal(k4, (n_head * d_v, d_out), jnp.float32) * s,
        gamma=jnp.ones((1, d_out), jnp.float32),
        beta=jnp.zeros((1, d_out), jnp.float32),
    )


def init_combined_model(key, *, n_head, d_model, d_k, d_v, dim_head, d_output):
    keys = jax.random.split(key, 5)
    return dict(
        mha_message=_init_mha(keys[0], d_model, n_head, d_k, d_v, d_output),
        mha_diff=_init_mha(keys[1], d_model, n_head, d_k, d_v, d_output),
        cross=_init_mha(keys[2], d_model, n_head, dim_head, dim_head, d_model),
        down=_init_mha(keys[3], d_model, n_head, d_k, d_v, d_output),
        mha_cve=_init_mha(keys[4], d_model, n_head, d_k, d_v, d_output),
    )


def _pack_params(params, d_model, n_head, d_k, d_v):
    """Stack per-module weights into fused, lane-aligned bf16 tensors."""
    wq_l, wkv_l, wo_l, g_l, b_l = [], [], [], [], []
    for name in _MODULE_ORDER:
        p = params[name]
        d_out = p["wo"].shape[1]
        wq_pad = jnp.concatenate(
            [p["wq"], jnp.zeros((d_model, n_head * d_v), p["wq"].dtype)], axis=1)
        wkv = jnp.concatenate([p["wk"], p["wv"]], axis=1)
        wo_pad = jnp.concatenate(
            [jnp.zeros((n_head * d_k, d_out), p["wo"].dtype), p["wo"]], axis=0)
        wq_l.append(wq_pad)
        wkv_l.append(wkv)
        wo_l.append(wo_pad)
        g_l.append(p["gamma"])
        b_l.append(p["beta"])
    return (jnp.stack(wq_l).astype(jnp.bfloat16),
            jnp.stack(wkv_l).astype(jnp.bfloat16),
            jnp.stack(wo_l).astype(jnp.bfloat16),
            jnp.stack(g_l), jnp.stack(b_l))


def combined_model_forward(params, cve_embeddings, github_message, github_diff,
                           *, n_head, d_k, d_v, dim_head, temperature):
    B, L_msg, d_model = github_message.shape
    _, L_diff, _ = github_diff.shape
    _, L_cve, _ = cve_embeddings.shape
    d_output = params["mha_message"]["wo"].shape[1]

    n_down = 7
    assert L_msg == (1 << n_down), "7 halving down-sample stages need seq_len 128"
    assert L_cve == 1, "reference squeezes the CVE sequence axis"
    assert d_k == d_v == dim_head, "shared fused [K|V] weight layout"
    assert d_output == d_model, "residual + chained down-sampling require it"

    wq_all, wkv_all, wo_all, g_all, b_all = _pack_params(
        params, d_model, n_head, d_k, d_v)
    W = n_head * (d_k + d_v)

    # rough advisory cost for XLA's scheduler
    def _mha_cost(lq, lkv):
        fl = (2 * (lq + lkv) * d_model * W
              + 4 * n_head * lq * lkv * W
              + 2 * lq * W * d_output)
        return fl, n_head * lq * lkv
    fl, tr = 0, 0
    for lq, lkv in ((L_msg, L_msg), (L_diff, L_diff),
                    (L_msg, L_diff), (L_cve, L_cve)):
        f, t = _mha_cost(lq, lkv)
        fl += f
        tr += t
    l = L_msg
    for _ in range(n_down):
        f, t = _mha_cost(l // 2, l)
        fl += f + 2 * (l // 2) * l * d_model
        tr += t
        l //= 2
    bytes_accessed = int(sum(int(x.size) * x.dtype.itemsize for x in
                             (cve_embeddings, github_message, github_diff,
                              wq_all, wkv_all, wo_all, g_all, b_all))
                         + 2 * B * d_output * 4)
    cost = pl.CostEstimate(flops=int(B * fl), transcendentals=int(B * tr),
                           bytes_accessed=bytes_accessed)

    kernel = functools.partial(_branch_kernel, n_head=n_head, d_k=d_k, d_v=d_v,
                               n_down=n_down)
    batch_blk = lambda b: (b, 0, 0)
    whole = lambda b: (0, 0, 0)

    pooled_gh, pooled_cve = pl.pallas_call(
        kernel,
        out_shape=(jax.ShapeDtypeStruct((B, 1, d_output), jnp.float32),
                   jax.ShapeDtypeStruct((B, 1, d_output), jnp.float32)),
        grid_spec=pltpu.PrefetchScalarGridSpec(
            num_scalar_prefetch=0,
            grid=(B,),
            in_specs=[pl.BlockSpec((1, L_msg, d_model), batch_blk),
                      pl.BlockSpec((1, L_diff, d_model), batch_blk),
                      pl.BlockSpec((1, L_cve, d_model), batch_blk),
                      pl.BlockSpec((5, d_model, W), whole),
                      pl.BlockSpec((5, d_model, W), whole),
                      pl.BlockSpec((5, W, d_output), whole),
                      pl.BlockSpec((5, 1, d_output), whole),
                      pl.BlockSpec((5, 1, d_output), whole)],
            out_specs=[pl.BlockSpec((1, 1, d_output), batch_blk),
                       pl.BlockSpec((1, 1, d_output), batch_blk)]),
        compiler_params=pltpu.CompilerParams(
            dimension_semantics=("parallel",)),
        cost_estimate=cost,
    )(github_message, github_diff, cve_embeddings,
      wq_all, wkv_all, wo_all, g_all, b_all)

    loss = pl.pallas_call(
        functools.partial(_clip_loss_kernel, temperature=temperature),
        out_shape=jax.ShapeDtypeStruct((1, 1), jnp.float32),
        in_specs=[pl.BlockSpec(memory_space=pltpu.MemorySpace.VMEM),
                  pl.BlockSpec(memory_space=pltpu.MemorySpace.VMEM)],
        out_specs=pl.BlockSpec(memory_space=pltpu.MemorySpace.VMEM),
    )(pooled_gh, pooled_cve)

    # PyTorch return order: (loss, pooled_cve_embeddings, pooled_github_embeddings)
    return loss[0, 0], pooled_cve[:, 0, :], pooled_gh[:, 0, :]


# ---------------------------------------------------------------------------
if __name__ == "__main__":
    # model hyper-params (small, consistent with the module __init__ signature)
    n_head, d_model, d_k, d_v, dim_head, d_output = 2, 32, 16, 16, 16, 32
    temperature = 0.7
    B, L_msg, L_diff, L_cve = 2, 128, 64, 1   # 128 -> 7x down-sample -> 1

    root = jax.random.PRNGKey(0)
    k_param, k_cve, k_msg, k_diff = jax.random.split(root, 4)

    params = init_combined_model(
        k_param, n_head=n_head, d_model=d_model, d_k=d_k, d_v=d_v,
        dim_head=dim_head, d_output=d_output)

    cve_embeddings = jax.random.normal(k_cve, (B, L_cve, d_model), jnp.float32)
    github_message = jax.random.normal(k_msg, (B, L_msg, d_model), jnp.float32)
    github_diff = jax.random.normal(k_diff, (B, L_diff, d_model), jnp.float32)

    fwd = jax.jit(functools.partial(
        combined_model_forward, n_head=n_head, d_k=d_k, d_v=d_v,
        dim_head=dim_head, temperature=temperature))

    loss, pooled_cve, pooled_github = fwd(
        params, cve_embeddings, github_message, github_diff)
    jax.block_until_ready((loss, pooled_cve, pooled_github))

    assert pooled_cve.shape == (B, d_output)
    assert pooled_github.shape == (B, d_output)
    assert loss.shape == ()
    assert bool(jnp.isfinite(loss))
    print("KERNEL_OK")
</pallas_src>

<mosaic_0001>
module attributes {stable_mosaic.version = 11 : i64} {
  func.func @_clip_loss_kernel(%arg0: memref<2x1x32xf32, #tpu.memory_space<vmem>>, %arg1: memref<2x1x32xf32, #tpu.memory_space<vmem>>, %arg2: memref<1x1xf32, #tpu.memory_space<vmem>>) attributes {dimension_semantics = [], scalar_prefetch = 0 : i64, scratch_operands = 0 : i64, tpu.core_type = #tpu.core_type<tc>} {
    %c0 = arith.constant 0 : index
    %c0_0 = arith.constant 0 : index
    %c0_1 = arith.constant 0 : index
    %0 = vector.load %arg0[%c0, %c0_0, %c0_1] : memref<2x1x32xf32, #tpu.memory_space<vmem>>, vector<2x1x32xf32>
    %1 = vector.shape_cast %0 : vector<2x1x32xf32> to vector<2x32xf32>
    %c0_2 = arith.constant 0 : index
    %c0_3 = arith.constant 0 : index
    %c0_4 = arith.constant 0 : index
    %2 = vector.load %arg1[%c0_2, %c0_3, %c0_4] : memref<2x1x32xf32, #tpu.memory_space<vmem>>, vector<2x1x32xf32>
    %3 = vector.shape_cast %2 : vector<2x1x32xf32> to vector<2x32xf32>
    %4 = arith.mulf %1, %1 : vector<2x32xf32>
    %cst = arith.constant dense<0.000000e+00> : vector<2xf32>
    %5 = vector.multi_reduction <add>, %4, %cst [1] : vector<2x32xf32> to vector<2xf32>
    %6 = vector.shape_cast %5 : vector<2xf32> to vector<2x1xf32>
    %7 = math.sqrt %6 : vector<2x1xf32>
    %cst_5 = arith.constant 9.99999996E-13 : f32
    %8 = vector.broadcast %cst_5 : f32 to vector<2x1xf32>
    %9 = arith.maximumf %7, %8 : vector<2x1xf32>
    %10 = vector.broadcast %9 : vector<2x1xf32> to vector<2x32xf32>
    %11 = arith.divf %1, %10 : vector<2x32xf32>
    %12 = arith.mulf %3, %3 : vector<2x32xf32>
    %cst_6 = arith.constant dense<0.000000e+00> : vector<2xf32>
    %13 = vector.multi_reduction <add>, %12, %cst_6 [1] : vector<2x32xf32> to vector<2xf32>
    %14 = vector.shape_cast %13 : vector<2xf32> to vector<2x1xf32>
    %15 = math.sqrt %14 : vector<2x1xf32>
    %cst_7 = arith.constant 9.99999996E-13 : f32
    %16 = vector.broadcast %cst_7 : f32 to vector<2x1xf32>
    %17 = arith.maximumf %15, %16 : vector<2x1xf32>
    %18 = vector.broadcast %17 : vector<2x1xf32> to vector<2x32xf32>
    %19 = arith.divf %3, %18 : vector<2x32xf32>
    %cst_8 = arith.constant dense<0.000000e+00> : vector<2x2xf32>
    %20 = tpu.matmul %19, %11, %cst_8 {dimension_numbers = #tpu.dot_dimension_numbers<[1], [1], [0], [0], [0, 0, 1, 0], [], []>} : vector<2x32xf32>, vector<2x32xf32>, vector<2x2xf32> -> vector<2x2xf32>
    %cst_9 = arith.constant 1.42857146 : f32
    %21 = vector.broadcast %cst_9 : f32 to vector<2x2xf32>
    %22 = arith.mulf %20, %21 : vector<2x2xf32>
    %cst_10 = arith.constant dense<0.000000e+00> : vector<2x2xf32>
    %23 = tpu.matmul %11, %11, %cst_10 {dimension_numbers = #tpu.dot_dimension_numbers<[1], [1], [0], [0], [0, 0, 1, 0], [], []>} : vector<2x32xf32>, vector<2x32xf32>, vector<2x2xf32> -> vector<2x2xf32>
    %cst_11 = arith.constant dense<0.000000e+00> : vector<2x2xf32>
    %24 = tpu.matmul %19, %19, %cst_11 {dimension_numbers = #tpu.dot_dimension_numbers<[1], [1], [0], [0], [0, 0, 1, 0], [], []>} : vector<2x32xf32>, vector<2x32xf32>, vector<2x2xf32> -> vector<2x2xf32>
    %25 = arith.addf %23, %24 : vector<2x2xf32>
    %cst_12 = arith.constant 3.500000e-01 : f32
    %26 = vector.broadcast %cst_12 : f32 to vector<2x2xf32>
    %27 = arith.mulf %25, %26 : vector<2x2xf32>
    %cst_13 = arith.constant dense<0xFF800000> : vector<2xf32>
    %28 = vector.multi_reduction <maximumf>, %27, %cst_13 [1] : vector<2x2xf32> to vector<2xf32>
    %29 = vector.shape_cast %28 : vector<2xf32> to vector<2x1xf32>
    %30 = vector.broadcast %29 : vector<2x1xf32> to vector<2x2xf32>
    %31 = arith.subf %27, %30 : vector<2x2xf32>
    %32 = math.exp %31 : vector<2x2xf32>
    %cst_14 = arith.constant dense<0.000000e+00> : vector<2xf32>
    %33 = vector.multi_reduction <add>, %32, %cst_14 [1] : vector<2x2xf32> to vector<2xf32>
    %34 = vector.shape_cast %33 : vector<2xf32> to vector<2x1xf32>
    %35 = vector.broadcast %34 : vector<2x1xf32> to vector<2x2xf32>
    %36 = arith.divf %32, %35 : vector<2x2xf32>
    %cst_15 = arith.constant dense<0xFF800000> : vector<2xf32>
    %37 = vector.multi_reduction <maximumf>, %22, %cst_15 [1] : vector<2x2xf32> to vector<2xf32>
    %38 = vector.shape_cast %37 : vector<2xf32> to vector<2x1xf32>
    %39 = vector.broadcast %38 : vector<2x1xf32> to vector<2x2xf32>
    %40 = arith.subf %22, %39 : vector<2x2xf32>
    %41 = math.exp %40 : vector<2x2xf32>
    %cst_16 = arith.constant dense<0.000000e+00> : vector<2xf32>
    %42 = vector.multi_reduction <add>, %41, %cst_16 [1] : vector<2x2xf32> to vector<2xf32>
    %43 = vector.shape_cast %42 : vector<2xf32> to vector<2x1xf32>
    %44 = math.log %43 : vector<2x1xf32>
    %45 = vector.broadcast %44 : vector<2x1xf32> to vector<2x2xf32>
    %46 = arith.subf %40, %45 : vector<2x2xf32>
    %cst_17 = arith.constant dense<0xFF800000> : vector<2xf32>
    %47 = vector.multi_reduction <maximumf>, %22, %cst_17 [0] : vector<2x2xf32> to vector<2xf32>
    %48 = vector.shape_cast %47 : vector<2xf32> to vector<1x2xf32>
    %49 = vector.broadcast %48 : vector<1x2xf32> to vector<2x2xf32>
    %50 = arith.subf %22, %49 : vector<2x2xf32>
    %51 = math.exp %50 : vector<2x2xf32>
    %cst_18 = arith.constant dense<0.000000e+00> : vector<2xf32>
    %52 = vector.multi_reduction <add>, %51, %cst_18 [0] : vector<2x2xf32> to vector<2xf32>
    %53 = vector.shape_cast %52 : vector<2xf32> to vector<1x2xf32>
    %54 = math.log %53 : vector<1x2xf32>
    %55 = vector.broadcast %54 : vector<1x2xf32> to vector<2x2xf32>
    %56 = arith.subf %50, %55 : vector<2x2xf32>
    %cst_19 = arith.constant 0.000000e+00 : f32
    %57 = vector.broadcast %cst_19 : f32 to vector<2x2xf32>
    %58 = arith.subf %57, %36 : vector<2x2xf32>
    %59 = arith.mulf %58, %46 : vector<2x2xf32>
    %cst_20 = arith.constant dense<0.000000e+00> : vector<2xf32>
    %60 = vector.multi_reduction <add>, %59, %cst_20 [1] : vector<2x2xf32> to vector<2xf32>
    %61 = vector.shape_cast %60 : vector<2xf32> to vector<2x1xf32>
    %cst_21 = arith.constant 0.000000e+00 : f32
    %62 = vector.broadcast %cst_21 : f32 to vector<2x2xf32>
    %63 = arith.subf %62, %36 : vector<2x2xf32>
    %64 = arith.mulf %63, %56 : vector<2x2xf32>
    %cst_22 = arith.constant dense<0.000000e+00> : vector<2xf32>
    %65 = vector.multi_reduction <add>, %64, %cst_22 [0] : vector<2x2xf32> to vector<2xf32>
    %66 = vector.shape_cast %65 : vector<2xf32> to vector<1x2xf32>
    %67 = vector.broadcast %61 : vector<2x1xf32> to vector<2x2xf32>
    %68 = vector.broadcast %66 : vector<1x2xf32> to vector<2x2xf32>
    %69 = arith.addf %67, %68 : vector<2x2xf32>
    %cst_23 = arith.constant 5.000000e-01 : f32
    %70 = vector.broadcast %cst_23 : f32 to vector<2x2xf32>
    %71 = arith.mulf %69, %70 : vector<2x2xf32>
    %72 = vector.shape_cast %71 : vector<2x2xf32> to vector<1x2x2xf32>
    %cst_24 = arith.constant dense<0.000000e+00> : vector<1xf32>
    %73 = vector.multi_reduction <add>, %72, %cst_24 [1, 2] : vector<1x2x2xf32> to vector<1xf32>
    %74 = vector.shape_cast %73 : vector<1xf32> to vector<1x1x1xf32>
    %75 = vector.extract %74[0, 0, 0] : f32 from vector<1x1x1xf32>
    %76 = vector.broadcast %75 : f32 to vector<1x1xf32>
    %cst_25 = arith.constant 4.000000e+00 : f32
    %77 = vector.broadcast %cst_25 : f32 to vector<1x1xf32>
    %78 = arith.divf %76, %77 : vector<1x1xf32>
    %c0_26 = arith.constant 0 : index
    %c0_27 = arith.constant 0 : index
    %79 = vector.load %arg2[%c0_26, %c0_27] : memref<1x1xf32, #tpu.memory_space<vmem>>, vector<1x1xf32>
    tpu.vector_store %arg2[%c0_26, %c0_27], %78 {strides = array<i32>} : memref<1x1xf32, #tpu.memory_space<vmem>>, vector<1x1xf32>,
    return
  }
}

module attributes {stable_mosaic.version = 11 : i64} {
  func.func @_branch_kernel(%arg0: i32, %arg1: memref<1x128x32xf32, #tpu.memory_space<vmem>>, %arg2: memref<1x64x32xf32, #tpu.memory_space<vmem>>, %arg3: memref<1x1x32xf32, #tpu.memory_space<vmem>>, %arg4: memref<5x32x64xbf16, #tpu.memory_space<vmem>>, %arg5: memref<5x32x64xbf16, #tpu.memory_space<vmem>>, %arg6: memref<5x64x32xbf16, #tpu.memory_space<vmem>>, %arg7: memref<5x1x32xf32, #tpu.memory_space<vmem>>, %arg8: memref<5x1x32xf32, #tpu.memory_space<vmem>>, %arg9: memref<1x1x32xf32, #tpu.memory_space<vmem>>, %arg10: memref<1x1x32xf32, #tpu.memory_space<vmem>>) attributes {dimension_semantics = [#tpu.dimension_semantics<parallel>], iteration_bounds = array<i64: 2>, scalar_prefetch = 0 : i64, scratch_operands = 0 : i64, tpu.core_type = #tpu.core_type<tc>, window_params = [{transform_indices = @transform_0, window_bounds = array<i64: 1, 128, 32>}, {transform_indices = @transform_1, window_bounds = array<i64: 1, 64, 32>}, {transform_indices = @transform_2, window_bounds = array<i64: 1, 1, 32>}, {pipeline_mode = #tpu.pipeline_mode<synchronous>, transform_indices = @transform_3, window_bounds = array<i64: 5, 32, 64>}, {pipeline_mode = #tpu.pipeline_mode<synchronous>, transform_indices = @transform_4, window_bounds = array<i64: 5, 32, 64>}, {pipeline_mode = #tpu.pipeline_mode<synchronous>, transform_indices = @transform_5, window_bounds = array<i64: 5, 64, 32>}, {pipeline_mode = #tpu.pipeline_mode<synchronous>, transform_indices = @transform_6, window_bounds = array<i64: 5, 1, 32>}, {pipeline_mode = #tpu.pipeline_mode<synchronous>, transform_indices = @transform_7, window_bounds = array<i64: 5, 1, 32>}, {transform_indices = @transform_8, window_bounds = array<i64: 1, 1, 32>}, {transform_indices = @transform_9, window_bounds = array<i64: 1, 1, 32>}]} {
    %0 = tpu.iota {dimensions = array<i32: 1>} : vector<1x64xi32>
    %c0_i32 = arith.constant 0 : i32
    %1 = vector.broadcast %c0_i32 : i32 to vector<1x64xi32>
    %2 = arith.cmpi sge, %0, %1 : vector<1x64xi32>
    %c16_i32 = arith.constant 16 : i32
    %3 = vector.broadcast %c16_i32 : i32 to vector<1x64xi32>
    %4 = arith.cmpi slt, %0, %3 : vector<1x64xi32>
    %5 = arith.andi %2, %4 : vector<1x64xi1>
    %cst = arith.constant 2.500000e-01 : f32
    %cst_0 = arith.constant 0.000000e+00 : f32
    %6 = vector.broadcast %cst : f32 to vector<1x64xf32>
    %7 = vector.broadcast %cst_0 : f32 to vector<1x64xf32>
    %8 = arith.select %5, %6, %7 : vector<1x64xi1>, vector<1x64xf32>
    %c16_i32_1 = arith.constant 16 : i32
    %9 = vector.broadcast %c16_i32_1 : i32 to vector<1x64xi32>
    %10 = arith.cmpi sge, %0, %9 : vector<1x64xi32>
    %c32_i32 = arith.constant 32 : i32
    %11 = vector.broadcast %c32_i32 : i32 to vector<1x64xi32>
    %12 = arith.cmpi slt, %0, %11 : vector<1x64xi32>
    %13 = arith.andi %10, %12 : vector<1x64xi1>
    %cst_2 = arith.constant 2.500000e-01 : f32
    %cst_3 = arith.constant 0.000000e+00 : f32
    %14 = vector.broadcast %cst_2 : f32 to vector<1x64xf32>
    %15 = vector.broadcast %cst_3 : f32 to vector<1x64xf32>
    %16 = arith.select %13, %14, %15 : vector<1x64xi1>, vector<1x64xf32>
    %c32_i32_4 = arith.constant 32 : i32
    %17 = vector.broadcast %c32_i32_4 : i32 to vector<1x64xi32>
    %18 = arith.cmpi sge, %0, %17 : vector<1x64xi32>
    %c48_i32 = arith.constant 48 : i32
    %19 = vector.broadcast %c48_i32 : i32 to vector<1x64xi32>
    %20 = arith.cmpi slt, %0, %19 : vector<1x64xi32>
    %21 = arith.andi %18, %20 : vector<1x64xi1>
    %cst_5 = arith.constant 1.000000e+00 : f32
    %cst_6 = arith.constant 0.000000e+00 : f32
    %22 = vector.broadcast %cst_5 : f32 to vector<1x64xf32>
    %23 = vector.broadcast %cst_6 : f32 to vector<1x64xf32>
    %24 = arith.select %21, %22, %23 : vector<1x64xi1>, vector<1x64xf32>
    %c48_i32_7 = arith.constant 48 : i32
    %25 = vector.broadcast %c48_i32_7 : i32 to vector<1x64xi32>
    %26 = arith.cmpi sge, %0, %25 : vector<1x64xi32>
    %c64_i32 = arith.constant 64 : i32
    %27 = vector.broadcast %c64_i32 : i32 to vector<1x64xi32>
    %28 = arith.cmpi slt, %0, %27 : vector<1x64xi32>
    %29 = arith.andi %26, %28 : vector<1x64xi1>
    %cst_8 = arith.constant 1.000000e+00 : f32
    %cst_9 = arith.constant 0.000000e+00 : f32
    %30 = vector.broadcast %cst_8 : f32 to vector<1x64xf32>
    %31 = vector.broadcast %cst_9 : f32 to vector<1x64xf32>
    %32 = arith.select %29, %30, %31 : vector<1x64xi1>, vector<1x64xf32>
    %c0 = arith.constant 0 : index
    %c0_10 = arith.constant 0 : index
    %c0_11 = arith.constant 0 : index
    %33 = vector.load %arg1[%c0, %c0_10, %c0_11] : memref<1x128x32xf32, #tpu.memory_space<vmem>>, vector<1x128x32xf32>
    %34 = vector.shape_cast %33 : vector<1x128x32xf32> to vector<128x32xf32>
    %c0_12 = arith.constant 0 : index
    %c0_13 = arith.constant 0 : index
    %c0_14 = arith.constant 0 : index
    %35 = vector.load %arg2[%c0_12, %c0_13, %c0_14] : memref<1x64x32xf32, #tpu.memory_space<vmem>>, vector<1x64x32xf32>
    %36 = vector.shape_cast %35 : vector<1x64x32xf32> to vector<64x32xf32>
    %c0_15 = arith.constant 0 : index
    %c0_16 = arith.constant 0 : index
    %c0_17 = arith.constant 0 : index
    %37 = vector.load %arg3[%c0_15, %c0_16, %c0_17] : memref<1x1x32xf32, #tpu.memory_space<vmem>>, vector<1x1x32xf32>
    %38 = vector.shape_cast %37 : vector<1x1x32xf32> to vector<1x32xf32>
    %39 = arith.truncf %34 : vector<128x32xf32> to vector<128x32xbf16>
    %c0_18 = arith.constant 0 : index
    %c0_19 = arith.constant 0 : index
    %c0_20 = arith.constant 0 : index
    %40 = vector.load %arg4[%c0_18, %c0_19, %c0_20] : memref<5x32x64xbf16, #tpu.memory_space<vmem>>, vector<1x32x64xbf16>
    %41 = vector.shape_cast %40 : vector<1x32x64xbf16> to vector<32x64xbf16>
    %cst_21 = arith.constant dense<0.000000e+00> : vector<128x64xf32>
    %42 = tpu.matmul %39, %41, %cst_21 {dimension_numbers = #tpu.dot_dimension_numbers<[1], [0], [0], [1], [0, 0, 1, 1], [], []>} : vector<128x32xbf16>, vector<32x64xbf16>, vector<128x64xf32> -> vector<128x64xf32>
    %43 = arith.truncf %34 : vector<128x32xf32> to vector<128x32xbf16>
    %c0_22 = arith.constant 0 : index
    %c0_23 = arith.constant 0 : index
    %c0_24 = arith.constant 0 : index
    %44 = vector.load %arg5[%c0_22, %c0_23, %c0_24] : memref<5x32x64xbf16, #tpu.memory_space<vmem>>, vector<1x32x64xbf16>
    %45 = vector.shape_cast %44 : vector<1x32x64xbf16> to vector<32x64xbf16>
    %cst_25 = arith.constant dense<0.000000e+00> : vector<128x64xf32>
    %46 = tpu.matmul %43, %45, %cst_25 {dimension_numbers = #tpu.dot_dimension_numbers<[1], [0], [0], [1], [0, 0, 1, 1], [], []>} : vector<128x32xbf16>, vector<32x64xbf16>, vector<128x64xf32> -> vector<128x64xf32>
    %47 = arith.truncf %46 : vector<128x64xf32> to vector<128x64xbf16>
    %cst_26 = arith.constant 0.000000e+00 : f32
    %48 = vector.broadcast %cst_26 : f32 to vector<128x64xf32>
    %49 = vector.broadcast %8 : vector<1x64xf32> to vector<128x64xf32>
    %50 = arith.mulf %42, %49 : vector<128x64xf32>
    %51 = arith.truncf %50 : vector<128x64xf32> to vector<128x64xbf16>
    %cst_27 = arith.constant dense<0.000000e+00> : vector<128x128xf32>
    %52 = tpu.matmul %51, %47, %cst_27 {dimension_numbers = #tpu.dot_dimension_numbers<[1], [1], [0], [0], [0, 0, 1, 0], [], []>} : vector<128x64xbf16>, vector<128x64xbf16>, vector<128x128xf32> -> vector<128x128xf32>
    %cst_28 = arith.constant dense<0xFF800000> : vector<128xf32>
    %53 = vector.multi_reduction <maximumf>, %52, %cst_28 [1] : vector<128x128xf32> to vector<128xf32>
    %54 = vector.shape_cast %53 : vector<128xf32> to vector<128x1xf32>
    %55 = vector.broadcast %54 : vector<128x1xf32> to vector<128x128xf32>
    %56 = arith.subf %52, %55 : vector<128x128xf32>
    %57 = math.exp %56 : vector<128x128xf32>
    %cst_29 = arith.constant dense<0.000000e+00> : vector<128xf32>
    %58 = vector.multi_reduction <add>, %57, %cst_29 [1] : vector<128x128xf32> to vector<128xf32>
    %59 = vector.shape_cast %58 : vector<128xf32> to vector<128x1xf32>
    %60 = tpu.reciprocal %59 {approx = true} : vector<128x1xf32> -> vector<128x1xf32>
    %61 = vector.broadcast %60 : vector<128x1xf32> to vector<128x128xf32>
    %62 = arith.mulf %57, %61 : vector<128x128xf32>
    %63 = arith.truncf %62 : vector<128x128xf32> to vector<128x128xbf16>
    %cst_30 = arith.constant dense<0.000000e+00> : vector<128x64xf32>
    %64 = tpu.matmul %63, %47, %cst_30 {dimension_numbers = #tpu.dot_dimension_numbers<[1], [0], [0], [1], [0, 0, 1, 1], [], []>} : vector<128x128xbf16>, vector<128x64xbf16>, vector<128x64xf32> -> vector<128x64xf32>
    %65 = vector.broadcast %24 : vector<1x64xf32> to vector<128x64xf32>
    %66 = arith.mulf %64, %65 : vector<128x64xf32>
    %67 = arith.addf %48, %66 : vector<128x64xf32>
    %68 = vector.broadcast %16 : vector<1x64xf32> to vector<128x64xf32>
    %69 = arith.mulf %42, %68 : vector<128x64xf32>
    %70 = arith.truncf %69 : vector<128x64xf32> to vector<128x64xbf16>
    %cst_31 = arith.constant dense<0.000000e+00> : vector<128x128xf32>
    %71 = tpu.matmul %70, %47, %cst_31 {dimension_numbers = #tpu.dot_dimension_numbers<[1], [1], [0], [0], [0, 0, 1, 0], [], []>} : vector<128x64xbf16>, vector<128x64xbf16>, vector<128x128xf32> -> vector<128x128xf32>
    %cst_32 = arith.constant dense<0xFF800000> : vector<128xf32>
    %72 = vector.multi_reduction <maximumf>, %71, %cst_32 [1] : vector<128x128xf32> to vector<128xf32>
    %73 = vector.shape_cast %72 : vector<128xf32> to vector<128x1xf32>
    %74 = vector.broadcast %73 : vector<128x1xf32> to vector<128x128xf32>
    %75 = arith.subf %71, %74 : vector<128x128xf32>
    %76 = math.exp %75 : vector<128x128xf32>
    %cst_33 = arith.constant dense<0.000000e+00> : vector<128xf32>
    %77 = vector.multi_reduction <add>, %76, %cst_33 [1] : vector<128x128xf32> to vector<128xf32>
    %78 = vector.shape_cast %77 : vector<128xf32> to vector<128x1xf32>
    %79 = tpu.reciprocal %78 {approx = true} : vector<128x1xf32> -> vector<128x1xf32>
    %80 = vector.broadcast %79 : vector<128x1xf32> to vector<128x128xf32>
    %81 = arith.mulf %76, %80 : vector<128x128xf32>
    %82 = arith.truncf %81 : vector<128x128xf32> to vector<128x128xbf16>
    %cst_34 = arith.constant dense<0.000000e+00> : vector<128x64xf32>
    %83 = tpu.matmul %82, %47, %cst_34 {dimension_numbers = #tpu.dot_dimension_numbers<[1], [0], [0], [1], [0, 0, 1, 1], [], []>} : vector<128x128xbf16>, vector<128x64xbf16>, vector<128x64xf32> -> vector<128x64xf32>
    %84 = vector.broadcast %32 : vector<1x64xf32> to vector<128x64xf32>
    %85 = arith.mulf %83, %84 : vector<128x64xf32>
    %86 = arith.addf %67, %85 : vector<128x64xf32>
    %87 = arith.truncf %86 : vector<128x64xf32> to vector<128x64xbf16>
    %c0_35 = arith.constant 0 : index
    %c0_36 = arith.constant 0 : index
    %c0_37 = arith.constant 0 : index
    %88 = vector.load %arg6[%c0_35, %c0_36, %c0_37] : memref<5x64x32xbf16, #tpu.memory_space<vmem>>, vector<1x64x32xbf16>
    %89 = vector.shape_cast %88 : vector<1x64x32xbf16> to vector<64x32xbf16>
    %cst_38 = arith.constant dense<0.000000e+00> : vector<128x32xf32>
    %90 = tpu.matmul %87, %89, %cst_38 {dimension_numbers = #tpu.dot_dimension_numbers<[1], [0], [0], [1], [0, 0, 1, 1], [], []>} : vector<128x64xbf16>, vector<64x32xbf16>, vector<128x32xf32> -> vector<128x32xf32>
    %91 = arith.addf %90, %34 : vector<128x32xf32>
    %cst_39 = arith.constant dense<0.000000e+00> : vector<128xf32>
    %92 = vector.multi_reduction <add>, %91, %cst_39 [1] : vector<128x32xf32> to vector<128xf32>
    %93 = vector.shape_cast %92 : vector<128xf32> to vector<128x1xf32>
    %cst_40 = arith.constant 3.200000e+01 : f32
    %94 = vector.broadcast %cst_40 : f32 to vector<128x1xf32>
    %95 = arith.divf %93, %94 : vector<128x1xf32>
    %96 = vector.broadcast %95 : vector<128x1xf32> to vector<128x32xf32>
    %97 = arith.subf %91, %96 : vector<128x32xf32>
    %98 = vector.broadcast %95 : vector<128x1xf32> to vector<128x32xf32>
    %99 = arith.subf %91, %98 : vector<128x32xf32>
    %100 = arith.mulf %97, %99 : vector<128x32xf32>
    %cst_41 = arith.constant dense<0.000000e+00> : vector<128xf32>
    %101 = vector.multi_reduction <add>, %100, %cst_41 [1] : vector<128x32xf32> to vector<128xf32>
    %102 = vector.shape_cast %101 : vector<128xf32> to vector<128x1xf32>
    %cst_42 = arith.constant 3.200000e+01 : f32
    %103 = vector.broadcast %cst_42 : f32 to vector<128x1xf32>
    %104 = arith.divf %102, %103 : vector<128x1xf32>
    %105 = vector.broadcast %95 : vector<128x1xf32> to vector<128x32xf32>
    %106 = arith.subf %91, %105 : vector<128x32xf32>
    %cst_43 = arith.constant 9.99999974E-6 : f32
    %107 = vector.broadcast %cst_43 : f32 to vector<128x1xf32>
    %108 = arith.addf %104, %107 : vector<128x1xf32>
    %109 = math.rsqrt %108 : vector<128x1xf32>
    %110 = vector.broadcast %109 : vector<128x1xf32> to vector<128x32xf32>
    %111 = arith.mulf %106, %110 : vector<128x32xf32>
    %c0_44 = arith.constant 0 : index
    %c0_45 = arith.constant 0 : index
    %c0_46 = arith.constant 0 : index
    %112 = vector.load %arg7[%c0_44, %c0_45, %c0_46] : memref<5x1x32xf32, #tpu.memory_space<vmem>>, vector<1x1x32xf32>
    %113 = vector.shape_cast %112 : vector<1x1x32xf32> to vector<1x32xf32>
    %114 = vector.broadcast %113 : vector<1x32xf32> to vector<128x32xf32>
    %115 = arith.mulf %111, %114 : vector<128x32xf32>
    %c0_47 = arith.constant 0 : index
    %c0_48 = arith.constant 0 : index
    %c0_49 = arith.constant 0 : index
    %116 = vector.load %arg8[%c0_47, %c0_48, %c0_49] : memref<5x1x32xf32, #tpu.memory_space<vmem>>, vector<1x1x32xf32>
    %117 = vector.shape_cast %116 : vector<1x1x32xf32> to vector<1x32xf32>
    %118 = vector.broadcast %117 : vector<1x32xf32> to vector<128x32xf32>
    %119 = arith.addf %115, %118 : vector<128x32xf32>
    %120 = arith.truncf %36 : vector<64x32xf32> to vector<64x32xbf16>
    %c1 = arith.constant 1 : index
    %c0_50 = arith.constant 0 : index
    %c0_51 = arith.constant 0 : index
    %121 = vector.load %arg4[%c1, %c0_50, %c0_51] : memref<5x32x64xbf16, #tpu.memory_space<vmem>>, vector<1x32x64xbf16>
    %122 = vector.shape_cast %121 : vector<1x32x64xbf16> to vector<32x64xbf16>
    %cst_52 = arith.constant dense<0.000000e+00> : vector<64x64xf32>
    %123 = tpu.matmul %120, %122, %cst_52 {dimension_numbers = #tpu.dot_dimension_numbers<[1], [0], [0], [1], [0, 0, 1, 1], [], []>} : vector<64x32xbf16>, vector<32x64xbf16>, vector<64x64xf32> -> vector<64x64xf32>
    %124 = arith.truncf %36 : vector<64x32xf32> to vector<64x32xbf16>
    %c1_53 = arith.constant 1 : index
    %c0_54 = arith.constant 0 : index
    %c0_55 = arith.constant 0 : index
    %125 = vector.load %arg5[%c1_53, %c0_54, %c0_55] : memref<5x32x64xbf16, #tpu.memory_space<vmem>>, vector<1x32x64xbf16>
    %126 = vector.shape_cast %125 : vector<1x32x64xbf16> to vector<32x64xbf16>
    %cst_56 = arith.constant dense<0.000000e+00> : vector<64x64xf32>
    %127 = tpu.matmul %124, %126, %cst_56 {dimension_numbers = #tpu.dot_dimension_numbers<[1], [0], [0], [1], [0, 0, 1, 1], [], []>} : vector<64x32xbf16>, vector<32x64xbf16>, vector<64x64xf32> -> vector<64x64xf32>
    %128 = arith.truncf %127 : vector<64x64xf32> to vector<64x64xbf16>
    %cst_57 = arith.constant 0.000000e+00 : f32
    %129 = vector.broadcast %cst_57 : f32 to vector<64x64xf32>
    %130 = vector.broadcast %8 : vector<1x64xf32> to vector<64x64xf32>
    %131 = arith.mulf %123, %130 : vector<64x64xf32>
    %132 = arith.truncf %131 : vector<64x64xf32> to vector<64x64xbf16>
    %cst_58 = arith.constant dense<0.000000e+00> : vector<64x64xf32>
    %133 = tpu.matmul %132, %128, %cst_58 {dimension_numbers = #tpu.dot_dimension_numbers<[1], [1], [0], [0], [0, 0, 1, 0], [], []>} : vector<64x64xbf16>, vector<64x64xbf16>, vector<64x64xf32> -> vector<64x64xf32>
    %cst_59 = arith.constant dense<0xFF800000> : vector<64xf32>
    %134 = vector.multi_reduction <maximumf>, %133, %cst_59 [1] : vector<64x64xf32> to vector<64xf32>
    %135 = vector.shape_cast %134 : vector<64xf32> to vector<64x1xf32>
    %136 = vector.broadcast %135 : vector<64x1xf32> to vector<64x64xf32>
    %137 = arith.subf %133, %136 : vector<64x64xf32>
    %138 = math.exp %137 : vector<64x64xf32>
    %cst_60 = arith.constant dense<0.000000e+00> : vector<64xf32>
    %139 = vector.multi_reduction <add>, %138, %cst_60 [1] : vector<64x64xf32> to vector<64xf32>
    %140 = vector.shape_cast %139 : vector<64xf32> to vector<64x1xf32>
    %141 = tpu.reciprocal %140 {approx = true} : vector<64x1xf32> -> vector<64x1xf32>
    %142 = vector.broadcast %141 : vector<64x1xf32> to vector<64x64xf32>
    %143 = arith.mulf %138, %142 : vector<64x64xf32>
    %144 = arith.truncf %143 : vector<64x64xf32> to vector<64x64xbf16>
    %cst_61 = arith.constant dense<0.000000e+00> : vector<64x64xf32>
    %145 = tpu.matmul %144, %128, %cst_61 {dimension_numbers = #tpu.dot_dimension_numbers<[1], [0], [0], [1], [0, 0, 1, 1], [], []>} : vector<64x64xbf16>, vector<64x64xbf16>, vector<64x64xf32> -> vector<64x64xf32>
    %146 = vector.broadcast %24 : vector<1x64xf32> to vector<64x64xf32>
    %147 = arith.mulf %145, %146 : vector<64x64xf32>
    %148 = arith.addf %129, %147 : vector<64x64xf32>
    %149 = vector.broadcast %16 : vector<1x64xf32> to vector<64x64xf32>
    %150 = arith.mulf %123, %149 : vector<64x64xf32>
    %151 = arith.truncf %150 : vector<64x64xf32> to vector<64x64xbf16>
    %cst_62 = arith.constant dense<0.000000e+00> : vector<64x64xf32>
    %152 = tpu.matmul %151, %128, %cst_62 {dimension_numbers = #tpu.dot_dimension_numbers<[1], [1], [0], [0], [0, 0, 1, 0], [], []>} : vector<64x64xbf16>, vector<64x64xbf16>, vector<64x64xf32> -> vector<64x64xf32>
    %cst_63 = arith.constant dense<0xFF800000> : vector<64xf32>
    %153 = vector.multi_reduction <maximumf>, %152, %cst_63 [1] : vector<64x64xf32> to vector<64xf32>
    %154 = vector.shape_cast %153 : vector<64xf32> to vector<64x1xf32>
    %155 = vector.broadcast %154 : vector<64x1xf32> to vector<64x64xf32>
    %156 = arith.subf %152, %155 : vector<64x64xf32>
    %157 = math.exp %156 : vector<64x64xf32>
    %cst_64 = arith.constant dense<0.000000e+00> : vector<64xf32>
    %158 = vector.multi_reduction <add>, %157, %cst_64 [1] : vector<64x64xf32> to vector<64xf32>
    %159 = vector.shape_cast %158 : vector<64xf32> to vector<64x1xf32>
    %160 = tpu.reciprocal %159 {approx = true} : vector<64x1xf32> -> vector<64x1xf32>
    %161 = vector.broadcast %160 : vector<64x1xf32> to vector<64x64xf32>
    %162 = arith.mulf %157, %161 : vector<64x64xf32>
    %163 = arith.truncf %162 : vector<64x64xf32> to vector<64x64xbf16>
    %cst_65 = arith.constant dense<0.000000e+00> : vector<64x64xf32>
    %164 = tpu.matmul %163, %128, %cst_65 {dimension_numbers = #tpu.dot_dimension_numbers<[1], [0], [0], [1], [0, 0, 1, 1], [], []>} : vector<64x64xbf16>, vector<64x64xbf16>, vector<64x64xf32> -> vector<64x64xf32>
    %165 = vector.broadcast %32 : vector<1x64xf32> to vector<64x64xf32>
    %166 = arith.mulf %164, %165 : vector<64x64xf32>
    %167 = arith.addf %148, %166 : vector<64x64xf32>
    %168 = arith.truncf %167 : vector<64x64xf32> to vector<64x64xbf16>
    %c1_66 = arith.constant 1 : index
    %c0_67 = arith.constant 0 : index
    %c0_68 = arith.constant 0 : index
    %169 = vector.load %arg6[%c1_66, %c0_67, %c0_68] : memref<5x64x32xbf16, #tpu.memory_space<vmem>>, vector<1x64x32xbf16>
    %170 = vector.shape_cast %169 : vector<1x64x32xbf16> to vector<64x32xbf16>
    %cst_69 = arith.constant dense<0.000000e+00> : vector<64x32xf32>
    %171 = tpu.matmul %168, %170, %cst_69 {dimension_numbers = #tpu.dot_dimension_numbers<[1], [0], [0], [1], [0, 0, 1, 1], [], []>} : vector<64x64xbf16>, vector<64x32xbf16>, vector<64x32xf32> -> vector<64x32xf32>
    %172 = arith.addf %171, %36 : vector<64x32xf32>
    %cst_70 = arith.constant dense<0.000000e+00> : vector<64xf32>
    %173 = vector.multi_reduction <add>, %172, %cst_70 [1] : vector<64x32xf32> to vector<64xf32>
    %174 = vector.shape_cast %173 : vector<64xf32> to vector<64x1xf32>
    %cst_71 = arith.constant 3.200000e+01 : f32
    %175 = vector.broadcast %cst_71 : f32 to vector<64x1xf32>
    %176 = arith.divf %174, %175 : vector<64x1xf32>
    %177 = vector.broadcast %176 : vector<64x1xf32> to vector<64x32xf32>
    %178 = arith.subf %172, %177 : vector<64x32xf32>
    %179 = vector.broadcast %176 : vector<64x1xf32> to vector<64x32xf32>
    %180 = arith.subf %172, %179 : vector<64x32xf32>
    %181 = arith.mulf %178, %180 : vector<64x32xf32>
    %cst_72 = arith.constant dense<0.000000e+00> : vector<64xf32>
    %182 = vector.multi_reduction <add>, %181, %cst_72 [1] : vector<64x32xf32> to vector<64xf32>
    %183 = vector.shape_cast %182 : vector<64xf32> to vector<64x1xf32>
    %cst_73 = arith.constant 3.200000e+01 : f32
    %184 = vector.broadcast %cst_73 : f32 to vector<64x1xf32>
    %185 = arith.divf %183, %184 : vector<64x1xf32>
    %186 = vector.broadcast %176 : vector<64x1xf32> to vector<64x32xf32>
    %187 = arith.subf %172, %186 : vector<64x32xf32>
    %cst_74 = arith.constant 9.99999974E-6 : f32
    %188 = vector.broadcast %cst_74 : f32 to vector<64x1xf32>
    %189 = arith.addf %185, %188 : vector<64x1xf32>
    %190 = math.rsqrt %189 : vector<64x1xf32>
    %191 = vector.broadcast %190 : vector<64x1xf32> to vector<64x32xf32>
    %192 = arith.mulf %187, %191 : vector<64x32xf32>
    %c1_75 = arith.constant 1 : index
    %c0_76 = arith.constant 0 : index
    %c0_77 = arith.constant 0 : index
    %193 = vector.load %arg7[%c1_75, %c0_76, %c0_77] : memref<5x1x32xf32, #tpu.memory_space<vmem>>, vector<1x1x32xf32>
    %194 = vector.shape_cast %193 : vector<1x1x32xf32> to vector<1x32xf32>
    %195 = vector.broadcast %194 : vector<1x32xf32> to vector<64x32xf32>
    %196 = arith.mulf %192, %195 : vector<64x32xf32>
    %c1_78 = arith.constant 1 : index
    %c0_79 = arith.constant 0 : index
    %c0_80 = arith.constant 0 : index
    %197 = vector.load %arg8[%c1_78, %c0_79, %c0_80] : memref<5x1x32xf32, #tpu.memory_space<vmem>>, vector<1x1x32xf32>
    %198 = vector.shape_cast %197 : vector<1x1x32xf32> to vector<1x32xf32>
    %199 = vector.broadcast %198 : vector<1x32xf32> to vector<64x32xf32>
    %200 = arith.addf %196, %199 : vector<64x32xf32>
    %201 = arith.truncf %119 : vector<128x32xf32> to vector<128x32xbf16>
    %c2 = arith.constant 2 : index
    %c0_81 = arith.constant 0 : index
    %c0_82 = arith.constant 0 : index
    %202 = vector.load %arg4[%c2, %c0_81, %c0_82] : memref<5x32x64xbf16, #tpu.memory_space<vmem>>, vector<1x32x64xbf16>
    %203 = vector.shape_cast %202 : vector<1x32x64xbf16> to vector<32x64xbf16>
    %cst_83 = arith.constant dense<0.000000e+00> : vector<128x64xf32>
    %204 = tpu.matmul %201, %203, %cst_83 {dimension_numbers = #tpu.dot_dimension_numbers<[1], [0], [0], [1], [0, 0, 1, 1], [], []>} : vector<128x32xbf16>, vector<32x64xbf16>, vector<128x64xf32> -> vector<128x64xf32>
    %205 = arith.truncf %200 : vector<64x32xf32> to vector<64x32xbf16>
    %c2_84 = arith.constant 2 : index
    %c0_85 = arith.constant 0 : index
    %c0_86 = arith.constant 0 : index
    %206 = vector.load %arg5[%c2_84, %c0_85, %c0_86] : memref<5x32x64xbf16, #tpu.memory_space<vmem>>, vector<1x32x64xbf16>
    %207 = vector.shape_cast %206 : vector<1x32x64xbf16> to vector<32x64xbf16>
    %cst_87 = arith.constant dense<0.000000e+00> : vector<64x64xf32>
    %208 = tpu.matmul %205, %207, %cst_87 {dimension_numbers = #tpu.dot_dimension_numbers<[1], [0], [0], [1], [0, 0, 1, 1], [], []>} : vector<64x32xbf16>, vector<32x64xbf16>, vector<64x64xf32> -> vector<64x64xf32>
    %209 = arith.truncf %208 : vector<64x64xf32> to vector<64x64xbf16>
    %cst_88 = arith.constant 0.000000e+00 : f32
    %210 = vector.broadcast %cst_88 : f32 to vector<128x64xf32>
    %211 = vector.broadcast %8 : vector<1x64xf32> to vector<128x64xf32>
    %212 = arith.mulf %204, %211 : vector<128x64xf32>
    %213 = arith.truncf %212 : vector<128x64xf32> to vector<128x64xbf16>
    %cst_89 = arith.constant dense<0.000000e+00> : vector<128x64xf32>
    %214 = tpu.matmul %213, %209, %cst_89 {dimension_numbers = #tpu.dot_dimension_numbers<[1], [1], [0], [0], [0, 0, 1, 0], [], []>} : vector<128x64xbf16>, vector<64x64xbf16>, vector<128x64xf32> -> vector<128x64xf32>
    %cst_90 = arith.constant dense<0xFF800000> : vector<128xf32>
    %215 = vector.multi_reduction <maximumf>, %214, %cst_90 [1] : vector<128x64xf32> to vector<128xf32>
    %216 = vector.shape_cast %215 : vector<128xf32> to vector<128x1xf32>
    %217 = vector.broadcast %216 : vector<128x1xf32> to vector<128x64xf32>
    %218 = arith.subf %214, %217 : vector<128x64xf32>
    %219 = math.exp %218 : vector<128x64xf32>
    %cst_91 = arith.constant dense<0.000000e+00> : vector<128xf32>
    %220 = vector.multi_reduction <add>, %219, %cst_91 [1] : vector<128x64xf32> to vector<128xf32>
    %221 = vector.shape_cast %220 : vector<128xf32> to vector<128x1xf32>
    %222 = tpu.reciprocal %221 {approx = true} : vector<128x1xf32> -> vector<128x1xf32>
    %223 = vector.broadcast %222 : vector<128x1xf32> to vector<128x64xf32>
    %224 = arith.mulf %219, %223 : vector<128x64xf32>
    %225 = arith.truncf %224 : vector<128x64xf32> to vector<128x64xbf16>
    %cst_92 = arith.constant dense<0.000000e+00> : vector<128x64xf32>
    %226 = tpu.matmul %225, %209, %cst_92 {dimension_numbers = #tpu.dot_dimension_numbers<[1], [0], [0], [1], [0, 0, 1, 1], [], []>} : vector<128x64xbf16>, vector<64x64xbf16>, vector<128x64xf32> -> vector<128x64xf32>
    %227 = vector.broadcast %24 : vector<1x64xf32> to vector<128x64xf32>
    %228 = arith.mulf %226, %227 : vector<128x64xf32>
    %229 = arith.addf %210, %228 : vector<128x64xf32>
    %230 = vector.broadcast %16 : vector<1x64xf32> to vector<128x64xf32>
    %231 = arith.mulf %204, %230 : vector<128x64xf32>
    %232 = arith.truncf %231 : vector<128x64xf32> to vector<128x64xbf16>
    %cst_93 = arith.constant dense<0.000000e+00> : vector<128x64xf32>
    %233 = tpu.matmul %232, %209, %cst_93 {dimension_numbers = #tpu.dot_dimension_numbers<[1], [1], [0], [0], [0, 0, 1, 0], [], []>} : vector<128x64xbf16>, vector<64x64xbf16>, vector<128x64xf32> -> vector<128x64xf32>
    %cst_94 = arith.constant dense<0xFF800000> : vector<128xf32>
    %234 = vector.multi_reduction <maximumf>, %233, %cst_94 [1] : vector<128x64xf32> to vector<128xf32>
    %235 = vector.shape_cast %234 : vector<128xf32> to vector<128x1xf32>
    %236 = vector.broadcast %235 : vector<128x1xf32> to vector<128x64xf32>
    %237 = arith.subf %233, %236 : vector<128x64xf32>
    %238 = math.exp %237 : vector<128x64xf32>
    %cst_95 = arith.constant dense<0.000000e+00> : vector<128xf32>
    %239 = vector.multi_reduction <add>, %238, %cst_95 [1] : vector<128x64xf32> to vector<128xf32>
    %240 = vector.shape_cast %239 : vector<128xf32> to vector<128x1xf32>
    %241 = tpu.reciprocal %240 {approx = true} : vector<128x1xf32> -> vector<128x1xf32>
    %242 = vector.broadcast %241 : vector<128x1xf32> to vector<128x64xf32>
    %243 = arith.mulf %238, %242 : vector<128x64xf32>
    %244 = arith.truncf %243 : vector<128x64xf32> to vector<128x64xbf16>
    %cst_96 = arith.constant dense<0.000000e+00> : vector<128x64xf32>
    %245 = tpu.matmul %244, %209, %cst_96 {dimension_numbers = #tpu.dot_dimension_numbers<[1], [0], [0], [1], [0, 0, 1, 1], [], []>} : vector<128x64xbf16>, vector<64x64xbf16>, vector<128x64xf32> -> vector<128x64xf32>
    %246 = vector.broadcast %32 : vector<1x64xf32> to vector<128x64xf32>
    %247 = arith.mulf %245, %246 : vector<128x64xf32>
    %248 = arith.addf %229, %247 : vector<128x64xf32>
    %249 = arith.truncf %248 : vector<128x64xf32> to vector<128x64xbf16>
    %c2_97 = arith.constant 2 : index
    %c0_98 = arith.constant 0 : index
    %c0_99 = arith.constant 0 : index
    %250 = vector.load %arg6[%c2_97, %c0_98, %c0_99] : memref<5x64x32xbf16, #tpu.memory_space<vmem>>, vector<1x64x32xbf16>
    %251 = vector.shape_cast %250 : vector<1x64x32xbf16> to vector<64x32xbf16>
    %cst_100 = arith.constant dense<0.000000e+00> : vector<128x32xf32>
    %252 = tpu.matmul %249, %251, %cst_100 {dimension_numbers = #tpu.dot_dimension_numbers<[1], [0], [0], [1], [0, 0, 1, 1], [], []>} : vector<128x64xbf16>, vector<64x32xbf16>, vector<128x32xf32> -> vector<128x32xf32>
    %253 = tpu.iota {dimensions = array<i32: 0>} : vector<64x128xi32>
    %254 = tpu.iota {dimensions = array<i32: 1>} : vector<64x128xi32>
    %c2_i32 = arith.constant 2 : i32
    %255 = vector.broadcast %c2_i32 : i32 to vector<64x128xi32>
    %256 = arith.muli %255, %253 : vector<64x128xi32>
    %257 = arith.cmpi eq, %254, %256 : vector<64x128xi32>
    %c2_i32_101 = arith.constant 2 : i32
    %258 = vector.broadcast %c2_i32_101 : i32 to vector<64x128xi32>
    %259 = arith.muli %258, %253 : vector<64x128xi32>
    %c1_i32 = arith.constant 1 : i32
    %260 = vector.broadcast %c1_i32 : i32 to vector<64x128xi32>
    %261 = arith.addi %259, %260 : vector<64x128xi32>
    %262 = arith.cmpi eq, %254, %261 : vector<64x128xi32>
    %263 = arith.ori %257, %262 : vector<64x128xi1>
    %cst_102 = arith.constant 5.000000e-01 : f32
    %cst_103 = arith.constant 0.000000e+00 : f32
    %264 = vector.broadcast %cst_102 : f32 to vector<64x128xf32>
    %265 = vector.broadcast %cst_103 : f32 to vector<64x128xf32>
    %266 = arith.select %263, %264, %265 : vector<64x128xi1>, vector<64x128xf32>
    %267 = arith.truncf %266 : vector<64x128xf32> to vector<64x128xbf16>
    %268 = arith.truncf %252 : vector<128x32xf32> to vector<128x32xbf16>
    %cst_104 = arith.constant dense<0.000000e+00> : vector<64x32xf32>
    %269 = tpu.matmul %267, %268, %cst_104 {dimension_numbers = #tpu.dot_dimension_numbers<[1], [0], [0], [1], [0, 0, 1, 1], [], []>} : vector<64x128xbf16>, vector<128x32xbf16>, vector<64x32xf32> -> vector<64x32xf32>
    %270 = arith.truncf %269 : vector<64x32xf32> to vector<64x32xbf16>
    %c3 = arith.constant 3 : index
    %c0_105 = arith.constant 0 : index
    %c0_106 = arith.constant 0 : index
    %271 = vector.load %arg4[%c3, %c0_105, %c0_106] : memref<5x32x64xbf16, #tpu.memory_space<vmem>>, vector<1x32x64xbf16>
    %272 = vector.shape_cast %271 : vector<1x32x64xbf16> to vector<32x64xbf16>
    %cst_107 = arith.constant dense<0.000000e+00> : vector<64x64xf32>
    %273 = tpu.matmul %270, %272, %cst_107 {dimension_numbers = #tpu.dot_dimension_numbers<[1], [0], [0], [1], [0, 0, 1, 1], [], []>} : vector<64x32xbf16>, vector<32x64xbf16>, vector<64x64xf32> -> vector<64x64xf32>
    %274 = arith.truncf %252 : vector<128x32xf32> to vector<128x32xbf16>
    %c3_108 = arith.constant 3 : index
    %c0_109 = arith.constant 0 : index
    %c0_110 = arith.constant 0 : index
    %275 = vector.load %arg5[%c3_108, %c0_109, %c0_110] : memref<5x32x64xbf16, #tpu.memory_space<vmem>>, vector<1x32x64xbf16>
    %276 = vector.shape_cast %275 : vector<1x32x64xbf16> to vector<32x64xbf16>
    %cst_111 = arith.constant dense<0.000000e+00> : vector<128x64xf32>
    %277 = tpu.matmul %274, %276, %cst_111 {dimension_numbers = #tpu.dot_dimension_numbers<[1], [0], [0], [1], [0, 0, 1, 1], [], []>} : vector<128x32xbf16>, vector<32x64xbf16>, vector<128x64xf32> -> vector<128x64xf32>
    %278 = arith.truncf %277 : vector<128x64xf32> to vector<128x64xbf16>
    %cst_112 = arith.constant 0.000000e+00 : f32
    %279 = vector.broadcast %cst_112 : f32 to vector<64x64xf32>
    %280 = vector.broadcast %8 : vector<1x64xf32> to vector<64x64xf32>
    %281 = arith.mulf %273, %280 : vector<64x64xf32>
    %282 = arith.truncf %281 : vector<64x64xf32> to vector<64x64xbf16>
    %cst_113 = arith.constant dense<0.000000e+00> : vector<64x128xf32>
    %283 = tpu.matmul %282, %278, %cst_113 {dimension_numbers = #tpu.dot_dimension_numbers<[1], [1], [0], [0], [0, 0, 1, 0], [], []>} : vector<64x64xbf16>, vector<128x64xbf16>, vector<64x128xf32> -> vector<64x128xf32>
    %cst_114 = arith.constant dense<0xFF800000> : vector<64xf32>
    %284 = vector.multi_reduction <maximumf>, %283, %cst_114 [1] : vector<64x128xf32> to vector<64xf32>
    %285 = vector.shape_cast %284 : vector<64xf32> to vector<64x1xf32>
    %286 = vector.broadcast %285 : vector<64x1xf32> to vector<64x128xf32>
    %287 = arith.subf %283, %286 : vector<64x128xf32>
    %288 = math.exp %287 : vector<64x128xf32>
    %cst_115 = arith.constant dense<0.000000e+00> : vector<64xf32>
    %289 = vector.multi_reduction <add>, %288, %cst_115 [1] : vector<64x128xf32> to vector<64xf32>
    %290 = vector.shape_cast %289 : vector<64xf32> to vector<64x1xf32>
    %291 = tpu.reciprocal %290 {approx = true} : vector<64x1xf32> -> vector<64x1xf32>
    %292 = vector.broadcast %291 : vector<64x1xf32> to vector<64x128xf32>
    %293 = arith.mulf %288, %292 : vector<64x128xf32>
    %294 = arith.truncf %293 : vector<64x128xf32> to vector<64x128xbf16>
    %cst_116 = arith.constant dense<0.000000e+00> : vector<64x64xf32>
    %295 = tpu.matmul %294, %278, %cst_116 {dimension_numbers = #tpu.dot_dimension_numbers<[1], [0], [0], [1], [0, 0, 1, 1], [], []>} : vector<64x128xbf16>, vector<128x64xbf16>, vector<64x64xf32> -> vector<64x64xf32>
    %296 = vector.broadcast %24 : vector<1x64xf32> to vector<64x64xf32>
    %297 = arith.mulf %295, %296 : vector<64x64xf32>
    %298 = arith.addf %279, %297 : vector<64x64xf32>
    %299 = vector.broadcast %16 : vector<1x64xf32> to vector<64x64xf32>
    %300 = arith.mulf %273, %299 : vector<64x64xf32>
    %301 = arith.truncf %300 : vector<64x64xf32> to vector<64x64xbf16>
    %cst_117 = arith.constant dense<0.000000e+00> : vector<64x128xf32>
    %302 = tpu.matmul %301, %278, %cst_117 {dimension_numbers = #tpu.dot_dimension_numbers<[1], [1], [0], [0], [0, 0, 1, 0], [], []>} : vector<64x64xbf16>, vector<128x64xbf16>, vector<64x128xf32> -> vector<64x128xf32>
    %cst_118 = arith.constant dense<0xFF800000> : vector<64xf32>
    %303 = vector.multi_reduction <maximumf>, %302, %cst_118 [1] : vector<64x128xf32> to vector<64xf32>
    %304 = vector.shape_cast %303 : vector<64xf32> to vector<64x1xf32>
    %305 = vector.broadcast %304 : vector<64x1xf32> to vector<64x128xf32>
    %306 = arith.subf %302, %305 : vector<64x128xf32>
    %307 = math.exp %306 : vector<64x128xf32>
    %cst_119 = arith.constant dense<0.000000e+00> : vector<64xf32>
    %308 = vector.multi_reduction <add>, %307, %cst_119 [1] : vector<64x128xf32> to vector<64xf32>
    %309 = vector.shape_cast %308 : vector<64xf32> to vector<64x1xf32>
    %310 = tpu.reciprocal %309 {approx = true} : vector<64x1xf32> -> vector<64x1xf32>
    %311 = vector.broadcast %310 : vector<64x1xf32> to vector<64x128xf32>
    %312 = arith.mulf %307, %311 : vector<64x128xf32>
    %313 = arith.truncf %312 : vector<64x128xf32> to vector<64x128xbf16>
    %cst_120 = arith.constant dense<0.000000e+00> : vector<64x64xf32>
    %314 = tpu.matmul %313, %278, %cst_120 {dimension_numbers = #tpu.dot_dimension_numbers<[1], [0], [0], [1], [0, 0, 1, 1], [], []>} : vector<64x128xbf16>, vector<128x64xbf16>, vector<64x64xf32> -> vector<64x64xf32>
    %315 = vector.broadcast %32 : vector<1x64xf32> to vector<64x64xf32>
    %316 = arith.mulf %314, %315 : vector<64x64xf32>
    %317 = arith.addf %298, %316 : vector<64x64xf32>
    %318 = arith.truncf %317 : vector<64x64xf32> to vector<64x64xbf16>
    %c3_121 = arith.constant 3 : index
    %c0_122 = arith.constant 0 : index
    %c0_123 = arith.constant 0 : index
    %319 = vector.load %arg6[%c3_121, %c0_122, %c0_123] : memref<5x64x32xbf16, #tpu.memory_space<vmem>>, vector<1x64x32xbf16>
    %320 = vector.shape_cast %319 : vector<1x64x32xbf16> to vector<64x32xbf16>
    %cst_124 = arith.constant dense<0.000000e+00> : vector<64x32xf32>
    %321 = tpu.matmul %318, %320, %cst_124 {dimension_numbers = #tpu.dot_dimension_numbers<[1], [0], [0], [1], [0, 0, 1, 1], [], []>} : vector<64x64xbf16>, vector<64x32xbf16>, vector<64x32xf32> -> vector<64x32xf32>
    %322 = arith.addf %321, %269 : vector<64x32xf32>
    %cst_125 = arith.constant dense<0.000000e+00> : vector<64xf32>
    %323 = vector.multi_reduction <add>, %322, %cst_125 [1] : vector<64x32xf32> to vector<64xf32>
    %324 = vector.shape_cast %323 : vector<64xf32> to vector<64x1xf32>
    %cst_126 = arith.constant 3.200000e+01 : f32
    %325 = vector.broadcast %cst_126 : f32 to vector<64x1xf32>
    %326 = arith.divf %324, %325 : vector<64x1xf32>
    %327 = vector.broadcast %326 : vector<64x1xf32> to vector<64x32xf32>
    %328 = arith.subf %322, %327 : vector<64x32xf32>
    %329 = vector.broadcast %326 : vector<64x1xf32> to vector<64x32xf32>
    %330 = arith.subf %322, %329 : vector<64x32xf32>
    %331 = arith.mulf %328, %330 : vector<64x32xf32>
    %cst_127 = arith.constant dense<0.000000e+00> : vector<64xf32>
    %332 = vector.multi_reduction <add>, %331, %cst_127 [1] : vector<64x32xf32> to vector<64xf32>
    %333 = vector.shape_cast %332 : vector<64xf32> to vector<64x1xf32>
    %cst_128 = arith.constant 3.200000e+01 : f32
    %334 = vector.broadcast %cst_128 : f32 to vector<64x1xf32>
    %335 = arith.divf %333, %334 : vector<64x1xf32>
    %336 = vector.broadcast %326 : vector<64x1xf32> to vector<64x32xf32>
    %337 = arith.subf %322, %336 : vector<64x32xf32>
    %cst_129 = arith.constant 9.99999974E-6 : f32
    %338 = vector.broadcast %cst_129 : f32 to vector<64x1xf32>
    %339 = arith.addf %335, %338 : vector<64x1xf32>
    %340 = math.rsqrt %339 : vector<64x1xf32>
    %341 = vector.broadcast %340 : vector<64x1xf32> to vector<64x32xf32>
    %342 = arith.mulf %337, %341 : vector<64x32xf32>
    %c3_130 = arith.constant 3 : index
    %c0_131 = arith.constant 0 : index
    %c0_132 = arith.constant 0 : index
    %343 = vector.load %arg7[%c3_130, %c0_131, %c0_132] : memref<5x1x32xf32, #tpu.memory_space<vmem>>, vector<1x1x32xf32>
    %344 = vector.shape_cast %343 : vector<1x1x32xf32> to vector<1x32xf32>
    %345 = vector.broadcast %344 : vector<1x32xf32> to vector<64x32xf32>
    %346 = arith.mulf %342, %345 : vector<64x32xf32>
    %c3_133 = arith.constant 3 : index
    %c0_134 = arith.constant 0 : index
    %c0_135 = arith.constant 0 : index
    %347 = vector.load %arg8[%c3_133, %c0_134, %c0_135] : memref<5x1x32xf32, #tpu.memory_space<vmem>>, vector<1x1x32xf32>
    %348 = vector.shape_cast %347 : vector<1x1x32xf32> to vector<1x32xf32>
    %349 = vector.broadcast %348 : vector<1x32xf32> to vector<64x32xf32>
    %350 = arith.addf %346, %349 : vector<64x32xf32>
    %351 = tpu.iota {dimensions = array<i32: 0>} : vector<32x64xi32>
    %352 = tpu.iota {dimensions = array<i32: 1>} : vector<32x64xi32>
    %c2_i32_136 = arith.constant 2 : i32
    %353 = vector.broadcast %c2_i32_136 : i32 to vector<32x64xi32>
    %354 = arith.muli %353, %351 : vector<32x64xi32>
    %355 = arith.cmpi eq, %352, %354 : vector<32x64xi32>
    %c2_i32_137 = arith.constant 2 : i32
    %356 = vector.broadcast %c2_i32_137 : i32 to vector<32x64xi32>
    %357 = arith.muli %356, %351 : vector<32x64xi32>
    %c1_i32_138 = arith.constant 1 : i32
    %358 = vector.broadcast %c1_i32_138 : i32 to vector<32x64xi32>
    %359 = arith.addi %357, %358 : vector<32x64xi32>
    %360 = arith.cmpi eq, %352, %359 : vector<32x64xi32>
    %361 = arith.ori %355, %360 : vector<32x64xi1>
    %cst_139 = arith.constant 5.000000e-01 : f32
    %cst_140 = arith.constant 0.000000e+00 : f32
    %362 = vector.broadcast %cst_139 : f32 to vector<32x64xf32>
    %363 = vector.broadcast %cst_140 : f32 to vector<32x64xf32>
    %364 = arith.select %361, %362, %363 : vector<32x64xi1>, vector<32x64xf32>
    %365 = arith.truncf %364 : vector<32x64xf32> to vector<32x64xbf16>
    %366 = arith.truncf %350 : vector<64x32xf32> to vector<64x32xbf16>
    %cst_141 = arith.constant dense<0.000000e+00> : vector<32x32xf32>
    %367 = tpu.matmul %365, %366, %cst_141 {dimension_numbers = #tpu.dot_dimension_numbers<[1], [0], [0], [1], [0, 0, 1, 1], [], []>} : vector<32x64xbf16>, vector<64x32xbf16>, vector<32x32xf32> -> vector<32x32xf32>
    %368 = arith.truncf %367 : vector<32x32xf32> to vector<32x32xbf16>
    %c3_142 = arith.constant 3 : index
    %c0_143 = arith.constant 0 : index
    %c0_144 = arith.constant 0 : index
    %369 = vector.load %arg4[%c3_142, %c0_143, %c0_144] : memref<5x32x64xbf16, #tpu.memory_space<vmem>>, vector<1x32x64xbf16>
    %370 = vector.shape_cast %369 : vector<1x32x64xbf16> to vector<32x64xbf16>
    %cst_145 = arith.constant dense<0.000000e+00> : vector<32x64xf32>
    %371 = tpu.matmul %368, %370, %cst_145 {dimension_numbers = #tpu.dot_dimension_numbers<[1], [0], [0], [1], [0, 0, 1, 1], [], []>} : vector<32x32xbf16>, vector<32x64xbf16>, vector<32x64xf32> -> vector<32x64xf32>
    %372 = arith.truncf %350 : vector<64x32xf32> to vector<64x32xbf16>
    %c3_146 = arith.constant 3 : index
    %c0_147 = arith.constant 0 : index
    %c0_148 = arith.constant 0 : index
    %373 = vector.load %arg5[%c3_146, %c0_147, %c0_148] : memref<5x32x64xbf16, #tpu.memory_space<vmem>>, vector<1x32x64xbf16>
    %374 = vector.shape_cast %373 : vector<1x32x64xbf16> to vector<32x64xbf16>
    %cst_149 = arith.constant dense<0.000000e+00> : vector<64x64xf32>
    %375 = tpu.matmul %372, %374, %cst_149 {dimension_numbers = #tpu.dot_dimension_numbers<[1], [0], [0], [1], [0, 0, 1, 1], [], []>} : vector<64x32xbf16>, vector<32x64xbf16>, vector<64x64xf32> -> vector<64x64xf32>
    %376 = arith.truncf %375 : vector<64x64xf32> to vector<64x64xbf16>
    %cst_150 = arith.constant 0.000000e+00 : f32
    %377 = vector.broadcast %cst_150 : f32 to vector<32x64xf32>
    %378 = vector.broadcast %8 : vector<1x64xf32> to vector<32x64xf32>
    %379 = arith.mulf %371, %378 : vector<32x64xf32>
    %380 = arith.truncf %379 : vector<32x64xf32> to vector<32x64xbf16>
    %cst_151 = arith.constant dense<0.000000e+00> : vector<32x64xf32>
    %381 = tpu.matmul %380, %376, %cst_151 {dimension_numbers = #tpu.dot_dimension_numbers<[1], [1], [0], [0], [0, 0, 1, 0], [], []>} : vector<32x64xbf16>, vector<64x64xbf16>, vector<32x64xf32> -> vector<32x64xf32>
    %cst_152 = arith.constant dense<0xFF800000> : vector<32xf32>
    %382 = vector.multi_reduction <maximumf>, %381, %cst_152 [1] : vector<32x64xf32> to vector<32xf32>
    %383 = vector.shape_cast %382 : vector<32xf32> to vector<32x1xf32>
    %384 = vector.broadcast %383 : vector<32x1xf32> to vector<32x64xf32>
    %385 = arith.subf %381, %384 : vector<32x64xf32>
    %386 = math.exp %385 : vector<32x64xf32>
    %cst_153 = arith.constant dense<0.000000e+00> : vector<32xf32>
    %387 = vector.multi_reduction <add>, %386, %cst_153 [1] : vector<32x64xf32> to vector<32xf32>
    %388 = vector.shape_cast %387 : vector<32xf32> to vector<32x1xf32>
    %389 = tpu.reciprocal %388 {approx = true} : vector<32x1xf32> -> vector<32x1xf32>
    %390 = vector.broadcast %389 : vector<32x1xf32> to vector<32x64xf32>
    %391 = arith.mulf %386, %390 : vector<32x64xf32>
    %392 = arith.truncf %391 : vector<32x64xf32> to vector<32x64xbf16>
    %cst_154 = arith.constant dense<0.000000e+00> : vector<32x64xf32>
    %393 = tpu.matmul %392, %376, %cst_154 {dimension_numbers = #tpu.dot_dimension_numbers<[1], [0], [0], [1], [0, 0, 1, 1], [], []>} : vector<32x64xbf16>, vector<64x64xbf16>, vector<32x64xf32> -> vector<32x64xf32>
    %394 = vector.broadcast %24 : vector<1x64xf32> to vector<32x64xf32>
    %395 = arith.mulf %393, %394 : vector<32x64xf32>
    %396 = arith.addf %377, %395 : vector<32x64xf32>
    %397 = vector.broadcast %16 : vector<1x64xf32> to vector<32x64xf32>
    %398 = arith.mulf %371, %397 : vector<32x64xf32>
    %399 = arith.truncf %398 : vector<32x64xf32> to vector<32x64xbf16>
    %cst_155 = arith.constant dense<0.000000e+00> : vector<32x64xf32>
    %400 = tpu.matmul %399, %376, %cst_155 {dimension_numbers = #tpu.dot_dimension_numbers<[1], [1], [0], [0], [0, 0, 1, 0], [], []>} : vector<32x64xbf16>, vector<64x64xbf16>, vector<32x64xf32> -> vector<32x64xf32>
    %cst_156 = arith.constant dense<0xFF800000> : vector<32xf32>
    %401 = vector.multi_reduction <maximumf>, %400, %cst_156 [1] : vector<32x64xf32> to vector<32xf32>
    %402 = vector.shape_cast %401 : vector<32xf32> to vector<32x1xf32>
    %403 = vector.broadcast %402 : vector<32x1xf32> to vector<32x64xf32>
    %404 = arith.subf %400, %403 : vector<32x64xf32>
    %405 = math.exp %404 : vector<32x64xf32>
    %cst_157 = arith.constant dense<0.000000e+00> : vector<32xf32>
    %406 = vector.multi_reduction <add>, %405, %cst_157 [1] : vector<32x64xf32> to vector<32xf32>
    %407 = vector.shape_cast %406 : vector<32xf32> to vector<32x1xf32>
    %408 = tpu.reciprocal %407 {approx = true} : vector<32x1xf32> -> vector<32x1xf32>
    %409 = vector.broadcast %408 : vector<32x1xf32> to vector<32x64xf32>
    %410 = arith.mulf %405, %409 : vector<32x64xf32>
    %411 = arith.truncf %410 : vector<32x64xf32> to vector<32x64xbf16>
    %cst_158 = arith.constant dense<0.000000e+00> : vector<32x64xf32>
    %412 = tpu.matmul %411, %376, %cst_158 {dimension_numbers = #tpu.dot_dimension_numbers<[1], [0], [0], [1], [0, 0, 1, 1], [], []>} : vector<32x64xbf16>, vector<64x64xbf16>, vector<32x64xf32> -> vector<32x64xf32>
    %413 = vector.broadcast %32 : vector<1x64xf32> to vector<32x64xf32>
    %414 = arith.mulf %412, %413 : vector<32x64xf32>
    %415 = arith.addf %396, %414 : vector<32x64xf32>
    %416 = arith.truncf %415 : vector<32x64xf32> to vector<32x64xbf16>
    %c3_159 = arith.constant 3 : index
    %c0_160 = arith.constant 0 : index
    %c0_161 = arith.constant 0 : index
    %417 = vector.load %arg6[%c3_159, %c0_160, %c0_161] : memref<5x64x32xbf16, #tpu.memory_space<vmem>>, vector<1x64x32xbf16>
    %418 = vector.shape_cast %417 : vector<1x64x32xbf16> to vector<64x32xbf16>
    %cst_162 = arith.constant dense<0.000000e+00> : vector<32x32xf32>
    %419 = tpu.matmul %416, %418, %cst_162 {dimension_numbers = #tpu.dot_dimension_numbers<[1], [0], [0], [1], [0, 0, 1, 1], [], []>} : vector<32x64xbf16>, vector<64x32xbf16>, vector<32x32xf32> -> vector<32x32xf32>
    %420 = arith.addf %419, %367 : vector<32x32xf32>
    %cst_163 = arith.constant dense<0.000000e+00> : vector<32xf32>
    %421 = vector.multi_reduction <add>, %420, %cst_163 [1] : vector<32x32xf32> to vector<32xf32>
    %422 = vector.shape_cast %421 : vector<32xf32> to vector<32x1xf32>
    %cst_164 = arith.constant 3.200000e+01 : f32
    %423 = vector.broadcast %cst_164 : f32 to vector<32x1xf32>
    %424 = arith.divf %422, %423 : vector<32x1xf32>
    %425 = vector.broadcast %424 : vector<32x1xf32> to vector<32x32xf32>
    %426 = arith.subf %420, %425 : vector<32x32xf32>
    %427 = vector.broadcast %424 : vector<32x1xf32> to vector<32x32xf32>
    %428 = arith.subf %420, %427 : vector<32x32xf32>
    %429 = arith.mulf %426, %428 : vector<32x32xf32>
    %cst_165 = arith.constant dense<0.000000e+00> : vector<32xf32>
    %430 = vector.multi_reduction <add>, %429, %cst_165 [1] : vector<32x32xf32> to vector<32xf32>
    %431 = vector.shape_cast %430 : vector<32xf32> to vector<32x1xf32>
    %cst_166 = arith.constant 3.200000e+01 : f32
    %432 = vector.broadcast %cst_166 : f32 to vector<32x1xf32>
    %433 = arith.divf %431, %432 : vector<32x1xf32>
    %434 = vector.broadcast %424 : vector<32x1xf32> to vector<32x32xf32>
    %435 = arith.subf %420, %434 : vector<32x32xf32>
    %cst_167 = arith.constant 9.99999974E-6 : f32
    %436 = vector.broadcast %cst_167 : f32 to vector<32x1xf32>
    %437 = arith.addf %433, %436 : vector<32x1xf32>
    %438 = math.rsqrt %437 : vector<32x1xf32>
    %439 = vector.broadcast %438 : vector<32x1xf32> to vector<32x32xf32>
    %440 = arith.mulf %435, %439 : vector<32x32xf32>
    %c3_168 = arith.constant 3 : index
    %c0_169 = arith.constant 0 : index
    %c0_170 = arith.constant 0 : index
    %441 = vector.load %arg7[%c3_168, %c0_169, %c0_170] : memref<5x1x32xf32, #tpu.memory_space<vmem>>, vector<1x1x32xf32>
    %442 = vector.shape_cast %441 : vector<1x1x32xf32> to vector<1x32xf32>
    %443 = vector.broadcast %442 : vector<1x32xf32> to vector<32x32xf32>
    %444 = arith.mulf %440, %443 : vector<32x32xf32>
    %c3_171 = arith.constant 3 : index
    %c0_172 = arith.constant 0 : index
    %c0_173 = arith.constant 0 : index
    %445 = vector.load %arg8[%c3_171, %c0_172, %c0_173] : memref<5x1x32xf32, #tpu.memory_space<vmem>>, vector<1x1x32xf32>
    %446 = vector.shape_cast %445 : vector<1x1x32xf32> to vector<1x32xf32>
    %447 = vector.broadcast %446 : vector<1x32xf32> to vector<32x32xf32>
    %448 = arith.addf %444, %447 : vector<32x32xf32>
    %449 = tpu.iota {dimensions = array<i32: 0>} : vector<16x32xi32>
    %450 = tpu.iota {dimensions = array<i32: 1>} : vector<16x32xi32>
    %c2_i32_174 = arith.constant 2 : i32
    %451 = vector.broadcast %c2_i32_174 : i32 to vector<16x32xi32>
    %452 = arith.muli %451, %449 : vector<16x32xi32>
    %453 = arith.cmpi eq, %450, %452 : vector<16x32xi32>
    %c2_i32_175 = arith.constant 2 : i32
    %454 = vector.broadcast %c2_i32_175 : i32 to vector<16x32xi32>
    %455 = arith.muli %454, %449 : vector<16x32xi32>
    %c1_i32_176 = arith.constant 1 : i32
    %456 = vector.broadcast %c1_i32_176 : i32 to vector<16x32xi32>
    %457 = arith.addi %455, %456 : vector<16x32xi32>
    %458 = arith.cmpi eq, %450, %457 : vector<16x32xi32>
    %459 = arith.ori %453, %458 : vector<16x32xi1>
    %cst_177 = arith.constant 5.000000e-01 : f32
    %cst_178 = arith.constant 0.000000e+00 : f32
    %460 = vector.broadcast %cst_177 : f32 to vector<16x32xf32>
    %461 = vector.broadcast %cst_178 : f32 to vector<16x32xf32>
    %462 = arith.select %459, %460, %461 : vector<16x32xi1>, vector<16x32xf32>
    %463 = arith.truncf %462 : vector<16x32xf32> to vector<16x32xbf16>
    %464 = arith.truncf %448 : vector<32x32xf32> to vector<32x32xbf16>
    %cst_179 = arith.constant dense<0.000000e+00> : vector<16x32xf32>
    %465 = tpu.matmul %463, %464, %cst_179 {dimension_numbers = #tpu.dot_dimension_numbers<[1], [0], [0], [1], [0, 0, 1, 1], [], []>} : vector<16x32xbf16>, vector<32x32xbf16>, vector<16x32xf32> -> vector<16x32xf32>
    %466 = arith.truncf %465 : vector<16x32xf32> to vector<16x32xbf16>
    %c3_180 = arith.constant 3 : index
    %c0_181 = arith.constant 0 : index
    %c0_182 = arith.constant 0 : index
    %467 = vector.load %arg4[%c3_180, %c0_181, %c0_182] : memref<5x32x64xbf16, #tpu.memory_space<vmem>>, vector<1x32x64xbf16>
    %468 = vector.shape_cast %467 : vector<1x32x64xbf16> to vector<32x64xbf16>
    %cst_183 = arith.constant dense<0.000000e+00> : vector<16x64xf32>
    %469 = tpu.matmul %466, %468, %cst_183 {dimension_numbers = #tpu.dot_dimension_numbers<[1], [0], [0], [1], [0, 0, 1, 1], [], []>} : vector<16x32xbf16>, vector<32x64xbf16>, vector<16x64xf32> -> vector<16x64xf32>
    %470 = arith.truncf %448 : vector<32x32xf32> to vector<32x32xbf16>
    %c3_184 = arith.constant 3 : index
    %c0_185 = arith.constant 0 : index
    %c0_186 = arith.constant 0 : index
    %471 = vector.load %arg5[%c3_184, %c0_185, %c0_186] : memref<5x32x64xbf16, #tpu.memory_space<vmem>>, vector<1x32x64xbf16>
    %472 = vector.shape_cast %471 : vector<1x32x64xbf16> to vector<32x64xbf16>
    %cst_187 = arith.constant dense<0.000000e+00> : vector<32x64xf32>
    %473 = tpu.matmul %470, %472, %cst_187 {dimension_numbers = #tpu.dot_dimension_numbers<[1], [0], [0], [1], [0, 0, 1, 1], [], []>} : vector<32x32xbf16>, vector<32x64xbf16>, vector<32x64xf32> -> vector<32x64xf32>
    %474 = arith.truncf %473 : vector<32x64xf32> to vector<32x64xbf16>
    %cst_188 = arith.constant 0.000000e+00 : f32
    %475 = vector.broadcast %cst_188 : f32 to vector<16x64xf32>
    %476 = vector.broadcast %8 : vector<1x64xf32> to vector<16x64xf32>
    %477 = arith.mulf %469, %476 : vector<16x64xf32>
    %478 = arith.truncf %477 : vector<16x64xf32> to vector<16x64xbf16>
    %cst_189 = arith.constant dense<0.000000e+00> : vector<16x32xf32>
    %479 = tpu.matmul %478, %474, %cst_189 {dimension_numbers = #tpu.dot_dimension_numbers<[1], [1], [0], [0], [0, 0, 1, 0], [], []>} : vector<16x64xbf16>, vector<32x64xbf16>, vector<16x32xf32> -> vector<16x32xf32>
    %cst_190 = arith.constant dense<0xFF800000> : vector<16xf32>
    %480 = vector.multi_reduction <maximumf>, %479, %cst_190 [1] : vector<16x32xf32> to vector<16xf32>
    %481 = vector.shape_cast %480 : vector<16xf32> to vector<16x1xf32>
    %482 = vector.broadcast %481 : vector<16x1xf32> to vector<16x32xf32>
    %483 = arith.subf %479, %482 : vector<16x32xf32>
    %484 = math.exp %483 : vector<16x32xf32>
    %cst_191 = arith.constant dense<0.000000e+00> : vector<16xf32>
    %485 = vector.multi_reduction <add>, %484, %cst_191 [1] : vector<16x32xf32> to vector<16xf32>
    %486 = vector.shape_cast %485 : vector<16xf32> to vector<16x1xf32>
    %487 = tpu.reciprocal %486 {approx = true} : vector<16x1xf32> -> vector<16x1xf32>
    %488 = vector.broadcast %487 : vector<16x1xf32> to vector<16x32xf32>
    %489 = arith.mulf %484, %488 : vector<16x32xf32>
    %490 = arith.truncf %489 : vector<16x32xf32> to vector<16x32xbf16>
    %cst_192 = arith.constant dense<0.000000e+00> : vector<16x64xf32>
    %491 = tpu.matmul %490, %474, %cst_192 {dimension_numbers = #tpu.dot_dimension_numbers<[1], [0], [0], [1], [0, 0, 1, 1], [], []>} : vector<16x32xbf16>, vector<32x64xbf16>, vector<16x64xf32> -> vector<16x64xf32>
    %492 = vector.broadcast %24 : vector<1x64xf32> to vector<16x64xf32>
    %493 = arith.mulf %491, %492 : vector<16x64xf32>
    %494 = arith.addf %475, %493 : vector<16x64xf32>
    %495 = vector.broadcast %16 : vector<1x64xf32> to vector<16x64xf32>
    %496 = arith.mulf %469, %495 : vector<16x64xf32>
    %497 = arith.truncf %496 : vector<16x64xf32> to vector<16x64xbf16>
    %cst_193 = arith.constant dense<0.000000e+00> : vector<16x32xf32>
    %498 = tpu.matmul %497, %474, %cst_193 {dimension_numbers = #tpu.dot_dimension_numbers<[1], [1], [0], [0], [0, 0, 1, 0], [], []>} : vector<16x64xbf16>, vector<32x64xbf16>, vector<16x32xf32> -> vector<16x32xf32>
    %cst_194 = arith.constant dense<0xFF800000> : vector<16xf32>
    %499 = vector.multi_reduction <maximumf>, %498, %cst_194 [1] : vector<16x32xf32> to vector<16xf32>
    %500 = vector.shape_cast %499 : vector<16xf32> to vector<16x1xf32>
    %501 = vector.broadcast %500 : vector<16x1xf32> to vector<16x32xf32>
    %502 = arith.subf %498, %501 : vector<16x32xf32>
    %503 = math.exp %502 : vector<16x32xf32>
    %cst_195 = arith.constant dense<0.000000e+00> : vector<16xf32>
    %504 = vector.multi_reduction <add>, %503, %cst_195 [1] : vector<16x32xf32> to vector<16xf32>
    %505 = vector.shape_cast %504 : vector<16xf32> to vector<16x1xf32>
    %506 = tpu.reciprocal %505 {approx = true} : vector<16x1xf32> -> vector<16x1xf32>
    %507 = vector.broadcast %506 : vector<16x1xf32> to vector<16x32xf32>
    %508 = arith.mulf %503, %507 : vector<16x32xf32>
    %509 = arith.truncf %508 : vector<16x32xf32> to vector<16x32xbf16>
    %cst_196 = arith.constant dense<0.000000e+00> : vector<16x64xf32>
    %510 = tpu.matmul %509, %474, %cst_196 {dimension_numbers = #tpu.dot_dimension_numbers<[1], [0], [0], [1], [0, 0, 1, 1], [], []>} : vector<16x32xbf16>, vector<32x64xbf16>, vector<16x64xf32> -> vector<16x64xf32>
    %511 = vector.broadcast %32 : vector<1x64xf32> to vector<16x64xf32>
    %512 = arith.mulf %510, %511 : vector<16x64xf32>
    %513 = arith.addf %494, %512 : vector<16x64xf32>
    %514 = arith.truncf %513 : vector<16x64xf32> to vector<16x64xbf16>
    %c3_197 = arith.constant 3 : index
    %c0_198 = arith.constant 0 : index
    %c0_199 = arith.constant 0 : index
    %515 = vector.load %arg6[%c3_197, %c0_198, %c0_199] : memref<5x64x32xbf16, #tpu.memory_space<vmem>>, vector<1x64x32xbf16>
    %516 = vector.shape_cast %515 : vector<1x64x32xbf16> to vector<64x32xbf16>
    %cst_200 = arith.constant dense<0.000000e+00> : vector<16x32xf32>
    %517 = tpu.matmul %514, %516, %cst_200 {dimension_numbers = #tpu.dot_dimension_numbers<[1], [0], [0], [1], [0, 0, 1, 1], [], []>} : vector<16x64xbf16>, vector<64x32xbf16>, vector<16x32xf32> -> vector<16x32xf32>
    %518 = arith.addf %517, %465 : vector<16x32xf32>
    %cst_201 = arith.constant dense<0.000000e+00> : vector<16xf32>
    %519 = vector.multi_reduction <add>, %518, %cst_201 [1] : vector<16x32xf32> to vector<16xf32>
    %520 = vector.shape_cast %519 : vector<16xf32> to vector<16x1xf32>
    %cst_202 = arith.constant 3.200000e+01 : f32
    %521 = vector.broadcast %cst_202 : f32 to vector<16x1xf32>
    %522 = arith.divf %520, %521 : vector<16x1xf32>
    %523 = vector.broadcast %522 : vector<16x1xf32> to vector<16x32xf32>
    %524 = arith.subf %518, %523 : vector<16x32xf32>
    %525 = vector.broadcast %522 : vector<16x1xf32> to vector<16x32xf32>
    %526 = arith.subf %518, %525 : vector<16x32xf32>
    %527 = arith.mulf %524, %526 : vector<16x32xf32>
    %cst_203 = arith.constant dense<0.000000e+00> : vector<16xf32>
    %528 = vector.multi_reduction <add>, %527, %cst_203 [1] : vector<16x32xf32> to vector<16xf32>
    %529 = vector.shape_cast %528 : vector<16xf32> to vector<16x1xf32>
    %cst_204 = arith.constant 3.200000e+01 : f32
    %530 = vector.broadcast %cst_204 : f32 to vector<16x1xf32>
    %531 = arith.divf %529, %530 : vector<16x1xf32>
    %532 = vector.broadcast %522 : vector<16x1xf32> to vector<16x32xf32>
    %533 = arith.subf %518, %532 : vector<16x32xf32>
    %cst_205 = arith.constant 9.99999974E-6 : f32
    %534 = vector.broadcast %cst_205 : f32 to vector<16x1xf32>
    %535 = arith.addf %531, %534 : vector<16x1xf32>
    %536 = math.rsqrt %535 : vector<16x1xf32>
    %537 = vector.broadcast %536 : vector<16x1xf32> to vector<16x32xf32>
    %538 = arith.mulf %533, %537 : vector<16x32xf32>
    %c3_206 = arith.constant 3 : index
    %c0_207 = arith.constant 0 : index
    %c0_208 = arith.constant 0 : index
    %539 = vector.load %arg7[%c3_206, %c0_207, %c0_208] : memref<5x1x32xf32, #tpu.memory_space<vmem>>, vector<1x1x32xf32>
    %540 = vector.shape_cast %539 : vector<1x1x32xf32> to vector<1x32xf32>
    %541 = vector.broadcast %540 : vector<1x32xf32> to vector<16x32xf32>
    %542 = arith.mulf %538, %541 : vector<16x32xf32>
    %c3_209 = arith.constant 3 : index
    %c0_210 = arith.constant 0 : index
    %c0_211 = arith.constant 0 : index
    %543 = vector.load %arg8[%c3_209, %c0_210, %c0_211] : memref<5x1x32xf32, #tpu.memory_space<vmem>>, vector<1x1x32xf32>
    %544 = vector.shape_cast %543 : vector<1x1x32xf32> to vector<1x32xf32>
    %545 = vector.broadcast %544 : vector<1x32xf32> to vector<16x32xf32>
    %546 = arith.addf %542, %545 : vector<16x32xf32>
    %547 = tpu.iota {dimensions = array<i32: 0>} : vector<8x16xi32>
    %548 = tpu.iota {dimensions = array<i32: 1>} : vector<8x16xi32>
    %c2_i32_212 = arith.constant 2 : i32
    %549 = vector.broadcast %c2_i32_212 : i32 to vector<8x16xi32>
    %550 = arith.muli %549, %547 : vector<8x16xi32>
    %551 = arith.cmpi eq, %548, %550 : vector<8x16xi32>
    %c2_i32_213 = arith.constant 2 : i32
    %552 = vector.broadcast %c2_i32_213 : i32 to vector<8x16xi32>
    %553 = arith.muli %552, %547 : vector<8x16xi32>
    %c1_i32_214 = arith.constant 1 : i32
    %554 = vector.broadcast %c1_i32_214 : i32 to vector<8x16xi32>
    %555 = arith.addi %553, %554 : vector<8x16xi32>
    %556 = arith.cmpi eq, %548, %555 : vector<8x16xi32>
    %557 = arith.ori %551, %556 : vector<8x16xi1>
    %cst_215 = arith.constant 5.000000e-01 : f32
    %cst_216 = arith.constant 0.000000e+00 : f32
    %558 = vector.broadcast %cst_215 : f32 to vector<8x16xf32>
    %559 = vector.broadcast %cst_216 : f32 to vector<8x16xf32>
    %560 = arith.select %557, %558, %559 : vector<8x16xi1>, vector<8x16xf32>
    %561 = arith.truncf %560 : vector<8x16xf32> to vector<8x16xbf16>
    %562 = arith.truncf %546 : vector<16x32xf32> to vector<16x32xbf16>
    %cst_217 = arith.constant dense<0.000000e+00> : vector<8x32xf32>
    %563 = tpu.matmul %561, %562, %cst_217 {dimension_numbers = #tpu.dot_dimension_numbers<[1], [0], [0], [1], [0, 0, 1, 1], [], []>} : vector<8x16xbf16>, vector<16x32xbf16>, vector<8x32xf32> -> vector<8x32xf32>
    %564 = arith.truncf %563 : vector<8x32xf32> to vector<8x32xbf16>
    %c3_218 = arith.constant 3 : index
    %c0_219 = arith.constant 0 : index
    %c0_220 = arith.constant 0 : index
    %565 = vector.load %arg4[%c3_218, %c0_219, %c0_220] : memref<5x32x64xbf16, #tpu.memory_space<vmem>>, vector<1x32x64xbf16>
    %566 = vector.shape_cast %565 : vector<1x32x64xbf16> to vector<32x64xbf16>
    %cst_221 = arith.constant dense<0.000000e+00> : vector<8x64xf32>
    %567 = tpu.matmul %564, %566, %cst_221 {dimension_numbers = #tpu.dot_dimension_numbers<[1], [0], [0], [1], [0, 0, 1, 1], [], []>} : vector<8x32xbf16>, vector<32x64xbf16>, vector<8x64xf32> -> vector<8x64xf32>
    %568 = arith.truncf %546 : vector<16x32xf32> to vector<16x32xbf16>
    %c3_222 = arith.constant 3 : index
    %c0_223 = arith.constant 0 : index
    %c0_224 = arith.constant 0 : index
    %569 = vector.load %arg5[%c3_222, %c0_223, %c0_224] : memref<5x32x64xbf16, #tpu.memory_space<vmem>>, vector<1x32x64xbf16>
    %570 = vector.shape_cast %569 : vector<1x32x64xbf16> to vector<32x64xbf16>
    %cst_225 = arith.constant dense<0.000000e+00> : vector<16x64xf32>
    %571 = tpu.matmul %568, %570, %cst_225 {dimension_numbers = #tpu.dot_dimension_numbers<[1], [0], [0], [1], [0, 0, 1, 1], [], []>} : vector<16x32xbf16>, vector<32x64xbf16>, vector<16x64xf32> -> vector<16x64xf32>
    %572 = arith.truncf %571 : vector<16x64xf32> to vector<16x64xbf16>
    %cst_226 = arith.constant 0.000000e+00 : f32
    %573 = vector.broadcast %cst_226 : f32 to vector<8x64xf32>
    %574 = vector.broadcast %8 : vector<1x64xf32> to vector<8x64xf32>
    %575 = arith.mulf %567, %574 : vector<8x64xf32>
    %576 = arith.truncf %575 : vector<8x64xf32> to vector<8x64xbf16>
    %cst_227 = arith.constant dense<0.000000e+00> : vector<8x16xf32>
    %577 = tpu.matmul %576, %572, %cst_227 {dimension_numbers = #tpu.dot_dimension_numbers<[1], [1], [0], [0], [0, 0, 1, 0], [], []>} : vector<8x64xbf16>, vector<16x64xbf16>, vector<8x16xf32> -> vector<8x16xf32>
    %cst_228 = arith.constant dense<0xFF800000> : vector<8xf32>
    %578 = vector.multi_reduction <maximumf>, %577, %cst_228 [1] : vector<8x16xf32> to vector<8xf32>
    %579 = vector.shape_cast %578 : vector<8xf32> to vector<8x1xf32>
    %580 = vector.broadcast %579 : vector<8x1xf32> to vector<8x16xf32>
    %581 = arith.subf %577, %580 : vector<8x16xf32>
    %582 = math.exp %581 : vector<8x16xf32>
    %cst_229 = arith.constant dense<0.000000e+00> : vector<8xf32>
    %583 = vector.multi_reduction <add>, %582, %cst_229 [1] : vector<8x16xf32> to vector<8xf32>
    %584 = vector.shape_cast %583 : vector<8xf32> to vector<8x1xf32>
    %585 = tpu.reciprocal %584 {approx = true} : vector<8x1xf32> -> vector<8x1xf32>
    %586 = vector.broadcast %585 : vector<8x1xf32> to vector<8x16xf32>
    %587 = arith.mulf %582, %586 : vector<8x16xf32>
    %588 = arith.truncf %587 : vector<8x16xf32> to vector<8x16xbf16>
    %cst_230 = arith.constant dense<0.000000e+00> : vector<8x64xf32>
    %589 = tpu.matmul %588, %572, %cst_230 {dimension_numbers = #tpu.dot_dimension_numbers<[1], [0], [0], [1], [0, 0, 1, 1], [], []>} : vector<8x16xbf16>, vector<16x64xbf16>, vector<8x64xf32> -> vector<8x64xf32>
    %590 = vector.broadcast %24 : vector<1x64xf32> to vector<8x64xf32>
    %591 = arith.mulf %589, %590 : vector<8x64xf32>
    %592 = arith.addf %573, %591 : vector<8x64xf32>
    %593 = vector.broadcast %16 : vector<1x64xf32> to vector<8x64xf32>
    %594 = arith.mulf %567, %593 : vector<8x64xf32>
    %595 = arith.truncf %594 : vector<8x64xf32> to vector<8x64xbf16>
    %cst_231 = arith.constant dense<0.000000e+00> : vector<8x16xf32>
    %596 = tpu.matmul %595, %572, %cst_231 {dimension_numbers = #tpu.dot_dimension_numbers<[1], [1], [0], [0], [0, 0, 1, 0], [], []>} : vector<8x64xbf16>, vector<16x64xbf16>, vector<8x16xf32> -> vector<8x16xf32>
    %cst_232 = arith.constant dense<0xFF800000> : vector<8xf32>
    %597 = vector.multi_reduction <maximumf>, %596, %cst_232 [1] : vector<8x16xf32> to vector<8xf32>
    %598 = vector.shape_cast %597 : vector<8xf32> to vector<8x1xf32>
    %599 = vector.broadcast %598 : vector<8x1xf32> to vector<8x16xf32>
    %600 = arith.subf %596, %599 : vector<8x16xf32>
    %601 = math.exp %600 : vector<8x16xf32>
    %cst_233 = arith.constant dense<0.000000e+00> : vector<8xf32>
    %602 = vector.multi_reduction <add>, %601, %cst_233 [1] : vector<8x16xf32> to vector<8xf32>
    %603 = vector.shape_cast %602 : vector<8xf32> to vector<8x1xf32>
    %604 = tpu.reciprocal %603 {approx = true} : vector<8x1xf32> -> vector<8x1xf32>
    %605 = vector.broadcast %604 : vector<8x1xf32> to vector<8x16xf32>
    %606 = arith.mulf %601, %605 : vector<8x16xf32>
    %607 = arith.truncf %606 : vector<8x16xf32> to vector<8x16xbf16>
    %cst_234 = arith.constant dense<0.000000e+00> : vector<8x64xf32>
    %608 = tpu.matmul %607, %572, %cst_234 {dimension_numbers = #tpu.dot_dimension_numbers<[1], [0], [0], [1], [0, 0, 1, 1], [], []>} : vector<8x16xbf16>, vector<16x64xbf16>, vector<8x64xf32> -> vector<8x64xf32>
    %609 = vector.broadcast %32 : vector<1x64xf32> to vector<8x64xf32>
    %610 = arith.mulf %608, %609 : vector<8x64xf32>
    %611 = arith.addf %592, %610 : vector<8x64xf32>
    %612 = arith.truncf %611 : vector<8x64xf32> to vector<8x64xbf16>
    %c3_235 = arith.constant 3 : index
    %c0_236 = arith.constant 0 : index
    %c0_237 = arith.constant 0 : index
    %613 = vector.load %arg6[%c3_235, %c0_236, %c0_237] : memref<5x64x32xbf16, #tpu.memory_space<vmem>>, vector<1x64x32xbf16>
    %614 = vector.shape_cast %613 : vector<1x64x32xbf16> to vector<64x32xbf16>
    %cst_238 = arith.constant dense<0.000000e+00> : vector<8x32xf32>
    %615 = tpu.matmul %612, %614, %cst_238 {dimension_numbers = #tpu.dot_dimension_numbers<[1], [0], [0], [1], [0, 0, 1, 1], [], []>} : vector<8x64xbf16>, vector<64x32xbf16>, vector<8x32xf32> -> vector<8x32xf32>
    %616 = arith.addf %615, %563 : vector<8x32xf32>
    %cst_239 = arith.constant dense<0.000000e+00> : vector<8xf32>
    %617 = vector.multi_reduction <add>, %616, %cst_239 [1] : vector<8x32xf32> to vector<8xf32>
    %618 = vector.shape_cast %617 : vector<8xf32> to vector<8x1xf32>
    %cst_240 = arith.constant 3.200000e+01 : f32
    %619 = vector.broadcast %cst_240 : f32 to vector<8x1xf32>
    %620 = arith.divf %618, %619 : vector<8x1xf32>
    %621 = vector.broadcast %620 : vector<8x1xf32> to vector<8x32xf32>
    %622 = arith.subf %616, %621 : vector<8x32xf32>
    %623 = vector.broadcast %620 : vector<8x1xf32> to vector<8x32xf32>
    %624 = arith.subf %616, %623 : vector<8x32xf32>
    %625 = arith.mulf %622, %624 : vector<8x32xf32>
    %cst_241 = arith.constant dense<0.000000e+00> : vector<8xf32>
    %626 = vector.multi_reduction <add>, %625, %cst_241 [1] : vector<8x32xf32> to vector<8xf32>
    %627 = vector.shape_cast %626 : vector<8xf32> to vector<8x1xf32>
    %cst_242 = arith.constant 3.200000e+01 : f32
    %628 = vector.broadcast %cst_242 : f32 to vector<8x1xf32>
    %629 = arith.divf %627, %628 : vector<8x1xf32>
    %630 = vector.broadcast %620 : vector<8x1xf32> to vector<8x32xf32>
    %631 = arith.subf %616, %630 : vector<8x32xf32>
    %cst_243 = arith.constant 9.99999974E-6 : f32
    %632 = vector.broadcast %cst_243 : f32 to vector<8x1xf32>
    %633 = arith.addf %629, %632 : vector<8x1xf32>
    %634 = math.rsqrt %633 : vector<8x1xf32>
    %635 = vector.broadcast %634 : vector<8x1xf32> to vector<8x32xf32>
    %636 = arith.mulf %631, %635 : vector<8x32xf32>
    %c3_244 = arith.constant 3 : index
    %c0_245 = arith.constant 0 : index
    %c0_246 = arith.constant 0 : index
    %637 = vector.load %arg7[%c3_244, %c0_245, %c0_246] : memref<5x1x32xf32, #tpu.memory_space<vmem>>, vector<1x1x32xf32>
    %638 = vector.shape_cast %637 : vector<1x1x32xf32> to vector<1x32xf32>
    %639 = vector.broadcast %638 : vector<1x32xf32> to vector<8x32xf32>
    %640 = arith.mulf %636, %639 : vector<8x32xf32>
    %c3_247 = arith.constant 3 : index
    %c0_248 = arith.constant 0 : index
    %c0_249 = arith.constant 0 : index
    %641 = vector.load %arg8[%c3_247, %c0_248, %c0_249] : memref<5x1x32xf32, #tpu.memory_space<vmem>>, vector<1x1x32xf32>
    %642 = vector.shape_cast %641 : vector<1x1x32xf32> to vector<1x32xf32>
    %643 = vector.broadcast %642 : vector<1x32xf32> to vector<8x32xf32>
    %644 = arith.addf %640, %643 : vector<8x32xf32>
    %645 = tpu.iota {dimensions = array<i32: 0>} : vector<4x8xi32>
    %646 = tpu.iota {dimensions = array<i32: 1>} : vector<4x8xi32>
    %c2_i32_250 = arith.constant 2 : i32
    %647 = vector.broadcast %c2_i32_250 : i32 to vector<4x8xi32>
    %648 = arith.muli %647, %645 : vector<4x8xi32>
    %649 = arith.cmpi eq, %646, %648 : vector<4x8xi32>
    %c2_i32_251 = arith.constant 2 : i32
    %650 = vector.broadcast %c2_i32_251 : i32 to vector<4x8xi32>
    %651 = arith.muli %650, %645 : vector<4x8xi32>
    %c1_i32_252 = arith.constant 1 : i32
    %652 = vector.broadcast %c1_i32_252 : i32 to vector<4x8xi32>
    %653 = arith.addi %651, %652 : vector<4x8xi32>
    %654 = arith.cmpi eq, %646, %653 : vector<4x8xi32>
    %655 = arith.ori %649, %654 : vector<4x8xi1>
    %cst_253 = arith.constant 5.000000e-01 : f32
    %cst_254 = arith.constant 0.000000e+00 : f32
    %656 = vector.broadcast %cst_253 : f32 to vector<4x8xf32>
    %657 = vector.broadcast %cst_254 : f32 to vector<4x8xf32>
    %658 = arith.select %655, %656, %657 : vector<4x8xi1>, vector<4x8xf32>
    %659 = arith.truncf %658 : vector<4x8xf32> to vector<4x8xbf16>
    %660 = arith.truncf %644 : vector<8x32xf32> to vector<8x32xbf16>
    %cst_255 = arith.constant dense<0.000000e+00> : vector<4x32xf32>
    %661 = tpu.matmul %659, %660, %cst_255 {dimension_numbers = #tpu.dot_dimension_numbers<[1], [0], [0], [1], [0, 0, 1, 1], [], []>} : vector<4x8xbf16>, vector<8x32xbf16>, vector<4x32xf32> -> vector<4x32xf32>
    %662 = arith.truncf %661 : vector<4x32xf32> to vector<4x32xbf16>
    %c3_256 = arith.constant 3 : index
    %c0_257 = arith.constant 0 : index
    %c0_258 = arith.constant 0 : index
    %663 = vector.load %arg4[%c3_256, %c0_257, %c0_258] : memref<5x32x64xbf16, #tpu.memory_space<vmem>>, vector<1x32x64xbf16>
    %664 = vector.shape_cast %663 : vector<1x32x64xbf16> to vector<32x64xbf16>
    %cst_259 = arith.constant dense<0.000000e+00> : vector<4x64xf32>
    %665 = tpu.matmul %662, %664, %cst_259 {dimension_numbers = #tpu.dot_dimension_numbers<[1], [0], [0], [1], [0, 0, 1, 1], [], []>} : vector<4x32xbf16>, vector<32x64xbf16>, vector<4x64xf32> -> vector<4x64xf32>
    %666 = arith.truncf %644 : vector<8x32xf32> to vector<8x32xbf16>
    %c3_260 = arith.constant 3 : index
    %c0_261 = arith.constant 0 : index
    %c0_262 = arith.constant 0 : index
    %667 = vector.load %arg5[%c3_260, %c0_261, %c0_262] : memref<5x32x64xbf16, #tpu.memory_space<vmem>>, vector<1x32x64xbf16>
    %668 = vector.shape_cast %667 : vector<1x32x64xbf16> to vector<32x64xbf16>
    %cst_263 = arith.constant dense<0.000000e+00> : vector<8x64xf32>
    %669 = tpu.matmul %666, %668, %cst_263 {dimension_numbers = #tpu.dot_dimension_numbers<[1], [0], [0], [1], [0, 0, 1, 1], [], []>} : vector<8x32xbf16>, vector<32x64xbf16>, vector<8x64xf32> -> vector<8x64xf32>
    %670 = arith.truncf %669 : vector<8x64xf32> to vector<8x64xbf16>
    %cst_264 = arith.constant 0.000000e+00 : f32
    %671 = vector.broadcast %cst_264 : f32 to vector<4x64xf32>
    %672 = vector.broadcast %8 : vector<1x64xf32> to vector<4x64xf32>
    %673 = arith.mulf %665, %672 : vector<4x64xf32>
    %674 = arith.truncf %673 : vector<4x64xf32> to vector<4x64xbf16>
    %cst_265 = arith.constant dense<0.000000e+00> : vector<4x8xf32>
    %675 = tpu.matmul %674, %670, %cst_265 {dimension_numbers = #tpu.dot_dimension_numbers<[1], [1], [0], [0], [0, 0, 1, 0], [], []>} : vector<4x64xbf16>, vector<8x64xbf16>, vector<4x8xf32> -> vector<4x8xf32>
    %cst_266 = arith.constant dense<0xFF800000> : vector<4xf32>
    %676 = vector.multi_reduction <maximumf>, %675, %cst_266 [1] : vector<4x8xf32> to vector<4xf32>
    %677 = vector.shape_cast %676 : vector<4xf32> to vector<4x1xf32>
    %678 = vector.broadcast %677 : vector<4x1xf32> to vector<4x8xf32>
    %679 = arith.subf %675, %678 : vector<4x8xf32>
    %680 = math.exp %679 : vector<4x8xf32>
    %cst_267 = arith.constant dense<0.000000e+00> : vector<4xf32>
    %681 = vector.multi_reduction <add>, %680, %cst_267 [1] : vector<4x8xf32> to vector<4xf32>
    %682 = vector.shape_cast %681 : vector<4xf32> to vector<4x1xf32>
    %683 = tpu.reciprocal %682 {approx = true} : vector<4x1xf32> -> vector<4x1xf32>
    %684 = vector.broadcast %683 : vector<4x1xf32> to vector<4x8xf32>
    %685 = arith.mulf %680, %684 : vector<4x8xf32>
    %686 = arith.truncf %685 : vector<4x8xf32> to vector<4x8xbf16>
    %cst_268 = arith.constant dense<0.000000e+00> : vector<4x64xf32>
    %687 = tpu.matmul %686, %670, %cst_268 {dimension_numbers = #tpu.dot_dimension_numbers<[1], [0], [0], [1], [0, 0, 1, 1], [], []>} : vector<4x8xbf16>, vector<8x64xbf16>, vector<4x64xf32> -> vector<4x64xf32>
    %688 = vector.broadcast %24 : vector<1x64xf32> to vector<4x64xf32>
    %689 = arith.mulf %687, %688 : vector<4x64xf32>
    %690 = arith.addf %671, %689 : vector<4x64xf32>
    %691 = vector.broadcast %16 : vector<1x64xf32> to vector<4x64xf32>
    %692 = arith.mulf %665, %691 : vector<4x64xf32>
    %693 = arith.truncf %692 : vector<4x64xf32> to vector<4x64xbf16>
    %cst_269 = arith.constant dense<0.000000e+00> : vector<4x8xf32>
    %694 = tpu.matmul %693, %670, %cst_269 {dimension_numbers = #tpu.dot_dimension_numbers<[1], [1], [0], [0], [0, 0, 1, 0], [], []>} : vector<4x64xbf16>, vector<8x64xbf16>, vector<4x8xf32> -> vector<4x8xf32>
    %cst_270 = arith.constant dense<0xFF800000> : vector<4xf32>
    %695 = vector.multi_reduction <maximumf>, %694, %cst_270 [1] : vector<4x8xf32> to vector<4xf32>
    %696 = vector.shape_cast %695 : vector<4xf32> to vector<4x1xf32>
    %697 = vector.broadcast %696 : vector<4x1xf32> to vector<4x8xf32>
    %698 = arith.subf %694, %697 : vector<4x8xf32>
    %699 = math.exp %698 : vector<4x8xf32>
    %cst_271 = arith.constant dense<0.000000e+00> : vector<4xf32>
    %700 = vector.multi_reduction <add>, %699, %cst_271 [1] : vector<4x8xf32> to vector<4xf32>
    %701 = vector.shape_cast %700 : vector<4xf32> to vector<4x1xf32>
    %702 = tpu.reciprocal %701 {approx = true} : vector<4x1xf32> -> vector<4x1xf32>
    %703 = vector.broadcast %702 : vector<4x1xf32> to vector<4x8xf32>
    %704 = arith.mulf %699, %703 : vector<4x8xf32>
    %705 = arith.truncf %704 : vector<4x8xf32> to vector<4x8xbf16>
    %cst_272 = arith.constant dense<0.000000e+00> : vector<4x64xf32>
    %706 = tpu.matmul %705, %670, %cst_272 {dimension_numbers = #tpu.dot_dimension_numbers<[1], [0], [0], [1], [0, 0, 1, 1], [], []>} : vector<4x8xbf16>, vector<8x64xbf16>, vector<4x64xf32> -> vector<4x64xf32>
    %707 = vector.broadcast %32 : vector<1x64xf32> to vector<4x64xf32>
    %708 = arith.mulf %706, %707 : vector<4x64xf32>
    %709 = arith.addf %690, %708 : vector<4x64xf32>
    %710 = arith.truncf %709 : vector<4x64xf32> to vector<4x64xbf16>
    %c3_273 = arith.constant 3 : index
    %c0_274 = arith.constant 0 : index
    %c0_275 = arith.constant 0 : index
    %711 = vector.load %arg6[%c3_273, %c0_274, %c0_275] : memref<5x64x32xbf16, #tpu.memory_space<vmem>>, vector<1x64x32xbf16>
    %712 = vector.shape_cast %711 : vector<1x64x32xbf16> to vector<64x32xbf16>
    %cst_276 = arith.constant dense<0.000000e+00> : vector<4x32xf32>
    %713 = tpu.matmul %710, %712, %cst_276 {dimension_numbers = #tpu.dot_dimension_numbers<[1], [0], [0], [1], [0, 0, 1, 1], [], []>} : vector<4x64xbf16>, vector<64x32xbf16>, vector<4x32xf32> -> vector<4x32xf32>
    %714 = arith.addf %713, %661 : vector<4x32xf32>
    %cst_277 = arith.constant dense<0.000000e+00> : vector<4xf32>
    %715 = vector.multi_reduction <add>, %714, %cst_277 [1] : vector<4x32xf32> to vector<4xf32>
    %716 = vector.shape_cast %715 : vector<4xf32> to vector<4x1xf32>
    %cst_278 = arith.constant 3.200000e+01 : f32
    %717 = vector.broadcast %cst_278 : f32 to vector<4x1xf32>
    %718 = arith.divf %716, %717 : vector<4x1xf32>
    %719 = vector.broadcast %718 : vector<4x1xf32> to vector<4x32xf32>
    %720 = arith.subf %714, %719 : vector<4x32xf32>
    %721 = vector.broadcast %718 : vector<4x1xf32> to vector<4x32xf32>
    %722 = arith.subf %714, %721 : vector<4x32xf32>
    %723 = arith.mulf %720, %722 : vector<4x32xf32>
    %cst_279 = arith.constant dense<0.000000e+00> : vector<4xf32>
    %724 = vector.multi_reduction <add>, %723, %cst_279 [1] : vector<4x32xf32> to vector<4xf32>
    %725 = vector.shape_cast %724 : vector<4xf32> to vector<4x1xf32>
    %cst_280 = arith.constant 3.200000e+01 : f32
    %726 = vector.broadcast %cst_280 : f32 to vector<4x1xf32>
    %727 = arith.divf %725, %726 : vector<4x1xf32>
    %728 = vector.broadcast %718 : vector<4x1xf32> to vector<4x32xf32>
    %729 = arith.subf %714, %728 : vector<4x32xf32>
    %cst_281 = arith.constant 9.99999974E-6 : f32
    %730 = vector.broadcast %cst_281 : f32 to vector<4x1xf32>
    %731 = arith.addf %727, %730 : vector<4x1xf32>
    %732 = math.rsqrt %731 : vector<4x1xf32>
    %733 = vector.broadcast %732 : vector<4x1xf32> to vector<4x32xf32>
    %734 = arith.mulf %729, %733 : vector<4x32xf32>
    %c3_282 = arith.constant 3 : index
    %c0_283 = arith.constant 0 : index
    %c0_284 = arith.constant 0 : index
    %735 = vector.load %arg7[%c3_282, %c0_283, %c0_284] : memref<5x1x32xf32, #tpu.memory_space<vmem>>, vector<1x1x32xf32>
    %736 = vector.shape_cast %735 : vector<1x1x32xf32> to vector<1x32xf32>
    %737 = vector.broadcast %736 : vector<1x32xf32> to vector<4x32xf32>
    %738 = arith.mulf %734, %737 : vector<4x32xf32>
    %c3_285 = arith.constant 3 : index
    %c0_286 = arith.constant 0 : index
    %c0_287 = arith.constant 0 : index
    %739 = vector.load %arg8[%c3_285, %c0_286, %c0_287] : memref<5x1x32xf32, #tpu.memory_space<vmem>>, vector<1x1x32xf32>
    %740 = vector.shape_cast %739 : vector<1x1x32xf32> to vector<1x32xf32>
    %741 = vector.broadcast %740 : vector<1x32xf32> to vector<4x32xf32>
    %742 = arith.addf %738, %741 : vector<4x32xf32>
    %743 = tpu.iota {dimensions = array<i32: 0>} : vector<2x4xi32>
    %744 = tpu.iota {dimensions = array<i32: 1>} : vector<2x4xi32>
    %c2_i32_288 = arith.constant 2 : i32
    %745 = vector.broadcast %c2_i32_288 : i32 to vector<2x4xi32>
    %746 = arith.muli %745, %743 : vector<2x4xi32>
    %747 = arith.cmpi eq, %744, %746 : vector<2x4xi32>
    %c2_i32_289 = arith.constant 2 : i32
    %748 = vector.broadcast %c2_i32_289 : i32 to vector<2x4xi32>
    %749 = arith.muli %748, %743 : vector<2x4xi32>
    %c1_i32_290 = arith.constant 1 : i32
    %750 = vector.broadcast %c1_i32_290 : i32 to vector<2x4xi32>
    %751 = arith.addi %749, %750 : vector<2x4xi32>
    %752 = arith.cmpi eq, %744, %751 : vector<2x4xi32>
    %753 = arith.ori %747, %752 : vector<2x4xi1>
    %cst_291 = arith.constant 5.000000e-01 : f32
    %cst_292 = arith.constant 0.000000e+00 : f32
    %754 = vector.broadcast %cst_291 : f32 to vector<2x4xf32>
    %755 = vector.broadcast %cst_292 : f32 to vector<2x4xf32>
    %756 = arith.select %753, %754, %755 : vector<2x4xi1>, vector<2x4xf32>
    %757 = arith.truncf %756 : vector<2x4xf32> to vector<2x4xbf16>
    %758 = arith.truncf %742 : vector<4x32xf32> to vector<4x32xbf16>
    %cst_293 = arith.constant dense<0.000000e+00> : vector<2x32xf32>
    %759 = tpu.matmul %757, %758, %cst_293 {dimension_numbers = #tpu.dot_dimension_numbers<[1], [0], [0], [1], [0, 0, 1, 1], [], []>} : vector<2x4xbf16>, vector<4x32xbf16>, vector<2x32xf32> -> vector<2x32xf32>
    %760 = arith.truncf %759 : vector<2x32xf32> to vector<2x32xbf16>
    %c3_294 = arith.constant 3 : index
    %c0_295 = arith.constant 0 : index
    %c0_296 = arith.constant 0 : index
    %761 = vector.load %arg4[%c3_294, %c0_295, %c0_296] : memref<5x32x64xbf16, #tpu.memory_space<vmem>>, vector<1x32x64xbf16>
    %762 = vector.shape_cast %761 : vector<1x32x64xbf16> to vector<32x64xbf16>
    %cst_297 = arith.constant dense<0.000000e+00> : vector<2x64xf32>
    %763 = tpu.matmul %760, %762, %cst_297 {dimension_numbers = #tpu.dot_dimension_numbers<[1], [0], [0], [1], [0, 0, 1, 1], [], []>} : vector<2x32xbf16>, vector<32x64xbf16>, vector<2x64xf32> -> vector<2x64xf32>
    %764 = arith.truncf %742 : vector<4x32xf32> to vector<4x32xbf16>
    %c3_298 = arith.constant 3 : index
    %c0_299 = arith.constant 0 : index
    %c0_300 = arith.constant 0 : index
    %765 = vector.load %arg5[%c3_298, %c0_299, %c0_300] : memref<5x32x64xbf16, #tpu.memory_space<vmem>>, vector<1x32x64xbf16>
    %766 = vector.shape_cast %765 : vector<1x32x64xbf16> to vector<32x64xbf16>
    %cst_301 = arith.constant dense<0.000000e+00> : vector<4x64xf32>
    %767 = tpu.matmul %764, %766, %cst_301 {dimension_numbers = #tpu.dot_dimension_numbers<[1], [0], [0], [1], [0, 0, 1, 1], [], []>} : vector<4x32xbf16>, vector<32x64xbf16>, vector<4x64xf32> -> vector<4x64xf32>
    %768 = arith.truncf %767 : vector<4x64xf32> to vector<4x64xbf16>
    %cst_302 = arith.constant 0.000000e+00 : f32
    %769 = vector.broadcast %cst_302 : f32 to vector<2x64xf32>
    %770 = vector.broadcast %8 : vector<1x64xf32> to vector<2x64xf32>
    %771 = arith.mulf %763, %770 : vector<2x64xf32>
    %772 = arith.truncf %771 : vector<2x64xf32> to vector<2x64xbf16>
    %cst_303 = arith.constant dense<0.000000e+00> : vector<2x4xf32>
    %773 = tpu.matmul %772, %768, %cst_303 {dimension_numbers = #tpu.dot_dimension_numbers<[1], [1], [0], [0], [0, 0, 1, 0], [], []>} : vector<2x64xbf16>, vector<4x64xbf16>, vector<2x4xf32> -> vector<2x4xf32>
    %cst_304 = arith.constant dense<0xFF800000> : vector<2xf32>
    %774 = vector.multi_reduction <maximumf>, %773, %cst_304 [1] : vector<2x4xf32> to vector<2xf32>
    %775 = vector.shape_cast %774 : vector<2xf32> to vector<2x1xf32>
    %776 = vector.broadcast %775 : vector<2x1xf32> to vector<2x4xf32>
    %777 = arith.subf %773, %776 : vector<2x4xf32>
    %778 = math.exp %777 : vector<2x4xf32>
    %cst_305 = arith.constant dense<0.000000e+00> : vector<2xf32>
    %779 = vector.multi_reduction <add>, %778, %cst_305 [1] : vector<2x4xf32> to vector<2xf32>
    %780 = vector.shape_cast %779 : vector<2xf32> to vector<2x1xf32>
    %781 = tpu.reciprocal %780 {approx = true} : vector<2x1xf32> -> vector<2x1xf32>
    %782 = vector.broadcast %781 : vector<2x1xf32> to vector<2x4xf32>
    %783 = arith.mulf %778, %782 : vector<2x4xf32>
    %784 = arith.truncf %783 : vector<2x4xf32> to vector<2x4xbf16>
    %cst_306 = arith.constant dense<0.000000e+00> : vector<2x64xf32>
    %785 = tpu.matmul %784, %768, %cst_306 {dimension_numbers = #tpu.dot_dimension_numbers<[1], [0], [0], [1], [0, 0, 1, 1], [], []>} : vector<2x4xbf16>, vector<4x64xbf16>, vector<2x64xf32> -> vector<2x64xf32>
    %786 = vector.broadcast %24 : vector<1x64xf32> to vector<2x64xf32>
    %787 = arith.mulf %785, %786 : vector<2x64xf32>
    %788 = arith.addf %769, %787 : vector<2x64xf32>
    %789 = vector.broadcast %16 : vector<1x64xf32> to vector<2x64xf32>
    %790 = arith.mulf %763, %789 : vector<2x64xf32>
    %791 = arith.truncf %790 : vector<2x64xf32> to vector<2x64xbf16>
    %cst_307 = arith.constant dense<0.000000e+00> : vector<2x4xf32>
    %792 = tpu.matmul %791, %768, %cst_307 {dimension_numbers = #tpu.dot_dimension_numbers<[1], [1], [0], [0], [0, 0, 1, 0], [], []>} : vector<2x64xbf16>, vector<4x64xbf16>, vector<2x4xf32> -> vector<2x4xf32>
    %cst_308 = arith.constant dense<0xFF800000> : vector<2xf32>
    %793 = vector.multi_reduction <maximumf>, %792, %cst_308 [1] : vector<2x4xf32> to vector<2xf32>
    %794 = vector.shape_cast %793 : vector<2xf32> to vector<2x1xf32>
    %795 = vector.broadcast %794 : vector<2x1xf32> to vector<2x4xf32>
    %796 = arith.subf %792, %795 : vector<2x4xf32>
    %797 = math.exp %796 : vector<2x4xf32>
    %cst_309 = arith.constant dense<0.000000e+00> : vector<2xf32>
    %798 = vector.multi_reduction <add>, %797, %cst_309 [1] : vector<2x4xf32> to vector<2xf32>
    %799 = vector.shape_cast %798 : vector<2xf32> to vector<2x1xf32>
    %800 = tpu.reciprocal %799 {approx = true} : vector<2x1xf32> -> vector<2x1xf32>
    %801 = vector.broadcast %800 : vector<2x1xf32> to vector<2x4xf32>
    %802 = arith.mulf %797, %801 : vector<2x4xf32>
    %803 = arith.truncf %802 : vector<2x4xf32> to vector<2x4xbf16>
    %cst_310 = arith.constant dense<0.000000e+00> : vector<2x64xf32>
    %804 = tpu.matmul %803, %768, %cst_310 {dimension_numbers = #tpu.dot_dimension_numbers<[1], [0], [0], [1], [0, 0, 1, 1], [], []>} : vector<2x4xbf16>, vector<4x64xbf16>, vector<2x64xf32> -> vector<2x64xf32>
    %805 = vector.broadcast %32 : vector<1x64xf32> to vector<2x64xf32>
    %806 = arith.mulf %804, %805 : vector<2x64xf32>
    %807 = arith.addf %788, %806 : vector<2x64xf32>
    %808 = arith.truncf %807 : vector<2x64xf32> to vector<2x64xbf16>
    %c3_311 = arith.constant 3 : index
    %c0_312 = arith.constant 0 : index
    %c0_313 = arith.constant 0 : index
    %809 = vector.load %arg6[%c3_311, %c0_312, %c0_313] : memref<5x64x32xbf16, #tpu.memory_space<vmem>>, vector<1x64x32xbf16>
    %810 = vector.shape_cast %809 : vector<1x64x32xbf16> to vector<64x32xbf16>
    %cst_314 = arith.constant dense<0.000000e+00> : vector<2x32xf32>
    %811 = tpu.matmul %808, %810, %cst_314 {dimension_numbers = #tpu.dot_dimension_numbers<[1], [0], [0], [1], [0, 0, 1, 1], [], []>} : vector<2x64xbf16>, vector<64x32xbf16>, vector<2x32xf32> -> vector<2x32xf32>
    %812 = arith.addf %811, %759 : vector<2x32xf32>
    %cst_315 = arith.constant dense<0.000000e+00> : vector<2xf32>
    %813 = vector.multi_reduction <add>, %812, %cst_315 [1] : vector<2x32xf32> to vector<2xf32>
    %814 = vector.shape_cast %813 : vector<2xf32> to vector<2x1xf32>
    %cst_316 = arith.constant 3.200000e+01 : f32
    %815 = vector.broadcast %cst_316 : f32 to vector<2x1xf32>
    %816 = arith.divf %814, %815 : vector<2x1xf32>
    %817 = vector.broadcast %816 : vector<2x1xf32> to vector<2x32xf32>
    %818 = arith.subf %812, %817 : vector<2x32xf32>
    %819 = vector.broadcast %816 : vector<2x1xf32> to vector<2x32xf32>
    %820 = arith.subf %812, %819 : vector<2x32xf32>
    %821 = arith.mulf %818, %820 : vector<2x32xf32>
    %cst_317 = arith.constant dense<0.000000e+00> : vector<2xf32>
    %822 = vector.multi_reduction <add>, %821, %cst_317 [1] : vector<2x32xf32> to vector<2xf32>
    %823 = vector.shape_cast %822 : vector<2xf32> to vector<2x1xf32>
    %cst_318 = arith.constant 3.200000e+01 : f32
    %824 = vector.broadcast %cst_318 : f32 to vector<2x1xf32>
    %825 = arith.divf %823, %824 : vector<2x1xf32>
    %826 = vector.broadcast %816 : vector<2x1xf32> to vector<2x32xf32>
    %827 = arith.subf %812, %826 : vector<2x32xf32>
    %cst_319 = arith.constant 9.99999974E-6 : f32
    %828 = vector.broadcast %cst_319 : f32 to vector<2x1xf32>
    %829 = arith.addf %825, %828 : vector<2x1xf32>
    %830 = math.rsqrt %829 : vector<2x1xf32>
    %831 = vector.broadcast %830 : vector<2x1xf32> to vector<2x32xf32>
    %832 = arith.mulf %827, %831 : vector<2x32xf32>
    %c3_320 = arith.constant 3 : index
    %c0_321 = arith.constant 0 : index
    %c0_322 = arith.constant 0 : index
    %833 = vector.load %arg7[%c3_320, %c0_321, %c0_322] : memref<5x1x32xf32, #tpu.memory_space<vmem>>, vector<1x1x32xf32>
    %834 = vector.shape_cast %833 : vector<1x1x32xf32> to vector<1x32xf32>
    %835 = vector.broadcast %834 : vector<1x32xf32> to vector<2x32xf32>
    %836 = arith.mulf %832, %835 : vector<2x32xf32>
    %c3_323 = arith.constant 3 : index
    %c0_324 = arith.constant 0 : index
    %c0_325 = arith.constant 0 : index
    %837 = vector.load %arg8[%c3_323, %c0_324, %c0_325] : memref<5x1x32xf32, #tpu.memory_space<vmem>>, vector<1x1x32xf32>
    %838 = vector.shape_cast %837 : vector<1x1x32xf32> to vector<1x32xf32>
    %839 = vector.broadcast %838 : vector<1x32xf32> to vector<2x32xf32>
    %840 = arith.addf %836, %839 : vector<2x32xf32>
    %841 = tpu.iota {dimensions = array<i32: 0>} : vector<1x2xi32>
    %842 = tpu.iota {dimensions = array<i32: 1>} : vector<1x2xi32>
    %c2_i32_326 = arith.constant 2 : i32
    %843 = vector.broadcast %c2_i32_326 : i32 to vector<1x2xi32>
    %844 = arith.muli %843, %841 : vector<1x2xi32>
    %845 = arith.cmpi eq, %842, %844 : vector<1x2xi32>
    %c2_i32_327 = arith.constant 2 : i32
    %846 = vector.broadcast %c2_i32_327 : i32 to vector<1x2xi32>
    %847 = arith.muli %846, %841 : vector<1x2xi32>
    %c1_i32_328 = arith.constant 1 : i32
    %848 = vector.broadcast %c1_i32_328 : i32 to vector<1x2xi32>
    %849 = arith.addi %847, %848 : vector<1x2xi32>
    %850 = arith.cmpi eq, %842, %849 : vector<1x2xi32>
    %851 = arith.ori %845, %850 : vector<1x2xi1>
    %cst_329 = arith.constant 5.000000e-01 : f32
    %cst_330 = arith.constant 0.000000e+00 : f32
    %852 = vector.broadcast %cst_329 : f32 to vector<1x2xf32>
    %853 = vector.broadcast %cst_330 : f32 to vector<1x2xf32>
    %854 = arith.select %851, %852, %853 : vector<1x2xi1>, vector<1x2xf32>
    %855 = arith.truncf %854 : vector<1x2xf32> to vector<1x2xbf16>
    %856 = arith.truncf %840 : vector<2x32xf32> to vector<2x32xbf16>
    %cst_331 = arith.constant dense<0.000000e+00> : vector<1x32xf32>
    %857 = tpu.matmul %855, %856, %cst_331 {dimension_numbers = #tpu.dot_dimension_numbers<[1], [0], [0], [1], [0, 0, 1, 1], [], []>} : vector<1x2xbf16>, vector<2x32xbf16>, vector<1x32xf32> -> vector<1x32xf32>
    %858 = arith.truncf %857 : vector<1x32xf32> to vector<1x32xbf16>
    %c3_332 = arith.constant 3 : index
    %c0_333 = arith.constant 0 : index
    %c0_334 = arith.constant 0 : index
    %859 = vector.load %arg4[%c3_332, %c0_333, %c0_334] : memref<5x32x64xbf16, #tpu.memory_space<vmem>>, vector<1x32x64xbf16>
    %860 = vector.shape_cast %859 : vector<1x32x64xbf16> to vector<32x64xbf16>
    %cst_335 = arith.constant dense<0.000000e+00> : vector<1x64xf32>
    %861 = tpu.matmul %858, %860, %cst_335 {dimension_numbers = #tpu.dot_dimension_numbers<[1], [0], [0], [1], [0, 0, 1, 1], [], []>} : vector<1x32xbf16>, vector<32x64xbf16>, vector<1x64xf32> -> vector<1x64xf32>
    %862 = arith.truncf %840 : vector<2x32xf32> to vector<2x32xbf16>
    %c3_336 = arith.constant 3 : index
    %c0_337 = arith.constant 0 : index
    %c0_338 = arith.constant 0 : index
    %863 = vector.load %arg5[%c3_336, %c0_337, %c0_338] : memref<5x32x64xbf16, #tpu.memory_space<vmem>>, vector<1x32x64xbf16>
    %864 = vector.shape_cast %863 : vector<1x32x64xbf16> to vector<32x64xbf16>
    %cst_339 = arith.constant dense<0.000000e+00> : vector<2x64xf32>
    %865 = tpu.matmul %862, %864, %cst_339 {dimension_numbers = #tpu.dot_dimension_numbers<[1], [0], [0], [1], [0, 0, 1, 1], [], []>} : vector<2x32xbf16>, vector<32x64xbf16>, vector<2x64xf32> -> vector<2x64xf32>
    %866 = arith.truncf %865 : vector<2x64xf32> to vector<2x64xbf16>
    %cst_340 = arith.constant 0.000000e+00 : f32
    %867 = vector.broadcast %cst_340 : f32 to vector<1x64xf32>
    %868 = arith.mulf %861, %8 : vector<1x64xf32>
    %869 = arith.truncf %868 : vector<1x64xf32> to vector<1x64xbf16>
    %cst_341 = arith.constant dense<0.000000e+00> : vector<1x2xf32>
    %870 = tpu.matmul %869, %866, %cst_341 {dimension_numbers = #tpu.dot_dimension_numbers<[1], [1], [0], [0], [0, 0, 1, 0], [], []>} : vector<1x64xbf16>, vector<2x64xbf16>, vector<1x2xf32> -> vector<1x2xf32>
    %cst_342 = arith.constant dense<0xFF800000> : vector<1xf32>
    %871 = vector.multi_reduction <maximumf>, %870, %cst_342 [1] : vector<1x2xf32> to vector<1xf32>
    %872 = vector.shape_cast %871 : vector<1xf32> to vector<1x1xf32>
    %873 = vector.broadcast %872 : vector<1x1xf32> to vector<1x2xf32>
    %874 = arith.subf %870, %873 : vector<1x2xf32>
    %875 = math.exp %874 : vector<1x2xf32>
    %cst_343 = arith.constant dense<0.000000e+00> : vector<1xf32>
    %876 = vector.multi_reduction <add>, %875, %cst_343 [1] : vector<1x2xf32> to vector<1xf32>
    %877 = vector.shape_cast %876 : vector<1xf32> to vector<1x1xf32>
    %878 = tpu.reciprocal %877 {approx = true} : vector<1x1xf32> -> vector<1x1xf32>
    %879 = vector.broadcast %878 : vector<1x1xf32> to vector<1x2xf32>
    %880 = arith.mulf %875, %879 : vector<1x2xf32>
    %881 = arith.truncf %880 : vector<1x2xf32> to vector<1x2xbf16>
    %cst_344 = arith.constant dense<0.000000e+00> : vector<1x64xf32>
    %882 = tpu.matmul %881, %866, %cst_344 {dimension_numbers = #tpu.dot_dimension_numbers<[1], [0], [0], [1], [0, 0, 1, 1], [], []>} : vector<1x2xbf16>, vector<2x64xbf16>, vector<1x64xf32> -> vector<1x64xf32>
    %883 = arith.mulf %882, %24 : vector<1x64xf32>
    %884 = arith.addf %867, %883 : vector<1x64xf32>
    %885 = arith.mulf %861, %16 : vector<1x64xf32>
    %886 = arith.truncf %885 : vector<1x64xf32> to vector<1x64xbf16>
    %cst_345 = arith.constant dense<0.000000e+00> : vector<1x2xf32>
    %887 = tpu.matmul %886, %866, %cst_345 {dimension_numbers = #tpu.dot_dimension_numbers<[1], [1], [0], [0], [0, 0, 1, 0], [], []>} : vector<1x64xbf16>, vector<2x64xbf16>, vector<1x2xf32> -> vector<1x2xf32>
    %cst_346 = arith.constant dense<0xFF800000> : vector<1xf32>
    %888 = vector.multi_reduction <maximumf>, %887, %cst_346 [1] : vector<1x2xf32> to vector<1xf32>
    %889 = vector.shape_cast %888 : vector<1xf32> to vector<1x1xf32>
    %890 = vector.broadcast %889 : vector<1x1xf32> to vector<1x2xf32>
    %891 = arith.subf %887, %890 : vector<1x2xf32>
    %892 = math.exp %891 : vector<1x2xf32>
    %cst_347 = arith.constant dense<0.000000e+00> : vector<1xf32>
    %893 = vector.multi_reduction <add>, %892, %cst_347 [1] : vector<1x2xf32> to vector<1xf32>
    %894 = vector.shape_cast %893 : vector<1xf32> to vector<1x1xf32>
    %895 = tpu.reciprocal %894 {approx = true} : vector<1x1xf32> -> vector<1x1xf32>
    %896 = vector.broadcast %895 : vector<1x1xf32> to vector<1x2xf32>
    %897 = arith.mulf %892, %896 : vector<1x2xf32>
    %898 = arith.truncf %897 : vector<1x2xf32> to vector<1x2xbf16>
    %cst_348 = arith.constant dense<0.000000e+00> : vector<1x64xf32>
    %899 = tpu.matmul %898, %866, %cst_348 {dimension_numbers = #tpu.dot_dimension_numbers<[1], [0], [0], [1], [0, 0, 1, 1], [], []>} : vector<1x2xbf16>, vector<2x64xbf16>, vector<1x64xf32> -> vector<1x64xf32>
    %900 = arith.mulf %899, %32 : vector<1x64xf32>
    %901 = arith.addf %884, %900 : vector<1x64xf32>
    %902 = arith.truncf %901 : vector<1x64xf32> to vector<1x64xbf16>
    %c3_349 = arith.constant 3 : index
    %c0_350 = arith.constant 0 : index
    %c0_351 = arith.constant 0 : index
    %903 = vector.load %arg6[%c3_349, %c0_350, %c0_351] : memref<5x64x32xbf16, #tpu.memory_space<vmem>>, vector<1x64x32xbf16>
    %904 = vector.shape_cast %903 : vector<1x64x32xbf16> to vector<64x32xbf16>
    %cst_352 = arith.constant dense<0.000000e+00> : vector<1x32xf32>
    %905 = tpu.matmul %902, %904, %cst_352 {dimension_numbers = #tpu.dot_dimension_numbers<[1], [0], [0], [1], [0, 0, 1, 1], [], []>} : vector<1x64xbf16>, vector<64x32xbf16>, vector<1x32xf32> -> vector<1x32xf32>
    %906 = arith.addf %905, %857 : vector<1x32xf32>
    %cst_353 = arith.constant dense<0.000000e+00> : vector<1xf32>
    %907 = vector.multi_reduction <add>, %906, %cst_353 [1] : vector<1x32xf32> to vector<1xf32>
    %908 = vector.shape_cast %907 : vector<1xf32> to vector<1x1xf32>
    %cst_354 = arith.constant 3.200000e+01 : f32
    %909 = vector.broadcast %cst_354 : f32 to vector<1x1xf32>
    %910 = arith.divf %908, %909 : vector<1x1xf32>
    %911 = vector.broadcast %910 : vector<1x1xf32> to vector<1x32xf32>
    %912 = arith.subf %906, %911 : vector<1x32xf32>
    %913 = vector.broadcast %910 : vector<1x1xf32> to vector<1x32xf32>
    %914 = arith.subf %906, %913 : vector<1x32xf32>
    %915 = arith.mulf %912, %914 : vector<1x32xf32>
    %cst_355 = arith.constant dense<0.000000e+00> : vector<1xf32>
    %916 = vector.multi_reduction <add>, %915, %cst_355 [1] : vector<1x32xf32> to vector<1xf32>
    %917 = vector.shape_cast %916 : vector<1xf32> to vector<1x1xf32>
    %cst_356 = arith.constant 3.200000e+01 : f32
    %918 = vector.broadcast %cst_356 : f32 to vector<1x1xf32>
    %919 = arith.divf %917, %918 : vector<1x1xf32>
    %920 = vector.broadcast %910 : vector<1x1xf32> to vector<1x32xf32>
    %921 = arith.subf %906, %920 : vector<1x32xf32>
    %cst_357 = arith.constant 9.99999974E-6 : f32
    %922 = vector.broadcast %cst_357 : f32 to vector<1x1xf32>
    %923 = arith.addf %919, %922 : vector<1x1xf32>
    %924 = math.rsqrt %923 : vector<1x1xf32>
    %925 = vector.broadcast %924 : vector<1x1xf32> to vector<1x32xf32>
    %926 = arith.mulf %921, %925 : vector<1x32xf32>
    %c3_358 = arith.constant 3 : index
    %c0_359 = arith.constant 0 : index
    %c0_360 = arith.constant 0 : index
    %927 = vector.load %arg7[%c3_358, %c0_359, %c0_360] : memref<5x1x32xf32, #tpu.memory_space<vmem>>, vector<1x1x32xf32>
    %928 = vector.shape_cast %927 : vector<1x1x32xf32> to vector<1x32xf32>
    %929 = arith.mulf %926, %928 : vector<1x32xf32>
    %c3_361 = arith.constant 3 : index
    %c0_362 = arith.constant 0 : index
    %c0_363 = arith.constant 0 : index
    %930 = vector.load %arg8[%c3_361, %c0_362, %c0_363] : memref<5x1x32xf32, #tpu.memory_space<vmem>>, vector<1x1x32xf32>
    %931 = vector.shape_cast %930 : vector<1x1x32xf32> to vector<1x32xf32>
    %932 = arith.addf %929, %931 : vector<1x32xf32>
    %933 = vector.shape_cast %932 : vector<1x32xf32> to vector<1x1x32xf32>
    %c0_364 = arith.constant 0 : index
    %c0_365 = arith.constant 0 : index
    %c0_366 = arith.constant 0 : index
    %934 = vector.load %arg9[%c0_364, %c0_365, %c0_366] : memref<1x1x32xf32, #tpu.memory_space<vmem>>, vector<1x1x32xf32>
    tpu.vector_store %arg9[%c0_364, %c0_365, %c0_366], %933 {strides = array<i32>} : memref<1x1x32xf32, #tpu.memory_space<vmem>>, vector<1x1x32xf32>,
    %935 = arith.truncf %38 : vector<1x32xf32> to vector<1x32xbf16>
    %c4 = arith.constant 4 : index
    %c0_367 = arith.constant 0 : index
    %c0_368 = arith.constant 0 : index
    %936 = vector.load %arg4[%c4, %c0_367, %c0_368] : memref<5x32x64xbf16, #tpu.memory_space<vmem>>, vector<1x32x64xbf16>
    %937 = vector.shape_cast %936 : vector<1x32x64xbf16> to vector<32x64xbf16>
    %cst_369 = arith.constant dense<0.000000e+00> : vector<1x64xf32>
    %938 = tpu.matmul %935, %937, %cst_369 {dimension_numbers = #tpu.dot_dimension_numbers<[1], [0], [0], [1], [0, 0, 1, 1], [], []>} : vector<1x32xbf16>, vector<32x64xbf16>, vector<1x64xf32> -> vector<1x64xf32>
    %939 = arith.truncf %38 : vector<1x32xf32> to vector<1x32xbf16>
    %c4_370 = arith.constant 4 : index
    %c0_371 = arith.constant 0 : index
    %c0_372 = arith.constant 0 : index
    %940 = vector.load %arg5[%c4_370, %c0_371, %c0_372] : memref<5x32x64xbf16, #tpu.memory_space<vmem>>, vector<1x32x64xbf16>
    %941 = vector.shape_cast %940 : vector<1x32x64xbf16> to vector<32x64xbf16>
    %cst_373 = arith.constant dense<0.000000e+00> : vector<1x64xf32>
    %942 = tpu.matmul %939, %941, %cst_373 {dimension_numbers = #tpu.dot_dimension_numbers<[1], [0], [0], [1], [0, 0, 1, 1], [], []>} : vector<1x32xbf16>, vector<32x64xbf16>, vector<1x64xf32> -> vector<1x64xf32>
    %943 = arith.truncf %942 : vector<1x64xf32> to vector<1x64xbf16>
    %cst_374 = arith.constant 0.000000e+00 : f32
    %944 = vector.broadcast %cst_374 : f32 to vector<1x64xf32>
    %945 = arith.mulf %938, %8 : vector<1x64xf32>
    %946 = arith.truncf %945 : vector<1x64xf32> to vector<1x64xbf16>
    %947 = arith.extf %946 : vector<1x64xbf16> to vector<1x64xf32>
    %948 = arith.extf %943 : vector<1x64xbf16> to vector<1x64xf32>
    %cst_375 = arith.constant dense<0.000000e+00> : vector<1xf32>
    %949 = arith.mulf %947, %948 : vector<1x64xf32>
    %950 = vector.multi_reduction <add>, %949, %cst_375 [1] : vector<1x64xf32> to vector<1xf32>
    %951 = vector.shape_cast %950 : vector<1xf32> to vector<1x1xf32>
    %cst_376 = arith.constant dense<0xFF800000> : vector<1xf32>
    %952 = vector.multi_reduction <maximumf>, %951, %cst_376 [1] : vector<1x1xf32> to vector<1xf32>
    %953 = vector.shape_cast %952 : vector<1xf32> to vector<1x1xf32>
    %954 = arith.subf %951, %953 : vector<1x1xf32>
    %955 = math.exp %954 : vector<1x1xf32>
    %cst_377 = arith.constant dense<0.000000e+00> : vector<1xf32>
    %956 = vector.multi_reduction <add>, %955, %cst_377 [1] : vector<1x1xf32> to vector<1xf32>
    %957 = vector.shape_cast %956 : vector<1xf32> to vector<1x1xf32>
    %958 = tpu.reciprocal %957 {approx = true} : vector<1x1xf32> -> vector<1x1xf32>
    %959 = arith.mulf %955, %958 : vector<1x1xf32>
    %960 = arith.truncf %959 : vector<1x1xf32> to vector<1x1xbf16>
    %cst_378 = arith.constant dense<0.000000e+00> : vector<1x64xf32>
    %961 = tpu.matmul %960, %943, %cst_378 {dimension_numbers = #tpu.dot_dimension_numbers<[1], [0], [0], [1], [0, 0, 1, 1], [], []>} : vector<1x1xbf16>, vector<1x64xbf16>, vector<1x64xf32> -> vector<1x64xf32>
    %962 = arith.mulf %961, %24 : vector<1x64xf32>
    %963 = arith.addf %944, %962 : vector<1x64xf32>
    %964 = arith.mulf %938, %16 : vector<1x64xf32>
    %965 = arith.truncf %964 : vector<1x64xf32> to vector<1x64xbf16>
    %966 = arith.extf %965 : vector<1x64xbf16> to vector<1x64xf32>
    %967 = arith.extf %943 : vector<1x64xbf16> to vector<1x64xf32>
    %cst_379 = arith.constant dense<0.000000e+00> : vector<1xf32>
    %968 = arith.mulf %966, %967 : vector<1x64xf32>
    %969 = vector.multi_reduction <add>, %968, %cst_379 [1] : vector<1x64xf32> to vector<1xf32>
    %970 = vector.shape_cast %969 : vector<1xf32> to vector<1x1xf32>
    %cst_380 = arith.constant dense<0xFF800000> : vector<1xf32>
    %971 = vector.multi_reduction <maximumf>, %970, %cst_380 [1] : vector<1x1xf32> to vector<1xf32>
    %972 = vector.shape_cast %971 : vector<1xf32> to vector<1x1xf32>
    %973 = arith.subf %970, %972 : vector<1x1xf32>
    %974 = math.exp %973 : vector<1x1xf32>
    %cst_381 = arith.constant dense<0.000000e+00> : vector<1xf32>
    %975 = vector.multi_reduction <add>, %974, %cst_381 [1] : vector<1x1xf32> to vector<1xf32>
    %976 = vector.shape_cast %975 : vector<1xf32> to vector<1x1xf32>
    %977 = tpu.reciprocal %976 {approx = true} : vector<1x1xf32> -> vector<1x1xf32>
    %978 = arith.mulf %974, %977 : vector<1x1xf32>
    %979 = arith.truncf %978 : vector<1x1xf32> to vector<1x1xbf16>
    %cst_382 = arith.constant dense<0.000000e+00> : vector<1x64xf32>
    %980 = tpu.matmul %979, %943, %cst_382 {dimension_numbers = #tpu.dot_dimension_numbers<[1], [0], [0], [1], [0, 0, 1, 1], [], []>} : vector<1x1xbf16>, vector<1x64xbf16>, vector<1x64xf32> -> vector<1x64xf32>
    %981 = arith.mulf %980, %32 : vector<1x64xf32>
    %982 = arith.addf %963, %981 : vector<1x64xf32>
    %983 = arith.truncf %982 : vector<1x64xf32> to vector<1x64xbf16>
    %c4_383 = arith.constant 4 : index
    %c0_384 = arith.constant 0 : index
    %c0_385 = arith.constant 0 : index
    %984 = vector.load %arg6[%c4_383, %c0_384, %c0_385] : memref<5x64x32xbf16, #tpu.memory_space<vmem>>, vector<1x64x32xbf16>
    %985 = vector.shape_cast %984 : vector<1x64x32xbf16> to vector<64x32xbf16>
    %cst_386 = arith.constant dense<0.000000e+00> : vector<1x32xf32>
    %986 = tpu.matmul %983, %985, %cst_386 {dimension_numbers = #tpu.dot_dimension_numbers<[1], [0], [0], [1], [0, 0, 1, 1], [], []>} : vector<1x64xbf16>, vector<64x32xbf16>, vector<1x32xf32> -> vector<1x32xf32>
    %987 = arith.addf %986, %38 : vector<1x32xf32>
    %cst_387 = arith.constant dense<0.000000e+00> : vector<1xf32>
    %988 = vector.multi_reduction <add>, %987, %cst_387 [1] : vector<1x32xf32> to vector<1xf32>
    %989 = vector.shape_cast %988 : vector<1xf32> to vector<1x1xf32>
    %cst_388 = arith.constant 3.200000e+01 : f32
    %990 = vector.broadcast %cst_388 : f32 to vector<1x1xf32>
    %991 = arith.divf %989, %990 : vector<1x1xf32>
    %992 = vector.broadcast %991 : vector<1x1xf32> to vector<1x32xf32>
    %993 = arith.subf %987, %992 : vector<1x32xf32>
    %994 = vector.broadcast %991 : vector<1x1xf32> to vector<1x32xf32>
    %995 = arith.subf %987, %994 : vector<1x32xf32>
    %996 = arith.mulf %993, %995 : vector<1x32xf32>
    %cst_389 = arith.constant dense<0.000000e+00> : vector<1xf32>
    %997 = vector.multi_reduction <add>, %996, %cst_389 [1] : vector<1x32xf32> to vector<1xf32>
    %998 = vector.shape_cast %997 : vector<1xf32> to vector<1x1xf32>
    %cst_390 = arith.constant 3.200000e+01 : f32
    %999 = vector.broadcast %cst_390 : f32 to vector<1x1xf32>
    %1000 = arith.divf %998, %999 : vector<1x1xf32>
    %1001 = vector.broadcast %991 : vector<1x1xf32> to vector<1x32xf32>
    %1002 = arith.subf %987, %1001 : vector<1x32xf32>
    %cst_391 = arith.constant 9.99999974E-6 : f32
    %1003 = vector.broadcast %cst_391 : f32 to vector<1x1xf32>
    %1004 = arith.addf %1000, %1003 : vector<1x1xf32>
    %1005 = math.rsqrt %1004 : vector<1x1xf32>
    %1006 = vector.broadcast %1005 : vector<1x1xf32> to vector<1x32xf32>
    %1007 = arith.mulf %1002, %1006 : vector<1x32xf32>
    %c4_392 = arith.constant 4 : index
    %c0_393 = arith.constant 0 : index
    %c0_394 = arith.constant 0 : index
    %1008 = vector.load %arg7[%c4_392, %c0_393, %c0_394] : memref<5x1x32xf32, #tpu.memory_space<vmem>>, vector<1x1x32xf32>
    %1009 = vector.shape_cast %1008 : vector<1x1x32xf32> to vector<1x32xf32>
    %1010 = arith.mulf %1007, %1009 : vector<1x32xf32>
    %c4_395 = arith.constant 4 : index
    %c0_396 = arith.constant 0 : index
    %c0_397 = arith.constant 0 : index
    %1011 = vector.load %arg8[%c4_395, %c0_396, %c0_397] : memref<5x1x32xf32, #tpu.memory_space<vmem>>, vector<1x1x32xf32>
    %1012 = vector.shape_cast %1011 : vector<1x1x32xf32> to vector<1x32xf32>
    %1013 = arith.addf %1010, %1012 : vector<1x32xf32>
    %1014 = vector.shape_cast %1013 : vector<1x32xf32> to vector<1x1x32xf32>
    %c0_398 = arith.constant 0 : index
    %c0_399 = arith.constant 0 : index
    %c0_400 = arith.constant 0 : index
    %1015 = vector.load %arg10[%c0_398, %c0_399, %c0_400] : memref<1x1x32xf32, #tpu.memory_space<vmem>>, vector<1x1x32xf32>
    tpu.vector_store %arg10[%c0_398, %c0_399, %c0_400], %1014 {strides = array<i32>} : memref<1x1x32xf32, #tpu.memory_space<vmem>>, vector<1x1x32xf32>,
    return
  }
  func.func @transform_0(%arg0: i32) -> (i32, i32, i32) {
    %c0_i32 = arith.constant 0 : i32
    %c0_i32_0 = arith.constant 0 : i32
    %c0_i32_1 = arith.constant 0 : i32
    return %arg0, %c0_i32, %c0_i32_0 : i32, i32, i32
  }
  func.func @transform_1(%arg0: i32) -> (i32, i32, i32) {
    %c0_i32 = arith.constant 0 : i32
    %c0_i32_0 = arith.constant 0 : i32
    %c0_i32_1 = arith.constant 0 : i32
    return %arg0, %c0_i32, %c0_i32_0 : i32, i32, i32
  }
  func.func @transform_2(%arg0: i32) -> (i32, i32, i32) {
    %c0_i32 = arith.constant 0 : i32
    %c0_i32_0 = arith.constant 0 : i32
    %c0_i32_1 = arith.constant 0 : i32
    return %arg0, %c0_i32, %c0_i32_0 : i32, i32, i32
  }
  func.func @transform_3(%arg0: i32) -> (i32, i32, i32) {
    %c0_i32 = arith.constant 0 : i32
    %c0_i32_0 = arith.constant 0 : i32
    %c0_i32_1 = arith.constant 0 : i32
    %c0_i32_2 = arith.constant 0 : i32
    return %c0_i32, %c0_i32_0, %c0_i32_1 : i32, i32, i32
  }
  func.func @transform_4(%arg0: i32) -> (i32, i32, i32) {
    %c0_i32 = arith.constant 0 : i32
    %c0_i32_0 = arith.constant 0 : i32
    %c0_i32_1 = arith.constant 0 : i32
    %c0_i32_2 = arith.constant 0 : i32
    return %c0_i32, %c0_i32_0, %c0_i32_1 : i32, i32, i32
  }
  func.func @transform_5(%arg0: i32) -> (i32, i32, i32) {
    %c0_i32 = arith.constant 0 : i32
    %c0_i32_0 = arith.constant 0 : i32
    %c0_i32_1 = arith.constant 0 : i32
    %c0_i32_2 = arith.constant 0 : i32
    return %c0_i32, %c0_i32_0, %c0_i32_1 : i32, i32, i32
  }
  func.func @transform_6(%arg0: i32) -> (i32, i32, i32) {
    %c0_i32 = arith.constant 0 : i32
    %c0_i32_0 = arith.constant 0 : i32
    %c0_i32_1 = arith.constant 0 : i32
    %c0_i32_2 = arith.constant 0 : i32
    return %c0_i32, %c0_i32_0, %c0_i32_1 : i32, i32, i32
  }
  func.func @transform_7(%arg0: i32) -> (i32, i32, i32) {
    %c0_i32 = arith.constant 0 : i32
    %c0_i32_0 = arith.constant 0 : i32
    %c0_i32_1 = arith.constant 0 : i32
    %c0_i32_2 = arith.constant 0 : i32
    return %c0_i32, %c0_i32_0, %c0_i32_1 : i32, i32, i32
  }
  func.func @transform_8(%arg0: i32) -> (i32, i32, i32) {
    %c0_i32 = arith.constant 0 : i32
    %c0_i32_0 = arith.constant 0 : i32
    %c0_i32_1 = arith.constant 0 : i32
    return %arg0, %c0_i32, %c0_i32_0 : i32, i32, i32
  }
  func.func @transform_9(%arg0: i32) -> (i32, i32, i32) {
    %c0_i32 = arith.constant 0 : i32
    %c0_i32_0 = arith.constant 0 : i32
    %c0_i32_1 = arith.constant 0 : i32
    return %arg0, %c0_i32, %c0_i32_0 : i32, i32, i32
  }
}

</mosaic_0001>

<bundles_post_ra>
// kernel: combined_model_forward.3
= control target key start
LH: loop header
LB: loop body
LE: loop exit
PB: predicated region body
PF: predicated region fallthrough
CT: control target
= control target key end

     0   :  { %s476_s0 = inlined_call_operand.vmem [shape: f32[2,1,32], index: 0, kind: input, shape index: {}]   ;;  %s477_s1 = inlined_call_operand.vmem [shape: f32[2,1,32], index: 1, kind: input, shape index: {}]   ;;  %s478_s2 = inlined_call_operand.hbm [shape: f32[1,1], index: 2, kind: output, shape index: {}]  }
   0x1   :  { %v430_v0 = vld [vmem:[%s476_s0] sm:$0x1]  ;;  %v435_v1 = vld [vmem:[%s476_s0 + $0x1] sm:$0x1] }
   0x2   :  { %v16_v2 = vmul.f32 %v430_v0, %v430_v0  ;;  %v17_v3 = vmul.f32 %v435_v1, %v435_v1 }
   0x3   :  { %7 = vsyncpa [#allocation3], 0  ;;  %v444_v4 = vld [vmem:[%s477_s1] sm:$0x1]  ;;  %v449_v5 = vld [vmem:[%s477_s1 + $0x1] sm:$0x1] }
   0x4   :  { %20 = vst [vmem:[#allocation1] ss:$9 sm:$0xff] %v16_v2  ;;  %v77_v6 = vmul.f32 %v444_v4, %v444_v4  ;;  %v78_v7 = vmul.f32 %v449_v5, %v449_v5  ;;  %vm25_vm0 = vcmask 254976   ;;  %s411_s0 = smov [#allocation2]   ;;  %s339_s19 = sshll.u32 %s478_s2, 4  ;;  %s340_s19 = int_to_ptr.hbm [resolvable:$true] %s339_s19 }
   0x5   :  { %22 = vst [vmem:[#allocation1 + $0x1] ss:$9 sm:$0xff] %v17_v3  ;;  %s337_s1 = sshll.u32 %s411_s0, 4  ;;  %s338_s1 = int_to_ptr.vmem [resolvable:$true] %s337_s1 }
   0xc   :  { %v23_v8 = vld [vmem:[#allocation1] sm:$0xff] }
   0xd   :  { %81 = vst [vmem:[#allocation1] ss:$9 sm:$0xff] %v77_v6  ;;  %v26_v11 = vsel %vm25_vm0, %v23_v8, 0.0 }
   0xe   :  { %83 = vst [vmem:[#allocation1 + $0x1] ss:$9 sm:$0xff] %v78_v7 }
  0x15   :  { %v84_v9 = vld [vmem:[#allocation1] sm:$0xff] }
  0x16   :  { %v86_v10 = vsel %vm25_vm0, %v84_v9, 0.0 }
  0x17   :  { %87 = vadd.xlane.f32.xlu0 %v86_v10 }
  0x1f   :  { %27 = vadd.xlane.f32.xlu0 %v26_v11 }
  0x8a   :  { %v88_v12 = vpop.xlane.xlu0 %87 }
  0x8b   :  { %358 = vrsqrt.f32 %v88_v12  ;;  %vm96_vm1 = vcmp.eq.f32.partialorder %v88_v12, inf  ;;  %v99_v24 = vand.u32 2147483648, %v88_v12  ;;  %vm98_vm2 = vcmp.eq.f32.partialorder %v88_v12, 0.0 }
  0x91   :  { %v359_v13 = vpop.eup %358 }
  0x92   :  { %v90_v14 = vmul.f32 %v359_v13, %v88_v12  ;;  %v28_v15 = vpop.xlane.xlu0 %27 }
  0x93   :  { %360 = vrsqrt.f32 %v28_v15  ;;  %vm36_vm3 = vcmp.eq.f32.partialorder %v28_v15, inf  ;;  %v39_v34 = vand.u32 2147483648, %v28_v15  ;;  %vm38_vm4 = vcmp.eq.f32.partialorder %v28_v15, 0.0 }
  0x94   :  { %v91_v16 = vmul.f32 %v359_v13, %v90_v14 }
  0x96   :  { %v92_v17 = vmul.f32 0.5, %v91_v16 }
  0x98   :  { %v93_v18 = vsub.f32 1.5, %v92_v17 }
  0x99   :  { %v361_v19 = vpop.eup %360 }
  0x9a   :  { %v94_v20 = vmul.f32 %v359_v13, %v93_v18  ;;  %v30_v21 = vmul.f32 %v361_v19, %v28_v15 }
  0x9c   :  { %v95_v22 = vmul.f32 %v94_v20, %v88_v12  ;;  %v31_v23 = vmul.f32 %v361_v19, %v30_v21 }
  0x9e   :  { %v97_v25 = vsel %vm96_vm1, %v88_v12, %v95_v22  ;;  %v32_v26 = vmul.f32 0.5, %v31_v23 }
  0x9f   :  { %v100_v27 = vsel %vm98_vm2, %v99_v24, %v97_v25 }
  0xa0   :  { %v101_v28 = vmax.f32 %v100_v27, 1e-12  ;;  %v33_v29 = vsub.f32 1.5, %v32_v26 }
  0xa2   :  { %v103_v30 = vperm.slane %v101_v28, 0  ;;  %v104_v31 = vperm.slane %v101_v28, 1  ;;  %v34_v32 = vmul.f32 %v361_v19, %v33_v29 }
  0xa4   :  { %362 = vrcp.f32 %v103_v30  ;;  %v35_v33 = vmul.f32 %v34_v32, %v28_v15  ;;  %v116_v45 = vand.u32 2147483647, %v103_v30  ;;  %v118_v46 = vand.u32 2147483648, %v103_v30 }
  0xa5   :  { %364 = vrcp.f32 %v104_v31  ;;  %v133_v49 = vand.u32 2147483648, %v104_v31  ;;  %v131_v51 = vand.u32 2147483647, %v104_v31  ;;  %vm112_vm7 = vweird.f32 %v103_v30 }
  0xa6   :  { %v37_v35 = vsel %vm36_vm3, %v28_v15, %v35_v33  ;;  %v119_v53 = vor.u32 1.1754944e-38, %v118_v46  ;;  %vm127_vm9 = vweird.f32 %v104_v31  ;;  %vm117_vm10 = vcmp.eq.f32.partialorder %v116_v45, 8.507059e+37 }
  0xa7   :  { %v40_v36 = vsel %vm38_vm4, %v39_v34, %v37_v35  ;;  %v134_v56 = vor.u32 1.1754944e-38, %v133_v49  ;;  %vm132_vm12 = vcmp.eq.f32.partialorder %v131_v51, 8.507059e+37 }
  0xa8   :  { %v41_v38 = vmax.f32 %v40_v36, 1e-12 }
  0xaa   :  { %v363_v37 = vpop.eup %362  ;;  %v43_v42 = vperm.slane %v41_v38, 0  ;;  %v44_v43 = vperm.slane %v41_v38, 1 }
  0xab   :  { %v365_v39 = vpop.eup %364  ;;  %v108_v40 = vmul.f32 %v363_v37, %v103_v30  ;;  %vm113_vm5 = vweird.f32 %v363_v37 }
  0xac   :  { %v123_v41 = vmul.f32 %v365_v39, %v104_v31  ;;  %366 = vrcp.f32 %v43_v42  ;;  %vm128_vm6 = vweird.f32 %v365_v39  ;;  %vm114_vm8 = vmor %vm112_vm7, %vm113_vm5  ;;  %v58_v7 = vand.u32 2147483648, %v43_v42 }
  0xad   :  { %v109_v44 = vsub.f32 1.0, %v108_v40  ;;  %368 = vrcp.f32 %v44_v43  ;;  %vm129_vm11 = vmor %vm127_vm9, %vm128_vm6  ;;  %v56_v10 = vand.u32 2147483647, %v43_v42  ;;  %v73_v11 = vand.u32 2147483648, %v44_v43 }
  0xae   :  { %v124_v47 = vsub.f32 1.0, %v123_v41  ;;  %v71_v13 = vand.u32 2147483647, %v44_v43  ;;  %vm52_vm15 = vweird.f32 %v43_v42  ;;  %vm67_vm1 = vweird.f32 %v44_v43 }
  0xaf   :  { %v110_v48 = vmul.f32 %v363_v37, %v109_v44  ;;  %vm57_vm2 = vcmp.eq.f32.partialorder %v56_v10, 8.507059e+37  ;;  %v74_v16 = vor.u32 1.1754944e-38, %v73_v11  ;;  %vm149_vm5 = vcmask 261120  }
  0xb0   :  { %v125_v50 = vmul.f32 %v365_v39, %v124_v47  ;;  %vm72_vm4 = vcmp.eq.f32.partialorder %v71_v13, 8.507059e+37  ;;  %vm240_vm6 = vcmask 9216  }
  0xb1   :  { %v111_v52 = vadd.f32 %v363_v37, %v110_v48 }
  0xb2   :  { %v126_v54 = vadd.f32 %v365_v39, %v125_v50  ;;  %v367_v57 = vpop.eup %366 }
  0xb3   :  { %v115_v55 = vsel %vm114_vm8, %v363_v37, %v111_v52  ;;  %v369_v60 = vpop.eup %368  ;;  %v48_v63 = vmul.f32 %v367_v57, %v43_v42  ;;  %vm53_vm13 = vweird.f32 %v367_v57 }
  0xb4   :  { %v120_v58 = vsel %vm117_vm10, %v119_v53, %v115_v55  ;;  %v130_v59 = vsel %vm129_vm11, %v365_v39, %v126_v54  ;;  %v63_v3 = vmul.f32 %v369_v60, %v44_v43  ;;  %vm68_vm14 = vweird.f32 %v369_v60  ;;  %vm54_vm0 = vmor %vm52_vm15, %vm53_vm13 }
  0xb5   :  { %v121_v61 = vmul.f32 %v120_v58, %v444_v4  ;;  %v135_v62 = vsel %vm132_vm12, %v134_v56, %v130_v59  ;;  %v49_v6 = vsub.f32 1.0, %v48_v63  ;;  %v59_v4 = vor.u32 1.1754944e-38, %v58_v7  ;;  %vm69_vm3 = vmor %vm67_vm1, %vm68_vm14 }
  0xb6   :  { %v136_v2 = vmul.f32 %v135_v62, %v449_v5  ;;  %v64_v8 = vsub.f32 1.0, %v63_v3  ;;  %vm330_vm12 = vcmask 0  }
  0xb7   :  { %139 = vst [vmem:[#allocation1] ss:$9 sm:$0xff] %v121_v61  ;;  %v50_v9 = vmul.f32 %v367_v57, %v49_v6 }
  0xb8   :  { %141 = vst [vmem:[#allocation1 + $0x1] ss:$9 sm:$0xff] %v136_v2  ;;  %v65_v12 = vmul.f32 %v369_v60, %v64_v8 }
  0xb9   :  { %v51_v14 = vadd.f32 %v367_v57, %v50_v9 }
  0xba   :  { %v66_v15 = vadd.f32 %v369_v60, %v65_v12 }
  0xbb   :  { %v55_v5 = vsel %vm54_vm0, %v367_v57, %v51_v14 }
  0xbc   :  { %v60_v17 = vsel %vm57_vm2, %v59_v4, %v55_v5  ;;  %v70_v18 = vsel %vm69_vm3, %v369_v60, %v66_v15 }
  0xbd   :  { %v61_v20 = vmul.f32 %v60_v17, %v430_v0  ;;  %v75_v21 = vsel %vm72_vm4, %v74_v16, %v70_v18 }
  0xbe   :  { %v76_v22 = vmul.f32 %v75_v21, %v435_v1 }
  0xbf   :  { %v142_v19 = vld [vmem:[#allocation1] sm:$0xff] }
  0xc0   :  { %145 = vst [vmem:[#allocation1] ss:$9 sm:$0xff] %v61_v20 }
  0xc1   :  { %147 = vst [vmem:[#allocation1 + $0x1] ss:$9 sm:$0xff] %v76_v22 }
  0xc8   :  { %v148_v23 = vld [vmem:[#allocation1] sm:$0xff] }
  0xc9   :  { %348 = vmatpush.xpose.msk.msra.mxu0 %vm149_vm5, %v148_v23  ;;  %175 = vst [vmem:[#allocation1] ss:$9 sm:$0xff] %v121_v61 }
  0xca   :  { %177 = vst [vmem:[#allocation1 + $0x1] ss:$9 sm:$0xff] %v136_v2 }
  0xcc   :  { %349 = vmatmul.msk.f32.vlgmr.msra.gmra.mxu0 %vm149_vm5, %v142_v19 }
  0xd1   :  { %v178_v24 = vld [vmem:[#allocation1] sm:$0xff] }
  0xd2   :  { %179 = vst [vmem:[#allocation1] ss:$9 sm:$0xff] %v121_v61 }
  0xd3   :  { %181 = vst [vmem:[#allocation1 + $0x1] ss:$9 sm:$0xff] %v136_v2 }
  0xda   :  { %v182_v25 = vld [vmem:[#allocation1] sm:$0xff] }
  0xdb   :  { %350 = vmatpush.xpose.msk.msra.mxu1 %vm149_vm5, %v182_v25  ;;  %207 = vst [vmem:[#allocation1] ss:$9 sm:$0xff] %v61_v20 }
  0xdc   :  { %209 = vst [vmem:[#allocation1 + $0x1] ss:$9 sm:$0xff] %v76_v22 }
  0xde   :  { %351 = vmatmul.msk.f32.vlgmr.msra.gmra.mxu1 %vm149_vm5, %v178_v24 }
  0xe3   :  { %v210_v0 = vld [vmem:[#allocation1] sm:$0xff] }
  0xe4   :  { %211 = vst [vmem:[#allocation1] ss:$9 sm:$0xff] %v61_v20 }
  0xe5   :  { %213 = vst [vmem:[#allocation1 + $0x1] ss:$9 sm:$0xff] %v76_v22 }
  0xec   :  { %v214_v1 = vld [vmem:[#allocation1] sm:$0xff] }
  0xed   :  { %352 = vmatpush.xpose.msk.msra.mxu2 %vm149_vm5, %v214_v1 }
  0xf0   :  { %353 = vmatmul.msk.f32.vlgmr.msra.gmra.mxu2 %vm149_vm5, %v210_v0 }
 0x149   :  { %v171_v31 = vpop.f32.mrf.mxu0 }
 0x14a   :  { %v174_v32 = vmul.f32 1.4285715, %v171_v31 }
 0x14c   :  { %v265_v33 = vsel %vm240_vm6, %v174_v32, -inf }
 0x14d   :  { %v277_v44 = vrot.slane %v265_v33, 4 }
 0x14f   :  { %v278_v45 = vmax.f32 %v265_v33, %v277_v44 }
 0x151   :  { %v279_v46 = vrot.slane %v278_v45, 2 }
 0x153   :  { %v280_v47 = vmax.f32 %v278_v45, %v279_v46 }
 0x155   :  { %v281_v48 = vrot.slane %v280_v47, 1 }
 0x157   :  { %v282_v49 = vmax.f32 %v280_v47, %v281_v48 }
 0x159   :  { %v283_v50 = vsub.f32 %v174_v32, %v282_v49 }
 0x15b   :  { %v204_v26 = vpop.f32.mrf.mxu1  ;;  %v284_v51 = vmul.f32 1.442695, %v283_v50 }
 0x173   :  { %v236_v27 = vpop.f32.mrf.mxu2 }
 0x174   :  { %v237_v28 = vadd.f32 %v236_v27, %v204_v26 }
 0x176   :  { %v239_v29 = vmul.f32 0.35, %v237_v28 }
 0x178   :  { %v241_v30 = vsel %vm240_vm6, %v239_v29, -inf }
 0x179   :  { %242 = vmax.xlane.f32.xlu1 %v241_v30 }
 0x181   :  { %266 = vmax.xlane.f32.xlu1 %v265_v33 }
 0x1ec   :  { %v243_v34 = vpop.xlane.xlu1 %242 }
 0x1ed   :  { %v244_v35 = vsub.f32 %v239_v29, %v243_v34 }
 0x1ef   :  { %v245_v36 = vmul.f32 1.442695, %v244_v35 }
 0x1f1   :  { %370 = vpow2.f32 %v245_v36 }
 0x1f4   :  { %v267_v37 = vpop.xlane.xlu1 %266 }
 0x1f5   :  { %v268_v38 = vsub.f32 %v174_v32, %v267_v37  ;;  %v410_v37 = vmov 4.0  }
 0x1f7   :  { %v371_v39 = vpop.eup %370  ;;  %v269_v40 = vmul.f32 1.442695, %v268_v38 }
 0x1f8   :  { %v247_v41 = vsel %vm240_vm6, %v371_v39, 0.0 }
 0x1f9   :  { %372 = vpow2.f32 %v269_v40  ;;  %248 = vadd.xlane.f32.xlu2 %v247_v41 }
 0x1fa   :  { %374 = vpow2.f32 %v284_v51 }
 0x1ff   :  { %v373_v42 = vpop.eup %372 }
 0x200   :  { %v271_v43 = vsel %vm240_vm6, %v373_v42, 0.0  ;;  %v375_v52 = vpop.eup %374 }
 0x201   :  { %272 = vadd.xlane.f32.xlu2 %v271_v43  ;;  %v286_v53 = vsel %vm240_vm6, %v375_v52, 0.0 }
 0x202   :  { %v287_v54 = vrot.slane %v286_v53, 4 }
 0x204   :  { %v288_v55 = vadd.f32 %v287_v54, %v286_v53 }
 0x206   :  { %v289_v56 = vrot.slane %v288_v55, 2 }
 0x208   :  { %v290_v57 = vadd.f32 %v289_v56, %v288_v55 }
 0x20a   :  { %v291_v58 = vrot.slane %v290_v57, 1 }
 0x20c   :  { %v292_v60 = vadd.f32 %v291_v58, %v290_v57 }
 0x26c   :  { %v249_v59 = vpop.xlane.xlu2 %248 }
 0x26d   :  { %376 = vrcp.f32 %v249_v59  ;;  %v261_v3 = vand.u32 2147483648, %v249_v59  ;;  %v259_v7 = vand.u32 2147483647, %v249_v59  ;;  %vm255_vm8 = vweird.f32 %v249_v59 }
 0x26e   :  { %378 = vlog2.f32 %v292_v60 }
 0x26f   :  { %v262_v11 = vor.u32 1.1754944e-38, %v261_v3  ;;  %vm260_vm10 = vcmp.eq.f32.partialorder %v259_v7, 8.507059e+37 }
 0x273   :  { %v377_v61 = vpop.eup %376 }
 0x274   :  { %v251_v62 = vmul.f32 %v377_v61, %v249_v59  ;;  %v273_v63 = vpop.xlane.xlu2 %272  ;;  %vm256_vm7 = vweird.f32 %v377_v61  ;;  %v379_v8 = vpop.eup %378 }
 0x275   :  { %380 = vlog2.f32 %v273_v63  ;;  %vm257_vm9 = vmor %vm255_vm8, %vm256_vm7  ;;  %v294_v14 = vmul.f32 0.6931472, %v379_v8 }
 0x276   :  { %v252_v2 = vsub.f32 1.0, %v251_v62  ;;  %382 = vrcp.f32 %v410_v37 }
 0x277   :  { %v295_v17 = vsub.f32 %v283_v50, %v294_v14 }
 0x278   :  { %v253_v6 = vmul.f32 %v377_v61, %v252_v2 }
 0x27a   :  { %v254_v9 = vadd.f32 %v377_v61, %v253_v6 }
 0x27b   :  { %v381_v10 = vpop.eup %380 }
 0x27c   :  { %v275_v12 = vmul.f32 0.6931472, %v381_v10  ;;  %v258_v13 = vsel %vm257_vm9, %v377_v61, %v254_v9 }
 0x27d   :  { %v263_v4 = vsel %vm260_vm10, %v262_v11, %v258_v13 }
 0x27e   :  { %v264_v15 = vmul.f32 %v371_v39, %v263_v4  ;;  %v276_v5 = vsub.f32 %v268_v38, %v275_v12  ;;  %v383_v38 = vpop.eup %382 }
 0x27f   :  { %v323_v39 = vmul.f32 4.0, %v383_v38  ;;  %vm327_vm11 = vweird.f32 %v383_v38 }
 0x280   :  { %v296_v16 = vsub.f32 0.0, %v264_v15 }
 0x281   :  { %v324_v40 = vsub.f32 1.0, %v323_v39 }
 0x282   :  { %v297_v18 = vmul.f32 %v296_v16, %v276_v5  ;;  %v301_v19 = vmul.f32 %v296_v16, %v295_v17 }
 0x283   :  { %v325_v41 = vmul.f32 %v383_v38, %v324_v40 }
 0x284   :  { %v298_v20 = vsel %vm240_vm6, %v297_v18, 0.0  ;;  %v302_v21 = vsel %vm240_vm6, %v301_v19, 0.0 }
 0x285   :  { %299 = vadd.xlane.f32.xlu0 %v298_v20  ;;  %v303_v22 = vrot.slane %v302_v21, 4  ;;  %v326_v42 = vadd.f32 %v383_v38, %v325_v41 }
 0x287   :  { %v304_v23 = vadd.f32 %v303_v22, %v302_v21  ;;  %v328_v43 = vsel %vm327_vm11, %v383_v38, %v326_v42 }
 0x289   :  { %v305_v24 = vrot.slane %v304_v23, 2 }
 0x28b   :  { %v306_v25 = vadd.f32 %v305_v24, %v304_v23 }
 0x28d   :  { %v307_v0 = vrot.slane %v306_v25, 1 }
 0x28f   :  { %v308_v1 = vadd.f32 %v307_v0, %v306_v25 }
 0x2f8   :  { %v300_v26 = vpop.xlane.xlu0 %299 }
 0x2f9   :  { %v309_v27 = vadd.f32 %v308_v1, %v300_v26 }
 0x2fb   :  { %v310_v28 = vmul.f32 0.5, %v309_v27 }
 0x2fd   :  { %v311_v29 = vsel %vm240_vm6, %v310_v28, 0.0 }
 0x2fe   :  { %312 = vadd.xlane.f32.xlu1 %v311_v29 }
 0x371   :  { %v313_v30 = vpop.xlane.xlu1 %312 }
 0x372   :  { %v314_v31 = vrot.slane %v313_v30, 4 }
 0x374   :  { %v315_v32 = vadd.f32 %v314_v31, %v313_v30 }
 0x376   :  { %v316_v33 = vrot.slane %v315_v32, 2 }
 0x378   :  { %v317_v34 = vadd.f32 %v316_v33, %v315_v32 }
 0x37a   :  { %v318_v35 = vrot.slane %v317_v34, 1 }
 0x37c   :  { %v319_v36 = vadd.f32 %v318_v35, %v317_v34 }
 0x37e   :  { %354 = vpush %v319_v36 }
 0x3af   :  { %s355_s20 = spop %354 }
 0x3b0   :  { %v321_v44 = vstv %s355_s20 }
 0x3b1   :  { %v329_v45 = vmul.f32 %v328_v43, %v321_v44 }
 0x3b3   :  { %331 = vst.msk [vmem:[#allocation2] sm:$0x1] %vm330_vm12, %v329_v45 }
 0x3b4   :  { %342 = dma.vmem_to_hbm [thread:$0]  %s338_s1, 16, %s340_s19, [#allocation3]  }
 0x3b5   :  { %408 = dma.done.wait [#allocation3], 16  }
 0x3b6   :  { %409 = vsyncadd [#allocation3], 4294967280 }
 0x3b7   :  { %347 = vsyncpa [#allocation3], 1 }

// kernel: combined_model_forward.2
= control target key start
LH: loop header
LB: loop body
LE: loop exit
PB: predicated region body
PF: predicated region fallthrough
CT: control target
= control target key end

     0   :  { %s7554_s30 = smov 0   ;;  %s10198_s0 = inlined_call_operand.vmem [shape: f32[2,128,32], index: 0, kind: input, shape index: {}]   ;;  %s10199_s1 = inlined_call_operand.vmem [shape: f32[2,64,32], index: 1, kind: input, shape index: {}]   ;;  %s10200_s2 = inlined_call_operand.vmem [shape: f32[2,1,32], index: 2, kind: input, shape index: {}]   ;;  %s10201_s3 = inlined_call_operand.vmem [shape: bf16[5,32,64], index: 3, kind: input, shape index: {}]   ;;  %s10202_s4 = inlined_call_operand.vmem [shape: bf16[5,32,64], index: 4, kind: input, shape index: {}]   ;;  %s10203_s5 = inlined_call_operand.vmem [shape: bf16[5,64,32], index: 5, kind: input, shape index: {}]   ;;  %s10204_s6 = inlined_call_operand.vmem [shape: f32[5,1,32], index: 6, kind: input, shape index: {}]   ;;  %s10205_s7 = inlined_call_operand.vmem [shape: f32[5,1,32], index: 7, kind: input, shape index: {}]   ;;  %s10206_s8 = inlined_call_operand.vmem [shape: f32[2,1,32], index: 8, kind: output, shape index: {0}]   ;;  %s10207_s9 = inlined_call_operand.vmem [shape: f32[2,1,32], index: 9, kind: output, shape index: {1}]  }
   0x1 LB: > { %s6381_s10 = sadd.s32 4294967295, %s7498_s30   ;;  %p6385_p0 = scmp.ge.s32.totalorder %s7498_s30, 1  ;;  %s7498_s30 = sphi %s7554_s30, %s20_s30  }
   0x2   : > { %p308_p1 = scmp.lt.s32.totalorder %s7498_s30, 3 }
   0x4   : > { %p309_p2 = pnand %p6385_p0, %p308_p1 }
   0x5   : > { %p353_p3 = scmp.lt.s32.totalorder (!%p309_p2), %s6381_s10, 1 }
   0x6   : > { %312 = sbr.rel (%p309_p2) target bundleno = 12356 (0x3044), region = 52 }
   0xb   : > { %v6843_v0 = vld [vmem:[%s10202_s4 + $0x8] sm:$0xff]  ;;  %v6842_v1 = vld [vmem:[%s10202_s4] sm:$0xff]  ;;  %s10221_s10 = smov (!%p353_p3, %s6381_s10), 1  ;;  %vm440_vm0 = vcmask 261120   ;;  %vm611_vm1 = vcmask 523264   ;;  %v373_v61 = vlaneseq }
   0xc   : > { %536 = vmatpush.bf16.msra.mxu1 %v6843_v0  ;;  %s6838_s15 = sshll.u32 %s10221_s10, 7  ;;  %v6841_v27 = vld [vmem:[%s10201_s3 + $0x8] sm:$0xff]  ;;  %v6840_v28 = vld [vmem:[%s10201_s3] sm:$0xff]  ;;  %s6839_s25 = sshll.u32 %s10221_s10, 6 }
   0xd   : > { %s7574_s18 = scalar_lea.vmem %s10198_s0, %s6838_s15  ;;  %471 = vmatpush.bf16.msra.mxu0 %v6841_v27  ;;  %v7624_v62 = vand.u32 127, %v373_v61  ;;  %s7722_s11 = scalar_lea.vmem %s10199_s1, %s6839_s25 }
   0xe   : > { %v391_v2 = vld [vmem:[%s7574_s18] sm:$0xff]  ;;  %v392_v3 = vld [vmem:[%s7574_s18 + $0x8] sm:$0xff]  ;;  %v393_v5 = vld [vmem:[%s7574_s18 + $0x10] sm:$0xff]  ;;  %s365_s28 = scalar_lea.vmem %s10200_s2, %s10221_s10  ;;  %s371_s15 = scalar_lea.vmem %s10207_s9, %s10221_s10 }
   0xf   : > { %v416_v4 = vpack.c.bf16 %v392_v3, %v391_v2  ;;  %v394_v6 = vld [vmem:[%s7574_s18 + $0x18] sm:$0xff]  ;;  %v395_v8 = vld [vmem:[%s7574_s18 + $0x20] sm:$0xff]  ;;  %v396_v9 = vld [vmem:[%s7574_s18 + $0x28] sm:$0xff]  ;;  %vm379_vm2 = vcmp.ge.s32.totalorder %v7624_v62, 16  ;;  %vm380_vm3 = vcmp.lt.s32.totalorder %v7624_v62, 32  ;;  %vm376_vm4 = vcmp.lt.s32.totalorder %v7624_v62, 16 }
  0x10   : > { %537 = vmatpush.bf16.msra.mxu1 %v6842_v1  ;;  %v417_v7 = vpack.c.bf16 %v394_v6, %v393_v5  ;;  %v418_v10 = vpack.c.bf16 %v396_v9, %v395_v8  ;;  %v397_v11 = vld [vmem:[%s7574_s18 + $0x30] sm:$0xff]  ;;  %v398_v12 = vld [vmem:[%s7574_s18 + $0x38] sm:$0xff]  ;;  %v399_v14 = vld [vmem:[%s7574_s18 + $0x40] sm:$0xff]  ;;  %v7500_v1 = vmov 0.0   ;;  %vm383_vm6 = vcmp.ge.s32.totalorder %v7624_v62, 32 }
  0x11   : > { %v419_v13 = vpack.c.bf16 %v398_v12, %v397_v11  ;;  %v400_v15 = vld [vmem:[%s7574_s18 + $0x48] sm:$0xff]  ;;  %v401_v17 = vld [vmem:[%s7574_s18 + $0x50] sm:$0xff]  ;;  %v402_v18 = vld [vmem:[%s7574_s18 + $0x58] sm:$0xff]  ;;  %472 = vmatpush.bf16.msra.mxu0 %v6840_v28  ;;  %v7631_v2 = vsel %vm376_vm4, 0.25, %v7500_v1  ;;  %vm384_vm7 = vcmp.lt.s32.totalorder %v7624_v62, 48  ;;  %vm387_vm8 = vcmp.ge.s32.totalorder %v7624_v62, 48 }
  0x12   : > { %v420_v16 = vpack.c.bf16 %v400_v15, %v399_v14  ;;  %v421_v19 = vpack.c.bf16 %v402_v18, %v401_v17  ;;  %v403_v20 = vld [vmem:[%s7574_s18 + $0x60] sm:$0xff]  ;;  %v404_v21 = vld [vmem:[%s7574_s18 + $0x68] sm:$0xff]  ;;  %v405_v23 = vld [vmem:[%s7574_s18 + $0x70] sm:$0xff]  ;;  %vm388_vm9 = vcmp.lt.s32.totalorder %v7624_v62, 64 }
  0x13   : > { %6414 = vmatmul.msk.bf16.vlgmr.msra.gmra.mxu1 %vm440_vm0, %v416_v4  ;;  %v422_v22 = vpack.c.bf16 %v404_v21, %v403_v20  ;;  %v406_v24 = vld [vmem:[%s7574_s18 + $0x78] sm:$0xff]  ;;  %vm381_vm5 = vmand %vm379_vm2, %vm380_vm3 }
  0x14   : > { %v423_v25 = vpack.c.bf16 %v406_v24, %v405_v23  ;;  %6398 = vmatmul.msk.bf16.vlgmr.msra.gmra.mxu0 %vm440_vm0, %v416_v4  ;;  %v7634_v3 = vsel %vm381_vm5, 0.25, %v7500_v1  ;;  %vm385_vm10 = vmand %vm383_vm6, %vm384_vm7 }
  0x15   : > { %vm389_vm11 = vmand %vm387_vm8, %vm388_vm9 }
  0x23   : > { %6415 = vmatmul.msk.bf16.gmra.mxu1 %vm440_vm0, %v417_v7 }
  0x24   : > { %6399 = vmatmul.msk.bf16.gmra.mxu0 %vm440_vm0, %v417_v7 }
  0x33   : > { %6416 = vmatmul.msk.bf16.gmra.mxu1 %vm440_vm0, %v418_v10 }
  0x34   : > { %6400 = vmatmul.msk.bf16.gmra.mxu0 %vm440_vm0, %v418_v10 }
  0x43   : > { %6417 = vmatmul.msk.bf16.gmra.mxu1 %vm440_vm0, %v419_v13 }
  0x44   : > { %6401 = vmatmul.msk.bf16.gmra.mxu0 %vm440_vm0, %v419_v13 }
  0x53   : > { %6418 = vmatmul.msk.bf16.gmra.mxu1 %vm440_vm0, %v420_v16 }
  0x54   : > { %6402 = vmatmul.msk.bf16.gmra.mxu0 %vm440_vm0, %v420_v16 }
  0x63   : > { %6419 = vmatmul.msk.bf16.gmra.mxu1 %vm440_vm0, %v421_v19 }
  0x64   : > { %6403 = vmatmul.msk.bf16.gmra.mxu0 %vm440_vm0, %v421_v19 }
  0x73   : > { %6420 = vmatmul.msk.bf16.gmra.mxu1 %vm440_vm0, %v422_v22 }
  0x74   : > { %6404 = vmatmul.msk.bf16.gmra.mxu0 %vm440_vm0, %v422_v22 }
  0x83   : > { %6421 = vmatmul.msk.bf16.gmra.mxu1 %vm440_vm0, %v423_v25 }
  0x84   : > { %6405 = vmatmul.msk.bf16.gmra.mxu0 %vm440_vm0, %v423_v25 }
  0x90   : > { %v7600_v26 = vpop.f32.mrf.mxu1 }
  0x91   : > { %v474_v52 = vpop.f32.mrf.mxu0 }
  0x92   : > { %v587_v6 = vmul.f32 %v474_v52, %v7631_v2  ;;  %v942_v7 = vmul.f32 %v474_v52, %v7634_v3 }
  0x98   : > { %v541_v29 = vpop.f32.mrf.mxu1 }
  0x99   : > { %v579_v56 = vpack.c.bf16 %v541_v29, %v7600_v26  ;;  %v476_v57 = vpop.f32.mrf.mxu0 }
  0x9a   : > { %v588_v8 = vmul.f32 %v476_v57, %v7631_v2  ;;  %v943_v9 = vmul.f32 %v476_v57, %v7634_v3 }
  0x9b   : > { %v637_v4 = vsel %vm611_vm1, %v579_v56, 0 }
  0x9c   : > { %v958_v10 = vpack.c.bf16 %v943_v9, %v942_v7  ;;  %v603_v11 = vpack.c.bf16 %v588_v8, %v587_v6 }
  0xa0   : > { %v544_v30 = vpop.f32.mrf.mxu1 }
  0xa1   : > { %v479_v59 = vpop.f32.mrf.mxu0 }
  0xa2   : > { %v589_v13 = vmul.f32 %v479_v59, %v7631_v2  ;;  %v944_v14 = vmul.f32 %v479_v59, %v7634_v3 }
  0xa8   : > { %v546_v31 = vpop.f32.mrf.mxu1 }
  0xa9   : > { %v580_v54 = vpack.c.bf16 %v546_v31, %v544_v30  ;;  %v481_v63 = vpop.f32.mrf.mxu0 }
  0xaa   : > { %v590_v15 = vmul.f32 %v481_v63, %v7631_v2  ;;  %v945_v16 = vmul.f32 %v481_v63, %v7634_v3 }
  0xab   : > { %v640_v0 = vsel %vm611_vm1, %v580_v54, 0 }
  0xac   : > { %v604_v18 = vpack.c.bf16 %v590_v15, %v589_v13  ;;  %v959_v19 = vpack.c.bf16 %v945_v16, %v944_v14  ;;  %v6849_v14 = vld [vmem:[%s10201_s3 + $0x18] sm:$0xff]  ;;  %v6848_v16 = vld [vmem:[%s10201_s3 + $0x10] sm:$0xff] }
  0xb0   : > { %v549_v32 = vpop.f32.mrf.mxu1 }
  0xb1   : > { %v484_v5 = vpop.f32.mrf.mxu0 }
  0xb2   : > { %v591_v21 = vmul.f32 %v484_v5, %v7631_v2  ;;  %v946_v22 = vmul.f32 %v484_v5, %v7634_v3 }
  0xb8   : > { %v551_v33 = vpop.f32.mrf.mxu1 }
  0xb9   : > { %v581_v53 = vpack.c.bf16 %v551_v33, %v549_v32  ;;  %v486_v12 = vpop.f32.mrf.mxu0 }
  0xba   : > { %v592_v23 = vmul.f32 %v486_v12, %v7631_v2  ;;  %v947_v24 = vmul.f32 %v486_v12, %v7634_v3 }
  0xbb   : > { %v643_v60 = vsel %vm611_vm1, %v581_v53, 0 }
  0xbc   : > { %v605_v25 = vpack.c.bf16 %v592_v23, %v591_v21  ;;  %v960_v26 = vpack.c.bf16 %v947_v24, %v946_v22  ;;  %v409_v24 = vld [vmem:[%s7722_s11 + $0x10] sm:$0xff] }
  0xc0   : > { %v554_v34 = vpop.f32.mrf.mxu1 }
  0xc1   : > { %v489_v17 = vpop.f32.mrf.mxu0 }
  0xc2   : > { %v593_v28 = vmul.f32 %v489_v17, %v7631_v2  ;;  %v948_v29 = vmul.f32 %v489_v17, %v7634_v3  ;;  %v407_v17 = vld [vmem:[%s7722_s11] sm:$0xff] }
  0xc8   : > { %v556_v35 = vpop.f32.mrf.mxu1 }
  0xc9   : > { %v582_v50 = vpack.c.bf16 %v556_v35, %v554_v34  ;;  %v491_v20 = vpop.f32.mrf.mxu0 }
  0xca   : > { %v594_v30 = vmul.f32 %v491_v20, %v7631_v2  ;;  %v949_v31 = vmul.f32 %v491_v20, %v7634_v3 }
  0xcb   : > { %v646_v58 = vsel %vm611_vm1, %v582_v50, 0 }
  0xcc   : > { %v606_v33 = vpack.c.bf16 %v594_v30, %v593_v28  ;;  %v961_v34 = vpack.c.bf16 %v949_v31, %v948_v29  ;;  %v411_v31 = vld [vmem:[%s7722_s11 + $0x20] sm:$0xff] }
  0xd0   : > { %v559_v36 = vpop.f32.mrf.mxu1 }
  0xd1   : > { %v494_v27 = vpop.f32.mrf.mxu0 }
  0xd8   : > { %v561_v37 = vpop.f32.mrf.mxu1 }
  0xd9   : > { %v583_v49 = vpack.c.bf16 %v561_v37, %v559_v36  ;;  %v496_v32 = vpop.f32.mrf.mxu0  ;;  %v595_v36 = vmul.f32 %v494_v27, %v7631_v2  ;;  %v950_v37 = vmul.f32 %v494_v27, %v7634_v3 }
  0xdb   : > { %v649_v55 = vsel %vm611_vm1, %v583_v49, 0 }
  0xe0   : > { %v564_v38 = vpop.f32.mrf.mxu1 }
  0xe1   : > { %v499_v35 = vpop.f32.mrf.mxu0 }
  0xe8   : > { %v566_v39 = vpop.f32.mrf.mxu1 }
  0xe9   : > { %v584_v47 = vpack.c.bf16 %v566_v39, %v564_v38  ;;  %v596_v38 = vmul.f32 %v496_v32, %v7631_v2  ;;  %v951_v39 = vmul.f32 %v496_v32, %v7634_v3  ;;  %v412_v32 = vld [vmem:[%s7722_s11 + $0x28] sm:$0xff] }
  0xeb   : > { %v652_v51 = vsel %vm611_vm1, %v584_v47, 0 }
  0xf0   : > { %v569_v40 = vpop.f32.mrf.mxu1 }
  0xf8   : > { %v571_v41 = vpop.f32.mrf.mxu1 }
  0xf9   : > { %v585_v46 = vpack.c.bf16 %v571_v41, %v569_v40  ;;  %v962_v40 = vpack.c.bf16 %v951_v39, %v950_v37  ;;  %v607_v41 = vpack.c.bf16 %v596_v38, %v595_v36  ;;  %v413_v37 = vld [vmem:[%s7722_s11 + $0x30] sm:$0xff]  ;;  %v414_v38 = vld [vmem:[%s7722_s11 + $0x38] sm:$0xff] }
  0xfa   : > { %v7768_v39 = vpack.c.bf16 %v414_v38, %v413_v37 }
  0xfb   : > { %v655_v48 = vsel %vm611_vm1, %v585_v46, 0 }
 0x100   : > { %v574_v42 = vpop.f32.mrf.mxu1 }
 0x108   : > { %v576_v43 = vpop.f32.mrf.mxu1 }
 0x109   : > { %v586_v44 = vpack.c.bf16 %v576_v43, %v574_v42  ;;  %v501_v42 = vpop.f32.mrf.mxu0 }
 0x10b   : > { %861 = vmatpush.bf16.msra.mxu3 %v586_v44  ;;  %1191 = vmatpush.bf16.msrb.mxu1 %v586_v44  ;;  %v658_v45 = vsel %vm611_vm1, %v586_v44, 0  ;;  %v597_v44 = vmul.f32 %v499_v35, %v7631_v2 }
 0x10c   : > { %660 = vmatpush.bf16.xpose.msra.mxu2 %v658_v45  ;;  %990 = vmatpush.bf16.xpose.msrb.mxu0 %v658_v45  ;;  %v952_v45 = vmul.f32 %v499_v35, %v7634_v3 }
 0x10f   : > { %862 = vmatpush.bf16.msra.mxu3 %v585_v46  ;;  %1192 = vmatpush.bf16.msrb.mxu1 %v585_v46  ;;  %v598_v46 = vmul.f32 %v501_v42, %v7631_v2 }
 0x111   : > { %v504_v43 = vpop.f32.mrf.mxu0 }
 0x112   : > { %v954_v52 = vmul.f32 %v504_v43, %v7634_v3 }
 0x113   : > { %863 = vmatpush.bf16.msra.mxu3 %v584_v47  ;;  %1193 = vmatpush.bf16.msrb.mxu1 %v584_v47  ;;  %v953_v47 = vmul.f32 %v501_v42, %v7634_v3  ;;  %v6851_v42 = vld [vmem:[%s10202_s4 + $0x18] sm:$0xff] }
 0x114   : > { %661 = vmatpush.bf16.xpose.msra.mxu2 %v655_v48  ;;  %991 = vmatpush.bf16.xpose.msrb.mxu0 %v655_v48 }
 0x115   : > { %v963_v48 = vpack.c.bf16 %v953_v47, %v952_v45 }
 0x117   : > { %864 = vmatpush.bf16.msra.mxu3 %v583_v49  ;;  %1194 = vmatpush.bf16.msrb.mxu1 %v583_v49  ;;  %v608_v49 = vpack.c.bf16 %v598_v46, %v597_v44 }
 0x11b   : > { %865 = vmatpush.bf16.msra.mxu3 %v582_v50  ;;  %1195 = vmatpush.bf16.msrb.mxu1 %v582_v50  ;;  %v506_v50 = vpop.f32.mrf.mxu0 }
 0x11c   : > { %662 = vmatpush.bf16.xpose.msra.mxu2 %v652_v51  ;;  %992 = vmatpush.bf16.xpose.msrb.mxu0 %v652_v51  ;;  %v599_v51 = vmul.f32 %v504_v43, %v7631_v2  ;;  %v6850_v43 = vld [vmem:[%s10202_s4 + $0x10] sm:$0xff] }
 0x11f   : > { %866 = vmatpush.bf16.msra.mxu3 %v581_v53  ;;  %1196 = vmatpush.bf16.msrb.mxu1 %v581_v53  ;;  %v600_v53 = vmul.f32 %v506_v50, %v7631_v2 }
 0x121   : > { %v609_v57 = vpack.c.bf16 %v600_v53, %v599_v51 }
 0x123   : > { %867 = vmatpush.bf16.msra.mxu3 %v580_v54  ;;  %1197 = vmatpush.bf16.msrb.mxu1 %v580_v54  ;;  %v955_v54 = vmul.f32 %v506_v50, %v7634_v3 }
 0x124   : > { %663 = vmatpush.bf16.xpose.msra.mxu2 %v649_v55  ;;  %993 = vmatpush.bf16.xpose.msrb.mxu0 %v649_v55  ;;  %v509_v55 = vpop.f32.mrf.mxu0 }
 0x125   : > { %v601_v59 = vmul.f32 %v509_v55, %v7631_v2 }
 0x127   : > { %868 = vmatpush.bf16.msra.mxu3 %v579_v56  ;;  %1198 = vmatpush.bf16.msrb.mxu1 %v579_v56  ;;  %v964_v56 = vpack.c.bf16 %v955_v54, %v954_v52 }
 0x12c   : > { %664 = vmatpush.bf16.xpose.msra.mxu2 %v646_v58  ;;  %994 = vmatpush.bf16.xpose.msrb.mxu0 %v646_v58  ;;  %v511_v58 = vpop.f32.mrf.mxu0 }
 0x12d   : > { %v602_v63 = vmul.f32 %v511_v58, %v7631_v2 }
 0x12f   : > { %v610_v5 = vpack.c.bf16 %v602_v63, %v601_v59 }
 0x134   : > { %665 = vmatpush.bf16.xpose.msra.mxu2 %v643_v60  ;;  %995 = vmatpush.bf16.xpose.msrb.mxu0 %v643_v60  ;;  %v956_v60 = vmul.f32 %v509_v55, %v7634_v3 }
 0x13c   : > { %666 = vmatpush.bf16.xpose.msra.mxu2 %v640_v0  ;;  %996 = vmatpush.bf16.xpose.msrb.mxu0 %v640_v0  ;;  %v957_v0 = vmul.f32 %v511_v58, %v7634_v3 }
 0x144   : > { %667 = vmatpush.bf16.xpose.msra.mxu2 %v637_v4  ;;  %997 = vmatpush.bf16.xpose.msrb.mxu0 %v637_v4  ;;  %v965_v4 = vpack.c.bf16 %v957_v0, %v956_v60 }
 0x14b   : > { %6422 = vmatmul.msk.bf16.vlgmr.msra.gmra.mxu2 %vm611_vm1, %v603_v11  ;;  %6430 = vmatmul.msk.bf16.vlgmr.msrb.gmra.mxu0 %vm611_vm1, %v958_v10 }
 0x14c   : > { %1823 = vmatpush.bf16.msrb.mxu2 %v6849_v14 }
 0x150   : > { %1824 = vmatpush.bf16.msrb.mxu2 %v6848_v16 }
 0x154   : > { %1869 = vmatpush.bf16.msra.mxu2 %v6851_v42 }
 0x158   : > { %1870 = vmatpush.bf16.msra.mxu2 %v6850_v43 }
 0x15b   : > { %6423 = vmatmul.msk.bf16.gmra.mxu2 %vm611_vm1, %v604_v18  ;;  %6431 = vmatmul.msk.bf16.gmra.mxu0 %vm611_vm1, %v959_v19  ;;  %v408_v18 = vld [vmem:[%s7722_s11 + $0x8] sm:$0xff] }
 0x15c   : > { %v1784_v19 = vpack.c.bf16 %v408_v18, %v407_v17 }
 0x16b   : > { %6424 = vmatmul.msk.bf16.gmra.mxu2 %vm611_vm1, %v605_v25  ;;  %6432 = vmatmul.msk.bf16.gmra.mxu0 %vm611_vm1, %v960_v26  ;;  %v410_v25 = vld [vmem:[%s7722_s11 + $0x18] sm:$0xff] }
 0x16c   : > { %v1785_v26 = vpack.c.bf16 %v410_v25, %v409_v24 }
 0x17b   : > { %6425 = vmatmul.msk.bf16.gmra.mxu2 %vm611_vm1, %v606_v33  ;;  %6433 = vmatmul.msk.bf16.gmra.mxu0 %vm611_vm1, %v961_v34  ;;  %v1786_v33 = vpack.c.bf16 %v412_v32, %v411_v31 }
 0x18b   : > { %6426 = vmatmul.msk.bf16.gmra.mxu2 %vm611_vm1, %v607_v41  ;;  %6434 = vmatmul.msk.bf16.gmra.mxu0 %vm611_vm1, %v962_v40 }
 0x19b   : > { %6427 = vmatmul.msk.bf16.gmra.mxu2 %vm611_vm1, %v608_v49  ;;  %6435 = vmatmul.msk.bf16.gmra.mxu0 %vm611_vm1, %v963_v48 }
 0x1ab   : > { %6428 = vmatmul.msk.bf16.gmra.mxu2 %vm611_vm1, %v609_v57  ;;  %6436 = vmatmul.msk.bf16.gmra.mxu0 %vm611_vm1, %v964_v56 }
 0x1bb   : > { %6429 = vmatmul.msk.bf16.gmra.mxu2 %vm611_vm1, %v610_v5  ;;  %6437 = vmatmul.msk.bf16.gmra.mxu0 %vm611_vm1, %v965_v4 }
 0x1c8   : > { %v7685_v6 = vpop.f32.mrf.mxu0 }
 0x1c9   : > { %1039 = vmax.xlane.f32.xlu1 %v7685_v6 }
 0x1cb   : > { %6474 = vmatmul.msk.bf16.vlgmr.msrb.gmra.mxu2 %vm440_vm0, %v1784_v19 }
 0x1ce   : > { %v7688_v7 = vpop.f32.mrf.mxu2 }
 0x1cf   : > { %709 = vmax.xlane.f32.xlu0 %v7688_v7 }
 0x1d0   : > { %v7691_v8 = vpop.f32.mrf.mxu0 }
 0x1d1   : > { %1041 = vmax.xlane.f32.xlu1 %v7691_v8 }
 0x1d6   : > { %v7694_v9 = vpop.f32.mrf.mxu2 }
 0x1d7   : > { %711 = vmax.xlane.f32.xlu0 %v7694_v9 }
 0x1d8   : > { %v7697_v10 = vpop.f32.mrf.mxu0 }
 0x1db   : > { %6475 = vmatmul.msk.bf16.gmra.mxu2 %vm440_vm0, %v1785_v26 }
 0x1de   : > { %v7699_v11 = vpop.f32.mrf.mxu2 }
 0x1df   : > { %713 = vmax.xlane.f32.xlu2 %v7699_v11  ;;  %1043 = vmax.xlane.f32.xlu0 %v7697_v10 }
 0x1e0   : > { %v7703_v12 = vpop.f32.mrf.mxu0 }
 0x1e1   : > { %1045 = vmax.xlane.f32.xlu1 %v7703_v12 }
 0x1e6   : > { %v7706_v13 = vpop.f32.mrf.mxu2 }
 0x1e7   : > { %715 = vmax.xlane.f32.xlu2 %v7706_v13 }
 0x1e8   : > { %v7713_v15 = vpop.f32.mrf.mxu0 }
 0x1e9   : > { %1047 = vmax.xlane.f32.xlu1 %v7713_v15 }
 0x1eb   : > { %6476 = vmatmul.msk.bf16.gmra.mxu2 %vm440_vm0, %v1786_v33 }
 0x1ee   : > { %v7726_v20 = vpop.f32.mrf.mxu2 }
 0x1ef   : > { %717 = vmax.xlane.f32.xlu2 %v7726_v20 }
 0x1f0   : > { %v7730_v21 = vpop.f32.mrf.mxu0 }
 0x1f6   : > { %v7732_v22 = vpop.f32.mrf.mxu2 }
 0x1f7   : > { %719 = vmax.xlane.f32.xlu0 %v7732_v22  ;;  %1049 = vmax.xlane.f32.xlu2 %v7730_v21 }
 0x1f8   : > { %v7736_v23 = vpop.f32.mrf.mxu0 }
 0x1f9   : > { %1051 = vmax.xlane.f32.xlu1 %v7736_v23 }
 0x1fb   : > { %6477 = vmatmul.msk.bf16.gmra.mxu2 %vm440_vm0, %v7768_v39 }
 0x1fe   : > { %v7741_v27 = vpop.f32.mrf.mxu2 }
 0x1ff   : > { %721 = vmax.xlane.f32.xlu0 %v7741_v27 }
 0x200   : > { %v7745_v28 = vpop.f32.mrf.mxu0 }
 0x201   : > { %1053 = vmax.xlane.f32.xlu2 %v7745_v28 }
 0x206   : > { %v7748_v29 = vpop.f32.mrf.mxu2 }
 0x207   : > { %723 = vmax.xlane.f32.xlu1 %v7748_v29 }
 0x208   : > { %v7751_v30 = vpop.f32.mrf.mxu0 }
 0x209   : > { %1055 = vmax.xlane.f32.xlu0 %v7751_v30 }
 0x20b   : > { %6490 = vmatmul.msk.bf16.vlgmr.msra.gmra.mxu2 %vm440_vm0, %v1784_v19 }
 0x20e   : > { %v7756_v34 = vpop.f32.mrf.mxu2 }
 0x20f   : > { %725 = vmax.xlane.f32.xlu2 %v7756_v34 }
 0x210   : > { %v7760_v35 = vpop.f32.mrf.mxu0 }
 0x211   : > { %1057 = vmax.xlane.f32.xlu1 %v7760_v35 }
 0x216   : > { %v7763_v36 = vpop.f32.mrf.mxu2 }
 0x217   : > { %727 = vmax.xlane.f32.xlu0 %v7763_v36 }
 0x218   : > { %v7813_v19 = vpop.f32.mrf.mxu0 }
 0x21b   : > { %6491 = vmatmul.msk.bf16.gmra.mxu2 %vm440_vm0, %v1785_v26 }
 0x21e   : > { %v7770_v40 = vpop.f32.mrf.mxu2 }
 0x21f   : > { %729 = vmax.xlane.f32.xlu1 %v7770_v40 }
 0x220   : > { %v7831_v37 = vpop.f32.mrf.mxu0 }
 0x226   : > { %v7775_v41 = vpop.f32.mrf.mxu2 }
 0x227   : > { %731 = vmax.xlane.f32.xlu2 %v7775_v41 }
 0x22b   : > { %6492 = vmatmul.msk.bf16.gmra.mxu2 %vm440_vm0, %v1786_v33 }
 0x22e   : > { %v7795_v57 = vpop.f32.mrf.mxu2 }
 0x236   : > { %v7808_v14 = vpop.f32.mrf.mxu2 }
 0x23b   : > { %6493 = vmatmul.msk.bf16.gmra.mxu2 %vm440_vm0, %v7768_v39 }
 0x23c   : > { %v1040_v44 = vpop.xlane.xlu1 %1039 }
 0x23d   : > { %v1071_v45 = vsub.f32 %v7685_v6, %v1040_v44 }
 0x23f   : > { %v1087_v46 = vmul.f32 1.442695, %v1071_v45 }
 0x241   : > { %6898 = vpow2.f32 %v1087_v46 }
 0x242   : > { %v710_v47 = vpop.xlane.xlu0 %709 }
 0x243   : > { %v741_v48 = vsub.f32 %v7688_v7, %v710_v47 }
 0x244   : > { %v1042_v49 = vpop.xlane.xlu1 %1041 }
 0x245   : > { %v757_v50 = vmul.f32 1.442695, %v741_v48  ;;  %v1072_v51 = vsub.f32 %v7691_v8, %v1042_v49 }
 0x247   : > { %v7789_v52 = vpop.eup %6898  ;;  %6900 = vpow2.f32 %v757_v50  ;;  %v1089_v53 = vmul.f32 1.442695, %v1072_v51  ;;  %v7846_v51 = vpop.f32.mrf.mxu0 }
 0x248   : > { %1119 = vadd.xlane.f32.xlu0 %v7789_v52 }
 0x249   : > { %6902 = vpow2.f32 %v1089_v53 }
 0x24a   : > { %v712_v54 = vpop.xlane.xlu0 %711 }
 0x24b   : > { %v742_v55 = vsub.f32 %v7694_v9, %v712_v54 }
 0x24d   : > { %v7793_v56 = vpop.eup %6900  ;;  %v759_v58 = vmul.f32 1.442695, %v742_v55 }
 0x24e   : > { %789 = vadd.xlane.f32.xlu2 %v7793_v56 }
 0x24f   : > { %v7798_v59 = vpop.eup %6902  ;;  %6904 = vpow2.f32 %v759_v58 }
 0x250   : > { %1121 = vadd.xlane.f32.xlu1 %v7798_v59 }
 0x252   : > { %v714_v60 = vpop.xlane.xlu2 %713  ;;  %v1044_v63 = vpop.xlane.xlu0 %1043 }
 0x253   : > { %v743_v0 = vsub.f32 %v7699_v11, %v714_v60  ;;  %v1073_v4 = vsub.f32 %v7697_v10, %v1044_v63 }
 0x254   : > { %v1046_v5 = vpop.xlane.xlu1 %1045 }
 0x255   : > { %v7804_v6 = vpop.eup %6904  ;;  %v761_v7 = vmul.f32 1.442695, %v743_v0  ;;  %v1091_v8 = vmul.f32 1.442695, %v1073_v4  ;;  %v1074_v9 = vsub.f32 %v7703_v12, %v1046_v5 }
 0x256   : > { %791 = vadd.xlane.f32.xlu0 %v7804_v6 }
 0x257   : > { %6906 = vpow2.f32 %v761_v7  ;;  %v1093_v16 = vmul.f32 1.442695, %v1074_v9  ;;  %v7861_v7 = vpop.f32.mrf.mxu0 }
 0x258   : > { %6908 = vpow2.f32 %v1091_v8 }
 0x259   : > { %6910 = vpow2.f32 %v1093_v16 }
 0x25a   : > { %v716_v17 = vpop.xlane.xlu2 %715 }
 0x25b   : > { %v744_v11 = vsub.f32 %v7706_v13, %v716_v17  ;;  %v7825_v13 = vpop.f32.mrf.mxu2 }
 0x25c   : > { %v1048_v18 = vpop.xlane.xlu1 %1047 }
 0x25d   : > { %v7811_v10 = vpop.eup %6906  ;;  %v763_v24 = vmul.f32 1.442695, %v744_v11  ;;  %v1075_v25 = vsub.f32 %v7713_v15, %v1048_v18 }
 0x25e   : > { %v7816_v12 = vpop.eup %6908  ;;  %793 = vadd.xlane.f32.xlu1 %v7811_v10 }
 0x25f   : > { %v7819_v26 = vpop.eup %6910  ;;  %6912 = vpow2.f32 %v763_v24  ;;  %v1095_v31 = vmul.f32 1.442695, %v1075_v25  ;;  %1123 = vadd.xlane.f32.xlu2 %v7816_v12 }
 0x260   : > { %1125 = vadd.xlane.f32.xlu0 %v7819_v26 }
 0x261   : > { %6914 = vpow2.f32 %v1095_v31 }
 0x262   : > { %v718_v32 = vpop.xlane.xlu2 %717 }
 0x263   : > { %v745_v38 = vsub.f32 %v7726_v20, %v718_v32  ;;  %v7837_v43 = vpop.f32.mrf.mxu2 }
 0x265   : > { %v7827_v15 = vpop.eup %6912  ;;  %v765_v46 = vmul.f32 1.442695, %v745_v38 }
 0x267   : > { %v7829_v33 = vpop.eup %6914  ;;  %795 = vadd.xlane.f32.xlu2 %v7827_v15 }
 0x268   : > { %1127 = vadd.xlane.f32.xlu1 %v7829_v33  ;;  %1061 = vmax.xlane.f32.xlu0 %v7831_v37 }
 0x26a   : > { %v720_v39 = vpop.xlane.xlu0 %719  ;;  %v1050_v42 = vpop.xlane.xlu2 %1049 }
 0x26b   : > { %v746_v44 = vsub.f32 %v7732_v22, %v720_v39  ;;  %v1076_v45 = vsub.f32 %v7730_v21, %v1050_v42  ;;  %v7844_v50 = vpop.f32.mrf.mxu2 }
 0x26c   : > { %v1052_v49 = vpop.xlane.xlu1 %1051 }
 0x26d   : > { %v767_v47 = vmul.f32 1.442695, %v746_v44  ;;  %v1097_v48 = vmul.f32 1.442695, %v1076_v45  ;;  %v1077_v20 = vsub.f32 %v7736_v23, %v1052_v49  ;;  %v7889_v45 = vpop.f32.mrf.mxu0 }
 0x26f   : > { %6916 = vpow2.f32 %v767_v47  ;;  %1059 = vmax.xlane.f32.xlu2 %v7813_v19  ;;  %v1099_v21 = vmul.f32 1.442695, %v1077_v20 }
 0x270   : > { %6918 = vpow2.f32 %v1097_v48  ;;  %733 = vmax.xlane.f32.xlu0 %v7795_v57 }
 0x271   : > { %6920 = vpow2.f32 %v765_v46 }
 0x272   : > { %v722_v53 = vpop.xlane.xlu0 %721  ;;  %6922 = vpow2.f32 %v1099_v21 }
 0x273   : > { %v747_v58 = vsub.f32 %v7741_v27, %v722_v53  ;;  %v7859_v0 = vpop.f32.mrf.mxu2 }
 0x274   : > { %v1054_v60 = vpop.xlane.xlu2 %1053 }
 0x275   : > { %v7848_v22 = vpop.eup %6916  ;;  %v769_v4 = vmul.f32 1.442695, %v747_v58  ;;  %v1078_v9 = vsub.f32 %v7745_v28, %v1054_v60 }
 0x276   : > { %v7850_v54 = vpop.eup %6918  ;;  %799 = vadd.xlane.f32.xlu1 %v7848_v22 }
 0x277   : > { %v7853_v55 = vpop.eup %6920  ;;  %1129 = vadd.xlane.f32.xlu2 %v7850_v54  ;;  %6924 = vpow2.f32 %v769_v4 }
 0x278   : > { %797 = vadd.xlane.f32.xlu0 %v7853_v55  ;;  %v7864_v8 = vpop.eup %6922 }
 0x27a   : > { %v724_v23 = vpop.xlane.xlu1 %723 }
 0x27b   : > { %v748_v63 = vsub.f32 %v7748_v29, %v724_v23  ;;  %v1101_v29 = vmul.f32 1.442695, %v1078_v9  ;;  %v7869_v17 = vpop.f32.mrf.mxu2  ;;  %v7904_v23 = vpop.f32.mrf.mxu0 }
 0x27c   : > { %v1056_v27 = vpop.xlane.xlu0 %1055 }
 0x27d   : > { %v771_v5 = vmul.f32 1.442695, %v748_v63  ;;  %v7871_v11 = vpop.eup %6924 }
 0x27e   : > { %735 = vmax.xlane.f32.xlu1 %v7808_v14 }
 0x27f   : > { %1065 = vmax.xlane.f32.xlu2 %v7861_v7  ;;  %6926 = vpow2.f32 %v771_v5 }
 0x280   : > { %1131 = vadd.xlane.f32.xlu0 %v7864_v8  ;;  %6928 = vpow2.f32 %v1101_v29 }
 0x282   : > { %v726_v16 = vpop.xlane.xlu2 %725 }
 0x283   : > { %v749_v18 = vsub.f32 %v7756_v34, %v726_v16  ;;  %v7880_v38 = vpop.f32.mrf.mxu2  ;;  %v1079_v34 = vsub.f32 %v7751_v30, %v1056_v27 }
 0x284   : > { %v1058_v31 = vpop.xlane.xlu1 %1057 }
 0x285   : > { %v7875_v24 = vpop.eup %6926  ;;  %v773_v28 = vmul.f32 1.442695, %v749_v18  ;;  %v1080_v44 = vsub.f32 %v7760_v35, %v1058_v31  ;;  %v1103_v48 = vmul.f32 1.442695, %v1079_v34 }
 0x286   : > { %1063 = vmax.xlane.f32.xlu1 %v7846_v51  ;;  %v7882_v39 = vpop.eup %6928 }
 0x287   : > { %801 = vadd.xlane.f32.xlu2 %v7871_v11  ;;  %6930 = vpow2.f32 %v773_v28  ;;  %v1105_v20 = vmul.f32 1.442695, %v1080_v44 }
 0x288   : > { %803 = vadd.xlane.f32.xlu0 %v7875_v24 }
 0x28a   : > { %v728_v25 = vpop.xlane.xlu0 %727 }
 0x28b   : > { %v750_v32 = vsub.f32 %v7763_v36, %v728_v25  ;;  %v7891_v46 = vpop.f32.mrf.mxu2 }
 0x28d   : > { %v775_v42 = vmul.f32 1.442695, %v750_v32  ;;  %v7893_v47 = vpop.eup %6930 }
 0x28e   : > { %1133 = vadd.xlane.f32.xlu1 %v7882_v39 }
 0x28f   : > { %6932 = vpow2.f32 %v775_v42  ;;  %737 = vmax.xlane.f32.xlu2 %v7825_v13 }
 0x290   : > { %739 = vmax.xlane.f32.xlu0 %v7837_v43  ;;  %6934 = vpow2.f32 %v1103_v48 }
 0x291   : > { %6936 = vpow2.f32 %v1105_v20 }
 0x292   : > { %v730_v36 = vpop.xlane.xlu1 %729 }
 0x293   : > { %v751_v21 = vsub.f32 %v7770_v40, %v730_v36  ;;  %v7902_v58 = vpop.f32.mrf.mxu2 }
 0x295   : > { %v7895_v49 = vpop.eup %6932  ;;  %v777_v30 = vmul.f32 1.442695, %v751_v21 }
 0x296   : > { %805 = vadd.xlane.f32.xlu1 %v7893_v47  ;;  %v7906_v63 = vpop.eup %6934 }
 0x297   : > { %807 = vadd.xlane.f32.xlu2 %v7895_v49  ;;  %6938 = vpow2.f32 %v777_v30  ;;  %v7909_v40 = vpop.eup %6936 }
 0x298   : > { %1067 = vmax.xlane.f32.xlu0 %v7889_v45 }
 0x29a   : > { %v732_v35 = vpop.xlane.xlu2 %731 }
 0x29b   : > { %v752_v53 = vsub.f32 %v7775_v41, %v732_v35  ;;  %v7913_v4 = vpop.f32.mrf.mxu2 }
 0x29d   : > { %v779_v60 = vmul.f32 1.442695, %v752_v53  ;;  %v7915_v41 = vpop.eup %6938 }
 0x29e   : > { %1069 = vmax.xlane.f32.xlu1 %v7904_v23 }
 0x29f   : > { %6940 = vpow2.f32 %v779_v60  ;;  %1135 = vadd.xlane.f32.xlu2 %v7906_v63 }
 0x2a0   : > { %1137 = vadd.xlane.f32.xlu0 %v7909_v40 }
 0x2a3   : > { %v7921_v9 = vpop.f32.mrf.mxu2 }
 0x2a5   : > { %v7917_v5 = vpop.eup %6940 }
 0x2a6   : > { %809 = vadd.xlane.f32.xlu1 %v7915_v41 }
 0x2a7   : > { %811 = vadd.xlane.f32.xlu2 %v7917_v5 }
 0x2ab   : > { %v7923_v27 = vpop.f32.mrf.mxu2 }
 0x2b3   : > { %v7925_v29 = vpop.f32.mrf.mxu2 }
 0x2bb   : > { %v1120_v16 = vpop.xlane.xlu0 %1119  ;;  %v7927_v28 = vpop.f32.mrf.mxu2 }
 0x2bc   : > { %6942 = vrcp.f32 %v1120_v16 }
 0x2c1   : > { %v790_v25 = vpop.xlane.xlu2 %789 }
 0x2c2   : > { %v6943_v31 = vpop.eup %6942 }
 0x2c3   : > { %v1122_v18 = vpop.xlane.xlu1 %1121  ;;  %v1167_v34 = vmul.f32 %v6943_v31, %v7789_v52  ;;  %v7931_v36 = vpop.f32.mrf.mxu2 }
 0x2c4   : > { %6944 = vrcp.f32 %v1122_v18 }
 0x2c5   : > { %6946 = vrcp.f32 %v790_v25 }
 0x2c9   : > { %v792_v32 = vpop.xlane.xlu0 %791 }
 0x2ca   : > { %v6945_v42 = vpop.eup %6944  ;;  %6948 = vrcp.f32 %v792_v32 }
 0x2cb   : > { %v1168_v44 = vmul.f32 %v6945_v42, %v7798_v59  ;;  %v6947_v20 = vpop.eup %6946  ;;  %v1882_v18 = vpop.f32.mrf.mxu2 }
 0x2cc   : > { %v837_v30 = vmul.f32 %v6947_v20, %v7793_v56 }
 0x2cd   : > { %v1183_v48 = vpack.c.bf16 %v1168_v44, %v1167_v34 }
 0x2cf   : > { %1199 = vmatmul.bf16.vlgmr.msrb.gmra.mxu1 %v1183_v48 }
 0x2d0   : > { %v6949_v21 = vpop.eup %6948 }
 0x2d1   : > { %v838_v35 = vmul.f32 %v6949_v21, %v7804_v6  ;;  %v794_v52 = vpop.xlane.xlu1 %793 }
 0x2d2   : > { %v1124_v53 = vpop.xlane.xlu2 %1123 }
 0x2d3   : > { %6950 = vrcp.f32 %v1124_v53  ;;  %v1126_v60 = vpop.xlane.xlu0 %1125  ;;  %v853_v16 = vpack.c.bf16 %v838_v35, %v837_v30  ;;  %v1884_v34 = vpop.f32.mrf.mxu2 }
 0x2d4   : > { %6952 = vrcp.f32 %v1126_v60 }
 0x2d5   : > { %869 = vmatmul.bf16.vlgmr.msra.gmra.mxu3 %v853_v16  ;;  %6954 = vrcp.f32 %v794_v52 }
 0x2d9   : > { %v6951_v25 = vpop.eup %6950 }
 0x2da   : > { %v6953_v59 = vpop.eup %6952  ;;  %v796_v31 = vpop.xlane.xlu2 %795  ;;  %v1169_v42 = vmul.f32 %v6951_v25, %v7816_v12 }
 0x2db   : > { %6956 = vrcp.f32 %v796_v31  ;;  %v1062_v32 = vpop.xlane.xlu0 %1061  ;;  %v1170_v56 = vmul.f32 %v6953_v59, %v7819_v26  ;;  %v6955_v20 = vpop.eup %6954 }
 0x2dc   : > { %v1082_v6 = vsub.f32 %v7831_v37, %v1062_v32  ;;  %v1128_v30 = vpop.xlane.xlu1 %1127  ;;  %v839_v53 = vmul.f32 %v6955_v20, %v7811_v10  ;;  %v1887_v37 = vpop.f32.mrf.mxu2 }
 0x2dd   : > { %v1184_v44 = vpack.c.bf16 %v1170_v56, %v1169_v42 }
 0x2de   : > { %v1109_v48 = vmul.f32 1.442695, %v1082_v6 }
 0x2df   : > { %1204 = vmatmul.bf16.gmra.mxu1 %v1184_v44 }
 0x2e0   : > { %6958 = vpow2.f32 %v1109_v48 }
 0x2e1   : > { %v6957_v21 = vpop.eup %6956 }
 0x2e2   : > { %v1060_v35 = vpop.xlane.xlu2 %1059  ;;  %v840_v60 = vmul.f32 %v6957_v21, %v7827_v15 }
 0x2e3   : > { %v1081_v16 = vsub.f32 %v7813_v19, %v1060_v35  ;;  %v734_v12 = vpop.xlane.xlu0 %733 }
 0x2e4   : > { %v753_v26 = vsub.f32 %v7795_v57, %v734_v12  ;;  %v854_v52 = vpack.c.bf16 %v840_v60, %v839_v53  ;;  %v1889_v32 = vpop.f32.mrf.mxu2 }
 0x2e5   : > { %v1107_v25 = vmul.f32 1.442695, %v1081_v16  ;;  %v1895_v42 = vpack.c.bf16 %v1889_v32, %v1887_v37 }
 0x2e6   : > { %v7942_v59 = vpop.eup %6958  ;;  %v781_v31 = vmul.f32 1.442695, %v753_v26  ;;  %874 = vmatmul.bf16.gmra.mxu3 %v854_v52 }
 0x2e7   : > { %6960 = vpow2.f32 %v1107_v25  ;;  %1141 = vadd.xlane.f32.xlu1 %v7942_v59  ;;  %v7952_v44 = vsel %vm611_vm1, %v1895_v42, 0  ;;  %2069 = vmatpush.bf16.msra.mxu1 %v1895_v42 }
 0x2e8   : > { %6962 = vpow2.f32 %v781_v31  ;;  %1936 = vmatpush.bf16.xpose.msra.mxu0 %v7952_v44  ;;  %2271 = vmatpush.bf16.msrb.mxu2 %v1895_v42 }
 0x2e9   : > { %6964 = vrcp.f32 %v1128_v30  ;;  %v800_v10 = vpop.xlane.xlu1 %799  ;;  %v1894_v30 = vpack.c.bf16 %v1884_v34, %v1882_v18  ;;  %v1893_v18 = vpack.c.bf16 %v7931_v36, %v7927_v28 }
 0x2ea   : > { %6966 = vrcp.f32 %v800_v10  ;;  %v1130_v15 = vpop.xlane.xlu2 %1129 }
 0x2eb   : > { %6968 = vrcp.f32 %v1130_v15  ;;  %v798_v19 = vpop.xlane.xlu0 %797  ;;  %2070 = vmatpush.bf16.msra.mxu1 %v1894_v30  ;;  %v7976_v32 = vsel %vm611_vm1, %v1893_v18, 0 }
 0x2ec   : > { %6970 = vrcp.f32 %v798_v19  ;;  %2272 = vmatpush.bf16.msrb.mxu2 %v1894_v30 }
 0x2ed   : > { %v7945_v57 = vpop.eup %6960 }
 0x2ee   : > { %v7947_v56 = vpop.eup %6962  ;;  %1139 = vadd.xlane.f32.xlu0 %v7945_v57 }
 0x2ef   : > { %v6965_v6 = vpop.eup %6964  ;;  %813 = vadd.xlane.f32.xlu2 %v7947_v56  ;;  %2071 = vmatpush.bf16.msra.mxu1 %v1893_v18 }
 0x2f0   : > { %v6967_v48 = vpop.eup %6966  ;;  %v1171_v16 = vmul.f32 %v6965_v6, %v7829_v33  ;;  %v7964_v33 = vsel %vm611_vm1, %v1894_v30, 0  ;;  %2273 = vmatpush.bf16.msrb.mxu2 %v1893_v18 }
 0x2f1   : > { %v6969_v20 = vpop.eup %6968  ;;  %v736_v21 = vpop.xlane.xlu1 %735  ;;  %v842_v25 = vmul.f32 %v6967_v48, %v7848_v22  ;;  %1937 = vmatpush.bf16.xpose.msra.mxu0 %v7964_v33  ;;  %v1892_v22 = vpack.c.bf16 %v7925_v29, %v7923_v27 }
 0x2f2   : > { %v6971_v35 = vpop.eup %6970  ;;  %v754_v53 = vsub.f32 %v7808_v14, %v736_v21  ;;  %v1066_v60 = vpop.xlane.xlu2 %1065  ;;  %v1172_v12 = vmul.f32 %v6969_v20, %v7850_v54 }
 0x2f3   : > { %v1084_v26 = vsub.f32 %v7861_v7, %v1066_v60  ;;  %v1132_v52 = vpop.xlane.xlu0 %1131  ;;  %v841_v37 = vmul.f32 %v6971_v35, %v7853_v55  ;;  %2072 = vmatpush.bf16.msra.mxu1 %v1892_v22 }
 0x2f4   : > { %v783_v31 = vmul.f32 1.442695, %v754_v53  ;;  %v1185_v10 = vpack.c.bf16 %v1172_v12, %v1171_v16  ;;  %2274 = vmatpush.bf16.msrb.mxu2 %v1892_v22  ;;  %v7988_v16 = vsel %vm611_vm1, %v1892_v22, 0 }
 0x2f5   : > { %v1113_v14 = vmul.f32 1.442695, %v1084_v26  ;;  %v855_v34 = vpack.c.bf16 %v842_v25, %v841_v37 }
 0x2f6   : > { %6972 = vpow2.f32 %v783_v31  ;;  %1209 = vmatmul.bf16.gmra.mxu1 %v1185_v10 }
 0x2f7   : > { %6974 = vpow2.f32 %v1113_v14  ;;  %879 = vmatmul.bf16.gmra.mxu3 %v855_v34 }
 0x2f9   : > { %v1064_v54 = vpop.xlane.xlu1 %1063  ;;  %1938 = vmatpush.bf16.xpose.msra.mxu0 %v7976_v32 }
 0x2fa   : > { %v1083_v55 = vsub.f32 %v7846_v51, %v1064_v54  ;;  %v802_v7 = vpop.xlane.xlu2 %801 }
 0x2fb   : > { %6976 = vrcp.f32 %v802_v7  ;;  %v804_v28 = vpop.xlane.xlu0 %803 }
 0x2fc   : > { %v7970_v36 = vpop.eup %6972  ;;  %v1111_v15 = vmul.f32 1.442695, %v1083_v55  ;;  %6978 = vrcp.f32 %v804_v28 }
 0x2fd   : > { %v7972_v19 = vpop.eup %6974  ;;  %815 = vadd.xlane.f32.xlu0 %v7970_v36 }
 0x2fe   : > { %6980 = vpow2.f32 %v1111_v15  ;;  %1145 = vadd.xlane.f32.xlu2 %v7972_v19 }
 0x2ff   : > { %6982 = vrcp.f32 %v1132_v52 }
 0x301   : > { %v6977_v51 = vpop.eup %6976  ;;  %v1134_v27 = vpop.xlane.xlu1 %1133  ;;  %1939 = vmatpush.bf16.xpose.msra.mxu0 %v7988_v16 }
 0x302   : > { %v6979_v29 = vpop.eup %6978  ;;  %6984 = vrcp.f32 %v1134_v27  ;;  %v738_v42 = vpop.xlane.xlu2 %737  ;;  %v843_v20 = vmul.f32 %v6977_v51, %v7871_v11  ;;  %v1897_v11 = vmul.f32 %v7859_v0, %v7631_v2 }
 0x303   : > { %v755_v6 = vsub.f32 %v7825_v13, %v738_v42  ;;  %v740_v48 = vpop.xlane.xlu0 %739  ;;  %v844_v21 = vmul.f32 %v6979_v29, %v7875_v24  ;;  %v1896_v13 = vmul.f32 %v7844_v50, %v7631_v2 }
 0x304   : > { %v7983_v30 = vpop.eup %6980  ;;  %v756_v35 = vsub.f32 %v7837_v43, %v740_v48  ;;  %v1899_v48 = vmul.f32 %v7880_v38, %v7631_v2 }
 0x305   : > { %v785_v53 = vmul.f32 1.442695, %v755_v6  ;;  %1143 = vadd.xlane.f32.xlu1 %v7983_v30  ;;  %v856_v60 = vpack.c.bf16 %v844_v21, %v843_v20  ;;  %v6983_v12 = vpop.eup %6982  ;;  %v1904_v31 = vpack.c.bf16 %v1897_v11, %v1896_v13  ;;  %v1898_v6 = vmul.f32 %v7869_v17, %v7631_v2 }
 0x306   : > { %v787_v26 = vmul.f32 1.442695, %v756_v35  ;;  %v1173_v52 = vmul.f32 %v6983_v12, %v7864_v8 }
 0x307   : > { %6986 = vpow2.f32 %v785_v53  ;;  %884 = vmatmul.bf16.gmra.mxu3 %v856_v60  ;;  %v1905_v21 = vpack.c.bf16 %v1899_v48, %v1898_v6  ;;  %v6844_v48 = vld [vmem:[%s10203_s5] sm:$0xff] }
 0x308   : > { %v6985_v24 = vpop.eup %6984  ;;  %6988 = vpow2.f32 %v787_v26  ;;  %6494 = vmatmul.msk.bf16.vlgmr.msra.gmra.mxu0 %vm611_vm1, %v1904_v31 }
 0x309   : > { %v806_v43 = vpop.xlane.xlu1 %805  ;;  %v1174_v37 = vmul.f32 %v6985_v24, %v7882_v39 }
 0x30a   : > { %6990 = vrcp.f32 %v806_v43  ;;  %v808_v25 = vpop.xlane.xlu2 %807 }
 0x30b   : > { %6992 = vrcp.f32 %v808_v25  ;;  %v1068_v10 = vpop.xlane.xlu0 %1067  ;;  %v1186_v18 = vpack.c.bf16 %v1174_v37, %v1173_v52  ;;  %v1902_v37 = vmul.f32 %v7913_v4, %v7631_v2  ;;  %v1903_v25 = vmul.f32 %v7921_v9, %v7631_v2 }
 0x30c   : > { %v1085_v14 = vsub.f32 %v7889_v45, %v1068_v10 }
 0x30d   : > { %v7998_v34 = vpop.eup %6986  ;;  %1214 = vmatmul.bf16.gmra.mxu1 %v1186_v18 }
 0x30e   : > { %v8000_v22 = vpop.eup %6988  ;;  %v1115_v54 = vmul.f32 1.442695, %v1085_v14  ;;  %817 = vadd.xlane.f32.xlu0 %v7998_v34 }
 0x30f   : > { %819 = vadd.xlane.f32.xlu1 %v8000_v22 }
 0x310   : > { %v6991_v8 = vpop.eup %6990  ;;  %6994 = vpow2.f32 %v1115_v54 }
 0x311   : > { %v6993_v39 = vpop.eup %6992  ;;  %v1070_v55 = vpop.xlane.xlu1 %1069  ;;  %v845_v7 = vmul.f32 %v6991_v8, %v7893_v47 }
 0x312   : > { %v1086_v45 = vsub.f32 %v7904_v23, %v1070_v55  ;;  %v1136_v28 = vpop.xlane.xlu2 %1135  ;;  %v846_v15 = vmul.f32 %v6993_v39, %v7895_v49  ;;  %v6847_v55 = vld [vmem:[%s10203_s5 + $0x18] sm:$0xff] }
 0x313   : > { %6996 = vrcp.f32 %v1136_v28  ;;  %v1138_v51 = vpop.xlane.xlu0 %1137  ;;  %1340 = vmatpush.bf16.msrb.mxu3 %v6847_v55 }
 0x314   : > { %v1117_v27 = vmul.f32 1.442695, %v1086_v45  ;;  %6998 = vrcp.f32 %v1138_v51  ;;  %v857_v29 = vpack.c.bf16 %v846_v15, %v845_v7  ;;  %v6846_v45 = vld [vmem:[%s10203_s5 + $0x10] sm:$0xff] }
 0x316   : > { %v8008_v42 = vpop.eup %6994  ;;  %7000 = vpow2.f32 %v1117_v27 }
 0x317   : > { %889 = vmatmul.bf16.gmra.mxu3 %v857_v29  ;;  %1147 = vadd.xlane.f32.xlu2 %v8008_v42 }
 0x318   : > { %6495 = vmatmul.msk.bf16.gmra.mxu0 %vm611_vm1, %v1905_v21  ;;  %1341 = vmatpush.bf16.msrb.mxu3 %v6846_v45 }
 0x319   : > { %v6997_v47 = vpop.eup %6996  ;;  %v810_v23 = vpop.xlane.xlu1 %809 }
 0x31a   : > { %v6999_v49 = vpop.eup %6998  ;;  %7002 = vrcp.f32 %v810_v23  ;;  %v812_v20 = vpop.xlane.xlu2 %811  ;;  %v1175_v35 = vmul.f32 %v6997_v47, %v7906_v63  ;;  %v1900_v63 = vmul.f32 %v7891_v46, %v7631_v2 }
 0x31b   : > { %7004 = vrcp.f32 %v812_v20  ;;  %v1176_v53 = vmul.f32 %v6999_v49, %v7909_v40  ;;  %v1901_v40 = vmul.f32 %v7902_v58, %v7631_v2 }
 0x31c   : > { %v8017_v60 = vpop.eup %7000 }
 0x31d   : > { %1149 = vadd.xlane.f32.xlu0 %v8017_v60  ;;  %v1187_v12 = vpack.c.bf16 %v1176_v53, %v1175_v35  ;;  %v1906_v52 = vpack.c.bf16 %v1901_v40, %v1900_v63  ;;  %v8065_v40 = vsel %vm385_vm10, 1.0, %v7500_v1 }
 0x31f   : > { %1219 = vmatmul.bf16.gmra.mxu1 %v1187_v12 }
 0x320   : > { %v7003_v26 = vpop.eup %7002 }
 0x321   : > { %v7005_v13 = vpop.eup %7004  ;;  %v847_v11 = vmul.f32 %v7003_v26, %v7915_v41  ;;  %v1907_v41 = vpack.c.bf16 %v1903_v25, %v1902_v37  ;;  %v8069_v25 = vsel %vm389_vm11, 1.0, %v7500_v1 }
 0x322   : > { %v848_v24 = vmul.f32 %v7005_v13, %v7917_v5 }
 0x324   : > { %v858_v43 = vpack.c.bf16 %v848_v24, %v847_v11 }
 0x327   : > { %894 = vmatmul.bf16.gmra.mxu3 %v858_v43 }
 0x328   : > { %6496 = vmatmul.msk.bf16.gmra.mxu0 %vm611_vm1, %v1906_v52 }
 0x338   : > { %6497 = vmatmul.msk.bf16.gmra.mxu0 %vm611_vm1, %v1907_v41 }
 0x34c   : > { %v1200_v49 = vpop.f32.mrf.mxu1 }
 0x354   : > { %v1202_v26 = vpop.f32.mrf.mxu1 }
 0x355   : > { %v1241_v41 = vmul.f32 %v1202_v26, %v8069_v25 }
 0x358   : > { %v870_v47 = vpop.f32.mrf.mxu3 }
 0x35a   : > { %v1142_v5 = vpop.xlane.xlu1 %1141 }
 0x35b   : > { %7006 = vrcp.f32 %v1142_v5  ;;  %v910_v5 = vmul.f32 %v870_v47, %v8065_v40 }
 0x360   : > { %v872_v12 = vpop.f32.mrf.mxu3 }
 0x361   : > { %v1140_v31 = vpop.xlane.xlu0 %1139  ;;  %v7007_v10 = vpop.eup %7006  ;;  %v911_v52 = vmul.f32 %v872_v12, %v8065_v40 }
 0x362   : > { %7008 = vrcp.f32 %v1140_v31  ;;  %v1178_v54 = vmul.f32 %v7007_v10, %v7942_v59  ;;  %v814_v39 = vpop.xlane.xlu2 %813  ;;  %v6845_v59 = vld [vmem:[%s10203_s5 + $0x8] sm:$0xff] }
 0x363   : > { %7010 = vrcp.f32 %v814_v39  ;;  %1342 = vmatpush.bf16.msrb.mxu3 %v6845_v59  ;;  %v1257_v10 = vadd.f32 %v1241_v41, %v911_v52 }
 0x367   : > { %1343 = vmatpush.bf16.msrb.mxu3 %v6844_v48 }
 0x368   : > { %v7009_v18 = vpop.eup %7008 }
 0x369   : > { %v1177_v14 = vmul.f32 %v7009_v18, %v7945_v57  ;;  %v7011_v57 = vpop.eup %7010 }
 0x36a   : > { %v849_v27 = vmul.f32 %v7011_v57, %v7947_v56 }
 0x36b   : > { %v1188_v8 = vpack.c.bf16 %v1178_v54, %v1177_v14  ;;  %2138 = vmatpush.bf16.xpose.msra.mxu3 %v7952_v44 }
 0x36d   : > { %1224 = vmatmul.bf16.gmra.mxu1 %v1188_v8 }
 0x370   : > { %v816_v7 = vpop.xlane.xlu0 %815 }
 0x371   : > { %7012 = vrcp.f32 %v816_v7  ;;  %v1146_v28 = vpop.xlane.xlu2 %1145 }
 0x372   : > { %7014 = vrcp.f32 %v1146_v28 }
 0x373   : > { %2139 = vmatpush.bf16.xpose.msra.mxu3 %v7964_v33  ;;  %v875_v33 = vpop.f32.mrf.mxu3 }
 0x374   : > { %v912_v59 = vmul.f32 %v875_v33, %v8065_v40 }
 0x377   : > { %v7013_v15 = vpop.eup %7012 }
 0x378   : > { %v1144_v51 = vpop.xlane.xlu1 %1143  ;;  %v850_v29 = vmul.f32 %v7013_v15, %v7970_v36  ;;  %v7015_v23 = vpop.eup %7014 }
 0x379   : > { %7016 = vrcp.f32 %v1144_v51  ;;  %v1180_v56 = vmul.f32 %v7015_v23, %v7972_v19 }
 0x37a   : > { %v859_v6 = vpack.c.bf16 %v850_v29, %v849_v27 }
 0x37b   : > { %2140 = vmatpush.bf16.xpose.msra.mxu3 %v7976_v32  ;;  %v1240_v32 = vmul.f32 %v1200_v49, %v8069_v25  ;;  %v877_v54 = vpop.f32.mrf.mxu3 }
 0x37c   : > { %899 = vmatmul.bf16.gmra.mxu3 %v859_v6  ;;  %v913_v57 = vmul.f32 %v877_v54, %v8065_v40 }
 0x37d   : > { %v1256_v8 = vadd.f32 %v1240_v32, %v910_v5 }
 0x37f   : > { %v7017_v20 = vpop.eup %7016  ;;  %v1272_v7 = vpack.c.bf16 %v1257_v10, %v1256_v8 }
 0x380   : > { %v1179_v21 = vmul.f32 %v7017_v20, %v7983_v30 }
 0x381   : > { %v818_v36 = vpop.xlane.xlu0 %817 }
 0x382   : > { %7018 = vrcp.f32 %v818_v36  ;;  %v820_v35 = vpop.xlane.xlu1 %819  ;;  %v1189_v53 = vpack.c.bf16 %v1180_v56, %v1179_v21 }
 0x383   : > { %7020 = vrcp.f32 %v820_v35  ;;  %2141 = vmatpush.bf16.xpose.msra.mxu3 %v7988_v16  ;;  %v880_v45 = vpop.f32.mrf.mxu3 }
 0x384   : > { %1229 = vmatmul.bf16.gmra.mxu1 %v1189_v53  ;;  %v914_v23 = vmul.f32 %v880_v45, %v8065_v40 }
 0x385   : > { %v8055_v63 = vpop.f32.mrf.mxu0 }
 0x386   : > { %v1961_v19 = vsel %vm611_vm1, %v8055_v63, -inf }
 0x387   : > { %1962 = vmax.xlane.f32.xlu0 %v1961_v19 }
 0x388   : > { %v7019_v13 = vpop.eup %7018 }
 0x389   : > { %v7021_v11 = vpop.eup %7020  ;;  %v851_v24 = vmul.f32 %v7019_v13, %v7998_v34 }
 0x38a   : > { %v852_v44 = vmul.f32 %v7021_v11, %v8000_v22  ;;  %v1148_v43 = vpop.xlane.xlu2 %1147  ;;  %v1205_v22 = vpop.f32.mrf.mxu1 }
 0x38b   : > { %7022 = vrcp.f32 %v1148_v43  ;;  %v882_v51 = vpop.f32.mrf.mxu3 }
 0x38c   : > { %v860_v30 = vpack.c.bf16 %v852_v44, %v851_v24  ;;  %v915_v6 = vmul.f32 %v882_v51, %v8065_v40 }
 0x38e   : > { %904 = vmatmul.bf16.gmra.mxu3 %v860_v30 }
 0x390   : > { %v1150_v34 = vpop.xlane.xlu0 %1149 }
 0x391   : > { %7024 = vrcp.f32 %v1150_v34  ;;  %v7023_v37 = vpop.eup %7022 }
 0x392   : > { %v1181_v18 = vmul.f32 %v7023_v37, %v8008_v42  ;;  %v1207_v55 = vpop.f32.mrf.mxu1  ;;  %v1242_v42 = vmul.f32 %v1205_v22, %v8069_v25 }
 0x393   : > { %v1243_v16 = vmul.f32 %v1207_v55, %v8069_v25  ;;  %v885_v48 = vpop.f32.mrf.mxu3 }
 0x394   : > { %v916_v13 = vmul.f32 %v885_v48, %v8065_v40 }
 0x395   : > { %v1259_v15 = vadd.f32 %v1243_v16, %v913_v57 }
 0x397   : > { %v7025_v31 = vpop.eup %7024 }
 0x398   : > { %v1182_v14 = vmul.f32 %v7025_v31, %v8017_v60  ;;  %v1258_v60 = vadd.f32 %v1242_v42, %v912_v59 }
 0x39a   : > { %v1190_v39 = vpack.c.bf16 %v1182_v14, %v1181_v18  ;;  %v1210_v28 = vpop.f32.mrf.mxu1  ;;  %v1273_v27 = vpack.c.bf16 %v1259_v15, %v1258_v60 }
 0x39b   : > { %v1244_v20 = vmul.f32 %v1210_v28, %v8069_v25  ;;  %v887_v35 = vpop.f32.mrf.mxu3 }
 0x39c   : > { %1234 = vmatmul.bf16.gmra.mxu1 %v1190_v39  ;;  %v917_v12 = vmul.f32 %v887_v35, %v8065_v40 }
 0x39d   : > { %v1260_v56 = vadd.f32 %v1244_v20, %v914_v23 }
 0x39e   : > { %6454 = vmatmul.msk.bf16.vlgmr.msrb.gmra.mxu3 %vm611_vm1, %v1272_v7 }
 0x3a2   : > { %v1212_v29 = vpop.f32.mrf.mxu1 }
 0x3a3   : > { %v1245_v49 = vmul.f32 %v1212_v29, %v8069_v25  ;;  %v890_v43 = vpop.f32.mrf.mxu3 }
 0x3a4   : > { %v918_v41 = vmul.f32 %v890_v43, %v8065_v40  ;;  %v2111_v43 = vmul.f32 %v7859_v0, %v7634_v3  ;;  %v2114_v0 = vmul.f32 %v7891_v46, %v7634_v3 }
 0x3a5   : > { %v1261_v21 = vadd.f32 %v1245_v49, %v915_v6 }
 0x3a7   : > { %v1274_v36 = vpack.c.bf16 %v1261_v21, %v1260_v56 }
 0x3aa   : > { %v1215_v47 = vpop.f32.mrf.mxu1 }
 0x3ab   : > { %v1246_v11 = vmul.f32 %v1215_v47, %v8069_v25  ;;  %v892_v34 = vpop.f32.mrf.mxu3 }
 0x3ac   : > { %v919_v37 = vmul.f32 %v892_v34, %v8065_v40  ;;  %v2113_v34 = vmul.f32 %v7880_v38, %v7634_v3  ;;  %v2116_v38 = vmul.f32 %v7913_v4, %v7634_v3 }
 0x3ad   : > { %v1262_v30 = vadd.f32 %v1246_v11, %v916_v13 }
 0x3ae   : > { %6455 = vmatmul.msk.bf16.gmra.mxu3 %vm611_vm1, %v1273_v27 }
 0x3b2   : > { %v1217_v53 = vpop.f32.mrf.mxu1 }
 0x3b3   : > { %v1247_v26 = vmul.f32 %v1217_v53, %v8069_v25  ;;  %v895_v10 = vpop.f32.mrf.mxu3 }
 0x3b4   : > { %v920_v39 = vmul.f32 %v895_v10, %v8065_v40 }
 0x3b5   : > { %v1263_v44 = vadd.f32 %v1247_v26, %v917_v12 }
 0x3b7   : > { %v1275_v19 = vpack.c.bf16 %v1263_v44, %v1262_v30  ;;  %v2110_v44 = vmul.f32 %v7844_v50, %v7634_v3 }
 0x3b9   : > { %v2118_v30 = vpack.c.bf16 %v2111_v43, %v2110_v44 }
 0x3ba   : > { %v1220_v24 = vpop.f32.mrf.mxu1 }
 0x3bb   : > { %v1248_v52 = vmul.f32 %v1220_v24, %v8069_v25  ;;  %v897_v14 = vpop.f32.mrf.mxu3 }
 0x3bc   : > { %v921_v55 = vmul.f32 %v897_v14, %v8065_v40 }
 0x3bd   : > { %v1264_v31 = vadd.f32 %v1248_v52, %v918_v41 }
 0x3be   : > { %6456 = vmatmul.msk.bf16.gmra.mxu3 %vm611_vm1, %v1274_v36 }
 0x3c2   : > { %v1222_v33 = vpop.f32.mrf.mxu1 }
 0x3c3   : > { %v1249_v22 = vmul.f32 %v1222_v33, %v8069_v25  ;;  %v2112_v33 = vmul.f32 %v7869_v17, %v7634_v3 }
 0x3c5   : > { %v1265_v5 = vadd.f32 %v1249_v22, %v919_v37  ;;  %v2119_v52 = vpack.c.bf16 %v2113_v34, %v2112_v33  ;;  %v2115_v37 = vmul.f32 %v7902_v58, %v7634_v3 }
 0x3c7   : > { %v1276_v32 = vpack.c.bf16 %v1265_v5, %v1264_v31  ;;  %v2120_v41 = vpack.c.bf16 %v2115_v37, %v2114_v0  ;;  %v2117_v31 = vmul.f32 %v7921_v9, %v7634_v3 }
 0x3ce   : > { %6457 = vmatmul.msk.bf16.gmra.mxu3 %vm611_vm1, %v1275_v19 }
 0x3de   : > { %6458 = vmatmul.msk.bf16.gmra.mxu3 %vm611_vm1, %v1276_v32  ;;  %v2121_v32 = vpack.c.bf16 %v2117_v31, %v2116_v38 }
 0x3ea   : > { %v1225_v18 = vpop.f32.mrf.mxu1 }
 0x3eb   : > { %v1250_v54 = vmul.f32 %v1225_v18, %v8069_v25 }
 0x3ed   : > { %v1266_v45 = vadd.f32 %v1250_v54, %v920_v39  ;;  %v1943_v39 = vpop.f32.mrf.mxu0 }
 0x3f2   : > { %v1227_v8 = vpop.f32.mrf.mxu1 }
 0x3f3   : > { %v1251_v7 = vmul.f32 %v1227_v8, %v8069_v25 }
 0x3f5   : > { %v1267_v28 = vadd.f32 %v1251_v7, %v921_v55 }
 0x3f7   : > { %v1277_v57 = vpack.c.bf16 %v1267_v28, %v1266_v45  ;;  %v8166_v45 = vpop.f32.mrf.mxu0 }
 0x3f9   : > { %6459 = vmatmul.msk.bf16.gmra.mxu3 %vm611_vm1, %v1277_v57 }
 0x3fa   : > { %v1963_v33 = vpop.xlane.xlu0 %1962 }
 0x3fb   : > { %v1985_v38 = vsub.f32 %v8055_v63, %v1963_v33 }
 0x3ff   : > { %v900_v16 = vpop.f32.mrf.mxu3 }
 0x400   : > { %v922_v51 = vmul.f32 %v900_v16, %v8065_v40  ;;  %v1964_v16 = vsel %vm611_vm1, %v1943_v39, -inf }
 0x401   : > { %v1230_v59 = vpop.f32.mrf.mxu1 }
 0x402   : > { %v1252_v15 = vmul.f32 %v1230_v59, %v8069_v25 }
 0x404   : > { %v1268_v6 = vadd.f32 %v1252_v15, %v922_v51  ;;  %v1967_v15 = vsel %vm611_vm1, %v8166_v45, -inf }
 0x407   : > { %v902_v42 = vpop.f32.mrf.mxu3 }
 0x408   : > { %v923_v27 = vmul.f32 %v902_v42, %v8065_v40 }
 0x409   : > { %v1232_v60 = vpop.f32.mrf.mxu1 }
 0x40a   : > { %v1253_v29 = vmul.f32 %v1232_v60, %v8069_v25  ;;  %v8173_v60 = vpop.f32.mrf.mxu0 }
 0x40c   : > { %v1269_v48 = vadd.f32 %v1253_v29, %v923_v27  ;;  %v1970_v29 = vsel %vm611_vm1, %v8173_v60, -inf }
 0x40e   : > { %v1278_v47 = vpack.c.bf16 %v1269_v48, %v1268_v6 }
 0x410   : > { %6460 = vmatmul.msk.bf16.gmra.mxu3 %vm611_vm1, %v1278_v47 }
 0x411   : > { %v905_v23 = vpop.f32.mrf.mxu3 }
 0x412   : > { %v924_v36 = vmul.f32 %v905_v23, %v8065_v40  ;;  %v8181_v6 = vpop.f32.mrf.mxu0 }
 0x413   : > { %v1973_v23 = vsel %vm611_vm1, %v8181_v6, -inf }
 0x419   : > { %v1235_v49 = vpop.f32.mrf.mxu1  ;;  %v907_v20 = vpop.f32.mrf.mxu3 }
 0x41a   : > { %v1254_v21 = vmul.f32 %v1235_v49, %v8069_v25  ;;  %v925_v35 = vmul.f32 %v907_v20, %v8065_v40  ;;  %v8189_v49 = vpop.f32.mrf.mxu0 }
 0x41c   : > { %v1270_v12 = vadd.f32 %v1254_v21, %v924_v36 }
 0x421   : > { %v1237_v56 = vpop.f32.mrf.mxu1  ;;  %v8112_v13 = vpop.f32.mrf.mxu3 }
 0x422   : > { %v1255_v53 = vmul.f32 %v1237_v56, %v8069_v25  ;;  %v1976_v56 = vsel %vm611_vm1, %v8189_v49, -inf }
 0x424   : > { %v1271_v26 = vadd.f32 %v1255_v53, %v925_v35 }
 0x426   : > { %v1279_v11 = vpack.c.bf16 %v1271_v26, %v1270_v12  ;;  %v8205_v26 = vpop.f32.mrf.mxu0 }
 0x428   : > { %6461 = vmatmul.msk.bf16.gmra.mxu3 %vm611_vm1, %v1279_v11  ;;  %v1979_v11 = vsel %vm611_vm1, %v8205_v26, -inf }
 0x429   : > { %v8115_v24 = vpop.f32.mrf.mxu3 }
 0x431   : > { %v8122_v19 = vpop.f32.mrf.mxu3 }
 0x438   : > { %6502 = vmatmul.msk.bf16.vlgmr.msra.gmra.mxu3 %vm611_vm1, %v2118_v30 }
 0x439   : > { %v8128_v22 = vpop.f32.mrf.mxu3 }
 0x441   : > { %v8131_v50 = vpop.f32.mrf.mxu3 }
 0x448   : > { %6503 = vmatmul.msk.bf16.gmra.mxu3 %vm611_vm1, %v2119_v52 }
 0x449   : > { %v8137_v5 = vpop.f32.mrf.mxu3 }
 0x451   : > { %v8140_v17 = vpop.f32.mrf.mxu3 }
 0x458   : > { %6504 = vmatmul.msk.bf16.gmra.mxu3 %vm611_vm1, %v2120_v41 }
 0x459   : > { %v8147_v46 = vpop.f32.mrf.mxu3 }
 0x461   : > { %v8149_v10 = vpop.f32.mrf.mxu3 }
 0x468   : > { %6505 = vmatmul.msk.bf16.gmra.mxu3 %vm611_vm1, %v2121_v32 }
 0x469   : > { %v8151_v58 = vpop.f32.mrf.mxu3 }
 0x47c   : > { %v8153_v18 = vpop.f32.mrf.mxu3 }
 0x484   : > { %v8155_v14 = vpop.f32.mrf.mxu3 }
 0x493   : > { %v8157_v54 = vpop.f32.mrf.mxu3 }
 0x49b   : > { %v8159_v8 = vpop.f32.mrf.mxu3 }
 0x4ab   : > { %v8161_v4 = vpop.f32.mrf.mxu3 }
 0x4b3   : > { %v8163_v9 = vpop.f32.mrf.mxu3 }
 0x4bb   : > { %v2143_v55 = vpop.f32.mrf.mxu3 }
 0x4bc   : > { %v2163_v7 = vsel %vm611_vm1, %v2143_v55, -inf }
 0x4bd   : > { %2164 = vmax.xlane.f32.xlu1 %v2163_v7 }
 0x4c3   : > { %v2145_v28 = vpop.f32.mrf.mxu3 }
 0x4c4   : > { %v2166_v57 = vsel %vm611_vm1, %v2145_v28, -inf }
 0x4c5   : > { %2167 = vmax.xlane.f32.xlu2 %v2166_v57  ;;  %1965 = vmax.xlane.f32.xlu1 %v1964_v16 }
 0x4cb   : > { %v2148_v59 = vpop.f32.mrf.mxu3 }
 0x4cc   : > { %v2169_v42 = vsel %vm611_vm1, %v2148_v59, -inf }
 0x4cd   : > { %2170 = vmax.xlane.f32.xlu2 %v2169_v42  ;;  %1968 = vmax.xlane.f32.xlu1 %v1967_v15  ;;  %v8214_v42 = vpop.f32.mrf.mxu0 }
 0x4d3   : > { %v8175_v51 = vpop.f32.mrf.mxu3 }
 0x4d4   : > { %v2172_v27 = vsel %vm611_vm1, %v8175_v51, -inf }
 0x4d5   : > { %2173 = vmax.xlane.f32.xlu0 %v2172_v27  ;;  %1971 = vmax.xlane.f32.xlu2 %v1970_v29 }
 0x4db   : > { %v8183_v48 = vpop.f32.mrf.mxu3 }
 0x4dc   : > { %v2175_v47 = vsel %vm611_vm1, %v8183_v48, -inf }
 0x4dd   : > { %2176 = vmax.xlane.f32.xlu0 %v2175_v47  ;;  %1974 = vmax.xlane.f32.xlu2 %v1973_v23  ;;  %v1982_v23 = vsel %vm611_vm1, %v8214_v42, -inf }
 0x4e3   : > { %v8191_v20 = vpop.f32.mrf.mxu3 }
 0x4e4   : > { %v2178_v21 = vsel %vm611_vm1, %v8191_v20, -inf }
 0x4e5   : > { %2179 = vmax.xlane.f32.xlu1 %v2178_v21  ;;  %1977 = vmax.xlane.f32.xlu0 %v1976_v56 }
 0x4eb   : > { %v8197_v36 = vpop.f32.mrf.mxu3 }
 0x4ec   : > { %v2181_v35 = vsel %vm611_vm1, %v8197_v36, -inf }
 0x4ed   : > { %2182 = vmax.xlane.f32.xlu1 %v2181_v35 }
 0x4f3   : > { %v8201_v53 = vpop.f32.mrf.mxu3 }
 0x4f4   : > { %v2184_v12 = vsel %vm611_vm1, %v8201_v53, -inf }
 0x4f5   : > { %2185 = vmax.xlane.f32.xlu2 %v2184_v12 }
 0x4fd   : > { %1980 = vmax.xlane.f32.xlu2 %v1979_v11 }
 0x530   : > { %v2165_v44 = vpop.xlane.xlu1 %2164 }
 0x531   : > { %v2187_v43 = vsub.f32 %v2143_v55, %v2165_v44  ;;  %v1993_v55 = vmul.f32 1.442695, %v1985_v38 }
 0x533   : > { %v2195_v30 = vmul.f32 1.442695, %v2187_v43 }
 0x535   : > { %7026 = vpow2.f32 %v2195_v30 }
 0x538   : > { %v2168_v34 = vpop.xlane.xlu2 %2167  ;;  %v1966_v52 = vpop.xlane.xlu1 %1965 }
 0x539   : > { %v2188_v0 = vsub.f32 %v2145_v28, %v2168_v34  ;;  %v1986_v37 = vsub.f32 %v1943_v39, %v1966_v52 }
 0x53b   : > { %v8209_v41 = vpop.eup %7026  ;;  %v2197_v31 = vmul.f32 1.442695, %v2188_v0  ;;  %v1995_v32 = vmul.f32 1.442695, %v1986_v37 }
 0x53c   : > { %v2211_v7 = vsel %vm611_vm1, %v8209_v41, 0.0 }
 0x53d   : > { %7028 = vpow2.f32 %v2197_v31  ;;  %2212 = vadd.xlane.f32.xlu0 %v2211_v7 }
 0x53e   : > { %7030 = vpow2.f32 %v1995_v32 }
 0x53f   : > { %7032 = vpow2.f32 %v1993_v55 }
 0x540   : > { %v2171_v57 = vpop.xlane.xlu2 %2170  ;;  %v1969_v16 = vpop.xlane.xlu1 %1968 }
 0x541   : > { %v2189_v15 = vsub.f32 %v2148_v59, %v2171_v57  ;;  %v1987_v39 = vsub.f32 %v8166_v45, %v1969_v16 }
 0x543   : > { %v8217_v28 = vpop.eup %7028  ;;  %v2199_v63 = vmul.f32 1.442695, %v2189_v15  ;;  %v1997_v27 = vmul.f32 1.442695, %v1987_v39 }
 0x544   : > { %v8219_v29 = vpop.eup %7030  ;;  %v2214_v47 = vsel %vm611_vm1, %v8217_v28, 0.0 }
 0x545   : > { %7034 = vpow2.f32 %v2199_v63  ;;  %2215 = vadd.xlane.f32.xlu1 %v2214_v47  ;;  %v2012_v59 = vsel %vm611_vm1, %v8219_v29, 0.0  ;;  %1983 = vmax.xlane.f32.xlu0 %v1982_v23  ;;  %v8227_v56 = vpop.eup %7032 }
 0x546   : > { %7036 = vpow2.f32 %v1997_v27  ;;  %2013 = vadd.xlane.f32.xlu2 %v2012_v59  ;;  %v2009_v33 = vsel %vm611_vm1, %v8227_v56, 0.0 }
 0x548   : > { %v2174_v45 = vpop.xlane.xlu0 %2173  ;;  %v1972_v21 = vpop.xlane.xlu2 %1971 }
 0x549   : > { %v2190_v35 = vsub.f32 %v8175_v51, %v2174_v45  ;;  %v1988_v12 = vsub.f32 %v8173_v60, %v1972_v21 }
 0x54b   : > { %v8231_v11 = vpop.eup %7034  ;;  %v2201_v44 = vmul.f32 1.442695, %v2190_v35  ;;  %v1999_v43 = vmul.f32 1.442695, %v1988_v12 }
 0x54c   : > { %v8233_v30 = vpop.eup %7036  ;;  %v2217_v34 = vsel %vm611_vm1, %v8231_v11, 0.0 }
 0x54d   : > { %7038 = vpow2.f32 %v2201_v44  ;;  %2010 = vadd.xlane.f32.xlu1 %v2009_v33  ;;  %v2015_v52 = vsel %vm611_vm1, %v8233_v30, 0.0  ;;  %2218 = vadd.xlane.f32.xlu0 %v2217_v34 }
 0x54e   : > { %7040 = vpow2.f32 %v1999_v43  ;;  %2016 = vadd.xlane.f32.xlu2 %v2015_v52 }
 0x550   : > { %v2177_v60 = vpop.xlane.xlu0 %2176  ;;  %v1975_v51 = vpop.xlane.xlu2 %1974 }
 0x551   : > { %v2191_v0 = vsub.f32 %v8183_v48, %v2177_v60  ;;  %v1989_v37 = vsub.f32 %v8181_v6, %v1975_v51 }
 0x553   : > { %v8243_v38 = vpop.eup %7038  ;;  %v2203_v31 = vmul.f32 1.442695, %v2191_v0  ;;  %v2001_v32 = vmul.f32 1.442695, %v1989_v37 }
 0x554   : > { %v8245_v7 = vpop.eup %7040  ;;  %v2220_v55 = vsel %vm611_vm1, %v8243_v38, 0.0 }
 0x555   : > { %7042 = vpow2.f32 %v2203_v31  ;;  %2221 = vadd.xlane.f32.xlu1 %v2220_v55  ;;  %v2018_v57 = vsel %vm611_vm1, %v8245_v7, 0.0 }
 0x556   : > { %7044 = vpow2.f32 %v2001_v32  ;;  %2019 = vadd.xlane.f32.xlu0 %v2018_v57 }
 0x558   : > { %v2180_v16 = vpop.xlane.xlu1 %2179  ;;  %v1978_v48 = vpop.xlane.xlu0 %1977 }
 0x559   : > { %v2192_v6 = vsub.f32 %v8191_v20, %v2180_v16  ;;  %v1990_v15 = vsub.f32 %v8189_v49, %v1978_v48 }
 0x55b   : > { %v8253_v39 = vpop.eup %7042  ;;  %v2205_v63 = vmul.f32 1.442695, %v2192_v6  ;;  %v2003_v27 = vmul.f32 1.442695, %v1990_v15 }
 0x55c   : > { %v8255_v47 = vpop.eup %7044  ;;  %v2223_v23 = vsel %vm611_vm1, %v8253_v39, 0.0 }
 0x55d   : > { %7046 = vpow2.f32 %v2205_v63  ;;  %2224 = vadd.xlane.f32.xlu1 %v2223_v23  ;;  %v2021_v59 = vsel %vm611_vm1, %v8255_v47, 0.0 }
 0x55e   : > { %7048 = vpow2.f32 %v2003_v27  ;;  %2022 = vadd.xlane.f32.xlu0 %v2021_v59 }
 0x560   : > { %v2183_v45 = vpop.xlane.xlu1 %2182 }
 0x561   : > { %v2193_v20 = vsub.f32 %v8197_v36, %v2183_v45 }
 0x563   : > { %v8262_v49 = vpop.eup %7046  ;;  %v2207_v21 = vmul.f32 1.442695, %v2193_v20 }
 0x564   : > { %v8264_v35 = vpop.eup %7048  ;;  %v2226_v12 = vsel %vm611_vm1, %v8262_v49, 0.0 }
 0x565   : > { %7050 = vpow2.f32 %v2207_v21  ;;  %v2024_v44 = vsel %vm611_vm1, %v8264_v35, 0.0  ;;  %2227 = vadd.xlane.f32.xlu2 %v2226_v12 }
 0x566   : > { %2025 = vadd.xlane.f32.xlu1 %v2024_v44 }
 0x568   : > { %v2186_v43 = vpop.xlane.xlu2 %2185 }
 0x569   : > { %v2194_v33 = vsub.f32 %v8201_v53, %v2186_v43 }
 0x56b   : > { %v8271_v34 = vpop.eup %7050  ;;  %v2209_v36 = vmul.f32 1.442695, %v2194_v33 }
 0x56c   : > { %v2229_v52 = vsel %vm611_vm1, %v8271_v34, 0.0 }
 0x56d   : > { %7052 = vpow2.f32 %v2209_v36  ;;  %2230 = vadd.xlane.f32.xlu2 %v2229_v52 }
 0x570   : > { %v1981_v60 = vpop.xlane.xlu2 %1980 }
 0x571   : > { %v1991_v51 = vsub.f32 %v8205_v26, %v1981_v60 }
 0x573   : > { %v8276_v0 = vpop.eup %7052  ;;  %v2005_v37 = vmul.f32 1.442695, %v1991_v51 }
 0x574   : > { %v2232_v31 = vsel %vm611_vm1, %v8276_v0, 0.0 }
 0x575   : > { %7054 = vpow2.f32 %v2005_v37  ;;  %2233 = vadd.xlane.f32.xlu0 %v2232_v31 }
 0x57b   : > { %v8280_v53 = vpop.eup %7054 }
 0x57c   : > { %v2027_v32 = vsel %vm611_vm1, %v8280_v53, 0.0 }
 0x57d   : > { %2028 = vadd.xlane.f32.xlu1 %v2027_v32 }
 0x5b0   : > { %v2213_v55 = vpop.xlane.xlu0 %2212 }
 0x5b1   : > { %7056 = vrcp.f32 %v2213_v55 }
 0x5b7   : > { %v7057_v15 = vpop.eup %7056 }
 0x5b8   : > { %v2216_v57 = vpop.xlane.xlu1 %2215  ;;  %v1984_v16 = vpop.xlane.xlu0 %1983  ;;  %v2243_v27 = vmul.f32 %v7057_v15, %v8209_v41 }
 0x5b9   : > { %7058 = vrcp.f32 %v2216_v57  ;;  %v1992_v26 = vsub.f32 %v8214_v42, %v1984_v16  ;;  %v2014_v6 = vpop.xlane.xlu2 %2013 }
 0x5bb   : > { %v2007_v48 = vmul.f32 1.442695, %v1992_v26 }
 0x5bd   : > { %7060 = vpow2.f32 %v2007_v48 }
 0x5be   : > { %7062 = vrcp.f32 %v2014_v6 }
 0x5bf   : > { %v7059_v63 = vpop.eup %7058 }
 0x5c0   : > { %v2244_v23 = vmul.f32 %v7059_v63, %v8217_v28  ;;  %v2011_v59 = vpop.xlane.xlu1 %2010  ;;  %v2219_v45 = vpop.xlane.xlu0 %2218 }
 0x5c1   : > { %7064 = vrcp.f32 %v2011_v59  ;;  %v2017_v52 = vpop.xlane.xlu2 %2016 }
 0x5c2   : > { %v2251_v20 = vpack.c.bf16 %v2244_v23, %v2243_v27  ;;  %7066 = vrcp.f32 %v2219_v45 }
 0x5c3   : > { %v8287_v21 = vpop.eup %7060 }
 0x5c4   : > { %6506 = vmatmul.msk.bf16.vlgmr.msrb.gmra.mxu2 %vm611_vm1, %v2251_v20  ;;  %v2030_v42 = vsel %vm611_vm1, %v8287_v21, 0.0  ;;  %v7063_v12 = vpop.eup %7062 }
 0x5c5   : > { %2031 = vadd.xlane.f32.xlu2 %v2030_v42  ;;  %v2042_v43 = vmul.f32 %v7063_v12, %v8219_v29 }
 0x5c7   : > { %v7065_v44 = vpop.eup %7064 }
 0x5c8   : > { %v2041_v41 = vmul.f32 %v7065_v44, %v8227_v56  ;;  %v2222_v28 = vpop.xlane.xlu1 %2221  ;;  %v7067_v60 = vpop.eup %7066 }
 0x5c9   : > { %7068 = vrcp.f32 %v2222_v28  ;;  %v2020_v36 = vpop.xlane.xlu0 %2019  ;;  %v2245_v37 = vmul.f32 %v7067_v60, %v8231_v11  ;;  %v6853_v28 = vld [vmem:[%s10203_s5 + $0x28] sm:$0xff] }
 0x5ca   : > { %v2049_v33 = vpack.c.bf16 %v2042_v43, %v2041_v41  ;;  %7070 = vrcp.f32 %v2020_v36 }
 0x5cb   : > { %7072 = vrcp.f32 %v2017_v52 }
 0x5cc   : > { %6498 = vmatmul.msk.bf16.vlgmr.msra.gmra.mxu1 %vm611_vm1, %v2049_v33 }
 0x5cf   : > { %v7069_v51 = vpop.eup %7068 }
 0x5d0   : > { %v2246_v31 = vmul.f32 %v7069_v51, %v8243_v38  ;;  %v2225_v32 = vpop.xlane.xlu1 %2224  ;;  %v7071_v29 = vpop.eup %7070 }
 0x5d1   : > { %v7073_v56 = vpop.eup %7072  ;;  %v2044_v57 = vmul.f32 %v7071_v29, %v8245_v7  ;;  %7074 = vrcp.f32 %v2225_v32  ;;  %v2023_v15 = vpop.xlane.xlu0 %2022 }
 0x5d2   : > { %v2252_v55 = vpack.c.bf16 %v2246_v31, %v2245_v37  ;;  %v2043_v16 = vmul.f32 %v7073_v56, %v8233_v30 }
 0x5d4   : > { %6507 = vmatmul.msk.bf16.gmra.mxu2 %vm611_vm1, %v2252_v55  ;;  %v2050_v6 = vpack.c.bf16 %v2044_v57, %v2043_v16 }
 0x5d7   : > { %v7075_v11 = vpop.eup %7074 }
 0x5d8   : > { %v2228_v26 = vpop.xlane.xlu2 %2227  ;;  %v2247_v63 = vmul.f32 %v7075_v11, %v8253_v39 }
 0x5d9   : > { %7076 = vrcp.f32 %v2228_v26  ;;  %v2026_v48 = vpop.xlane.xlu1 %2025 }
 0x5da   : > { %7078 = vrcp.f32 %v2026_v48 }
 0x5db   : > { %7080 = vrcp.f32 %v2023_v15 }
 0x5dc   : > { %6499 = vmatmul.msk.bf16.gmra.mxu1 %vm611_vm1, %v2050_v6 }
 0x5df   : > { %v7077_v38 = vpop.eup %7076 }
 0x5e0   : > { %v2248_v27 = vmul.f32 %v7077_v38, %v8262_v49  ;;  %v7079_v7 = vpop.eup %7078  ;;  %v2231_v59 = vpop.xlane.xlu2 %2230 }
 0x5e1   : > { %v7081_v30 = vpop.eup %7080  ;;  %v2046_v45 = vmul.f32 %v7079_v7, %v8264_v35  ;;  %7082 = vrcp.f32 %v2231_v59  ;;  %v6855_v35 = vld [vmem:[%s10203_s5 + $0x38] sm:$0xff] }
 0x5e2   : > { %v2253_v23 = vpack.c.bf16 %v2248_v27, %v2247_v63  ;;  %v2045_v20 = vmul.f32 %v7081_v30, %v8255_v47  ;;  %2365 = vmatpush.bf16.msrb.mxu0 %v6855_v35  ;;  %v6854_v47 = vld [vmem:[%s10203_s5 + $0x30] sm:$0xff] }
 0x5e4   : > { %6508 = vmatmul.msk.bf16.gmra.mxu2 %vm611_vm1, %v2253_v23  ;;  %v2051_v12 = vpack.c.bf16 %v2046_v45, %v2045_v20 }
 0x5e6   : > { %2366 = vmatpush.bf16.msrb.mxu0 %v6854_v47 }
 0x5e7   : > { %v7083_v44 = vpop.eup %7082 }
 0x5e8   : > { %v2234_v42 = vpop.xlane.xlu0 %2233  ;;  %v2249_v49 = vmul.f32 %v7083_v44, %v8271_v34 }
 0x5e9   : > { %7084 = vrcp.f32 %v2234_v42 }
 0x5ea   : > { %2367 = vmatpush.bf16.msrb.mxu0 %v6853_v28 }
 0x5ec   : > { %6500 = vmatmul.msk.bf16.gmra.mxu1 %vm611_vm1, %v2051_v12 }
 0x5ef   : > { %v7085_v39 = vpop.eup %7084 }
 0x5f0   : > { %v2250_v43 = vmul.f32 %v7085_v39, %v8276_v0  ;;  %v2029_v34 = vpop.xlane.xlu1 %2028  ;;  %v6852_v0 = vld [vmem:[%s10203_s5 + $0x20] sm:$0xff] }
 0x5f1   : > { %7086 = vrcp.f32 %v2029_v34  ;;  %2368 = vmatpush.bf16.msrb.mxu0 %v6852_v0 }
 0x5f2   : > { %v2254_v41 = vpack.c.bf16 %v2250_v43, %v2249_v49 }
 0x5f4   : > { %6509 = vmatmul.msk.bf16.gmra.mxu2 %vm611_vm1, %v2254_v41 }
 0x5f7   : > { %v7087_v36 = vpop.eup %7086 }
 0x5f8   : > { %v2047_v60 = vmul.f32 %v7087_v36, %v8280_v53 }
 0x638   : > { %v2032_v33 = vpop.xlane.xlu2 %2031 }
 0x639   : > { %7088 = vrcp.f32 %v2032_v33 }
 0x63f   : > { %v7089_v52 = vpop.eup %7088 }
 0x640   : > { %v2048_v51 = vmul.f32 %v7089_v52, %v8287_v21 }
 0x642   : > { %v2052_v37 = vpack.c.bf16 %v2048_v51, %v2047_v60 }
 0x644   : > { %6501 = vmatmul.msk.bf16.gmra.mxu1 %vm611_vm1, %v2052_v37 }
 0x647   : > { %v2276_v31 = vpop.f32.mrf.mxu2 }
 0x648   : > { %v2296_v57 = vmul.f32 %v2276_v31, %v8069_v25 }
 0x649   : > { %v2074_v32 = vpop.f32.mrf.mxu1 }
 0x64a   : > { %v2094_v29 = vmul.f32 %v2074_v32, %v8065_v40 }
 0x64c   : > { %v2304_v48 = vadd.f32 %v2296_v57, %v2094_v29 }
 0x64f   : > { %v2278_v55 = vpop.f32.mrf.mxu2 }
 0x650   : > { %v2297_v16 = vmul.f32 %v2278_v55, %v8069_v25 }
 0x651   : > { %v2076_v56 = vpop.f32.mrf.mxu1 }
 0x652   : > { %v2095_v26 = vmul.f32 %v2076_v56, %v8065_v40  ;;  %v7458_v56 = vld [vmem:[%s7722_s11] sm:$0xff] }
 0x654   : > { %v2305_v6 = vadd.f32 %v2297_v16, %v2095_v26 }
 0x656   : > { %v2312_v53 = vpack.c.bf16 %v2305_v6, %v2304_v48  ;;  %v7459_v48 = vld [vmem:[%s7722_s11 + $0x8] sm:$0xff] }
 0x657   : > { %v2281_v15 = vpop.f32.mrf.mxu2 }
 0x658   : > { %6534 = vmatmul.msk.bf16.vlgmr.msrb.gmra.mxu0 %vm611_vm1, %v2312_v53  ;;  %v2298_v27 = vmul.f32 %v2281_v15, %v8069_v25 }
 0x659   : > { %v2079_v21 = vpop.f32.mrf.mxu1 }
 0x65a   : > { %v2096_v38 = vmul.f32 %v2079_v21, %v8065_v40  ;;  %v7460_v21 = vld [vmem:[%s7722_s11 + $0x10] sm:$0xff] }
 0x65c   : > { %v2306_v59 = vadd.f32 %v2298_v27, %v2096_v38  ;;  %v7461_v27 = vld [vmem:[%s7722_s11 + $0x18] sm:$0xff] }
 0x65f   : > { %v2283_v11 = vpop.f32.mrf.mxu2 }
 0x660   : > { %v2299_v23 = vmul.f32 %v2283_v11, %v8069_v25 }
 0x661   : > { %v2081_v63 = vpop.f32.mrf.mxu1 }
 0x662   : > { %v2097_v7 = vmul.f32 %v2081_v63, %v8065_v40 }
 0x664   : > { %v2307_v30 = vadd.f32 %v2299_v23, %v2097_v7 }
 0x666   : > { %v2313_v45 = vpack.c.bf16 %v2307_v30, %v2306_v59  ;;  %v7462_v30 = vld [vmem:[%s7722_s11 + $0x20] sm:$0xff] }
 0x667   : > { %v2286_v20 = vpop.f32.mrf.mxu2 }
 0x668   : > { %6535 = vmatmul.msk.bf16.gmra.mxu0 %vm611_vm1, %v2313_v45  ;;  %v2300_v49 = vmul.f32 %v2286_v20, %v8069_v25 }
 0x669   : > { %v2084_v42 = vpop.f32.mrf.mxu1 }
 0x66a   : > { %v2098_v44 = vmul.f32 %v2084_v42, %v8065_v40 }
 0x66c   : > { %v2308_v35 = vadd.f32 %v2300_v49, %v2098_v44  ;;  %v7501_v49 = vmov 32.0  }
 0x66d   : > { %7090 = vrcp.f32 %v7501_v49 }
 0x66f   : > { %v2288_v12 = vpop.f32.mrf.mxu2 }
 0x670   : > { %v2301_v43 = vmul.f32 %v2288_v12, %v8069_v25  ;;  %v7463_v12 = vld [vmem:[%s7722_s11 + $0x28] sm:$0xff] }
 0x671   : > { %v2086_v39 = vpop.f32.mrf.mxu1 }
 0x672   : > { %v2099_v41 = vmul.f32 %v2086_v39, %v8065_v40 }
 0x674   : > { %v2309_v47 = vadd.f32 %v2301_v43, %v2099_v41  ;;  %v7091_v43 = vpop.eup %7090 }
 0x675   : > { %v1434_v41 = vmul.f32 32.0, %v7091_v43  ;;  %vm1438_vm12 = vweird.f32 %v7091_v43 }
 0x676   : > { %v2314_v28 = vpack.c.bf16 %v2309_v47, %v2308_v35 }
 0x677   : > { %v2291_v34 = vpop.f32.mrf.mxu2  ;;  %v1435_v35 = vsub.f32 1.0, %v1434_v41 }
 0x678   : > { %6536 = vmatmul.msk.bf16.gmra.mxu0 %vm611_vm1, %v2314_v28  ;;  %v2302_v60 = vmul.f32 %v2291_v34, %v8069_v25 }
 0x679   : > { %v1436_v47 = vmul.f32 %v7091_v43, %v1435_v35 }
 0x67b   : > { %v1437_v28 = vadd.f32 %v7091_v43, %v1436_v47 }
 0x67d   : > { %v8357_v34 = vsel %vm1438_vm12, %v7091_v43, %v1437_v28 }
 0x67f   : > { %v2293_v33 = vpop.f32.mrf.mxu2 }
 0x680   : > { %v2303_v51 = vmul.f32 %v2293_v33, %v8069_v25 }
 0x6c1   : > { %v2089_v0 = vpop.f32.mrf.mxu1 }
 0x6c2   : > { %v2100_v36 = vmul.f32 %v2089_v0, %v8065_v40 }
 0x6c4   : > { %v2310_v31 = vadd.f32 %v2302_v60, %v2100_v36 }
 0x6c9   : > { %v2091_v52 = vpop.f32.mrf.mxu1 }
 0x6ca   : > { %v2101_v37 = vmul.f32 %v2091_v52, %v8065_v40  ;;  %v7464_v52 = vld [vmem:[%s7722_s11 + $0x30] sm:$0xff] }
 0x6cc   : > { %v2311_v32 = vadd.f32 %v2303_v51, %v2101_v37 }
 0x6ce   : > { %v2315_v55 = vpack.c.bf16 %v2311_v32, %v2310_v31 }
 0x6d0   : > { %6537 = vmatmul.msk.bf16.gmra.mxu0 %vm611_vm1, %v2315_v55 }
 0x6d5   : > { %v2370_v29 = vpop.f32.mrf.mxu0 }
 0x6d6   : > { %v2371_v57 = vadd.f32 %v7458_v56, %v2370_v29 }
 0x6d8   : > { %v2390_v16 = vsel %vm440_vm0, %v2371_v57, 0.0 }
 0x6d9   : > { %2391 = vadd.xlane.f32.xlu0 %v2390_v16 }
 0x6dd   : > { %v2372_v26 = vpop.f32.mrf.mxu0 }
 0x6de   : > { %v2373_v6 = vadd.f32 %v7459_v48, %v2372_v26  ;;  %v7465_v26 = vld [vmem:[%s7722_s11 + $0x38] sm:$0xff] }
 0x6e0   : > { %v2393_v53 = vsel %vm440_vm0, %v2373_v6, 0.0 }
 0x6e1   : > { %2394 = vadd.xlane.f32.xlu1 %v2393_v53 }
 0x6e5   : > { %v2375_v15 = vpop.f32.mrf.mxu0 }
 0x6e6   : > { %v2376_v11 = vadd.f32 %v7460_v21, %v2375_v15 }
 0x6e8   : > { %v2396_v38 = vsel %vm440_vm0, %v2376_v11, 0.0 }
 0x6e9   : > { %2397 = vadd.xlane.f32.xlu2 %v2396_v38 }
 0x6ed   : > { %v2377_v63 = vpop.f32.mrf.mxu0 }
 0x6ee   : > { %v2378_v23 = vadd.f32 %v7461_v27, %v2377_v63 }
 0x6f0   : > { %v2399_v7 = vsel %vm440_vm0, %v2378_v23, 0.0 }
 0x6f1   : > { %2400 = vadd.xlane.f32.xlu0 %v2399_v7 }
 0x6f5   : > { %v2380_v59 = vpop.f32.mrf.mxu0 }
 0x6f6   : > { %v2381_v45 = vadd.f32 %v7462_v30, %v2380_v59 }
 0x6f8   : > { %v2402_v20 = vsel %vm440_vm0, %v2381_v45, 0.0 }
 0x6f9   : > { %2403 = vadd.xlane.f32.xlu1 %v2402_v20 }
 0x6fd   : > { %v2382_v42 = vpop.f32.mrf.mxu0 }
 0x6fe   : > { %v2383_v44 = vadd.f32 %v7463_v12, %v2382_v42 }
 0x700   : > { %v2405_v39 = vsel %vm440_vm0, %v2383_v44, 0.0 }
 0x701   : > { %2406 = vadd.xlane.f32.xlu2 %v2405_v39  ;;  %v7466_v39 = vld [vmem:[%s7574_s18] sm:$0xff] }
 0x702   : > { %v8396_v49 = vadd.f32 %v7466_v39, %v8112_v13 }
 0x704   : > { %v1385_v35 = vsel %vm440_vm0, %v8396_v49, 0.0 }
 0x74c   : > { %v2392_v0 = vpop.xlane.xlu0 %2391 }
 0x74d   : > { %v2414_v33 = vmul.f32 %v2392_v0, %v8357_v34  ;;  %v2385_v36 = vpop.f32.mrf.mxu0  ;;  %v7467_v0 = vld [vmem:[%s7574_s18 + $0x8] sm:$0xff] }
 0x74e   : > { %v8361_v60 = vadd.f32 %v7464_v52, %v2385_v36  ;;  %v8408_v13 = vadd.f32 %v7467_v0, %v8115_v24 }
 0x74f   : > { %v8363_v51 = vsub.f32 %v2371_v57, %v2414_v33 }
 0x750   : > { %v2408_v37 = vsel %vm440_vm0, %v8361_v60, 0.0  ;;  %v1388_v52 = vsel %vm440_vm0, %v8408_v13, 0.0 }
 0x751   : > { %2409 = vadd.xlane.f32.xlu2 %v2408_v37  ;;  %v2430_v31 = vmul.f32 %v8363_v51, %v8363_v51  ;;  %v7468_v37 = vld [vmem:[%s7574_s18 + $0x10] sm:$0xff] }
 0x753   : > { %v2438_v32 = vsel %vm440_vm0, %v2430_v31, 0.0  ;;  %v8419_v31 = vadd.f32 %v7468_v37, %v8122_v19  ;;  %v7472_v37 = vld [vmem:[%s7574_s18 + $0x20] sm:$0xff] }
 0x754   : > { %v2395_v55 = vpop.xlane.xlu1 %2394  ;;  %2439 = vadd.xlane.f32.xlu0 %v2438_v32 }
 0x755   : > { %v2415_v29 = vmul.f32 %v2395_v55, %v8357_v34  ;;  %v2387_v56 = vpop.f32.mrf.mxu0  ;;  %v1391_v24 = vsel %vm440_vm0, %v8419_v31, 0.0 }
 0x756   : > { %v8374_v48 = vadd.f32 %v7465_v26, %v2387_v56 }
 0x757   : > { %v8371_v16 = vsub.f32 %v2373_v6, %v2415_v29  ;;  %v7470_v29 = vld [vmem:[%s7574_s18 + $0x30] sm:$0xff] }
 0x758   : > { %v2411_v15 = vsel %vm440_vm0, %v8374_v48, 0.0  ;;  %v8431_v56 = vadd.f32 %v7470_v29, %v8140_v17 }
 0x759   : > { %v2431_v57 = vmul.f32 %v8371_v16, %v8371_v16 }
 0x75a   : > { %v1403_v19 = vsel %vm440_vm0, %v8431_v56, 0.0 }
 0x75b   : > { %v2441_v53 = vsel %vm440_vm0, %v2431_v57, 0.0 }
 0x75c   : > { %v2398_v21 = vpop.xlane.xlu2 %2397  ;;  %2442 = vadd.xlane.f32.xlu1 %v2441_v53  ;;  %2412 = vadd.xlane.f32.xlu0 %v2411_v15  ;;  %v6859_v15 = vld [vmem:[%s10202_s4 + $0x28] sm:$0xff] }
 0x75d   : > { %v2416_v38 = vmul.f32 %v2398_v21, %v8357_v34  ;;  %2729 = vmatpush.bf16.msrb.mxu3 %v6859_v15 }
 0x75f   : > { %v8382_v63 = vsub.f32 %v2376_v11, %v2416_v38 }
 0x761   : > { %v2432_v6 = vmul.f32 %v8382_v63, %v8382_v63 }
 0x763   : > { %v2444_v27 = vsel %vm440_vm0, %v2432_v6, 0.0 }
 0x764   : > { %2445 = vadd.xlane.f32.xlu1 %v2444_v27  ;;  %v2401_v7 = vpop.xlane.xlu0 %2400  ;;  %v6858_v27 = vld [vmem:[%s10202_s4 + $0x20] sm:$0xff] }
 0x765   : > { %v2417_v59 = vmul.f32 %v2401_v7, %v8357_v34  ;;  %2730 = vmatpush.bf16.msrb.mxu3 %v6858_v27 }
 0x767   : > { %v8388_v30 = vsub.f32 %v2378_v23, %v2417_v59 }
 0x769   : > { %v2433_v20 = vmul.f32 %v8388_v30, %v8388_v30 }
 0x76b   : > { %v2447_v42 = vsel %vm440_vm0, %v2433_v20, 0.0 }
 0x76c   : > { %v2404_v12 = vpop.xlane.xlu1 %2403  ;;  %2448 = vadd.xlane.f32.xlu2 %v2447_v42 }
 0x76d   : > { %v2418_v11 = vmul.f32 %v2404_v12, %v8357_v34 }
 0x76f   : > { %v8398_v43 = vsub.f32 %v2381_v45, %v2418_v11 }
 0x771   : > { %v2434_v23 = vmul.f32 %v8398_v43, %v8398_v43 }
 0x773   : > { %v2450_v41 = vsel %vm440_vm0, %v2434_v23, 0.0 }
 0x774   : > { %v2407_v47 = vpop.xlane.xlu2 %2406  ;;  %2451 = vadd.xlane.f32.xlu0 %v2450_v41  ;;  %1386 = vadd.xlane.f32.xlu2 %v1385_v35 }
 0x775   : > { %v2419_v28 = vmul.f32 %v2407_v47, %v8357_v34 }
 0x777   : > { %v8410_v45 = vsub.f32 %v2383_v44, %v2419_v28  ;;  %v7469_v44 = vld [vmem:[%s7574_s18 + $0x28] sm:$0xff] }
 0x778   : > { %v8425_v32 = vadd.f32 %v7469_v44, %v8137_v5 }
 0x779   : > { %v2435_v33 = vmul.f32 %v8410_v45, %v8410_v45 }
 0x77a   : > { %v1400_v55 = vsel %vm440_vm0, %v8425_v32, 0.0 }
 0x77b   : > { %v2453_v36 = vsel %vm440_vm0, %v2435_v33, 0.0 }
 0x77c   : > { %2454 = vadd.xlane.f32.xlu1 %v2453_v36  ;;  %1389 = vadd.xlane.f32.xlu0 %v1388_v52 }
 0x784   : > { %1392 = vadd.xlane.f32.xlu0 %v1391_v24  ;;  %v8466_v24 = vadd.f32 %v7472_v37, %v8131_v50 }
 0x78c   : > { %1401 = vadd.xlane.f32.xlu0 %v1400_v55 }
 0x794   : > { %1404 = vadd.xlane.f32.xlu0 %v1403_v19 }
 0x7c4   : > { %v2410_v26 = vpop.xlane.xlu2 %2409 }
 0x7c5   : > { %v2420_v57 = vmul.f32 %v2410_v26, %v8357_v34  ;;  %v1397_v26 = vsel %vm440_vm0, %v8466_v24, 0.0 }
 0x7c7   : > { %v8437_v53 = vsub.f32 %v8361_v60, %v2420_v57  ;;  %v2440_v5 = vpop.xlane.xlu0 %2439  ;;  %v7471_v60 = vld [vmem:[%s7574_s18 + $0x18] sm:$0xff] }
 0x7c8   : > { %v2462_v21 = vmul.f32 %v2440_v5, %v8357_v34  ;;  %v8451_v7 = vadd.f32 %v7471_v60, %v8128_v22 }
 0x7c9   : > { %v2436_v17 = vmul.f32 %v8437_v53, %v8437_v53 }
 0x7ca   : > { %v2470_v38 = vadd.f32 1e-05, %v2462_v21  ;;  %v1394_v35 = vsel %vm440_vm0, %v8451_v7, 0.0 }
 0x7cb   : > { %v2456_v6 = vsel %vm440_vm0, %v2436_v17, 0.0 }
 0x7cc   : > { %7092 = vrsqrt.f32 %v2470_v38  ;;  %2457 = vadd.xlane.f32.xlu1 %v2456_v6  ;;  %vm2484_vm14 = vweird.f32 %v2470_v38  ;;  %v8474_v6 = vld [vmem:[%s10204_s6 + $0x1] ss:$0 sm:$0xff] }
 0x7cf   : > { %v2443_v59 = vpop.xlane.xlu1 %2442  ;;  %v2413_v20 = vpop.xlane.xlu0 %2412 }
 0x7d0   : > { %v2463_v42 = vmul.f32 %v2443_v59, %v8357_v34  ;;  %v2421_v12 = vmul.f32 %v2413_v20, %v8357_v34 }
 0x7d2   : > { %v7093_v11 = vpop.eup %7092  ;;  %v2471_v39 = vadd.f32 1e-05, %v2463_v42  ;;  %v8456_v23 = vsub.f32 %v8374_v48, %v2421_v12  ;;  %v8480_v12 = vld [vmem:[%s10205_s7 + $0x1] ss:$0 sm:$0xff] }
 0x7d3   : > { %v2479_v41 = vmul.f32 %v7093_v11, %v2470_v38  ;;  %vm2485_vm13 = vweird.f32 %v7093_v11 }
 0x7d4   : > { %7094 = vrsqrt.f32 %v2471_v39  ;;  %1395 = vadd.xlane.f32.xlu1 %v1394_v35  ;;  %v2437_v22 = vmul.f32 %v8456_v23, %v8456_v23  ;;  %vm2486_vm15 = vmor %vm2484_vm14, %vm2485_vm13  ;;  %vm2494_vm3 = vweird.f32 %v2471_v39 }
 0x7d5   : > { %v2480_v47 = vmul.f32 %v7093_v11, %v2479_v41 }
 0x7d6   : > { %v2459_v28 = vsel %vm440_vm0, %v2437_v22, 0.0 }
 0x7d7   : > { %v2481_v0 = vmul.f32 0.5, %v2480_v47  ;;  %v2446_v33 = vpop.xlane.xlu1 %2445  ;;  %2460 = vadd.xlane.f32.xlu2 %v2459_v28 }
 0x7d8   : > { %v2464_v36 = vmul.f32 %v2446_v33, %v8357_v34 }
 0x7d9   : > { %v2482_v52 = vsub.f32 1.5, %v2481_v0 }
 0x7da   : > { %v7095_v48 = vpop.eup %7094  ;;  %v2472_v44 = vadd.f32 1e-05, %v2464_v36 }
 0x7db   : > { %v2483_v55 = vmul.f32 %v7093_v11, %v2482_v52  ;;  %v2489_v29 = vmul.f32 %v7095_v48, %v2471_v39  ;;  %vm2495_vm2 = vweird.f32 %v7095_v48 }
 0x7dc   : > { %7096 = vrsqrt.f32 %v2472_v44  ;;  %vm2496_vm4 = vmor %vm2494_vm3, %vm2495_vm2  ;;  %vm2504_vm6 = vweird.f32 %v2472_v44 }
 0x7dd   : > { %v2490_v19 = vmul.f32 %v7095_v48, %v2489_v29  ;;  %v2487_v57 = vsel %vm2486_vm15, %v7093_v11, %v2483_v55 }
 0x7de   : > { %v2558_v38 = vmul.f32 %v2487_v57, %v8363_v51 }
 0x7df   : > { %v2491_v5 = vmul.f32 0.5, %v2490_v19  ;;  %v2449_v15 = vpop.xlane.xlu2 %2448  ;;  %1398 = vadd.xlane.f32.xlu2 %v1397_v26 }
 0x7e0   : > { %v2465_v21 = vmul.f32 %v2449_v15, %v8357_v34  ;;  %v2571_v11 = vmul.f32 %v8474_v6, %v2558_v38 }
 0x7e1   : > { %v2492_v17 = vsub.f32 1.5, %v2491_v5 }
 0x7e2   : > { %v7097_v50 = vpop.eup %7096  ;;  %v2473_v27 = vadd.f32 1e-05, %v2465_v21  ;;  %v2584_v36 = vadd.f32 %v8480_v12, %v2571_v11 }
 0x7e3   : > { %v2493_v60 = vmul.f32 %v7095_v48, %v2492_v17  ;;  %v2499_v59 = vmul.f32 %v7097_v50, %v2472_v44  ;;  %vm2505_vm5 = vweird.f32 %v7097_v50 }
 0x7e4   : > { %7098 = vrsqrt.f32 %v2473_v27  ;;  %vm2506_vm7 = vmor %vm2504_vm6, %vm2505_vm5  ;;  %vm2514_vm9 = vweird.f32 %v2473_v27 }
 0x7e5   : > { %v2497_v20 = vsel %vm2496_vm4, %v7095_v48, %v2493_v60  ;;  %v2500_v42 = vmul.f32 %v7097_v50, %v2499_v59 }
 0x7e6   : > { %v2559_v41 = vmul.f32 %v2497_v20, %v8371_v16  ;;  %v7473_v20 = vld [vmem:[%s7574_s18 + $0x38] sm:$0xff] }
 0x7e7   : > { %v2501_v35 = vmul.f32 0.5, %v2500_v42  ;;  %v1387_v22 = vpop.xlane.xlu2 %1386  ;;  %v2452_v51 = vpop.xlane.xlu0 %2451  ;;  %v8500_v44 = vadd.f32 %v7473_v20, %v8147_v46 }
 0x7e8   : > { %v2572_v47 = vmul.f32 %v8474_v6, %v2559_v41  ;;  %v1440_v39 = vmul.f32 %v8357_v34, %v1387_v22  ;;  %v2466_v28 = vmul.f32 %v2452_v51, %v8357_v34 }
 0x7e9   : > { %v2502_v0 = vsub.f32 1.5, %v2501_v35 }
 0x7ea   : > { %v7099_v33 = vpop.eup %7098  ;;  %v2585_v52 = vadd.f32 %v8480_v12, %v2572_v47  ;;  %v8490_v48 = vsub.f32 %v8396_v49, %v1440_v39  ;;  %v2474_v37 = vadd.f32 1e-05, %v2466_v28 }
 0x7eb   : > { %v2503_v16 = vmul.f32 %v7097_v50, %v2502_v0  ;;  %v2509_v55 = vmul.f32 %v7099_v33, %v2473_v27  ;;  %vm2515_vm8 = vweird.f32 %v7099_v33 }
 0x7ec   : > { %v2690_v29 = vpack.c.bf16 %v2585_v52, %v2584_v36  ;;  %7100 = vrsqrt.f32 %v2474_v37  ;;  %v1472_v19 = vmul.f32 %v8490_v48, %v8490_v48  ;;  %vm2516_vm10 = vmor %vm2514_vm9, %vm2515_vm8  ;;  %vm2524_vm12 = vweird.f32 %v2474_v37 }
 0x7ed   : > { %v2510_v26 = vmul.f32 %v7099_v33, %v2509_v55  ;;  %v2507_v5 = vsel %vm2506_vm7, %v7097_v50, %v2503_v16  ;;  %v7474_v16 = vld [vmem:[%s7574_s18 + $0x40] sm:$0xff] }
 0x7ee   : > { %6572 = vmatmul.msk.bf16.vlgmr.msrb.gmra.mxu3 %vm440_vm0, %v2690_v29  ;;  %v1488_v57 = vsel %vm440_vm0, %v1472_v19, 0.0  ;;  %v2560_v42 = vmul.f32 %v2507_v5, %v8382_v63  ;;  %v1406_v63 = vsel %vm440_vm0, %v8500_v44, 0.0 }
 0x7ef   : > { %v2511_v49 = vmul.f32 0.5, %v2510_v26  ;;  %v2455_v15 = vpop.xlane.xlu1 %2454  ;;  %1489 = vadd.xlane.f32.xlu1 %v1488_v57  ;;  %v1390_v21 = vpop.xlane.xlu0 %1389 }
 0x7f0   : > { %v2467_v17 = vmul.f32 %v2455_v15, %v8357_v34  ;;  %v1441_v38 = vmul.f32 %v8357_v34, %v1390_v21 }
 0x7f1   : > { %v2512_v60 = vsub.f32 1.5, %v2511_v49 }
 0x7f2   : > { %v7101_v59 = vpop.eup %7100  ;;  %v2475_v11 = vadd.f32 1e-05, %v2467_v17  ;;  %v8504_v50 = vsub.f32 %v8408_v13, %v1441_v38  ;;  %v2573_v13 = vmul.f32 %v8474_v6, %v2560_v42  ;;  %v7475_v42 = vld [vmem:[%s7574_s18 + $0x48] sm:$0xff] }
 0x7f3   : > { %v2513_v41 = vmul.f32 %v7099_v33, %v2512_v60  ;;  %v2519_v35 = vmul.f32 %v7101_v59, %v2474_v37  ;;  %vm2525_vm11 = vweird.f32 %v7101_v59  ;;  %v8533_v37 = vadd.f32 %v7475_v42, %v8151_v58 }
 0x7f4   : > { %7102 = vrsqrt.f32 %v2475_v11  ;;  %v1473_v22 = vmul.f32 %v8504_v50, %v8504_v50  ;;  %v2586_v29 = vadd.f32 %v8480_v12, %v2573_v13  ;;  %vm2526_vm13 = vmor %vm2524_vm12, %vm2525_vm11  ;;  %vm2534_vm15 = vweird.f32 %v2475_v11 }
 0x7f5   : > { %v2517_v51 = vsel %vm2516_vm10, %v7099_v33, %v2513_v41  ;;  %v2520_v47 = vmul.f32 %v7101_v59, %v2519_v35 }
 0x7f6   : > { %v2561_v46 = vmul.f32 %v2517_v51, %v8388_v30  ;;  %v1491_v39 = vsel %vm440_vm0, %v1473_v22, 0.0  ;;  %v8517_v30 = vadd.f32 %v7474_v16, %v8149_v10 }
 0x7f7   : > { %v2521_v28 = vmul.f32 0.5, %v2520_v47  ;;  %1407 = vadd.xlane.f32.xlu1 %v1406_v63  ;;  %1492 = vadd.xlane.f32.xlu2 %v1491_v39  ;;  %v1393_v27 = vpop.xlane.xlu0 %1392  ;;  %v7476_v39 = vld [vmem:[%s7574_s18 + $0x50] sm:$0xff] }
 0x7f8   : > { %v1442_v0 = vmul.f32 %v8357_v34, %v1393_v27  ;;  %v2574_v36 = vmul.f32 %v8474_v6, %v2561_v46  ;;  %v1409_v10 = vsel %vm440_vm0, %v8517_v30, 0.0  ;;  %v1412_v46 = vsel %vm440_vm0, %v8533_v37, 0.0 }
 0x7f9   : > { %v2522_v52 = vsub.f32 1.5, %v2521_v28  ;;  %v8550_v13 = vadd.f32 %v7476_v39, %v8153_v18  ;;  %v7477_v18 = vld [vmem:[%s7574_s18 + $0x68] sm:$0xff] }
 0x7fa   : > { %v7103_v33 = vpop.eup %7102  ;;  %v8520_v55 = vsub.f32 %v8419_v31, %v1442_v0  ;;  %v2587_v19 = vadd.f32 %v8480_v12, %v2574_v36 }
 0x7fb   : > { %v2523_v26 = vmul.f32 %v7101_v59, %v2522_v52  ;;  %v2529_v57 = vmul.f32 %v7103_v33, %v2475_v11  ;;  %vm2535_vm14 = vweird.f32 %v7103_v33  ;;  %v1415_v52 = vsel %vm440_vm0, %v8550_v13, 0.0 }
 0x7fc   : > { %v2691_v5 = vpack.c.bf16 %v2587_v19, %v2586_v29  ;;  %v1474_v49 = vmul.f32 %v8520_v55, %v8520_v55  ;;  %vm2536_vm2 = vmor %vm2534_vm15, %vm2535_vm14  ;;  %v7478_v29 = vld [vmem:[%s7574_s18 + $0x70] sm:$0xff] }
 0x7fd   : > { %v2530_v15 = vmul.f32 %v7103_v33, %v2529_v57  ;;  %v2527_v21 = vsel %vm2526_vm13, %v7101_v59, %v2523_v26  ;;  %v8571_v19 = vadd.f32 %v7478_v29, %v8161_v4 }
 0x7fe   : > { %6573 = vmatmul.msk.bf16.gmra.mxu3 %vm440_vm0, %v2691_v5  ;;  %v1494_v31 = vsel %vm440_vm0, %v1474_v49, 0.0  ;;  %v2562_v41 = vmul.f32 %v2527_v21, %v8398_v43 }
 0x7ff   : > { %v2531_v17 = vmul.f32 0.5, %v2530_v15  ;;  %1410 = vadd.xlane.f32.xlu1 %v1409_v10  ;;  %1495 = vadd.xlane.f32.xlu2 %v1494_v31  ;;  %v1402_v38 = vpop.xlane.xlu0 %1401  ;;  %v1427_v26 = vsel %vm440_vm0, %v8571_v19, 0.0 }
 0x800   : > { %v1445_v60 = vmul.f32 %v8357_v34, %v1402_v38  ;;  %v2575_v43 = vmul.f32 %v8474_v6, %v2562_v41 }
 0x801   : > { %v2532_v20 = vsub.f32 1.5, %v2531_v17 }
 0x802   : > { %v8537_v35 = vsub.f32 %v8425_v32, %v1445_v60  ;;  %v2588_v28 = vadd.f32 %v8480_v12, %v2575_v43 }
 0x803   : > { %v2533_v22 = vmul.f32 %v7103_v33, %v2532_v20 }
 0x804   : > { %v1477_v59 = vmul.f32 %v8537_v35, %v8537_v35 }
 0x805   : > { %v2537_v51 = vsel %vm2536_vm2, %v7103_v33, %v2533_v22 }
 0x806   : > { %v2563_v47 = vmul.f32 %v2537_v51, %v8410_v45  ;;  %v1503_v58 = vsel %vm440_vm0, %v1477_v59, 0.0 }
 0x807   : > { %1413 = vadd.xlane.f32.xlu2 %v1412_v46  ;;  %1504 = vadd.xlane.f32.xlu1 %v1503_v58  ;;  %v1405_v32 = vpop.xlane.xlu0 %1404 }
 0x808   : > { %v1446_v11 = vmul.f32 %v8357_v34, %v1405_v32  ;;  %v2576_v63 = vmul.f32 %v8474_v6, %v2563_v47 }
 0x80a   : > { %v8553_v45 = vsub.f32 %v8431_v56, %v1446_v11  ;;  %v2589_v27 = vadd.f32 %v8480_v12, %v2576_v63  ;;  %v8565_v56 = vadd.f32 %v7477_v18, %v8159_v8 }
 0x80c   : > { %v2692_v0 = vpack.c.bf16 %v2589_v27, %v2588_v28  ;;  %v1478_v36 = vmul.f32 %v8553_v45, %v8553_v45  ;;  %v1424_v16 = vsel %vm440_vm0, %v8565_v56, 0.0  ;;  %v7479_v27 = vld [vmem:[%s7574_s18 + $0x58] sm:$0xff] }
 0x80e   : > { %6574 = vmatmul.msk.bf16.gmra.mxu3 %vm440_vm0, %v2692_v0  ;;  %v1506_v33 = vsel %vm440_vm0, %v1478_v36, 0.0 }
 0x80f   : > { %1416 = vadd.xlane.f32.xlu2 %v1415_v52  ;;  %1507 = vadd.xlane.f32.xlu1 %v1506_v33 }
 0x817   : > { %1425 = vadd.xlane.f32.xlu1 %v1424_v16 }
 0x81f   : > { %1428 = vadd.xlane.f32.xlu1 %v1427_v26 }
 0x83f   : > { %v2458_v57 = vpop.xlane.xlu1 %2457 }
 0x840   : > { %v2468_v5 = vmul.f32 %v2458_v57, %v8357_v34  ;;  %v7480_v57 = vld [vmem:[%s7574_s18 + $0x60] sm:$0xff] }
 0x842   : > { %v2476_v49 = vadd.f32 1e-05, %v2468_v5  ;;  %v8607_v5 = vadd.f32 %v7480_v57, %v8157_v54 }
 0x844   : > { %7104 = vrsqrt.f32 %v2476_v49  ;;  %vm2544_vm4 = vweird.f32 %v2476_v49 }
 0x847   : > { %v1396_v15 = vpop.xlane.xlu1 %1395 }
 0x848   : > { %v1443_v8 = vmul.f32 %v8357_v34, %v1396_v15 }
 0x84a   : > { %v7105_v10 = vpop.eup %7104  ;;  %v8578_v31 = vsub.f32 %v8451_v7, %v1443_v8  ;;  %v2461_v21 = vpop.xlane.xlu2 %2460  ;;  %v6856_v8 = vld [vmem:[%s10201_s3 + $0x20] sm:$0xff] }
 0x84b   : > { %v2539_v17 = vmul.f32 %v7105_v10, %v2476_v49  ;;  %v2469_v4 = vmul.f32 %v2461_v21, %v8357_v34  ;;  %vm2545_vm3 = vweird.f32 %v7105_v10 }
 0x84c   : > { %v1475_v38 = vmul.f32 %v8578_v31, %v8578_v31  ;;  %vm2546_vm5 = vmor %vm2544_vm4, %vm2545_vm3 }
 0x84d   : > { %v2540_v60 = vmul.f32 %v7105_v10, %v2539_v17  ;;  %v2477_v20 = vadd.f32 1e-05, %v2469_v4 }
 0x84e   : > { %v1497_v42 = vsel %vm440_vm0, %v1475_v38, 0.0 }
 0x84f   : > { %v2541_v41 = vmul.f32 0.5, %v2540_v60  ;;  %7106 = vrsqrt.f32 %v2477_v20  ;;  %1498 = vadd.xlane.f32.xlu0 %v1497_v42  ;;  %vm2554_vm7 = vweird.f32 %v2477_v20 }
 0x851   : > { %v2542_v22 = vsub.f32 1.5, %v2541_v41 }
 0x852   : > { %v1399_v59 = vpop.xlane.xlu2 %1398 }
 0x853   : > { %v1444_v51 = vmul.f32 %v8357_v34, %v1399_v59  ;;  %v2543_v46 = vmul.f32 %v7105_v10, %v2542_v22 }
 0x855   : > { %v7107_v7 = vpop.eup %7106  ;;  %v8586_v47 = vsub.f32 %v8466_v24, %v1444_v51  ;;  %v2547_v63 = vsel %vm2546_vm5, %v7105_v10, %v2543_v46  ;;  %v8593_v24 = vadd.f32 %v7479_v27, %v8155_v14  ;;  %v6857_v14 = vld [vmem:[%s10201_s3 + $0x28] sm:$0xff] }
 0x856   : > { %v2549_v58 = vmul.f32 %v7107_v7, %v2477_v20  ;;  %vm2555_vm6 = vweird.f32 %v7107_v7  ;;  %v2564_v0 = vmul.f32 %v2547_v63, %v8437_v53  ;;  %2647 = vmatpush.bf16.msrb.mxu1 %v6857_v14 }
 0x857   : > { %v1476_v43 = vmul.f32 %v8586_v47, %v8586_v47  ;;  %vm2556_vm8 = vmor %vm2554_vm7, %vm2555_vm6  ;;  %v1418_v18 = vsel %vm440_vm0, %v8593_v24, 0.0 }
 0x858   : > { %v2550_v32 = vmul.f32 %v7107_v7, %v2549_v58  ;;  %v2577_v16 = vmul.f32 %v8474_v6, %v2564_v0 }
 0x859   : > { %v1500_v11 = vsel %vm440_vm0, %v1476_v43, 0.0 }
 0x85a   : > { %v2551_v39 = vmul.f32 0.5, %v2550_v32  ;;  %1501 = vadd.xlane.f32.xlu0 %v1500_v11  ;;  %v2590_v49 = vadd.f32 %v8480_v12, %v2577_v16  ;;  %2648 = vmatpush.bf16.msrb.mxu1 %v6856_v8 }
 0x85c   : > { %v2552_v28 = vsub.f32 1.5, %v2551_v39 }
 0x85e   : > { %v2553_v36 = vmul.f32 %v7107_v7, %v2552_v28 }
 0x860   : > { %v2557_v52 = vsel %vm2556_vm8, %v7107_v7, %v2553_v36 }
 0x861   : > { %v2565_v33 = vmul.f32 %v2557_v52, %v8456_v23 }
 0x862   : > { %v1490_v29 = vpop.xlane.xlu1 %1489  ;;  %1419 = vadd.xlane.f32.xlu0 %v1418_v18  ;;  %v7481_v18 = vld [vmem:[%s7574_s18 + $0x78] sm:$0xff] }
 0x863   : > { %v1536_v26 = vmul.f32 %v1490_v29, %v8357_v34  ;;  %v2578_v53 = vmul.f32 %v8474_v6, %v2565_v33  ;;  %v1421_v6 = vsel %vm440_vm0, %v8607_v5, 0.0  ;;  %v8635_v16 = vadd.f32 %v7481_v18, %v8163_v9  ;;  %v8640_v29 = vld [vmem:[%s10204_s6] ss:$0 sm:$0xff] }
 0x864   : > { %v8651_v9 = vld [vmem:[%s10205_s7] ss:$0 sm:$0xff] }
 0x865   : > { %v1552_v23 = vadd.f32 1e-05, %v1536_v26  ;;  %v2591_v15 = vadd.f32 %v8480_v12, %v2578_v53 }
 0x867   : > { %7108 = vrsqrt.f32 %v1552_v23  ;;  %v2693_v10 = vpack.c.bf16 %v2591_v15, %v2590_v49  ;;  %vm1574_vm10 = vweird.f32 %v1552_v23 }
 0x869   : > { %6575 = vmatmul.msk.bf16.gmra.mxu3 %vm440_vm0, %v2693_v10 }
 0x86a   : > { %v1408_v21 = vpop.xlane.xlu1 %1407  ;;  %1422 = vadd.xlane.f32.xlu0 %v1421_v6  ;;  %v1493_v54 = vpop.xlane.xlu2 %1492 }
 0x86b   : > { %v1447_v17 = vmul.f32 %v8357_v34, %v1408_v21  ;;  %v1537_v4 = vmul.f32 %v1493_v54, %v8357_v34 }
 0x86d   : > { %v7109_v12 = vpop.eup %7108  ;;  %v8620_v38 = vsub.f32 %v8500_v44, %v1447_v17  ;;  %v1553_v60 = vadd.f32 1e-05, %v1537_v4 }
 0x86e   : > { %v1569_v20 = vmul.f32 %v7109_v12, %v1552_v23  ;;  %vm1575_vm9 = vweird.f32 %v7109_v12 }
 0x86f   : > { %7110 = vrsqrt.f32 %v1553_v60  ;;  %v1479_v42 = vmul.f32 %v8620_v38, %v8620_v38  ;;  %vm1576_vm11 = vmor %vm1574_vm10, %vm1575_vm9  ;;  %vm1584_vm13 = vweird.f32 %v1553_v60 }
 0x870   : > { %v1570_v41 = vmul.f32 %v7109_v12, %v1569_v20 }
 0x871   : > { %v1509_v22 = vsel %vm440_vm0, %v1479_v42, 0.0 }
 0x872   : > { %v1571_v59 = vmul.f32 0.5, %v1570_v41  ;;  %v1411_v51 = vpop.xlane.xlu1 %1410  ;;  %1510 = vadd.xlane.f32.xlu2 %v1509_v22  ;;  %v1496_v7 = vpop.xlane.xlu2 %1495 }
 0x873   : > { %v1448_v46 = vmul.f32 %v8357_v34, %v1411_v51 }
 0x874   : > { %v1572_v58 = vsub.f32 1.5, %v1571_v59  ;;  %v1538_v59 = vmul.f32 %v1496_v7, %v8357_v34 }
 0x875   : > { %v7111_v43 = vpop.eup %7110  ;;  %v8627_v44 = vsub.f32 %v8517_v30, %v1448_v46  ;;  %v8677_v46 = vpop.f32.mrf.mxu3 }
 0x876   : > { %v1573_v32 = vmul.f32 %v7109_v12, %v1572_v58  ;;  %v1579_v11 = vmul.f32 %v7111_v43, %v1553_v60  ;;  %vm1585_vm12 = vweird.f32 %v7111_v43  ;;  %v1554_v51 = vadd.f32 1e-05, %v1538_v59 }
 0x877   : > { %v1480_v63 = vmul.f32 %v8627_v44, %v8627_v44  ;;  %vm1586_vm14 = vmor %vm1584_vm13, %vm1585_vm12 }
 0x878   : > { %v1580_v39 = vmul.f32 %v7111_v43, %v1579_v11  ;;  %v1577_v27 = vsel %vm1576_vm11, %v7109_v12, %v1573_v32  ;;  %7112 = vrsqrt.f32 %v1554_v51  ;;  %vm1594_vm2 = vweird.f32 %v1554_v51 }
 0x879   : > { %v1512_v28 = vsel %vm440_vm0, %v1480_v63, 0.0  ;;  %v1728_v14 = vmul.f32 %v1577_v27, %v8490_v48  ;;  %v1430_v48 = vsel %vm440_vm0, %v8635_v16, 0.0 }
 0x87a   : > { %v1581_v0 = vmul.f32 0.5, %v1580_v39  ;;  %1513 = vadd.xlane.f32.xlu2 %v1512_v28  ;;  %v1414_v36 = vpop.xlane.xlu2 %1413  ;;  %v1505_v52 = vpop.xlane.xlu1 %1504 }
 0x87b   : > { %v1449_v30 = vmul.f32 %v8357_v34, %v1414_v36  ;;  %v1748_v49 = vmul.f32 %v8640_v29, %v1728_v14  ;;  %v1541_v32 = vmul.f32 %v1505_v52, %v8357_v34 }
 0x87c   : > { %v1582_v33 = vsub.f32 1.5, %v1581_v0 }
 0x87d   : > { %v8644_v26 = vsub.f32 %v8533_v37, %v1449_v30  ;;  %v1768_v54 = vadd.f32 %v8651_v9, %v1748_v49 }
 0x87e   : > { %v1583_v53 = vmul.f32 %v7111_v43, %v1582_v33  ;;  %v7113_v58 = vpop.eup %7112 }
 0x87f   : > { %v1481_v57 = vmul.f32 %v8644_v26, %v8644_v26  ;;  %v1589_v11 = vmul.f32 %v7113_v58, %v1554_v51  ;;  %vm1595_vm15 = vweird.f32 %v7113_v58 }
 0x880   : > { %v1587_v23 = vsel %vm1586_vm14, %v7111_v43, %v1583_v53  ;;  %v8679_v43 = vpop.f32.mrf.mxu3  ;;  %vm1596_vm3 = vmor %vm1594_vm2, %vm1595_vm15 }
 0x881   : > { %v1729_v15 = vmul.f32 %v1587_v23, %v8504_v50  ;;  %v1515_v37 = vsel %vm440_vm0, %v1481_v57, 0.0  ;;  %v1590_v63 = vmul.f32 %v7113_v58, %v1589_v11 }
 0x882   : > { %1431 = vadd.xlane.f32.xlu2 %v1430_v48  ;;  %1516 = vadd.xlane.f32.xlu0 %v1515_v37  ;;  %v1417_v8 = vpop.xlane.xlu2 %1416  ;;  %v1508_v10 = vpop.xlane.xlu1 %1507 }
 0x883   : > { %v1749_v6 = vmul.f32 %v8640_v29, %v1729_v15  ;;  %v1450_v21 = vmul.f32 %v8357_v34, %v1417_v8  ;;  %v1591_v7 = vmul.f32 0.5, %v1590_v63  ;;  %v1542_v23 = vmul.f32 %v1508_v10, %v8357_v34 }
 0x885   : > { %v1769_v17 = vadd.f32 %v8651_v9, %v1749_v6  ;;  %v8663_v4 = vsub.f32 %v8550_v13, %v1450_v21  ;;  %v1592_v36 = vsub.f32 1.5, %v1591_v7  ;;  %v8697_v21 = vadd.f32 1e-05, %v1542_v23 }
 0x887   : > { %v2592_v50 = vpack.c.bf16 %v1769_v17, %v1768_v54  ;;  %v1482_v12 = vmul.f32 %v8663_v4, %v8663_v4  ;;  %v1593_v18 = vmul.f32 %v7113_v58, %v1592_v36  ;;  %vm1634_vm14 = vweird.f32 %v8697_v21 }
 0x888   : > { %v8686_v0 = vpop.f32.mrf.mxu3 }
 0x889   : > { %6552 = vmatmul.msk.bf16.vlgmr.msrb.gmra.mxu1 %vm440_vm0, %v2592_v50  ;;  %v1518_v60 = vsel %vm440_vm0, %v1482_v12, 0.0  ;;  %v1597_v37 = vsel %vm1596_vm3, %v7113_v58, %v1593_v18 }
 0x88a   : > { %1519 = vadd.xlane.f32.xlu0 %v1518_v60  ;;  %v1426_v20 = vpop.xlane.xlu1 %1425  ;;  %v1730_v17 = vmul.f32 %v1597_v37, %v8520_v55 }
 0x88b   : > { %v1453_v42 = vmul.f32 %v8357_v34, %v1426_v20 }
 0x88c   : > { %v1750_v58 = vmul.f32 %v8640_v29, %v1730_v17 }
 0x88d   : > { %v8671_v41 = vsub.f32 %v8565_v56, %v1453_v42  ;;  %v8682_v56 = vadd.f32 1e-05, %v1541_v32 }
 0x88e   : > { %v1770_v36 = vadd.f32 %v8651_v9, %v1750_v58 }
 0x88f   : > { %v1485_v22 = vmul.f32 %v8671_v41, %v8671_v41  ;;  %7114 = vrsqrt.f32 %v8682_v56  ;;  %vm1624_vm9 = vweird.f32 %v8682_v56 }
 0x890   : > { %v8694_v49 = vpop.f32.mrf.mxu3 }
 0x891   : > { %v1527_v13 = vsel %vm440_vm0, %v1485_v22, 0.0 }
 0x892   : > { %1528 = vadd.xlane.f32.xlu0 %v1527_v13  ;;  %v1429_v50 = vpop.xlane.xlu1 %1428 }
 0x893   : > { %v1454_v22 = vmul.f32 %v8357_v34, %v1429_v50 }
 0x895   : > { %v8688_v30 = vpop.eup %7114 }
 0x896   : > { %v1619_v14 = vmul.f32 %v8688_v30, %v8682_v56  ;;  %vm1625_vm7 = vweird.f32 %v8688_v30 }
 0x897   : > { %vm1626_vm10 = vmor %vm1624_vm9, %vm1625_vm7 }
 0x898   : > { %v1620_v8 = vmul.f32 %v8688_v30, %v1619_v14  ;;  %v8708_v11 = vpop.f32.mrf.mxu3 }
 0x89a   : > { %v1621_v60 = vmul.f32 0.5, %v1620_v8 }
 0x89c   : > { %v1622_v32 = vsub.f32 1.5, %v1621_v60 }
 0x89e   : > { %v1623_v18 = vmul.f32 %v8688_v30, %v1622_v32 }
 0x8a0   : > { %v1627_v8 = vsel %vm1626_vm10, %v8688_v30, %v1623_v18 }
 0x8c2   : > { %v1499_v39 = vpop.xlane.xlu0 %1498 }
 0x8c3   : > { %v1539_v28 = vmul.f32 %v1499_v39, %v8357_v34 }
 0x8c5   : > { %v1555_v27 = vadd.f32 1e-05, %v1539_v28 }
 0x8c7   : > { %7116 = vrsqrt.f32 %v1555_v27  ;;  %vm1604_vm5 = vweird.f32 %v1555_v27 }
 0x8cd   : > { %v7117_v33 = vpop.eup %7116  ;;  %v1502_v52 = vpop.xlane.xlu0 %1501 }
 0x8ce   : > { %v1599_v53 = vmul.f32 %v7117_v33, %v1555_v27  ;;  %v1540_v57 = vmul.f32 %v1502_v52, %v8357_v34  ;;  %vm1605_vm4 = vweird.f32 %v7117_v33  ;;  %v8714_v27 = vsub.f32 %v8571_v19, %v1454_v22 }
 0x8cf   : > { %vm1606_vm6 = vmor %vm1604_vm5, %vm1605_vm4 }
 0x8d0   : > { %v1600_v15 = vmul.f32 %v7117_v33, %v1599_v53  ;;  %v1556_v48 = vadd.f32 1e-05, %v1540_v57  ;;  %v1486_v23 = vmul.f32 %v8714_v27, %v8714_v27 }
 0x8d2   : > { %v1601_v6 = vmul.f32 0.5, %v1600_v15  ;;  %7118 = vrsqrt.f32 %v1556_v48  ;;  %vm1614_vm11 = vweird.f32 %v1556_v48  ;;  %v1530_v17 = vsel %vm440_vm0, %v1486_v23, 0.0 }
 0x8d3   : > { %7120 = vrsqrt.f32 %v8697_v21 }
 0x8d4   : > { %v1602_v54 = vsub.f32 1.5, %v1601_v6 }
 0x8d5   : > { %v1420_v12 = vpop.xlane.xlu0 %1419 }
 0x8d6   : > { %v1603_v10 = vmul.f32 %v7117_v33, %v1602_v54  ;;  %v1451_v20 = vmul.f32 %v8357_v34, %v1420_v12  ;;  %v1733_v12 = vmul.f32 %v1627_v8, %v8537_v35 }
 0x8d8   : > { %v7119_v42 = vpop.eup %7118  ;;  %v1607_v13 = vsel %vm1606_vm6, %v7117_v33, %v1603_v10  ;;  %v8704_v59 = vsub.f32 %v8593_v24, %v1451_v20  ;;  %v1753_v22 = vmul.f32 %v8640_v29, %v1733_v12 }
 0x8d9   : > { %v1731_v51 = vmul.f32 %v1607_v13, %v8578_v31  ;;  %v1609_v55 = vmul.f32 %v7119_v42, %v1556_v48  ;;  %v8719_v52 = vpop.eup %7120  ;;  %vm1615_vm8 = vweird.f32 %v7119_v42 }
 0x8da   : > { %v1483_v63 = vmul.f32 %v8704_v59, %v8704_v59  ;;  %v1629_v15 = vmul.f32 %v8719_v52, %v8697_v21  ;;  %vm1616_vm12 = vmor %vm1614_vm11, %vm1615_vm8  ;;  %v1773_v35 = vadd.f32 %v8651_v9, %v1753_v22  ;;  %vm1635_vm13 = vweird.f32 %v8719_v52 }
 0x8db   : > { %v1610_v39 = vmul.f32 %v7119_v42, %v1609_v55  ;;  %v1751_v28 = vmul.f32 %v8640_v29, %v1731_v51  ;;  %vm1636_vm15 = vmor %vm1634_vm14, %vm1635_vm13 }
 0x8dc   : > { %v1521_v24 = vsel %vm440_vm0, %v1483_v63, 0.0  ;;  %v1630_v48 = vmul.f32 %v8719_v52, %v1629_v15 }
 0x8dd   : > { %v1611_v7 = vmul.f32 0.5, %v1610_v39  ;;  %1522 = vadd.xlane.f32.xlu1 %v1521_v24  ;;  %v1423_v31 = vpop.xlane.xlu0 %1422  ;;  %v1771_v33 = vadd.f32 %v8651_v9, %v1751_v28 }
 0x8de   : > { %v1452_v14 = vmul.f32 %v8357_v34, %v1423_v31 }
 0x8df   : > { %v1612_v53 = vsub.f32 1.5, %v1611_v7  ;;  %v2593_v19 = vpack.c.bf16 %v1771_v33, %v1770_v36 }
 0x8e0   : > { %v8726_v57 = vsub.f32 %v8607_v5, %v1452_v14  ;;  %v2744_v5 = vpop.f32.mrf.mxu3 }
 0x8e1   : > { %v1613_v37 = vmul.f32 %v7119_v42, %v1612_v53  ;;  %6553 = vmatmul.msk.bf16.gmra.mxu1 %vm440_vm0, %v2593_v19 }
 0x8e2   : > { %v1484_v56 = vmul.f32 %v8726_v57, %v8726_v57 }
 0x8e3   : > { %v1617_v6 = vsel %vm1616_vm12, %v7119_v42, %v1613_v37  ;;  %v1631_v42 = vmul.f32 0.5, %v1630_v48 }
 0x8e4   : > { %v1732_v54 = vmul.f32 %v1617_v6, %v8586_v47  ;;  %v1524_v50 = vsel %vm440_vm0, %v1484_v56, 0.0  ;;  %v2754_v6 = vpack.c.bf16 %v2744_v5, %v8708_v11  ;;  %v2753_v11 = vpack.c.bf16 %v8694_v49, %v8686_v0 }
 0x8e5   : > { %v1511_v60 = vpop.xlane.xlu2 %1510  ;;  %1531 = vadd.xlane.f32.xlu1 %v1530_v17  ;;  %1525 = vadd.xlane.f32.xlu2 %v1524_v50  ;;  %v1632_v51 = vsub.f32 1.5, %v1631_v42 }
 0x8e6   : > { %v1543_v30 = vmul.f32 %v1511_v60, %v8357_v34  ;;  %v1752_v10 = vmul.f32 %v8640_v29, %v1732_v54 }
 0x8e7   : > { %v1633_v28 = vmul.f32 %v8719_v52, %v1632_v51 }
 0x8e8   : > { %v1559_v20 = vadd.f32 1e-05, %v1543_v30  ;;  %v1772_v47 = vadd.f32 %v8651_v9, %v1752_v10 }
 0x8e9   : > { %v1637_v36 = vsel %vm1636_vm15, %v8719_v52, %v1633_v28 }
 0x8ea   : > { %7122 = vrsqrt.f32 %v1559_v20  ;;  %v2594_v32 = vpack.c.bf16 %v1773_v35, %v1772_v47  ;;  %v1734_v8 = vmul.f32 %v1637_v36, %v8553_v45  ;;  %vm1644_vm3 = vweird.f32 %v1559_v20 }
 0x8eb   : > { %v2752_v47 = vpack.c.bf16 %v8679_v43, %v8677_v46 }
 0x8ec   : > { %v2747_v13 = vpop.f32.mrf.mxu3  ;;  %v1754_v60 = vmul.f32 %v8640_v29, %v1734_v8 }
 0x8ed   : > { %v1514_v55 = vpop.xlane.xlu2 %1513  ;;  %v2805_v36 = vsel %vm611_vm1, %v2752_v47, 0 }
 0x8ee   : > { %v1544_v58 = vmul.f32 %v1514_v55, %v8357_v34 }
 0x8f0   : > { %v7123_v63 = vpop.eup %7122  ;;  %v8747_v39 = vadd.f32 1e-05, %v1544_v58 }
 0x8f1   : > { %v1639_v24 = vmul.f32 %v7123_v63, %v1559_v20  ;;  %6554 = vmatmul.msk.bf16.gmra.mxu1 %vm440_vm0, %v2594_v32  ;;  %vm1645_vm2 = vweird.f32 %v7123_v63  ;;  %v2811_v20 = vsel %vm611_vm1, %v2754_v6, 0 }
 0x8f2   : > { %7124 = vrsqrt.f32 %v8747_v39  ;;  %vm1646_vm4 = vmor %vm1644_vm3, %vm1645_vm2  ;;  %vm1654_vm6 = vweird.f32 %v8747_v39 }
 0x8f3   : > { %v1640_v7 = vmul.f32 %v7123_v63, %v1639_v24 }
 0x8f4   : > { %v2749_v31 = vpop.f32.mrf.mxu3 }
 0x8f5   : > { %v1641_v33 = vmul.f32 0.5, %v1640_v7  ;;  %v2755_v18 = vpack.c.bf16 %v2749_v31, %v2747_v13  ;;  %v1432_v14 = vpop.xlane.xlu2 %1431  ;;  %v1517_v53 = vpop.xlane.xlu0 %1516 }
 0x8f6   : > { %v1455_v19 = vmul.f32 %v8357_v34, %v1432_v14  ;;  %v1545_v23 = vmul.f32 %v1517_v53, %v8357_v34 }
 0x8f7   : > { %v1642_v15 = vsub.f32 1.5, %v1641_v33  ;;  %3077 = vmatpush.bf16.msra.mxu0 %v2755_v18  ;;  %3463 = vmatpush.bf16.msra.mxu1 %v2755_v18  ;;  %v2814_v37 = vsel %vm611_vm1, %v2755_v18, 0 }
 0x8f8   : > { %v7125_v21 = vpop.eup %7124  ;;  %v8760_v56 = vsub.f32 %v8635_v16, %v1455_v19  ;;  %v1561_v52 = vadd.f32 1e-05, %v1545_v23  ;;  %2820 = vmatpush.bf16.xpose.msra.mxu2 %v2814_v37  ;;  %3206 = vmatpush.bf16.xpose.msra.mxu3 %v2814_v37 }
 0x8f9   : > { %v1643_v54 = vmul.f32 %v7123_v63, %v1642_v15  ;;  %v1649_v17 = vmul.f32 %v7125_v21, %v8747_v39  ;;  %vm1655_vm5 = vweird.f32 %v7125_v21 }
 0x8fa   : > { %7126 = vrsqrt.f32 %v1561_v52  ;;  %v1487_v50 = vmul.f32 %v8760_v56, %v8760_v56  ;;  %vm1656_vm7 = vmor %vm1654_vm6, %vm1655_vm5  ;;  %vm1664_vm9 = vweird.f32 %v1561_v52 }
 0x8fb   : > { %v1647_v12 = vsel %vm1646_vm4, %v7123_v63, %v1643_v54  ;;  %v1650_v48 = vmul.f32 %v7125_v21, %v1649_v17  ;;  %3078 = vmatpush.bf16.msra.mxu0 %v2754_v6  ;;  %3464 = vmatpush.bf16.msra.mxu1 %v2754_v6  ;;  %v2808_v63 = vsel %vm611_vm1, %v2753_v11, 0 }
 0x8fc   : > { %v1735_v45 = vmul.f32 %v1647_v12, %v8620_v38  ;;  %v1533_v16 = vsel %vm440_vm0, %v1487_v50, 0.0  ;;  %v1774_v38 = vadd.f32 %v8651_v9, %v1754_v60 }
 0x8fd   : > { %v1651_v5 = vmul.f32 0.5, %v1650_v48  ;;  %1534 = vadd.xlane.f32.xlu2 %v1533_v16  ;;  %v1520_v37 = vpop.xlane.xlu0 %1519 }
 0x8fe   : > { %v1755_v30 = vmul.f32 %v8640_v29, %v1735_v45 }
 0x8ff   : > { %v1652_v10 = vsub.f32 1.5, %v1651_v5  ;;  %3079 = vmatpush.bf16.msra.mxu0 %v2753_v11  ;;  %3465 = vmatpush.bf16.msra.mxu1 %v2753_v11 }
 0x900   : > { %v7127_v42 = vpop.eup %7126  ;;  %2821 = vmatpush.bf16.xpose.msra.mxu2 %v2811_v20  ;;  %3207 = vmatpush.bf16.xpose.msra.mxu3 %v2811_v20  ;;  %v1775_v22 = vadd.f32 %v8651_v9, %v1755_v30 }
 0x901   : > { %v1653_v0 = vmul.f32 %v7125_v21, %v1652_v10  ;;  %v1659_v49 = vmul.f32 %v7127_v42, %v1561_v52  ;;  %vm1665_vm8 = vweird.f32 %v7127_v42 }
 0x902   : > { %v2595_v13 = vpack.c.bf16 %v1775_v22, %v1774_v38  ;;  %vm1666_vm10 = vmor %vm1664_vm9, %vm1665_vm8 }
 0x903   : > { %v1660_v51 = vmul.f32 %v7127_v42, %v1659_v49  ;;  %3080 = vmatpush.bf16.msra.mxu0 %v2752_v47  ;;  %3466 = vmatpush.bf16.msra.mxu1 %v2752_v47  ;;  %v1657_v55 = vsel %vm1656_vm7, %v7125_v21, %v1653_v0  ;;  %v1546_v21 = vmul.f32 %v1520_v37, %v8357_v34 }
 0x904   : > { %6555 = vmatmul.msk.bf16.gmra.mxu1 %vm440_vm0, %v2595_v13  ;;  %v1736_v46 = vmul.f32 %v1657_v55, %v8627_v44 }
 0x905   : > { %v1661_v35 = vmul.f32 0.5, %v1660_v51  ;;  %v1562_v8 = vadd.f32 1e-05, %v1546_v21  ;;  %v1529_v52 = vpop.xlane.xlu0 %1528 }
 0x906   : > { %v2650_v58 = vpop.f32.mrf.mxu1  ;;  %v1756_v24 = vmul.f32 %v8640_v29, %v1736_v46  ;;  %v1549_v54 = vmul.f32 %v1529_v52, %v8357_v34 }
 0x907   : > { %v1662_v32 = vsub.f32 1.5, %v1661_v35  ;;  %v3154_v19 = vmul.f32 %v2650_v58, %v7634_v3  ;;  %7128 = vrsqrt.f32 %v1562_v8  ;;  %vm1674_vm12 = vweird.f32 %v1562_v8 }
 0x908   : > { %2822 = vmatpush.bf16.xpose.msra.mxu2 %v2808_v63  ;;  %3208 = vmatpush.bf16.xpose.msra.mxu3 %v2808_v63  ;;  %v1776_v33 = vadd.f32 %v8651_v9, %v1756_v24  ;;  %v8796_v50 = vadd.f32 1e-05, %v1549_v54 }
 0x909   : > { %v1663_v43 = vmul.f32 %v7127_v42, %v1662_v32 }
 0x90a   : > { %7130 = vrsqrt.f32 %v8796_v50  ;;  %vm1704_vm5 = vweird.f32 %v8796_v50 }
 0x90b   : > { %v1667_v39 = vsel %vm1666_vm10, %v7127_v42, %v1663_v43 }
 0x90c   : > { %v1737_v28 = vmul.f32 %v1667_v39, %v8644_v26  ;;  %v2756_v26 = vmul.f32 %v2650_v58, %v7631_v2 }
 0x90d   : > { %v7129_v6 = vpop.eup %7128 }
 0x90e   : > { %v2652_v7 = vpop.f32.mrf.mxu1  ;;  %v1757_v31 = vmul.f32 %v8640_v29, %v1737_v28  ;;  %v1669_v17 = vmul.f32 %v7129_v6, %v1562_v8  ;;  %vm1675_vm11 = vweird.f32 %v7129_v6 }
 0x90f   : > { %v2757_v18 = vmul.f32 %v2652_v7, %v7631_v2  ;;  %v3155_v14 = vmul.f32 %v2652_v7, %v7634_v3  ;;  %vm1676_vm13 = vmor %vm1674_vm12, %vm1675_vm11 }
 0x910   : > { %2823 = vmatpush.bf16.xpose.msra.mxu2 %v2805_v36  ;;  %3209 = vmatpush.bf16.xpose.msra.mxu3 %v2805_v36  ;;  %v1777_v44 = vadd.f32 %v8651_v9, %v1757_v31  ;;  %v1670_v12 = vmul.f32 %v7129_v6, %v1669_v17  ;;  %v8800_v5 = vpop.eup %7130 }
 0x911   : > { %v2772_v23 = vpack.c.bf16 %v2757_v18, %v2756_v26  ;;  %v3170_v15 = vpack.c.bf16 %v3155_v14, %v3154_v19  ;;  %v1699_v38 = vmul.f32 %v8800_v5, %v8796_v50  ;;  %vm1705_vm3 = vweird.f32 %v8800_v5 }
 0x912   : > { %v2596_v53 = vpack.c.bf16 %v1777_v44, %v1776_v33  ;;  %v1671_v16 = vmul.f32 0.5, %v1670_v12  ;;  %vm1706_vm6 = vmor %vm1704_vm5, %vm1705_vm3 }
 0x913   : > { %v1700_v51 = vmul.f32 %v8800_v5, %v1699_v38 }
 0x914   : > { %6556 = vmatmul.msk.bf16.gmra.mxu1 %vm440_vm0, %v2596_v53  ;;  %v1672_v11 = vsub.f32 1.5, %v1671_v16 }
 0x915   : > { %v1701_v46 = vmul.f32 0.5, %v1700_v51 }
 0x916   : > { %v1673_v42 = vmul.f32 %v7129_v6, %v1672_v11 }
 0x917   : > { %6576 = vmatmul.msk.bf16.vlgmr.msra.gmra.mxu2 %vm611_vm1, %v2772_v23  ;;  %6592 = vmatmul.msk.bf16.vlgmr.msra.gmra.mxu3 %vm611_vm1, %v3170_v15  ;;  %v1702_v31 = vsub.f32 1.5, %v1701_v46 }
 0x918   : > { %v1677_v13 = vsel %vm1676_vm13, %v7129_v6, %v1673_v42 }
 0x919   : > { %v1738_v63 = vmul.f32 %v1677_v13, %v8663_v4  ;;  %v1703_v52 = vmul.f32 %v8800_v5, %v1702_v31 }
 0x91b   : > { %v1758_v7 = vmul.f32 %v8640_v29, %v1738_v63 }
 0x91d   : > { %v1778_v8 = vadd.f32 %v8651_v9, %v1758_v7 }
 0x950   : > { %v1523_v48 = vpop.xlane.xlu1 %1522 }
 0x951   : > { %v1547_v45 = vmul.f32 %v1523_v48, %v8357_v34 }
 0x953   : > { %v1563_v60 = vadd.f32 1e-05, %v1547_v45  ;;  %v1707_v45 = vsel %vm1706_vm6, %v8800_v5, %v1703_v52 }
 0x954   : > { %v1741_v50 = vmul.f32 %v1707_v45, %v8671_v41 }
 0x955   : > { %7132 = vrsqrt.f32 %v1563_v60  ;;  %vm1684_vm15 = vweird.f32 %v1563_v60 }
 0x958   : > { %v1532_v30 = vpop.xlane.xlu1 %1531  ;;  %v1526_v10 = vpop.xlane.xlu2 %1525 }
 0x959   : > { %v1548_v20 = vmul.f32 %v1526_v10, %v8357_v34  ;;  %v1550_v47 = vmul.f32 %v1532_v30, %v8357_v34 }
 0x95b   : > { %v7133_v22 = vpop.eup %7132  ;;  %v1564_v0 = vadd.f32 1e-05, %v1548_v20  ;;  %v8807_v58 = vadd.f32 1e-05, %v1550_v47  ;;  %v1761_v47 = vmul.f32 %v8640_v29, %v1741_v50 }
 0x95c   : > { %v1679_v49 = vmul.f32 %v7133_v22, %v1563_v60  ;;  %vm1685_vm14 = vweird.f32 %v7133_v22 }
 0x95d   : > { %7134 = vrsqrt.f32 %v1564_v0  ;;  %vm1686_vm2 = vmor %vm1684_vm15, %vm1685_vm14  ;;  %vm1694_vm7 = vweird.f32 %v1564_v0  ;;  %vm1714_vm10 = vweird.f32 %v8807_v58 }
 0x95e   : > { %v1680_v55 = vmul.f32 %v7133_v22, %v1679_v49  ;;  %v2655_v35 = vpop.f32.mrf.mxu1  ;;  %7136 = vrsqrt.f32 %v8807_v58 }
 0x95f   : > { %v2758_v33 = vmul.f32 %v2655_v35, %v7631_v2  ;;  %v3156_v44 = vmul.f32 %v2655_v35, %v7634_v3 }
 0x960   : > { %v1681_v32 = vmul.f32 0.5, %v1680_v55 }
 0x962   : > { %v1682_v43 = vsub.f32 1.5, %v1681_v32  ;;  %v1781_v32 = vadd.f32 %v8651_v9, %v1761_v47 }
 0x963   : > { %v7135_v39 = vpop.eup %7134 }
 0x964   : > { %v1683_v28 = vmul.f32 %v7133_v22, %v1682_v43  ;;  %v1689_v24 = vmul.f32 %v7135_v39, %v1564_v0  ;;  %v7137_v19 = vpop.eup %7136  ;;  %vm1695_vm4 = vweird.f32 %v7135_v39 }
 0x965   : > { %v1709_v54 = vmul.f32 %v7137_v19, %v8807_v58  ;;  %vm1696_vm8 = vmor %vm1694_vm7, %vm1695_vm4  ;;  %vm1715_vm9 = vweird.f32 %v7137_v19 }
 0x966   : > { %v1687_v36 = vsel %vm1686_vm2, %v7133_v22, %v1683_v28  ;;  %v2657_v18 = vpop.f32.mrf.mxu1  ;;  %v1690_v14 = vmul.f32 %v7135_v39, %v1689_v24  ;;  %vm1716_vm11 = vmor %vm1714_vm10, %vm1715_vm9 }
 0x967   : > { %v1739_v4 = vmul.f32 %v1687_v36, %v8704_v59  ;;  %v2759_v53 = vmul.f32 %v2657_v18, %v7631_v2  ;;  %v3157_v26 = vmul.f32 %v2657_v18, %v7634_v3  ;;  %v1710_v60 = vmul.f32 %v7137_v19, %v1709_v54 }
 0x968   : > { %v1691_v23 = vmul.f32 0.5, %v1690_v14 }
 0x969   : > { %v2773_v15 = vpack.c.bf16 %v2759_v53, %v2758_v33  ;;  %v3171_v37 = vpack.c.bf16 %v3157_v26, %v3156_v44  ;;  %v1759_v21 = vmul.f32 %v8640_v29, %v1739_v4  ;;  %v1711_v42 = vmul.f32 0.5, %v1710_v60 }
 0x96a   : > { %v1692_v6 = vsub.f32 1.5, %v1691_v23 }
 0x96b   : > { %6577 = vmatmul.msk.bf16.gmra.mxu2 %vm611_vm1, %v2773_v15  ;;  %6593 = vmatmul.msk.bf16.gmra.mxu3 %vm611_vm1, %v3171_v37  ;;  %v1779_v59 = vadd.f32 %v8651_v9, %v1759_v21  ;;  %v1712_v13 = vsub.f32 1.5, %v1711_v42 }
 0x96c   : > { %v1693_v17 = vmul.f32 %v7135_v39, %v1692_v6 }
 0x96d   : > { %v2597_v12 = vpack.c.bf16 %v1779_v59, %v1778_v8  ;;  %v1713_v63 = vmul.f32 %v7137_v19, %v1712_v13 }
 0x96e   : > { %v2660_v48 = vpop.f32.mrf.mxu1  ;;  %v1697_v16 = vsel %vm1696_vm8, %v7135_v39, %v1693_v17 }
 0x96f   : > { %6557 = vmatmul.msk.bf16.gmra.mxu1 %vm440_vm0, %v2597_v12  ;;  %v1740_v30 = vmul.f32 %v1697_v16, %v8726_v57  ;;  %v2760_v5 = vmul.f32 %v2660_v48, %v7631_v2  ;;  %v3158_v0 = vmul.f32 %v2660_v48, %v7634_v3  ;;  %v1717_v28 = vsel %vm1716_vm11, %v7137_v19, %v1713_v63 }
 0x970   : > { %v1535_v11 = vpop.xlane.xlu2 %1534  ;;  %v1742_v36 = vmul.f32 %v1717_v28, %v8714_v27 }
 0x971   : > { %v1551_v10 = vmul.f32 %v1535_v11, %v8357_v34  ;;  %v1760_v38 = vmul.f32 %v8640_v29, %v1740_v30 }
 0x972   : > { %v1762_v4 = vmul.f32 %v8640_v29, %v1742_v36 }
 0x973   : > { %v1567_v20 = vadd.f32 1e-05, %v1551_v10  ;;  %v1780_v41 = vadd.f32 %v8651_v9, %v1760_v38 }
 0x974   : > { %v1782_v27 = vadd.f32 %v8651_v9, %v1762_v4 }
 0x975   : > { %7138 = vrsqrt.f32 %v1567_v20  ;;  %v2598_v43 = vpack.c.bf16 %v1781_v32, %v1780_v41  ;;  %vm1724_vm13 = vweird.f32 %v1567_v20 }
 0x976   : > { %v2662_v22 = vpop.f32.mrf.mxu1 }
 0x977   : > { %v2761_v49 = vmul.f32 %v2662_v22, %v7631_v2  ;;  %v3159_v57 = vmul.f32 %v2662_v22, %v7634_v3 }
 0x979   : > { %v2774_v51 = vpack.c.bf16 %v2761_v49, %v2760_v5  ;;  %v3172_v55 = vpack.c.bf16 %v3159_v57, %v3158_v0 }
 0x97b   : > { %v7139_v35 = vpop.eup %7138  ;;  %6578 = vmatmul.msk.bf16.gmra.mxu2 %vm611_vm1, %v2774_v51  ;;  %6594 = vmatmul.msk.bf16.gmra.mxu3 %vm611_vm1, %v3172_v55 }
 0x97c   : > { %v1719_v46 = vmul.f32 %v7139_v35, %v1567_v20  ;;  %vm1725_vm12 = vweird.f32 %v7139_v35 }
 0x97d   : > { %vm1726_vm14 = vmor %vm1724_vm13, %vm1725_vm12 }
 0x97e   : > { %v1720_v39 = vmul.f32 %v7139_v35, %v1719_v46 }
 0x97f   : > { %6558 = vmatmul.msk.bf16.gmra.mxu1 %vm440_vm0, %v2598_v43 }
 0x980   : > { %v1721_v24 = vmul.f32 0.5, %v1720_v39 }
 0x981   : > { %v2665_v7 = vpop.f32.mrf.mxu1 }
 0x982   : > { %v1722_v31 = vsub.f32 1.5, %v1721_v24  ;;  %v2762_v53 = vmul.f32 %v2665_v7, %v7631_v2  ;;  %v3160_v26 = vmul.f32 %v2665_v7, %v7634_v3 }
 0x984   : > { %v1723_v33 = vmul.f32 %v7139_v35, %v1722_v31 }
 0x986   : > { %v1727_v44 = vsel %vm1726_vm14, %v7139_v35, %v1723_v33 }
 0x987   : > { %v1743_v18 = vmul.f32 %v1727_v44, %v8760_v56 }
 0x989   : > { %v2667_v58 = vpop.f32.mrf.mxu1  ;;  %v1763_v14 = vmul.f32 %v8640_v29, %v1743_v18 }
 0x98a   : > { %v2763_v19 = vmul.f32 %v2667_v58, %v7631_v2  ;;  %v3161_v23 = vmul.f32 %v2667_v58, %v7634_v3 }
 0x98b   : > { %v1783_v15 = vadd.f32 %v8651_v9, %v1763_v14 }
 0x98c   : > { %v2775_v37 = vpack.c.bf16 %v2763_v19, %v2762_v53  ;;  %v3173_v21 = vpack.c.bf16 %v3161_v23, %v3160_v26 }
 0x98d   : > { %v2599_v56 = vpack.c.bf16 %v1783_v15, %v1782_v27 }
 0x98e   : > { %6579 = vmatmul.msk.bf16.gmra.mxu2 %vm611_vm1, %v2775_v37  ;;  %6595 = vmatmul.msk.bf16.gmra.mxu3 %vm611_vm1, %v3173_v21 }
 0x98f   : > { %6559 = vmatmul.msk.bf16.gmra.mxu1 %vm440_vm0, %v2599_v56 }
 0x991   : > { %v2670_v29 = vpop.f32.mrf.mxu1 }
 0x992   : > { %v2764_v52 = vmul.f32 %v2670_v29, %v7631_v2  ;;  %v3162_v6 = vmul.f32 %v2670_v29, %v7634_v3 }
 0x999   : > { %v2672_v8 = vpop.f32.mrf.mxu1 }
 0x99a   : > { %v2765_v59 = vmul.f32 %v2672_v8, %v7631_v2  ;;  %v3163_v54 = vmul.f32 %v2672_v8, %v7634_v3  ;;  %v8860_v9 = vpop.f32.mrf.mxu2  ;;  %v8862_v17 = vpop.f32.mrf.mxu3 }
 0x99b   : > { %v2865_v12 = vsel %vm611_vm1, %v8860_v9, -inf  ;;  %v3251_v48 = vsel %vm611_vm1, %v8862_v17, -inf }
 0x99c   : > { %v2776_v45 = vpack.c.bf16 %v2765_v59, %v2764_v52  ;;  %v3174_v16 = vpack.c.bf16 %v3163_v54, %v3162_v6  ;;  %2866 = vmax.xlane.f32.xlu0 %v2865_v12  ;;  %3252 = vmax.xlane.f32.xlu2 %v3251_v48 }
 0x99e   : > { %6580 = vmatmul.msk.bf16.gmra.mxu2 %vm611_vm1, %v2776_v45  ;;  %6596 = vmatmul.msk.bf16.gmra.mxu3 %vm611_vm1, %v3174_v16 }
 0x9a2   : > { %v8870_v60 = vpop.f32.mrf.mxu2  ;;  %v8872_v11 = vpop.f32.mrf.mxu3 }
 0x9a3   : > { %v3254_v30 = vsel %vm611_vm1, %v8872_v11, -inf  ;;  %v2868_v10 = vsel %vm611_vm1, %v8870_v60, -inf }
 0x9a4   : > { %3255 = vmax.xlane.f32.xlu0 %v3254_v30  ;;  %2869 = vmax.xlane.f32.xlu1 %v2868_v10 }
 0x9ec   : > { %v2675_v50 = vpop.f32.mrf.mxu1 }
 0x9ed   : > { %v2766_v5 = vmul.f32 %v2675_v50, %v7631_v2  ;;  %v3164_v0 = vmul.f32 %v2675_v50, %v7634_v3 }
 0x9ee   : > { %v8878_v20 = vpop.f32.mrf.mxu2  ;;  %v8880_v42 = vpop.f32.mrf.mxu3 }
 0x9ef   : > { %v3257_v38 = vsel %vm611_vm1, %v8880_v42, -inf  ;;  %v2871_v22 = vsel %vm611_vm1, %v8878_v20, -inf }
 0x9f0   : > { %3258 = vmax.xlane.f32.xlu0 %v3257_v38  ;;  %2872 = vmax.xlane.f32.xlu1 %v2871_v22 }
 0x9f4   : > { %v2677_v47 = vpop.f32.mrf.mxu1 }
 0x9f5   : > { %v2767_v49 = vmul.f32 %v2677_v47, %v7631_v2  ;;  %v3165_v57 = vmul.f32 %v2677_v47, %v7634_v3 }
 0x9f6   : > { %v8890_v13 = vpop.f32.mrf.mxu2  ;;  %v8892_v51 = vpop.f32.mrf.mxu3 }
 0x9f7   : > { %v2777_v55 = vpack.c.bf16 %v2767_v49, %v2766_v5  ;;  %v3175_v41 = vpack.c.bf16 %v3165_v57, %v3164_v0  ;;  %v3260_v35 = vsel %vm611_vm1, %v8892_v51, -inf  ;;  %v2874_v32 = vsel %vm611_vm1, %v8890_v13, -inf }
 0x9f8   : > { %3261 = vmax.xlane.f32.xlu1 %v3260_v35  ;;  %2875 = vmax.xlane.f32.xlu2 %v2874_v32 }
 0x9f9   : > { %6581 = vmatmul.msk.bf16.gmra.mxu2 %vm611_vm1, %v2777_v55  ;;  %6597 = vmatmul.msk.bf16.gmra.mxu3 %vm611_vm1, %v3175_v41 }
 0x9fc   : > { %v2680_v63 = vpop.f32.mrf.mxu1 }
 0x9fd   : > { %v2768_v7 = vmul.f32 %v2680_v63, %v7631_v2  ;;  %v3166_v31 = vmul.f32 %v2680_v63, %v7634_v3 }
 0x9fe   : > { %v8900_v46 = vpop.f32.mrf.mxu2  ;;  %v8902_v43 = vpop.f32.mrf.mxu3 }
 0x9ff   : > { %v3263_v39 = vsel %vm611_vm1, %v8902_v43, -inf  ;;  %v2877_v28 = vsel %vm611_vm1, %v8900_v46, -inf }
 0xa00   : > { %3264 = vmax.xlane.f32.xlu1 %v3263_v39  ;;  %2878 = vmax.xlane.f32.xlu2 %v2877_v28 }
 0xa04   : > { %v2682_v24 = vpop.f32.mrf.mxu1 }
 0xa05   : > { %v2769_v36 = vmul.f32 %v2682_v24, %v7631_v2  ;;  %v3167_v33 = vmul.f32 %v2682_v24, %v7634_v3 }
 0xa06   : > { %v8912_v44 = vpop.f32.mrf.mxu2  ;;  %v8914_v18 = vpop.f32.mrf.mxu3 }
 0xa07   : > { %v2778_v4 = vpack.c.bf16 %v2769_v36, %v2768_v7  ;;  %v3176_v58 = vpack.c.bf16 %v3167_v33, %v3166_v31  ;;  %v2880_v14 = vsel %vm611_vm1, %v8912_v44, -inf  ;;  %v3266_v53 = vsel %vm611_vm1, %v8914_v18, -inf }
 0xa08   : > { %2881 = vmax.xlane.f32.xlu0 %v2880_v14  ;;  %3267 = vmax.xlane.f32.xlu2 %v3266_v53 }
 0xa09   : > { %6582 = vmatmul.msk.bf16.gmra.mxu2 %vm611_vm1, %v2778_v4  ;;  %6598 = vmatmul.msk.bf16.gmra.mxu3 %vm611_vm1, %v3176_v58 }
 0xa0c   : > { %v2685_v26 = vpop.f32.mrf.mxu1 }
 0xa0d   : > { %v2770_v21 = vmul.f32 %v2685_v26, %v7631_v2  ;;  %v3168_v56 = vmul.f32 %v2685_v26, %v7634_v3 }
 0xa0f   : > { %v2867_v5 = vpop.xlane.xlu0 %2866  ;;  %v3253_v0 = vpop.xlane.xlu2 %3252 }
 0xa10   : > { %v3299_v49 = vsub.f32 %v8862_v17, %v3253_v0  ;;  %v2913_v57 = vsub.f32 %v8860_v9, %v2867_v5 }
 0xa11   : > { %v8922_v19 = vpop.f32.mrf.mxu2  ;;  %v8924_v23 = vpop.f32.mrf.mxu3 }
 0xa12   : > { %v2883_v27 = vsel %vm611_vm1, %v8922_v19, -inf  ;;  %v3269_v15 = vsel %vm611_vm1, %v8924_v23, -inf  ;;  %v3315_v41 = vmul.f32 1.442695, %v3299_v49  ;;  %v2929_v35 = vmul.f32 1.442695, %v2913_v57 }
 0xa13   : > { %2884 = vmax.xlane.f32.xlu0 %v2883_v27  ;;  %3270 = vmax.xlane.f32.xlu2 %v3269_v15 }
 0xa14   : > { %v2687_v37 = vpop.f32.mrf.mxu1  ;;  %7140 = vpow2.f32 %v3315_v41 }
 0xa15   : > { %v2771_v29 = vmul.f32 %v2687_v37, %v7631_v2  ;;  %v3169_v8 = vmul.f32 %v2687_v37, %v7634_v3  ;;  %7142 = vpow2.f32 %v2929_v35 }
 0xa17   : > { %v2779_v52 = vpack.c.bf16 %v2771_v29, %v2770_v21  ;;  %v3177_v6 = vpack.c.bf16 %v3169_v8, %v3168_v56  ;;  %v2870_v55 = vpop.xlane.xlu1 %2869  ;;  %v3256_v32 = vpop.xlane.xlu0 %3255 }
 0xa18   : > { %v2914_v63 = vsub.f32 %v8870_v60, %v2870_v55  ;;  %v3300_v24 = vsub.f32 %v8872_v11, %v3256_v32 }
 0xa19   : > { %v8934_v59 = vpop.f32.mrf.mxu2  ;;  %6583 = vmatmul.msk.bf16.gmra.mxu2 %vm611_vm1, %v2779_v52  ;;  %v8937_v54 = vpop.f32.mrf.mxu3  ;;  %6599 = vmatmul.msk.bf16.gmra.mxu3 %vm611_vm1, %v3177_v6 }
 0xa1a   : > { %v3272_v12 = vsel %vm611_vm1, %v8937_v54, -inf  ;;  %v2886_v48 = vsel %vm611_vm1, %v8934_v59, -inf  ;;  %v2931_v31 = vmul.f32 1.442695, %v2914_v63  ;;  %v3317_v36 = vmul.f32 1.442695, %v3300_v24  ;;  %v8972_v60 = vpop.eup %7140 }
 0xa1b   : > { %3273 = vmax.xlane.f32.xlu0 %v3272_v12  ;;  %2887 = vmax.xlane.f32.xlu1 %v2886_v48  ;;  %v8974_v4 = vpop.eup %7142  ;;  %v3347_v26 = vsel %vm611_vm1, %v8972_v60, 0.0 }
 0xa1c   : > { %7144 = vpow2.f32 %v2931_v31  ;;  %v2961_v15 = vsel %vm611_vm1, %v8974_v4, 0.0 }
 0xa1d   : > { %7146 = vpow2.f32 %v3317_v36 }
 0xa21   : > { %v8944_v45 = vpop.f32.mrf.mxu2  ;;  %v8946_v16 = vpop.f32.mrf.mxu3 }
 0xa22   : > { %v3275_v30 = vsel %vm611_vm1, %v8946_v16, -inf  ;;  %v2889_v10 = vsel %vm611_vm1, %v8944_v45, -inf  ;;  %v8986_v56 = vpop.eup %7144 }
 0xa23   : > { %3276 = vmax.xlane.f32.xlu1 %v3275_v30  ;;  %2890 = vmax.xlane.f32.xlu2 %v2889_v10  ;;  %v2964_v12 = vsel %vm611_vm1, %v8986_v56, 0.0 }
 0xa29   : > { %v8952_v50 = vpop.f32.mrf.mxu2  ;;  %v8954_v38 = vpop.f32.mrf.mxu3 }
 0xa2a   : > { %v3278_v22 = vsel %vm611_vm1, %v8954_v38, -inf  ;;  %v2892_v47 = vsel %vm611_vm1, %v8952_v50, -inf }
 0xa2b   : > { %3279 = vmax.xlane.f32.xlu2 %v3278_v22  ;;  %2893 = vmax.xlane.f32.xlu0 %v2892_v47 }
 0xa63   : > { %v2873_v17 = vpop.xlane.xlu1 %2872  ;;  %v3259_v33 = vpop.xlane.xlu0 %3258 }
 0xa64   : > { %v2915_v58 = vsub.f32 %v8878_v20, %v2873_v17  ;;  %v3301_v11 = vsub.f32 %v8880_v42, %v3259_v33  ;;  %v8988_v42 = vpop.eup %7146 }
 0xa65   : > { %v3350_v10 = vsel %vm611_vm1, %v8988_v42, 0.0 }
 0xa66   : > { %v2933_v37 = vmul.f32 1.442695, %v2915_v58  ;;  %v3319_v20 = vmul.f32 1.442695, %v3301_v11 }
 0xa68   : > { %7148 = vpow2.f32 %v2933_v37 }
 0xa69   : > { %7150 = vpow2.f32 %v3319_v20 }
 0xa6b   : > { %v2876_v14 = vpop.xlane.xlu2 %2875  ;;  %v3262_v21 = vpop.xlane.xlu1 %3261 }
 0xa6c   : > { %v3302_v29 = vsub.f32 %v8892_v51, %v3262_v21  ;;  %v2916_v52 = vsub.f32 %v8890_v13, %v2876_v14 }
 0xa6e   : > { %v3321_v51 = vmul.f32 1.442695, %v3302_v29  ;;  %v9002_v22 = vpop.eup %7148  ;;  %v2935_v47 = vmul.f32 1.442695, %v2916_v52 }
 0xa6f   : > { %v9004_v13 = vpop.eup %7150  ;;  %v2967_v0 = vsel %vm611_vm1, %v9002_v22, 0.0 }
 0xa70   : > { %7152 = vpow2.f32 %v3321_v51  ;;  %v3353_v49 = vsel %vm611_vm1, %v9004_v13, 0.0 }
 0xa71   : > { %7154 = vpow2.f32 %v2935_v47 }
 0xa73   : > { %v2879_v6 = vpop.xlane.xlu2 %2878 }
 0xa74   : > { %v2917_v5 = vsub.f32 %v8900_v46, %v2879_v6  ;;  %v3265_v46 = vpop.xlane.xlu1 %3264 }
 0xa75   : > { %v3303_v17 = vsub.f32 %v8902_v43, %v3265_v46 }
 0xa76   : > { %v2937_v41 = vmul.f32 1.442695, %v2917_v5  ;;  %v9015_v63 = vpop.eup %7152 }
 0xa77   : > { %v9017_v24 = vpop.eup %7154  ;;  %v3356_v31 = vsel %vm611_vm1, %v9015_v63, 0.0 }
 0xa78   : > { %7156 = vpow2.f32 %v2937_v41  ;;  %v2970_v58 = vsel %vm611_vm1, %v9017_v24, 0.0 }
 0xa7b   : > { %v3268_v55 = vpop.xlane.xlu2 %3267  ;;  %v2882_v35 = vpop.xlane.xlu0 %2881 }
 0xa7c   : > { %v8963_v39 = vpop.f32.mrf.mxu2  ;;  %v8965_v28 = vpop.f32.mrf.mxu3 }
 0xa7d   : > { %v3281_v7 = vsel %vm611_vm1, %v8965_v28, -inf  ;;  %v2895_v9 = vsel %vm611_vm1, %v8963_v39, -inf }
 0xa7e   : > { %3282 = vmax.xlane.f32.xlu0 %v3281_v7  ;;  %2896 = vmax.xlane.f32.xlu1 %v2895_v9  ;;  %v3304_v7 = vsub.f32 %v8914_v18, %v3268_v55  ;;  %v2918_v9 = vsub.f32 %v8912_v44, %v2882_v35  ;;  %v3323_v44 = vmul.f32 1.442695, %v3303_v17 }
 0xa80   : > { %v3325_v14 = vmul.f32 1.442695, %v3304_v7  ;;  %v2939_v18 = vmul.f32 1.442695, %v2918_v9 }
 0xa82   : > { %7158 = vpow2.f32 %v3325_v14 }
 0xa83   : > { %7160 = vpow2.f32 %v2939_v18 }
 0xa84   : > { %v8978_v53 = vpop.f32.mrf.mxu2  ;;  %v8998_v30 = vpop.f32.mrf.mxu3  ;;  %7162 = vpow2.f32 %v3323_v44 }
 0xa85   : > { %v2898_v27 = vsel %vm611_vm1, %v8978_v53, -inf  ;;  %v3284_v57 = vsel %vm611_vm1, %v8998_v30, -inf }
 0xa86   : > { %3348 = vadd.xlane.f32.xlu0 %v3347_v26  ;;  %2899 = vmax.xlane.f32.xlu2 %v2898_v27  ;;  %v2885_v11 = vpop.xlane.xlu0 %2884  ;;  %v9030_v26 = vpop.eup %7156 }
 0xa87   : > { %2962 = vadd.xlane.f32.xlu1 %v2961_v15  ;;  %v2919_v27 = vsub.f32 %v8922_v19, %v2885_v11  ;;  %v2973_v37 = vsel %vm611_vm1, %v9030_v26, 0.0  ;;  %v3271_v21 = vpop.xlane.xlu2 %3270 }
 0xa88   : > { %v9043_v52 = vpop.eup %7158  ;;  %v3305_v51 = vsub.f32 %v8924_v23, %v3271_v21 }
 0xa89   : > { %v2941_v6 = vmul.f32 1.442695, %v2919_v27  ;;  %v9045_v19 = vpop.eup %7160 }
 0xa8a   : > { %v3327_v55 = vmul.f32 1.442695, %v3305_v51 }
 0xa8b   : > { %7164 = vpow2.f32 %v2941_v6 }
 0xa8c   : > { %v8991_v8 = vpop.f32.mrf.mxu2  ;;  %v9013_v32 = vpop.f32.mrf.mxu3  ;;  %7166 = vpow2.f32 %v3327_v55 }
 0xa8d   : > { %v2901_v48 = vsel %vm611_vm1, %v8991_v8, -inf  ;;  %v3287_v36 = vsel %vm611_vm1, %v9013_v32, -inf }
 0xa8e   : > { %2965 = vadd.xlane.f32.xlu2 %v2964_v12  ;;  %2902 = vmax.xlane.f32.xlu0 %v2901_v48  ;;  %v2888_v12 = vpop.xlane.xlu1 %2887  ;;  %v3274_v48 = vpop.xlane.xlu0 %3273 }
 0xa8f   : > { %3351 = vadd.xlane.f32.xlu1 %v3350_v10  ;;  %v9047_v10 = vpop.eup %7162  ;;  %v2920_v47 = vsub.f32 %v8934_v59, %v2888_v12  ;;  %v3306_v5 = vsub.f32 %v8937_v54, %v3274_v48 }
 0xa91   : > { %v2943_v23 = vmul.f32 1.442695, %v2920_v47  ;;  %v3329_v35 = vmul.f32 1.442695, %v3306_v5  ;;  %v9060_v46 = vpop.eup %7164 }
 0xa92   : > { %v2979_v17 = vsel %vm611_vm1, %v9060_v46, 0.0  ;;  %v9071_v14 = vpop.eup %7166 }
 0xa93   : > { %7168 = vpow2.f32 %v2943_v23  ;;  %v3365_v21 = vsel %vm611_vm1, %v9071_v14, 0.0 }
 0xa94   : > { %v9026_v33 = vpop.f32.mrf.mxu2  ;;  %v9032_v43 = vpop.f32.mrf.mxu3  ;;  %7170 = vpow2.f32 %v3329_v35 }
 0xa95   : > { %v3290_v15 = vsel %vm611_vm1, %v9032_v43, -inf  ;;  %v2904_v20 = vsel %vm611_vm1, %v9026_v33, -inf }
 0xa96   : > { %2968 = vadd.xlane.f32.xlu0 %v2967_v0  ;;  %3354 = vadd.xlane.f32.xlu2 %v3353_v49  ;;  %v3362_v0 = vsel %vm611_vm1, %v9043_v52, 0.0  ;;  %v2976_v49 = vsel %vm611_vm1, %v9045_v19, 0.0  ;;  %v2891_v41 = vpop.xlane.xlu2 %2890 }
 0xa97   : > { %3285 = vmax.xlane.f32.xlu1 %v3284_v57  ;;  %v3359_v57 = vsel %vm611_vm1, %v9047_v10, 0.0  ;;  %v2921_v54 = vsub.f32 %v8944_v45, %v2891_v41 }
 0xa99   : > { %v9073_v18 = vpop.eup %7168 }
 0xa9a   : > { %v9075_v44 = vpop.eup %7170 }
 0xa9b   : > { %v3368_v6 = vsel %vm611_vm1, %v9075_v44, 0.0 }
 0xa9c   : > { %v9041_v29 = vpop.f32.mrf.mxu2 }
 0xa9d   : > { %v2907_v7 = vsel %vm611_vm1, %v9041_v29, -inf }
 0xa9e   : > { %3357 = vadd.xlane.f32.xlu0 %v3356_v31  ;;  %3288 = vmax.xlane.f32.xlu2 %v3287_v36  ;;  %v3277_v31 = vpop.xlane.xlu1 %3276  ;;  %v2945_v36 = vmul.f32 1.442695, %v2921_v54  ;;  %v3280_v45 = vpop.xlane.xlu2 %3279 }
 0xa9f   : > { %2971 = vadd.xlane.f32.xlu1 %v2970_v58  ;;  %v9069_v58 = vpop.f32.mrf.mxu3  ;;  %v2894_v11 = vpop.xlane.xlu0 %2893  ;;  %v3307_v27 = vsub.f32 %v8946_v16, %v3277_v31 }
 0xaa0   : > { %7172 = vpow2.f32 %v2945_v36  ;;  %v3293_v5 = vsel %vm611_vm1, %v9069_v58, -inf }
 0xaa1   : > { %v3331_v12 = vmul.f32 1.442695, %v3307_v27 }
 0xaa3   : > { %7174 = vpow2.f32 %v3331_v12 }
 0xaa4   : > { %v9058_v59 = vpop.f32.mrf.mxu2 }
 0xaa5   : > { %v2910_v9 = vsel %vm611_vm1, %v9058_v59, -inf }
 0xaa6   : > { %3291 = vmax.xlane.f32.xlu0 %v3290_v15  ;;  %2974 = vadd.xlane.f32.xlu2 %v2973_v37  ;;  %v3308_v15 = vsub.f32 %v8954_v38, %v3280_v45  ;;  %v2922_v37 = vsub.f32 %v8952_v50, %v2894_v11  ;;  %v9086_v51 = vpop.eup %7172 }
 0xaa7   : > { %2905 = vmax.xlane.f32.xlu1 %v2904_v20  ;;  %v2982_v20 = vsel %vm611_vm1, %v9073_v18, 0.0  ;;  %v9088_v38 = vpop.f32.mrf.mxu3  ;;  %v2985_v47 = vsel %vm611_vm1, %v9086_v51, 0.0 }
 0xaa8   : > { %v3333_v48 = vmul.f32 1.442695, %v3308_v15  ;;  %v2947_v16 = vmul.f32 1.442695, %v2922_v37  ;;  %v3296_v50 = vsel %vm611_vm1, %v9088_v38, -inf }
 0xaaa   : > { %7176 = vpow2.f32 %v3333_v48 }
 0xaab   : > { %7178 = vpow2.f32 %v2947_v16 }
 0xaae   : > { %3363 = vadd.xlane.f32.xlu2 %v3362_v0  ;;  %2977 = vadd.xlane.f32.xlu0 %v2976_v49  ;;  %v9096_v0 = vpop.eup %7174 }
 0xaaf   : > { %3360 = vadd.xlane.f32.xlu1 %v3359_v57  ;;  %v3371_v55 = vsel %vm611_vm1, %v9096_v0, 0.0 }
 0xab0   : > { %v9098_v49 = vpop.eup %7176 }
 0xab1   : > { %v9100_v57 = vpop.eup %7178  ;;  %v3374_v41 = vsel %vm611_vm1, %v9098_v49, 0.0 }
 0xab2   : > { %v2988_v23 = vsel %vm611_vm1, %v9100_v57, 0.0 }
 0xab6   : > { %2908 = vmax.xlane.f32.xlu2 %v2907_v7  ;;  %2911 = vmax.xlane.f32.xlu0 %v2910_v9 }
 0xab7   : > { %2980 = vadd.xlane.f32.xlu1 %v2979_v17 }
 0xabe   : > { %2983 = vadd.xlane.f32.xlu2 %v2982_v20  ;;  %3366 = vadd.xlane.f32.xlu0 %v3365_v21 }
 0xabf   : > { %3369 = vadd.xlane.f32.xlu1 %v3368_v6 }
 0xac6   : > { %3297 = vmax.xlane.f32.xlu2 %v3296_v50  ;;  %2986 = vadd.xlane.f32.xlu0 %v2985_v47 }
 0xac7   : > { %3294 = vmax.xlane.f32.xlu1 %v3293_v5 }
 0xace   : > { %3372 = vadd.xlane.f32.xlu2 %v3371_v55  ;;  %3375 = vadd.xlane.f32.xlu0 %v3374_v41 }
 0xacf   : > { %2989 = vadd.xlane.f32.xlu1 %v2988_v23 }
 0xaf1   : > { %v2897_v35 = vpop.xlane.xlu1 %2896  ;;  %v3283_v54 = vpop.xlane.xlu0 %3282 }
 0xaf2   : > { %v2923_v7 = vsub.f32 %v8963_v39, %v2897_v35  ;;  %v3309_v9 = vsub.f32 %v8965_v28, %v3283_v54 }
 0xaf4   : > { %v2949_v17 = vmul.f32 1.442695, %v2923_v7  ;;  %v3335_v31 = vmul.f32 1.442695, %v3309_v9 }
 0xaf6   : > { %7180 = vpow2.f32 %v2949_v17 }
 0xaf7   : > { %7182 = vpow2.f32 %v3335_v31 }
 0xaf9   : > { %v2900_v36 = vpop.xlane.xlu2 %2899  ;;  %v3349_v45 = vpop.xlane.xlu0 %3348 }
 0xafa   : > { %v2924_v11 = vsub.f32 %v8978_v53, %v2900_v36  ;;  %v2963_v27 = vpop.xlane.xlu1 %2962 }
 0xafc   : > { %v9111_v15 = vpop.eup %7180  ;;  %v2951_v37 = vmul.f32 1.442695, %v2924_v11 }
 0xafd   : > { %v9113_v20 = vpop.eup %7182  ;;  %v2991_v21 = vsel %vm611_vm1, %v9111_v15, 0.0 }
 0xafe   : > { %7184 = vpow2.f32 %v2951_v37  ;;  %2992 = vadd.xlane.f32.xlu1 %v2991_v21  ;;  %v3377_v39 = vsel %vm611_vm1, %v9113_v20, 0.0 }
 0xaff   : > { %3378 = vadd.xlane.f32.xlu0 %v3377_v39  ;;  %7186 = vrcp.f32 %v2963_v27 }
 0xb00   : > { %7188 = vrcp.f32 %v3349_v45 }
 0xb01   : > { %v2966_v28 = vpop.xlane.xlu2 %2965  ;;  %v2903_v6 = vpop.xlane.xlu0 %2902 }
 0xb02   : > { %7190 = vrcp.f32 %v2966_v28  ;;  %v3352_v53 = vpop.xlane.xlu1 %3351  ;;  %v2925_v12 = vsub.f32 %v8991_v8, %v2903_v6 }
 0xb03   : > { %7192 = vrcp.f32 %v3352_v53 }
 0xb04   : > { %v9120_v48 = vpop.eup %7184  ;;  %v2953_v16 = vmul.f32 1.442695, %v2925_v12 }
 0xb05   : > { %v2994_v50 = vsel %vm611_vm1, %v9120_v48, 0.0  ;;  %v7187_v47 = vpop.eup %7186 }
 0xb06   : > { %7194 = vpow2.f32 %v2953_v16  ;;  %2995 = vadd.xlane.f32.xlu2 %v2994_v50  ;;  %v7189_v5 = vpop.eup %7188  ;;  %v3025_v23 = vmul.f32 %v7187_v47, %v8974_v4 }
 0xb07   : > { %v3411_v8 = vmul.f32 %v7189_v5, %v8972_v60 }
 0xb08   : > { %v7191_v55 = vpop.eup %7190 }
 0xb09   : > { %v7193_v41 = vpop.eup %7192  ;;  %v3026_v35 = vmul.f32 %v7191_v55, %v8986_v56  ;;  %v3355_v54 = vpop.xlane.xlu2 %3354 }
 0xb0a   : > { %v2969_v7 = vpop.xlane.xlu0 %2968  ;;  %v3412_v9 = vmul.f32 %v7193_v41, %v8988_v42  ;;  %v3286_v17 = vpop.xlane.xlu1 %3285 }
 0xb0b   : > { %v3041_v31 = vpack.c.bf16 %v3026_v35, %v3025_v23  ;;  %v3310_v36 = vsub.f32 %v8998_v30, %v3286_v17 }
 0xb0c   : > { %v9129_v45 = vpop.eup %7194  ;;  %v3427_v11 = vpack.c.bf16 %v3412_v9, %v3411_v8 }
 0xb0d   : > { %v3337_v27 = vmul.f32 1.442695, %v3310_v36  ;;  %6584 = vmatmul.msk.bf16.vlgmr.msra.gmra.mxu0 %vm611_vm1, %v3041_v31  ;;  %v2997_v4 = vsel %vm611_vm1, %v9129_v45, 0.0 }
 0xb0e   : > { %6600 = vmatmul.msk.bf16.vlgmr.msra.gmra.mxu1 %vm611_vm1, %v3427_v11  ;;  %2998 = vadd.xlane.f32.xlu2 %v2997_v4 }
 0xb0f   : > { %7196 = vpow2.f32 %v3337_v27 }
 0xb10   : > { %7198 = vrcp.f32 %v3355_v54 }
 0xb11   : > { %7200 = vrcp.f32 %v2969_v7  ;;  %v3289_v60 = vpop.xlane.xlu2 %3288 }
 0xb12   : > { %v3358_v56 = vpop.xlane.xlu0 %3357  ;;  %v2972_v42 = vpop.xlane.xlu1 %2971  ;;  %v3311_v30 = vsub.f32 %v9013_v32, %v3289_v60 }
 0xb13   : > { %7202 = vrcp.f32 %v3358_v56 }
 0xb14   : > { %7204 = vrcp.f32 %v2972_v42  ;;  %v3339_v37 = vmul.f32 1.442695, %v3311_v30 }
 0xb15   : > { %v9136_v21 = vpop.eup %7196 }
 0xb16   : > { %v7199_v39 = vpop.eup %7198  ;;  %7206 = vpow2.f32 %v3339_v37  ;;  %v3380_v28 = vsel %vm611_vm1, %v9136_v21, 0.0 }
 0xb17   : > { %v7201_v6 = vpop.eup %7200  ;;  %3381 = vadd.xlane.f32.xlu1 %v3380_v28  ;;  %v3413_v16 = vmul.f32 %v7199_v39, %v9004_v13 }
 0xb18   : > { %v3027_v5 = vmul.f32 %v7201_v6, %v9002_v22 }
 0xb19   : > { %v7203_v53 = vpop.eup %7202  ;;  %v2975_v47 = vpop.xlane.xlu2 %2974 }
 0xb1a   : > { %v7205_v12 = vpop.eup %7204  ;;  %v3414_v50 = vmul.f32 %v7203_v53, %v9015_v63  ;;  %v3292_v32 = vpop.xlane.xlu0 %3291 }
 0xb1b   : > { %v3028_v55 = vmul.f32 %v7205_v12, %v9017_v24  ;;  %v2906_v41 = vpop.xlane.xlu1 %2905  ;;  %v3312_v23 = vsub.f32 %v9032_v43, %v3292_v32 }
 0xb1c   : > { %v2926_v35 = vsub.f32 %v9026_v33, %v2906_v41  ;;  %v3428_v54 = vpack.c.bf16 %v3414_v50, %v3413_v16  ;;  %v9146_v7 = vpop.eup %7206 }
 0xb1d   : > { %v3341_v8 = vmul.f32 1.442695, %v3312_v23  ;;  %v3042_v9 = vpack.c.bf16 %v3028_v55, %v3027_v5  ;;  %v3383_v13 = vsel %vm611_vm1, %v9146_v7, 0.0 }
 0xb1e   : > { %v2955_v17 = vmul.f32 1.442695, %v2926_v35  ;;  %6601 = vmatmul.msk.bf16.gmra.mxu1 %vm611_vm1, %v3428_v54 }
 0xb1f   : > { %7208 = vpow2.f32 %v3341_v8  ;;  %6585 = vmatmul.msk.bf16.gmra.mxu0 %vm611_vm1, %v3042_v9  ;;  %3384 = vadd.xlane.f32.xlu1 %v3383_v13 }
 0xb20   : > { %7210 = vpow2.f32 %v2955_v17 }
 0xb21   : > { %7212 = vrcp.f32 %v2975_v47  ;;  %v3364_v22 = vpop.xlane.xlu2 %3363 }
 0xb22   : > { %v2978_v63 = vpop.xlane.xlu0 %2977  ;;  %7214 = vrcp.f32 %v3364_v22 }
 0xb23   : > { %v3361_v24 = vpop.xlane.xlu1 %3360 }
 0xb24   : > { %7216 = vrcp.f32 %v3361_v24 }
 0xb25   : > { %v9152_v33 = vpop.eup %7208  ;;  %7218 = vrcp.f32 %v2978_v63 }
 0xb26   : > { %v9154_v43 = vpop.eup %7210  ;;  %v3386_v31 = vsel %vm611_vm1, %v9152_v33, 0.0 }
 0xb27   : > { %v3000_v36 = vsel %vm611_vm1, %v9154_v43, 0.0  ;;  %3387 = vadd.xlane.f32.xlu2 %v3386_v31  ;;  %v7213_v11 = vpop.eup %7212 }
 0xb28   : > { %3001 = vadd.xlane.f32.xlu0 %v3000_v36  ;;  %v7215_v27 = vpop.eup %7214  ;;  %v3029_v53 = vmul.f32 %v7213_v11, %v9030_v26 }
 0xb29   : > { %v3416_v60 = vmul.f32 %v7215_v27, %v9043_v52  ;;  %v2909_v56 = vpop.xlane.xlu2 %2908 }
 0xb2a   : > { %v7217_v4 = vpop.eup %7216  ;;  %v2912_v42 = vpop.xlane.xlu0 %2911  ;;  %v2927_v39 = vsub.f32 %v9041_v29, %v2909_v56 }
 0xb2b   : > { %v7219_v30 = vpop.eup %7218  ;;  %v3415_v37 = vmul.f32 %v7217_v4, %v9047_v10  ;;  %v2981_v28 = vpop.xlane.xlu1 %2980  ;;  %v2928_v6 = vsub.f32 %v9058_v59, %v2912_v42 }
 0xb2c   : > { %v3030_v12 = vmul.f32 %v7219_v30, %v9045_v19  ;;  %v2957_v16 = vmul.f32 1.442695, %v2927_v39 }
 0xb2d   : > { %v2959_v50 = vmul.f32 1.442695, %v2928_v6  ;;  %v3429_v47 = vpack.c.bf16 %v3416_v60, %v3415_v37 }
 0xb2e   : > { %v3043_v32 = vpack.c.bf16 %v3030_v12, %v3029_v53  ;;  %7220 = vpow2.f32 %v2957_v16 }
 0xb2f   : > { %6602 = vmatmul.msk.bf16.gmra.mxu1 %vm611_vm1, %v3429_v47  ;;  %7222 = vpow2.f32 %v2959_v50  ;;  %v6863_v50 = vld [vmem:[%s10203_s5 + $0x58] sm:$0xff] }
 0xb30   : > { %6586 = vmatmul.msk.bf16.gmra.mxu0 %vm611_vm1, %v3043_v32  ;;  %7224 = vrcp.f32 %v2981_v28  ;;  %3609 = vmatpush.bf16.msrb.mxu2 %v6863_v50 }
 0xb31   : > { %v2984_v52 = vpop.xlane.xlu2 %2983 }
 0xb32   : > { %v3367_v29 = vpop.xlane.xlu0 %3366  ;;  %7226 = vrcp.f32 %v2984_v52 }
 0xb33   : > { %v3370_v10 = vpop.xlane.xlu1 %3369 }
 0xb34   : > { %7228 = vrcp.f32 %v3370_v10  ;;  %v9168_v59 = vpop.eup %7220 }
 0xb35   : > { %7230 = vrcp.f32 %v3367_v29  ;;  %v9170_v26 = vpop.eup %7222  ;;  %v3003_v19 = vsel %vm611_vm1, %v9168_v59, 0.0 }
 0xb36   : > { %v7225_v5 = vpop.eup %7224  ;;  %3004 = vadd.xlane.f32.xlu0 %v3003_v19  ;;  %v3006_v55 = vsel %vm611_vm1, %v9170_v26, 0.0 }
 0xb37   : > { %3007 = vadd.xlane.f32.xlu1 %v3006_v55  ;;  %v3031_v35 = vmul.f32 %v7225_v5, %v9060_v46 }
 0xb38   : > { %v7227_v41 = vpop.eup %7226 }
 0xb39   : > { %v3032_v54 = vmul.f32 %v7227_v41, %v9073_v18  ;;  %v3298_v8 = vpop.xlane.xlu2 %3297 }
 0xb3a   : > { %v7229_v23 = vpop.eup %7228  ;;  %v2987_v9 = vpop.xlane.xlu0 %2986  ;;  %v3314_v22 = vsub.f32 %v9088_v38, %v3298_v8 }
 0xb3b   : > { %v7231_v17 = vpop.eup %7230  ;;  %v3418_v13 = vmul.f32 %v7229_v23, %v9075_v44  ;;  %v3295_v63 = vpop.xlane.xlu1 %3294  ;;  %v3044_v36 = vpack.c.bf16 %v3032_v54, %v3031_v35 }
 0xb3c   : > { %v3417_v24 = vmul.f32 %v7231_v17, %v9071_v14  ;;  %v3313_v31 = vsub.f32 %v9069_v58, %v3295_v63  ;;  %v3345_v11 = vmul.f32 1.442695, %v3314_v22 }
 0xb3e   : > { %v3343_v27 = vmul.f32 1.442695, %v3313_v31  ;;  %v3430_v4 = vpack.c.bf16 %v3418_v13, %v3417_v24  ;;  %7232 = vpow2.f32 %v3345_v11 }
 0xb40   : > { %7234 = vpow2.f32 %v3343_v27  ;;  %6587 = vmatmul.msk.bf16.gmra.mxu0 %vm611_vm1, %v3044_v36  ;;  %6603 = vmatmul.msk.bf16.gmra.mxu1 %vm611_vm1, %v3430_v4 }
 0xb41   : > { %7236 = vrcp.f32 %v2987_v9  ;;  %v3373_v46 = vpop.xlane.xlu2 %3372 }
 0xb42   : > { %v3376_v18 = vpop.xlane.xlu0 %3375  ;;  %7238 = vrcp.f32 %v3373_v46 }
 0xb43   : > { %v2990_v44 = vpop.xlane.xlu1 %2989 }
 0xb44   : > { %7240 = vrcp.f32 %v2990_v44  ;;  %v9184_v38 = vpop.eup %7232 }
 0xb45   : > { %7242 = vrcp.f32 %v3376_v18  ;;  %v3392_v14 = vsel %vm611_vm1, %v9184_v38, 0.0 }
 0xb46   : > { %v9186_v58 = vpop.eup %7234  ;;  %3393 = vadd.xlane.f32.xlu0 %v3392_v14 }
 0xb47   : > { %v3389_v60 = vsel %vm611_vm1, %v9186_v58, 0.0  ;;  %v7237_v56 = vpop.eup %7236 }
 0xb48   : > { %3390 = vadd.xlane.f32.xlu2 %v3389_v60  ;;  %v7239_v42 = vpop.eup %7238  ;;  %v3033_v28 = vmul.f32 %v7237_v56, %v9086_v51  ;;  %v6861_v51 = vld [vmem:[%s10203_s5 + $0x48] sm:$0xff] }
 0xb49   : > { %v3419_v37 = vmul.f32 %v7239_v42, %v9096_v0  ;;  %v6862_v0 = vld [vmem:[%s10203_s5 + $0x50] sm:$0xff] }
 0xb4a   : > { %v7241_v30 = vpop.eup %7240  ;;  %3610 = vmatpush.bf16.msrb.mxu2 %v6862_v0 }
 0xb4b   : > { %v7243_v39 = vpop.eup %7242  ;;  %v3034_v6 = vmul.f32 %v7241_v30, %v9100_v57  ;;  %v6860_v57 = vld [vmem:[%s10203_s5 + $0x40] sm:$0xff] }
 0xb4c   : > { %v3420_v53 = vmul.f32 %v7243_v39, %v9098_v49 }
 0xb4d   : > { %v3045_v12 = vpack.c.bf16 %v3034_v6, %v3033_v28 }
 0xb4e   : > { %v3431_v16 = vpack.c.bf16 %v3420_v53, %v3419_v37  ;;  %3611 = vmatpush.bf16.msrb.mxu2 %v6861_v51 }
 0xb50   : > { %6588 = vmatmul.msk.bf16.gmra.mxu0 %vm611_vm1, %v3045_v12  ;;  %6604 = vmatmul.msk.bf16.gmra.mxu1 %vm611_vm1, %v3431_v16 }
 0xb52   : > { %3612 = vmatpush.bf16.msrb.mxu2 %v6860_v57 }
 0xb71   : > { %v2993_v49 = vpop.xlane.xlu1 %2992 }
 0xb72   : > { %7244 = vrcp.f32 %v2993_v49  ;;  %v3379_v5 = vpop.xlane.xlu0 %3378 }
 0xb78   : > { %v7245_v32 = vpop.eup %7244 }
 0xb79   : > { %v2996_v47 = vpop.xlane.xlu2 %2995  ;;  %v3035_v29 = vmul.f32 %v7245_v32, %v9111_v15 }
 0xb7a   : > { %7246 = vrcp.f32 %v2996_v47 }
 0xb7b   : > { %7248 = vrcp.f32 %v3379_v5 }
 0xb80   : > { %v7247_v52 = vpop.eup %7246 }
 0xb81   : > { %v3036_v10 = vmul.f32 %v7247_v52, %v9120_v48  ;;  %v7249_v35 = vpop.eup %7248  ;;  %v2999_v8 = vpop.xlane.xlu2 %2998 }
 0xb82   : > { %v3421_v9 = vmul.f32 %v7249_v35, %v9113_v20 }
 0xb83   : > { %v3046_v19 = vpack.c.bf16 %v3036_v10, %v3035_v29 }
 0xb85   : > { %6589 = vmatmul.msk.bf16.gmra.mxu0 %vm611_vm1, %v3046_v19 }
 0xb8a   : > { %v3382_v55 = vpop.xlane.xlu1 %3381  ;;  %v3082_v41 = vpop.f32.mrf.mxu0 }
 0xb8b   : > { %7250 = vrcp.f32 %v3382_v55  ;;  %v3468_v23 = vpop.f32.mrf.mxu1  ;;  %v3122_v15 = vmul.f32 %v3082_v41, %v8065_v40 }
 0xb8c   : > { %v3508_v48 = vmul.f32 %v3468_v23, %v8069_v25 }
 0xb8e   : > { %v3524_v11 = vadd.f32 %v3508_v48, %v3122_v15 }
 0xb91   : > { %v7251_v54 = vpop.eup %7250 }
 0xb92   : > { %v3422_v17 = vmul.f32 %v7251_v54, %v9136_v21  ;;  %v3084_v13 = vpop.f32.mrf.mxu0  ;;  %v3385_v36 = vpop.xlane.xlu1 %3384 }
 0xb93   : > { %v3123_v22 = vmul.f32 %v3084_v13, %v8065_v40  ;;  %v3470_v63 = vpop.f32.mrf.mxu1  ;;  %7252 = vrcp.f32 %v3385_v36 }
 0xb94   : > { %v3509_v24 = vmul.f32 %v3470_v63, %v8069_v25  ;;  %v3432_v31 = vpack.c.bf16 %v3422_v17, %v3421_v9  ;;  %7254 = vrcp.f32 %v2999_v8 }
 0xb96   : > { %v3525_v27 = vadd.f32 %v3509_v24, %v3123_v22  ;;  %6605 = vmatmul.msk.bf16.gmra.mxu1 %vm611_vm1, %v3432_v31 }
 0xb98   : > { %v3540_v20 = vpack.c.bf16 %v3525_v27, %v3524_v11 }
 0xb99   : > { %v7253_v44 = vpop.eup %7252 }
 0xb9a   : > { %v3388_v21 = vpop.xlane.xlu2 %3387  ;;  %6632 = vmatmul.msk.bf16.vlgmr.msrb.gmra.mxu2 %vm611_vm1, %v3540_v20  ;;  %v7255_v14 = vpop.eup %7254  ;;  %v3423_v42 = vmul.f32 %v7253_v44, %v9146_v7 }
 0xb9b   : > { %7256 = vrcp.f32 %v3388_v21  ;;  %v3002_v4 = vpop.xlane.xlu0 %3001  ;;  %v3473_v18 = vpop.f32.mrf.mxu1  ;;  %v3037_v37 = vmul.f32 %v7255_v14, %v9129_v45 }
 0xb9c   : > { %7258 = vrcp.f32 %v3002_v4  ;;  %v3087_v46 = vpop.f32.mrf.mxu0  ;;  %v3510_v6 = vmul.f32 %v3473_v18, %v8069_v25 }
 0xb9d   : > { %v3124_v28 = vmul.f32 %v3087_v46, %v8065_v40 }
 0xb9f   : > { %v3526_v49 = vadd.f32 %v3510_v6, %v3124_v28 }
 0xba1   : > { %v7257_v60 = vpop.eup %7256 }
 0xba2   : > { %v7259_v56 = vpop.eup %7258  ;;  %v3424_v30 = vmul.f32 %v7257_v60, %v9152_v33 }
 0xba3   : > { %v3038_v39 = vmul.f32 %v7259_v56, %v9154_v43  ;;  %v3475_v12 = vpop.f32.mrf.mxu1 }
 0xba4   : > { %v3089_v53 = vpop.f32.mrf.mxu0  ;;  %v3433_v16 = vpack.c.bf16 %v3424_v30, %v3423_v42  ;;  %v3511_v0 = vmul.f32 %v3475_v12, %v8069_v25 }
 0xba5   : > { %v3125_v50 = vmul.f32 %v3089_v53, %v8065_v40  ;;  %v3047_v51 = vpack.c.bf16 %v3038_v39, %v3037_v37 }
 0xba6   : > { %6606 = vmatmul.msk.bf16.gmra.mxu1 %vm611_vm1, %v3433_v16 }
 0xba7   : > { %v3527_v7 = vadd.f32 %v3511_v0, %v3125_v50  ;;  %6590 = vmatmul.msk.bf16.gmra.mxu0 %vm611_vm1, %v3047_v51 }
 0xba9   : > { %v3541_v45 = vpack.c.bf16 %v3527_v7, %v3526_v49  ;;  %v3005_v33 = vpop.xlane.xlu0 %3004 }
 0xbaa   : > { %v3008_v43 = vpop.xlane.xlu1 %3007  ;;  %7260 = vrcp.f32 %v3005_v33 }
 0xbab   : > { %6633 = vmatmul.msk.bf16.gmra.mxu2 %vm611_vm1, %v3541_v45  ;;  %7262 = vrcp.f32 %v3008_v43 }
 0xbac   : > { %v3478_v57 = vpop.f32.mrf.mxu1 }
 0xbad   : > { %v3092_v47 = vpop.f32.mrf.mxu0  ;;  %v3512_v5 = vmul.f32 %v3478_v57, %v8069_v25 }
 0xbae   : > { %v3126_v19 = vmul.f32 %v3092_v47, %v8065_v40 }
 0xbb0   : > { %v7261_v32 = vpop.eup %7260  ;;  %v3528_v8 = vadd.f32 %v3512_v5, %v3126_v19 }
 0xbb1   : > { %v7263_v52 = vpop.eup %7262  ;;  %v3039_v29 = vmul.f32 %v7261_v32, %v9168_v59 }
 0xbb2   : > { %v3040_v10 = vmul.f32 %v7263_v52, %v9170_v26 }
 0xbb4   : > { %v3480_v55 = vpop.f32.mrf.mxu1  ;;  %v3048_v35 = vpack.c.bf16 %v3040_v10, %v3039_v29 }
 0xbb5   : > { %v3094_v41 = vpop.f32.mrf.mxu0  ;;  %v3513_v23 = vmul.f32 %v3480_v55, %v8069_v25 }
 0xbb6   : > { %v3127_v54 = vmul.f32 %v3094_v41, %v8065_v40 }
 0xbb7   : > { %6591 = vmatmul.msk.bf16.gmra.mxu0 %vm611_vm1, %v3048_v35 }
 0xbb8   : > { %v3529_v9 = vadd.f32 %v3513_v23, %v3127_v54 }
 0xbb9   : > { %v3394_v15 = vpop.xlane.xlu0 %3393 }
 0xbba   : > { %v3542_v17 = vpack.c.bf16 %v3529_v9, %v3528_v8  ;;  %7264 = vrcp.f32 %v3394_v15 }
 0xbbb   : > { %v3391_v59 = vpop.xlane.xlu2 %3390 }
 0xbbc   : > { %7266 = vrcp.f32 %v3391_v59  ;;  %6634 = vmatmul.msk.bf16.gmra.mxu2 %vm611_vm1, %v3542_v17 }
 0xbbd   : > { %v3097_v26 = vpop.f32.mrf.mxu0  ;;  %v3483_v48 = vpop.f32.mrf.mxu1 }
 0xbbe   : > { %v3128_v31 = vmul.f32 %v3097_v26, %v8065_v40  ;;  %v3514_v36 = vmul.f32 %v3483_v48, %v8069_v25 }
 0xbc0   : > { %v7265_v13 = vpop.eup %7264  ;;  %v3530_v46 = vadd.f32 %v3514_v36, %v3128_v31 }
 0xbc1   : > { %v3426_v63 = vmul.f32 %v7265_v13, %v9184_v38 }
 0xbc2   : > { %v7267_v22 = vpop.eup %7266 }
 0xbc3   : > { %v3425_v24 = vmul.f32 %v7267_v22, %v9186_v58 }
 0xbc5   : > { %v3099_v11 = vpop.f32.mrf.mxu0  ;;  %v3485_v27 = vpop.f32.mrf.mxu1  ;;  %v3434_v20 = vpack.c.bf16 %v3426_v63, %v3425_v24 }
 0xbc6   : > { %v3129_v21 = vmul.f32 %v3099_v11, %v8065_v40  ;;  %v3515_v4 = vmul.f32 %v3485_v27, %v8069_v25 }
 0xbc7   : > { %6607 = vmatmul.msk.bf16.gmra.mxu1 %vm611_vm1, %v3434_v20 }
 0xbc8   : > { %v3531_v18 = vadd.f32 %v3515_v4, %v3129_v21 }
 0xbca   : > { %v3543_v44 = vpack.c.bf16 %v3531_v18, %v3530_v46 }
 0xbcc   : > { %6635 = vmatmul.msk.bf16.gmra.mxu2 %vm611_vm1, %v3543_v44 }
 0xbcd   : > { %v3102_v38 = vpop.f32.mrf.mxu0  ;;  %v3488_v58 = vpop.f32.mrf.mxu1 }
 0xbce   : > { %v3130_v14 = vmul.f32 %v3102_v38, %v8065_v40  ;;  %v3516_v60 = vmul.f32 %v3488_v58, %v8069_v25 }
 0xbd0   : > { %v3532_v39 = vadd.f32 %v3516_v60, %v3130_v14  ;;  %v9271_v60 = vshrl.u32 %v373_v61, 7 }
 0xbd5   : > { %v3104_v56 = vpop.f32.mrf.mxu0  ;;  %v3490_v42 = vpop.f32.mrf.mxu1 }
 0xbd6   : > { %v3131_v30 = vmul.f32 %v3104_v56, %v8065_v40  ;;  %v3517_v37 = vmul.f32 %v3490_v42, %v8069_v25  ;;  %v3656_v56 = vadd.s32 8, %v9271_v60  ;;  %v3663_v42 = vmul.u32 2, %v9271_v60 }
 0xbd8   : > { %v3533_v28 = vadd.f32 %v3517_v37, %v3131_v30  ;;  %v3664_v30 = vmul.u32 2, %v3656_v56  ;;  %v3679_v37 = vadd.s32 1, %v3663_v42  ;;  %vm3671_vm15 = vcmp.eq.s32.totalorder %v7624_v62, %v3663_v42 }
 0xbda   : > { %v3544_v6 = vpack.c.bf16 %v3533_v28, %v3532_v39  ;;  %v3680_v39 = vadd.s32 1, %v3664_v30  ;;  %vm3672_vm2 = vcmp.eq.s32.totalorder %v7624_v62, %v3664_v30  ;;  %vm3687_vm3 = vcmp.eq.s32.totalorder %v7624_v62, %v3679_v37 }
 0xbdb   : > { %vm9281_vm5 = vmor %vm3671_vm15, %vm3687_vm3 }
 0xbdc   : > { %6636 = vmatmul.msk.bf16.gmra.mxu2 %vm611_vm1, %v3544_v6  ;;  %vm3688_vm4 = vcmp.eq.s32.totalorder %v7624_v62, %v3680_v39 }
 0xbdd   : > { %vm9285_vm6 = vmor %vm3672_vm2, %vm3688_vm4 }
 0xbde   : > { %vm6640_vm13 = vmpackc.low %vm9285_vm6, %vm9281_vm5 }
 0xc02   : > { %v3107_v53 = vpop.f32.mrf.mxu0 }
 0xc03   : > { %v3132_v51 = vmul.f32 %v3107_v53, %v8065_v40 }
 0xc0a   : > { %v3109_v16 = vpop.f32.mrf.mxu0 }
 0xc0b   : > { %v3133_v49 = vmul.f32 %v3109_v16, %v8065_v40  ;;  %v3657_v16 = vadd.s32 16, %v9271_v60 }
 0xc13   : > { %v3493_v12 = vpop.f32.mrf.mxu1 }
 0xc14   : > { %v3518_v50 = vmul.f32 %v3493_v12, %v8069_v25  ;;  %v9292_v12 = vsel %vm9281_vm5, 0.5, %v7500_v1 }
 0xc16   : > { %v3534_v45 = vadd.f32 %v3518_v50, %v3132_v51  ;;  %v3658_v50 = vadd.s32 24, %v9271_v60 }
 0xc1b   : > { %v3495_v0 = vpop.f32.mrf.mxu1 }
 0xc1c   : > { %v3519_v7 = vmul.f32 %v3495_v0, %v8069_v25  ;;  %v3704_v0 = vsel %vm9285_vm6, 0.5, %v7500_v1 }
 0xc1d   : > { %v9267_v48 = vpop.f32.mrf.mxu2  ;;  %v9301_v51 = vpack.c.bf16 %v3704_v0, %v9292_v12 }
 0xc1e   : > { %v3535_v33 = vadd.f32 %v3519_v7, %v3133_v49  ;;  %v3665_v49 = vmul.u32 2, %v3657_v16  ;;  %v3666_v7 = vmul.u32 2, %v3658_v50 }
 0xc20   : > { %v3545_v43 = vpack.c.bf16 %v3535_v33, %v3534_v45  ;;  %vm3673_vm7 = vcmp.eq.s32.totalorder %v7624_v62, %v3665_v49  ;;  %v3681_v33 = vadd.s32 1, %v3665_v49  ;;  %vm3674_vm8 = vcmp.eq.s32.totalorder %v7624_v62, %v3666_v7 }
 0xc22   : > { %6637 = vmatmul.msk.bf16.gmra.mxu2 %vm611_vm1, %v3545_v43  ;;  %v3682_v43 = vadd.s32 1, %v3666_v7  ;;  %vm3689_vm9 = vcmp.eq.s32.totalorder %v7624_v62, %v3681_v33 }
 0xc23   : > { %v3498_v47 = vpop.f32.mrf.mxu1  ;;  %vm9312_vm11 = vmor %vm3673_vm7, %vm3689_vm9 }
 0xc24   : > { %v3112_v57 = vpop.f32.mrf.mxu0  ;;  %v3520_v52 = vmul.f32 %v3498_v47, %v8069_v25  ;;  %vm3690_vm10 = vcmp.eq.s32.totalorder %v7624_v62, %v3682_v43 }
 0xc25   : > { %v3134_v32 = vmul.f32 %v3112_v57, %v8065_v40  ;;  %v3616_v24 = vpop.f32.mrf.mxu2  ;;  %vm9316_vm12 = vmor %vm3674_vm8, %vm3690_vm10 }
 0xc26   : > { %vm6642_vm14 = vmpackc.low %vm9316_vm12, %vm9312_vm11 }
 0xc27   : > { %v3536_v55 = vadd.f32 %v3520_v52, %v3134_v32  ;;  %v9323_v52 = vsel %vm9312_vm11, 0.5, %v7500_v1 }
 0xc2b   : > { %v3500_v10 = vpop.f32.mrf.mxu1 }
 0xc2c   : > { %v3114_v29 = vpop.f32.mrf.mxu0  ;;  %v3521_v5 = vmul.f32 %v3500_v10, %v8069_v25 }
 0xc2d   : > { %v3135_v19 = vmul.f32 %v3114_v29, %v8065_v40  ;;  %v9329_v29 = vsel %vm9316_vm12, 0.5, %v7500_v1  ;;  %v7502_v1 = vmov 0.5|0.5  }
 0xc2e   : > { %v3619_v31 = vpop.f32.mrf.mxu2  ;;  %v3712_v10 = vpack.c.bf16 %v9329_v29, %v9323_v52 }
 0xc2f   : > { %v3537_v41 = vadd.f32 %v3521_v5, %v3135_v19 }
 0xc31   : > { %v3546_v23 = vpack.c.bf16 %v3537_v41, %v3536_v55 }
 0xc33   : > { %6638 = vmatmul.msk.bf16.gmra.mxu2 %vm611_vm1, %v3546_v23  ;;  %v3715_v23 = vpack.c.bf16 %v3616_v24, %v9267_v48  ;;  %v3661_v48 = vadd.s32 48, %v9271_v60 }
 0xc34   : > { %v3117_v35 = vpop.f32.mrf.mxu0 }
 0xc35   : > { %v3136_v15 = vmul.f32 %v3117_v35, %v8065_v40  ;;  %v3659_v35 = vadd.s32 32, %v9271_v60 }
 0xc36   : > { %v3621_v36 = vpop.f32.mrf.mxu2 }
 0xc37   : > { %v3716_v41 = vpack.c.bf16 %v3621_v36, %v3619_v31  ;;  %v9372_v36 = vld [vmem:[%s10201_s3 + $0x38] sm:$0xff] }
 0xc38   : > { %3791 = vmatpush.bf16.msrb.mxu3 %v9372_v36 }
 0xc3c   : > { %v3119_v8 = vpop.f32.mrf.mxu0 }
 0xc3d   : > { %v3137_v59 = vmul.f32 %v3119_v8, %v8065_v40  ;;  %v3667_v8 = vmul.u32 2, %v3659_v35 }
 0xc3f   : > { %v3624_v11 = vpop.f32.mrf.mxu2  ;;  %vm3675_vm15 = vcmp.eq.s32.totalorder %v7624_v62, %v3667_v8 }
 0xc44   : > { %v3503_v54 = vpop.f32.mrf.mxu1 }
 0xc45   : > { %v3522_v9 = vmul.f32 %v3503_v54, %v8069_v25  ;;  %v3660_v54 = vadd.s32 40, %v9271_v60 }
 0xc47   : > { %v3538_v13 = vadd.f32 %v3522_v9, %v3136_v15  ;;  %v3626_v27 = vpop.f32.mrf.mxu2  ;;  %v3668_v9 = vmul.u32 2, %v3660_v54  ;;  %v3683_v15 = vadd.s32 1, %v3667_v8 }
 0xc48   : > { %v3717_v55 = vpack.c.bf16 %v3626_v27, %v3624_v11 }
 0xc49   : > { %vm3691_vm2 = vcmp.eq.s32.totalorder %v7624_v62, %v3683_v15  ;;  %vm3676_vm3 = vcmp.eq.s32.totalorder %v7624_v62, %v3668_v9 }
 0xc4a   : > { %vm3699_vm5 = vmor %vm3675_vm15, %vm3691_vm2 }
 0xc4c   : > { %v3505_v17 = vpop.f32.mrf.mxu1 }
 0xc4d   : > { %v3523_v26 = vmul.f32 %v3505_v17, %v8069_v25  ;;  %v9347_v17 = vld [vmem:[%s10202_s4 + $0x38] sm:$0xff] }
 0xc4f   : > { %v3539_v22 = vadd.f32 %v3523_v26, %v3137_v59  ;;  %v3629_v20 = vpop.f32.mrf.mxu2  ;;  %v9353_v59 = vld [vmem:[%s10202_s4 + $0x30] sm:$0xff]  ;;  %v3684_v26 = vadd.s32 1, %v3668_v9 }
 0xc51   : > { %v3547_v63 = vpack.c.bf16 %v3539_v22, %v3538_v13  ;;  %vm3692_vm4 = vcmp.eq.s32.totalorder %v7624_v62, %v3684_v26  ;;  %v3662_v13 = vadd.s32 56, %v9271_v60  ;;  %v3669_v22 = vmul.u32 2, %v3661_v48 }
 0xc52   : > { %vm3700_vm6 = vmor %vm3676_vm3, %vm3692_vm4 }
 0xc53   : > { %6639 = vmatmul.msk.bf16.gmra.mxu2 %vm611_vm1, %v3547_v63  ;;  %vm6644_vm7 = vmpackc.low %vm3700_vm6, %vm3699_vm5  ;;  %v3670_v63 = vmul.u32 2, %v3662_v13  ;;  %v3685_v24 = vadd.s32 1, %v3669_v22  ;;  %vm3677_vm8 = vcmp.eq.s32.totalorder %v7624_v62, %v3669_v22 }
 0xc55   : > { %v3686_v31 = vadd.s32 1, %v3670_v63  ;;  %vm3693_vm9 = vcmp.eq.s32.totalorder %v7624_v62, %v3685_v24  ;;  %vm3678_vm10 = vcmp.eq.s32.totalorder %v7624_v62, %v3670_v63 }
 0xc56   : > { %vm3701_vm12 = vmor %vm3677_vm8, %vm3693_vm9 }
 0xc57   : > { %v3631_v21 = vpop.f32.mrf.mxu2  ;;  %vm3694_vm11 = vcmp.eq.s32.totalorder %v7624_v62, %v3686_v31  ;;  %v9379_v62 = vld [vmem:[%s10201_s3 + $0x30] sm:$0xff] }
 0xc58   : > { %v3718_v5 = vpack.c.bf16 %v3631_v21, %v3629_v20  ;;  %3792 = vmatpush.bf16.msrb.mxu3 %v9379_v62 }
 0xc5f   : > { %v3634_v4 = vpop.f32.mrf.mxu2 }
 0xc67   : > { %v3636_v46 = vpop.f32.mrf.mxu2 }
 0xc68   : > { %v3719_v19 = vpack.c.bf16 %v3636_v46, %v3634_v4 }
 0xca5   : > { %v3639_v18 = vpop.f32.mrf.mxu2 }
 0xcad   : > { %v3641_v44 = vpop.f32.mrf.mxu2 }
 0xcae   : > { %v9310_v57 = vpack.c.bf16 %v3641_v44, %v3639_v18 }
 0xcb6   : > { %v3644_v38 = vpop.f32.mrf.mxu2 }
 0xcbe   : > { %v3646_v58 = vpop.f32.mrf.mxu2 }
 0xcbf   : > { %v9303_v45 = vpack.c.bf16 %v3646_v58, %v3644_v38 }
 0xcd6   : > { %v3649_v14 = vpop.f32.mrf.mxu2 }
 0xcde   : > { %v3651_v28 = vpop.f32.mrf.mxu2 }
 0xcdf   : > { %v9279_v6 = vpack.c.bf16 %v3651_v28, %v3649_v14 }
 0xce1   : > { %3723 = vmatpush.bf16.msrb.mxu0 %v9279_v6 }
 0xce5   : > { %3724 = vmatpush.bf16.msrb.mxu0 %v9303_v45 }
 0xce9   : > { %3725 = vmatpush.bf16.msrb.mxu0 %v9310_v57 }
 0xced   : > { %3726 = vmatpush.bf16.msrb.mxu0 %v3719_v19 }
 0xcf1   : > { %3727 = vmatpush.bf16.msrb.mxu0 %v3718_v5 }
 0xcf5   : > { %3728 = vmatpush.bf16.msrb.mxu0 %v3717_v55 }
 0xcf9   : > { %3729 = vmatpush.bf16.msrb.mxu0 %v3716_v41 }
 0xcfd   : > { %3730 = vmatpush.bf16.msrb.mxu0 %v3715_v23 }
 0xd00   : > { %6641 = vmatmul.msk.bf16.vlgmr.msrb.gmra.mxu0 %vm6640_vm13, %v7502_v1  ;;  %vm3702_vm13 = vmor %vm3678_vm10, %vm3694_vm11 }
 0xd01   : > { %3861 = vmatpush.bf16.msra.mxu0 %v9347_v17 }
 0xd05   : > { %3862 = vmatpush.bf16.msra.mxu0 %v9353_v59 }
 0xd09   : > { %4607 = vmatpush.bf16.msrb.mxu0 %v9372_v36 }
 0xd0d   : > { %4608 = vmatpush.bf16.msrb.mxu0 %v9379_v62 }
 0xd10   : > { %6643 = vmatmul.msk.bf16.gmra.mxu0 %vm6642_vm14, %v7502_v1  ;;  %vm6646_vm14 = vmpackc.low %vm3702_vm13, %vm3701_vm12 }
 0xd20   : > { %6645 = vmatmul.msk.bf16.gmra.mxu0 %vm6644_vm7, %v7502_v1 }
 0xd30   : > { %6647 = vmatmul.msk.bf16.gmra.mxu0 %vm6646_vm14, %v7502_v1 }
 0xd40   : > { %6676 = vmatmul.msk.bf16.vlgmr.msra.gmra.mxu0 %vm440_vm0, %v3715_v23 }
 0xd50   : > { %6677 = vmatmul.msk.bf16.gmra.mxu0 %vm440_vm0, %v3716_v41 }
 0xd60   : > { %6678 = vmatmul.msk.bf16.gmra.mxu0 %vm440_vm0, %v3717_v55 }
 0xd70   : > { %6679 = vmatmul.msk.bf16.gmra.mxu0 %vm440_vm0, %v3718_v5 }
 0xd7d   : > { %v9384_v11 = vpop.f32.mrf.mxu0 }
 0xd80   : > { %6680 = vmatmul.msk.bf16.gmra.mxu0 %vm440_vm0, %v3719_v19 }
 0xd85   : > { %v9387_v27 = vpop.f32.mrf.mxu0 }
 0xd86   : > { %v3752_v20 = vpack.c.bf16 %v9387_v27, %v9384_v11 }
 0xd88   : > { %6660 = vmatmul.msk.bf16.vlgmr.msrb.gmra.mxu3 %vm440_vm0, %v3752_v20 }
 0xd8d   : > { %v9392_v21 = vpop.f32.mrf.mxu0 }
 0xd90   : > { %6681 = vmatmul.msk.bf16.gmra.mxu0 %vm440_vm0, %v9310_v57 }
 0xd95   : > { %v9396_v4 = vpop.f32.mrf.mxu0 }
 0xd96   : > { %v3753_v46 = vpack.c.bf16 %v9396_v4, %v9392_v21 }
 0xd98   : > { %6661 = vmatmul.msk.bf16.gmra.mxu3 %vm440_vm0, %v3753_v46 }
 0xd9d   : > { %v9401_v18 = vpop.f32.mrf.mxu0 }
 0xda0   : > { %6682 = vmatmul.msk.bf16.gmra.mxu0 %vm440_vm0, %v9303_v45 }
 0xda5   : > { %v9405_v44 = vpop.f32.mrf.mxu0 }
 0xda6   : > { %v3754_v38 = vpack.c.bf16 %v9405_v44, %v9401_v18 }
 0xda8   : > { %6662 = vmatmul.msk.bf16.gmra.mxu3 %vm440_vm0, %v3754_v38 }
 0xdad   : > { %v9410_v58 = vpop.f32.mrf.mxu0 }
 0xdb0   : > { %6683 = vmatmul.msk.bf16.gmra.mxu0 %vm440_vm0, %v9279_v6 }
 0xdb5   : > { %v9414_v14 = vpop.f32.mrf.mxu0 }
 0xdb6   : > { %v3755_v60 = vpack.c.bf16 %v9414_v14, %v9410_v58 }
 0xdb8   : > { %6663 = vmatmul.msk.bf16.gmra.mxu3 %vm440_vm0, %v3755_v60 }
 0xdbd   : > { %v3864_v56 = vpop.f32.mrf.mxu0 }
 0xdc5   : > { %v3866_v42 = vpop.f32.mrf.mxu0 }
 0xdc6   : > { %v3904_v54 = vpack.c.bf16 %v3866_v42, %v3864_v56 }
 0xdc8   : > { %v3937_v22 = vsel %vm611_vm1, %v3904_v54, 0 }
 0xdcd   : > { %v3869_v30 = vpop.f32.mrf.mxu0 }
 0xdd5   : > { %v3871_v37 = vpop.f32.mrf.mxu0 }
 0xdd6   : > { %v3905_v1 = vpack.c.bf16 %v3871_v37, %v3869_v30 }
 0xdd8   : > { %v3940_v48 = vsel %vm611_vm1, %v3905_v1, 0 }
 0xddd   : > { %v3874_v39 = vpop.f32.mrf.mxu0 }
 0xde5   : > { %v3876_v28 = vpop.f32.mrf.mxu0 }
 0xde6   : > { %v3906_v23 = vpack.c.bf16 %v3876_v28, %v3874_v39 }
 0xde8   : > { %v3943_v15 = vsel %vm611_vm1, %v3906_v23, 0 }
 0xded   : > { %v3879_v61 = vpop.f32.mrf.mxu0 }
 0xdf5   : > { %v3881_v53 = vpop.f32.mrf.mxu0 }
 0xdf6   : > { %v3907_v55 = vpack.c.bf16 %v3881_v53, %v3879_v61 }
 0xdf8   : > { %v3946_v8 = vsel %vm611_vm1, %v3907_v55, 0 }
 0xdfd   : > { %v3884_v16 = vpop.f32.mrf.mxu0 }
 0xe05   : > { %v3886_v50 = vpop.f32.mrf.mxu0 }
 0xe06   : > { %v3908_v5 = vpack.c.bf16 %v3886_v50, %v3884_v16 }
 0xe08   : > { %v3949_v35 = vsel %vm611_vm1, %v3908_v5, 0 }
 0xe0b   : > { %v3794_v9 = vpop.f32.mrf.mxu3 }
 0xe0c   : > { %v3912_v31 = vmul.f32 %v3794_v9, %v7631_v2  ;;  %v4110_v20 = vmul.f32 %v3794_v9, %v7634_v3 }
 0xe0d   : > { %v3889_v0 = vpop.f32.mrf.mxu0 }
 0xe13   : > { %v3796_v26 = vpop.f32.mrf.mxu3 }
 0xe14   : > { %v3913_v63 = vmul.f32 %v3796_v26, %v7631_v2  ;;  %v4111_v24 = vmul.f32 %v3796_v26, %v7634_v3 }
 0xe15   : > { %v3891_v49 = vpop.f32.mrf.mxu0 }
 0xe16   : > { %v3909_v32 = vpack.c.bf16 %v3891_v49, %v3889_v0  ;;  %v3920_v46 = vpack.c.bf16 %v3913_v63, %v3912_v31  ;;  %v4118_v38 = vpack.c.bf16 %v4111_v24, %v4110_v20 }
 0xe18   : > { %v3952_v41 = vsel %vm611_vm1, %v3909_v32, 0 }
 0xe1b   : > { %v3799_v13 = vpop.f32.mrf.mxu3 }
 0xe1c   : > { %v3914_v37 = vmul.f32 %v3799_v13, %v7631_v2  ;;  %v4112_v39 = vmul.f32 %v3799_v13, %v7634_v3 }
 0xe1d   : > { %v3894_v6 = vpop.f32.mrf.mxu0 }
 0xe23   : > { %v3801_v60 = vpop.f32.mrf.mxu3 }
 0xe24   : > { %v3915_v42 = vmul.f32 %v3801_v60, %v7631_v2  ;;  %v4113_v30 = vmul.f32 %v3801_v60, %v7634_v3 }
 0xe25   : > { %v3896_v7 = vpop.f32.mrf.mxu0 }
 0xe26   : > { %v3910_v47 = vpack.c.bf16 %v3896_v7, %v3894_v6  ;;  %v3921_v28 = vpack.c.bf16 %v3915_v42, %v3914_v37  ;;  %v4119_v61 = vpack.c.bf16 %v4113_v30, %v4112_v39 }
 0xe28   : > { %v3955_v19 = vsel %vm611_vm1, %v3910_v47, 0 }
 0xe2b   : > { %v3804_v56 = vpop.f32.mrf.mxu3 }
 0xe2c   : > { %v3916_v0 = vmul.f32 %v3804_v56, %v7631_v2  ;;  %v4114_v49 = vmul.f32 %v3804_v56, %v7634_v3 }
 0xe2d   : > { %v3899_v45 = vpop.f32.mrf.mxu0 }
 0xe33   : > { %v3806_v53 = vpop.f32.mrf.mxu3 }
 0xe34   : > { %v3917_v16 = vmul.f32 %v3806_v53, %v7631_v2  ;;  %v4115_v50 = vmul.f32 %v3806_v53, %v7634_v3 }
 0xe35   : > { %v3901_v33 = vpop.f32.mrf.mxu0 }
 0xe36   : > { %v3911_v43 = vpack.c.bf16 %v3901_v33, %v3899_v45  ;;  %v3922_v7 = vpack.c.bf16 %v3917_v16, %v3916_v0  ;;  %v4120_v45 = vpack.c.bf16 %v4115_v50, %v4114_v49 }
 0xe38   : > { %4065 = vmatpush.bf16.msra.mxu3 %v3911_v43  ;;  %v3958_v57 = vsel %vm611_vm1, %v3911_v43, 0 }
 0xe39   : > { %3960 = vmatpush.bf16.xpose.msrb.mxu1 %v3958_v57  ;;  %4134 = vmatpush.bf16.xpose.msra.mxu2 %v3958_v57 }
 0xe3b   : > { %v3809_v6 = vpop.f32.mrf.mxu3 }
 0xe3c   : > { %4066 = vmatpush.bf16.msra.mxu3 %v3910_v47  ;;  %v3918_v57 = vmul.f32 %v3809_v6, %v7631_v2 }
 0xe40   : > { %4067 = vmatpush.bf16.msra.mxu3 %v3909_v32 }
 0xe41   : > { %3961 = vmatpush.bf16.xpose.msrb.mxu1 %v3955_v19  ;;  %4135 = vmatpush.bf16.xpose.msra.mxu2 %v3955_v19 }
 0xe43   : > { %v3811_v33 = vpop.f32.mrf.mxu3 }
 0xe44   : > { %4068 = vmatpush.bf16.msra.mxu3 %v3908_v5 }
 0xe48   : > { %4069 = vmatpush.bf16.msra.mxu3 %v3907_v55 }
 0xe49   : > { %3962 = vmatpush.bf16.xpose.msrb.mxu1 %v3952_v41  ;;  %4136 = vmatpush.bf16.xpose.msra.mxu2 %v3952_v41 }
 0xe4c   : > { %4070 = vmatpush.bf16.msra.mxu3 %v3906_v23 }
 0xe50   : > { %4071 = vmatpush.bf16.msra.mxu3 %v3905_v1 }
 0xe51   : > { %3963 = vmatpush.bf16.xpose.msrb.mxu1 %v3949_v35  ;;  %4137 = vmatpush.bf16.xpose.msra.mxu2 %v3949_v35 }
 0xe54   : > { %4072 = vmatpush.bf16.msra.mxu3 %v3904_v54 }
 0xe59   : > { %3964 = vmatpush.bf16.xpose.msrb.mxu1 %v3946_v8  ;;  %4138 = vmatpush.bf16.xpose.msra.mxu2 %v3946_v8 }
 0xe61   : > { %3965 = vmatpush.bf16.xpose.msrb.mxu1 %v3943_v15  ;;  %4139 = vmatpush.bf16.xpose.msra.mxu2 %v3943_v15 }
 0xe69   : > { %3966 = vmatpush.bf16.xpose.msrb.mxu1 %v3940_v48  ;;  %4140 = vmatpush.bf16.xpose.msra.mxu2 %v3940_v48 }
 0xe71   : > { %3967 = vmatpush.bf16.xpose.msrb.mxu1 %v3937_v22  ;;  %4141 = vmatpush.bf16.xpose.msra.mxu2 %v3937_v22 }
 0xe78   : > { %6684 = vmatmul.msk.bf16.vlgmr.msrb.gmra.mxu1 %vm611_vm1, %v3920_v46  ;;  %6688 = vmatmul.msk.bf16.vlgmr.msra.gmra.mxu2 %vm611_vm1, %v4118_v38 }
 0xe79   : > { %4239 = vmatpush.bf16.msra.mxu1 %v3911_v43  ;;  %v4117_v43 = vmul.f32 %v3811_v33, %v7634_v3 }
 0xe7d   : > { %4240 = vmatpush.bf16.msra.mxu1 %v3910_v47 }
 0xe81   : > { %4241 = vmatpush.bf16.msra.mxu1 %v3909_v32 }
 0xe85   : > { %4242 = vmatpush.bf16.msra.mxu1 %v3908_v5 }
 0xe88   : > { %6685 = vmatmul.msk.bf16.gmra.mxu1 %vm611_vm1, %v3921_v28  ;;  %6689 = vmatmul.msk.bf16.gmra.mxu2 %vm611_vm1, %v4119_v61 }
 0xe89   : > { %4243 = vmatpush.bf16.msra.mxu1 %v3907_v55 }
 0xe8d   : > { %4244 = vmatpush.bf16.msra.mxu1 %v3906_v23 }
 0xe91   : > { %4245 = vmatpush.bf16.msra.mxu1 %v3905_v1 }
 0xe95   : > { %4246 = vmatpush.bf16.msra.mxu1 %v3904_v54 }
 0xe98   : > { %6686 = vmatmul.msk.bf16.gmra.mxu1 %vm611_vm1, %v3922_v7  ;;  %6690 = vmatmul.msk.bf16.gmra.mxu2 %vm611_vm1, %v4120_v45 }
 0xe99   : > { %4638 = vmatpush.bf16.msrb.mxu1 %v9347_v17  ;;  %v3919_v17 = vmul.f32 %v3811_v33, %v7631_v2 }
 0xe9b   : > { %v3923_v47 = vpack.c.bf16 %v3919_v17, %v3918_v57 }
 0xe9d   : > { %4639 = vmatpush.bf16.msrb.mxu1 %v9353_v59  ;;  %v4116_v59 = vmul.f32 %v3809_v6, %v7634_v3 }
 0xe9f   : > { %v4121_v32 = vpack.c.bf16 %v4117_v43, %v4116_v59 }
 0xea8   : > { %6687 = vmatmul.msk.bf16.gmra.mxu1 %vm611_vm1, %v3923_v47  ;;  %6691 = vmatmul.msk.bf16.gmra.mxu2 %vm611_vm1, %v4121_v32 }
 0xef5   : > { %v3969_v19 = vpop.f32.mrf.mxu1 }
 0xef6   : > { %3989 = vmax.xlane.f32.xlu1 %v3969_v19 }
 0xefb   : > { %v4143_v5 = vpop.f32.mrf.mxu2 }
 0xefc   : > { %4163 = vmax.xlane.f32.xlu0 %v4143_v5 }
 0xefd   : > { %v3971_v55 = vpop.f32.mrf.mxu1 }
 0xefe   : > { %3991 = vmax.xlane.f32.xlu2 %v3971_v55 }
 0xf03   : > { %v4145_v41 = vpop.f32.mrf.mxu2 }
 0xf04   : > { %4165 = vmax.xlane.f32.xlu1 %v4145_v41 }
 0xf05   : > { %v3974_v23 = vpop.f32.mrf.mxu1 }
 0xf06   : > { %3993 = vmax.xlane.f32.xlu2 %v3974_v23 }
 0xf0b   : > { %v4148_v1 = vpop.f32.mrf.mxu2 }
 0xf0c   : > { %4167 = vmax.xlane.f32.xlu1 %v4148_v1 }
 0xf0d   : > { %v3976_v35 = vpop.f32.mrf.mxu1 }
 0xf0e   : > { %3995 = vmax.xlane.f32.xlu0 %v3976_v35 }
 0xf13   : > { %v4150_v54 = vpop.f32.mrf.mxu2 }
 0xf14   : > { %4169 = vmax.xlane.f32.xlu2 %v4150_v54 }
 0xf15   : > { %v9453_v8 = vpop.f32.mrf.mxu1 }
 0xf16   : > { %3997 = vmax.xlane.f32.xlu0 %v9453_v8 }
 0xf1b   : > { %v9456_v9 = vpop.f32.mrf.mxu2 }
 0xf1c   : > { %4171 = vmax.xlane.f32.xlu2 %v9456_v9 }
 0xf1d   : > { %v9459_v15 = vpop.f32.mrf.mxu1 }
 0xf1e   : > { %3999 = vmax.xlane.f32.xlu1 %v9459_v15 }
 0xf23   : > { %v9462_v26 = vpop.f32.mrf.mxu2 }
 0xf24   : > { %4173 = vmax.xlane.f32.xlu0 %v9462_v26 }
 0xf25   : > { %v9465_v48 = vpop.f32.mrf.mxu1 }
 0xf26   : > { %4001 = vmax.xlane.f32.xlu1 %v9465_v48 }
 0xf2b   : > { %v9471_v22 = vpop.f32.mrf.mxu2 }
 0xf2d   : > { %v9468_v13 = vpop.f32.mrf.mxu1 }
 0xf2e   : > { %4003 = vmax.xlane.f32.xlu2 %v9468_v13 }
 0xf33   : > { %v9479_v50 = vpop.f32.mrf.mxu2 }
 0xf36   : > { %4175 = vmax.xlane.f32.xlu2 %v9471_v22 }
 0xf69   : > { %v3990_v63 = vpop.xlane.xlu1 %3989 }
 0xf6a   : > { %v4005_v24 = vsub.f32 %v3969_v19, %v3990_v63 }
 0xf6c   : > { %v4013_v31 = vmul.f32 1.442695, %v4005_v24 }
 0xf6e   : > { %7268 = vpow2.f32 %v4013_v31 }
 0xf6f   : > { %v4164_v46 = vpop.xlane.xlu0 %4163 }
 0xf70   : > { %v4179_v42 = vsub.f32 %v4143_v5, %v4164_v46 }
 0xf71   : > { %v3992_v20 = vpop.xlane.xlu2 %3991 }
 0xf72   : > { %v4006_v38 = vsub.f32 %v3971_v55, %v3992_v20  ;;  %v4187_v39 = vmul.f32 1.442695, %v4179_v42 }
 0xf74   : > { %v9474_v60 = vpop.eup %7268  ;;  %v4015_v56 = vmul.f32 1.442695, %v4006_v38 }
 0xf75   : > { %4029 = vadd.xlane.f32.xlu0 %v9474_v60 }
 0xf76   : > { %7270 = vpow2.f32 %v4015_v56 }
 0xf77   : > { %v4166_v30 = vpop.xlane.xlu1 %4165 }
 0xf78   : > { %v4180_v37 = vsub.f32 %v4145_v41, %v4166_v30 }
 0xf79   : > { %v3994_v28 = vpop.xlane.xlu2 %3993 }
 0xf7a   : > { %v4189_v61 = vmul.f32 1.442695, %v4180_v37  ;;  %v4007_v53 = vsub.f32 %v3974_v23, %v3994_v28 }
 0xf7c   : > { %v9477_v16 = vpop.eup %7270  ;;  %7272 = vpow2.f32 %v4189_v61  ;;  %v4017_v0 = vmul.f32 1.442695, %v4007_v53 }
 0xf7d   : > { %7274 = vpow2.f32 %v4187_v39  ;;  %4177 = vmax.xlane.f32.xlu0 %v9479_v50  ;;  %4031 = vadd.xlane.f32.xlu1 %v9477_v16 }
 0xf7e   : > { %7276 = vpow2.f32 %v4017_v0 }
 0xf7f   : > { %v4168_v49 = vpop.xlane.xlu1 %4167 }
 0xf80   : > { %v4181_v6 = vsub.f32 %v4148_v1, %v4168_v49 }
 0xf81   : > { %v3996_v7 = vpop.xlane.xlu0 %3995 }
 0xf82   : > { %v9483_v45 = vpop.eup %7272  ;;  %v4191_v33 = vmul.f32 1.442695, %v4181_v6  ;;  %v4008_v17 = vsub.f32 %v3976_v35, %v3996_v7 }
 0xf83   : > { %v9485_v43 = vpop.eup %7274  ;;  %4205 = vadd.xlane.f32.xlu2 %v9483_v45 }
 0xf84   : > { %v9488_v57 = vpop.eup %7276  ;;  %7278 = vpow2.f32 %v4191_v33  ;;  %v4019_v59 = vmul.f32 1.442695, %v4008_v17 }
 0xf85   : > { %4033 = vadd.xlane.f32.xlu0 %v9488_v57  ;;  %4203 = vadd.xlane.f32.xlu1 %v9485_v43 }
 0xf86   : > { %7280 = vpow2.f32 %v4019_v59 }
 0xf87   : > { %v4170_v47 = vpop.xlane.xlu2 %4169 }
 0xf88   : > { %v4182_v32 = vsub.f32 %v4150_v54, %v4170_v47 }
 0xf89   : > { %v3998_v19 = vpop.xlane.xlu0 %3997 }
 0xf8a   : > { %v9492_v5 = vpop.eup %7278  ;;  %v4193_v55 = vmul.f32 1.442695, %v4182_v32  ;;  %v4009_v41 = vsub.f32 %v9453_v8, %v3998_v19 }
 0xf8b   : > { %4207 = vadd.xlane.f32.xlu2 %v9492_v5 }
 0xf8c   : > { %v9496_v23 = vpop.eup %7280  ;;  %7282 = vpow2.f32 %v4193_v55  ;;  %v4021_v1 = vmul.f32 1.442695, %v4009_v41 }
 0xf8d   : > { %4035 = vadd.xlane.f32.xlu1 %v9496_v23 }
 0xf8e   : > { %7284 = vpow2.f32 %v4021_v1 }
 0xf8f   : > { %v4172_v35 = vpop.xlane.xlu2 %4171 }
 0xf90   : > { %v4183_v63 = vsub.f32 %v9456_v9, %v4172_v35 }
 0xf91   : > { %v4000_v24 = vpop.xlane.xlu1 %3999 }
 0xf92   : > { %v9500_v54 = vpop.eup %7282  ;;  %v4195_v31 = vmul.f32 1.442695, %v4183_v63  ;;  %v4010_v20 = vsub.f32 %v9459_v15, %v4000_v24 }
 0xf93   : > { %4209 = vadd.xlane.f32.xlu0 %v9500_v54 }
 0xf94   : > { %v9504_v8 = vpop.eup %7284  ;;  %7286 = vpow2.f32 %v4195_v31  ;;  %v4023_v46 = vmul.f32 1.442695, %v4010_v20 }
 0xf95   : > { %4037 = vadd.xlane.f32.xlu1 %v9504_v8 }
 0xf96   : > { %7288 = vpow2.f32 %v4023_v46 }
 0xf97   : > { %v4174_v38 = vpop.xlane.xlu0 %4173 }
 0xf98   : > { %v4184_v56 = vsub.f32 %v9462_v26, %v4174_v38 }
 0xf99   : > { %v4002_v42 = vpop.xlane.xlu1 %4001 }
 0xf9a   : > { %v9508_v9 = vpop.eup %7286  ;;  %v4197_v30 = vmul.f32 1.442695, %v4184_v56  ;;  %v4011_v37 = vsub.f32 %v9465_v48, %v4002_v42 }
 0xf9b   : > { %4211 = vadd.xlane.f32.xlu0 %v9508_v9 }
 0xf9c   : > { %v9512_v15 = vpop.eup %7288  ;;  %7290 = vpow2.f32 %v4197_v30  ;;  %v4025_v39 = vmul.f32 1.442695, %v4011_v37 }
 0xf9d   : > { %4039 = vadd.xlane.f32.xlu2 %v9512_v15 }
 0xf9e   : > { %7292 = vpow2.f32 %v4025_v39 }
 0xfa1   : > { %v4004_v28 = vpop.xlane.xlu2 %4003 }
 0xfa2   : > { %v9515_v61 = vpop.eup %7290  ;;  %v4012_v26 = vsub.f32 %v9468_v13, %v4004_v28 }
 0xfa3   : > { %4213 = vadd.xlane.f32.xlu1 %v9515_v61 }
 0xfa4   : > { %v9519_v53 = vpop.eup %7292  ;;  %v4027_v0 = vmul.f32 1.442695, %v4012_v26 }
 0xfa5   : > { %4041 = vadd.xlane.f32.xlu2 %v9519_v53 }
 0xfa6   : > { %7294 = vpow2.f32 %v4027_v0 }
 0xfa9   : > { %v4176_v48 = vpop.xlane.xlu2 %4175 }
 0xfaa   : > { %v4185_v49 = vsub.f32 %v9471_v22, %v4176_v48 }
 0xfac   : > { %v9523_v6 = vpop.eup %7294  ;;  %v4199_v7 = vmul.f32 1.442695, %v4185_v49 }
 0xfad   : > { %4043 = vadd.xlane.f32.xlu0 %v9523_v6 }
 0xfae   : > { %7296 = vpow2.f32 %v4199_v7 }
 0xfb4   : > { %v9526_v33 = vpop.eup %7296 }
 0xfb5   : > { %4215 = vadd.xlane.f32.xlu1 %v9526_v33 }
 0xfe8   : > { %v4030_v13 = vpop.xlane.xlu0 %4029 }
 0xfe9   : > { %7298 = vrcp.f32 %v4030_v13 }
 0xfef   : > { %v7299_v19 = vpop.eup %7298 }
 0xff0   : > { %v4178_v17 = vpop.xlane.xlu0 %4177  ;;  %v4032_v59 = vpop.xlane.xlu1 %4031  ;;  %v4053_v41 = vmul.f32 %v7299_v19, %v9474_v60 }
 0xff1   : > { %v4186_v47 = vsub.f32 %v9479_v50, %v4178_v17  ;;  %7300 = vrcp.f32 %v4032_v59 }
 0xff3   : > { %v4201_v32 = vmul.f32 1.442695, %v4186_v47 }
 0xff5   : > { %7302 = vpow2.f32 %v4201_v32 }
 0xff6   : > { %v4206_v22 = vpop.xlane.xlu2 %4205 }
 0xff7   : > { %v7301_v55 = vpop.eup %7300  ;;  %7304 = vrcp.f32 %v4206_v22 }
 0xff8   : > { %v4054_v1 = vmul.f32 %v7301_v55, %v9477_v16  ;;  %v4204_v35 = vpop.xlane.xlu1 %4203  ;;  %v4034_v31 = vpop.xlane.xlu0 %4033 }
 0xff9   : > { %7306 = vrcp.f32 %v4204_v35 }
 0xffa   : > { %v4061_v63 = vpack.c.bf16 %v4054_v1, %v4053_v41  ;;  %7308 = vrcp.f32 %v4034_v31  ;;  %v9552_v31 = vld [vmem:[%s10203_s5 + $0x78] sm:$0xff] }
 0xffb   : > { %v9532_v24 = vpop.eup %7302  ;;  %4337 = vmatpush.bf16.msrb.mxu3 %v9552_v31 }
 0xffc   : > { %4073 = vmatmul.bf16.vlgmr.msra.gmra.mxu3 %v4061_v63  ;;  %4217 = vadd.xlane.f32.xlu2 %v9532_v24 }
 0xffd   : > { %v7305_v50 = vpop.eup %7304 }
 0xffe   : > { %v4228_v38 = vmul.f32 %v7305_v50, %v9483_v45  ;;  %v4208_v42 = vpop.xlane.xlu2 %4207 }
 0xfff   : > { %v7307_v20 = vpop.eup %7306 }
0x1000   : > { %v4036_v46 = vpop.xlane.xlu1 %4035  ;;  %v4227_v60 = vmul.f32 %v7307_v20, %v9485_v43  ;;  %v7309_v56 = vpop.eup %7308 }
0x1001   : > { %7310 = vrcp.f32 %v4036_v46  ;;  %v4055_v39 = vmul.f32 %v7309_v56, %v9488_v57 }
0x1002   : > { %v4235_v16 = vpack.c.bf16 %v4228_v38, %v4227_v60 }
0x1004   : > { %4247 = vmatmul.bf16.vlgmr.msra.gmra.mxu1 %v4235_v16 }
0x1005   : > { %5048 = vmatpush.bf16.msra.mxu1 %v9372_v36 }
0x1006   : > { %v4210_v30 = vpop.xlane.xlu0 %4209 }
0x1007   : > { %v7311_v37 = vpop.eup %7310  ;;  %7312 = vrcp.f32 %v4210_v30 }
0x1008   : > { %7314 = vrcp.f32 %v4208_v42  ;;  %v4056_v28 = vmul.f32 %v7311_v37, %v9496_v23  ;;  %v4038_v45 = vpop.xlane.xlu1 %4037 }
0x1009   : > { %5049 = vmatpush.bf16.msra.mxu1 %v9379_v62  ;;  %7316 = vrcp.f32 %v4038_v45 }
0x100a   : > { %v4062_v26 = vpack.c.bf16 %v4056_v28, %v4055_v39 }
0x100c   : > { %4078 = vmatmul.bf16.gmra.mxu3 %v4062_v26 }
0x100d   : > { %v7313_v43 = vpop.eup %7312 }
0x100e   : > { %v7315_v0 = vpop.eup %7314  ;;  %v4230_v48 = vmul.f32 %v7313_v43, %v9500_v54  ;;  %v4212_v17 = vpop.xlane.xlu0 %4211 }
0x100f   : > { %v4229_v36 = vmul.f32 %v7315_v0, %v9492_v5  ;;  %v7317_v13 = vpop.eup %7316 }
0x1010   : > { %v4040_v49 = vpop.xlane.xlu2 %4039  ;;  %v4057_v62 = vmul.f32 %v7317_v13, %v9504_v8 }
0x1011   : > { %7318 = vrcp.f32 %v4040_v49  ;;  %v4236_v7 = vpack.c.bf16 %v4230_v48, %v4229_v36 }
0x1014   : > { %4252 = vmatmul.bf16.gmra.mxu1 %v4236_v7 }
0x1016   : > { %v4214_v57 = vpop.xlane.xlu1 %4213 }
0x1017   : > { %v7319_v23 = vpop.eup %7318  ;;  %7320 = vrcp.f32 %v4214_v57 }
0x1018   : > { %7322 = vrcp.f32 %v4212_v17  ;;  %v4058_v59 = vmul.f32 %v7319_v23, %v9512_v15  ;;  %v4042_v32 = vpop.xlane.xlu2 %4041 }
0x1019   : > { %7324 = vrcp.f32 %v4042_v32 }
0x101a   : > { %v4063_v47 = vpack.c.bf16 %v4058_v59, %v4057_v62 }
0x101c   : > { %4083 = vmatmul.bf16.gmra.mxu3 %v4063_v47 }
0x101d   : > { %v7321_v54 = vpop.eup %7320 }
0x101e   : > { %v7323_v19 = vpop.eup %7322  ;;  %v4232_v5 = vmul.f32 %v7321_v54, %v9515_v61  ;;  %v9564_v61 = vld [vmem:[%s10203_s5 + $0x68] sm:$0xff] }
0x101f   : > { %v4231_v55 = vmul.f32 %v7323_v19, %v9508_v9  ;;  %v7325_v1 = vpop.eup %7324  ;;  %v9558_v9 = vld [vmem:[%s10203_s5 + $0x70] sm:$0xff] }
0x1020   : > { %v4044_v22 = vpop.xlane.xlu0 %4043  ;;  %v4059_v8 = vmul.f32 %v7325_v1, %v9519_v53  ;;  %4338 = vmatpush.bf16.msrb.mxu3 %v9558_v9 }
0x1021   : > { %7326 = vrcp.f32 %v4044_v22  ;;  %v4237_v41 = vpack.c.bf16 %v4232_v5, %v4231_v55 }
0x1024   : > { %4257 = vmatmul.bf16.gmra.mxu1 %v4237_v41  ;;  %4339 = vmatpush.bf16.msrb.mxu3 %v9564_v61 }
0x1027   : > { %v7327_v35 = vpop.eup %7326 }
0x1028   : > { %v4060_v15 = vmul.f32 %v7327_v35, %v9523_v6  ;;  %v4216_v53 = vpop.xlane.xlu1 %4215  ;;  %v9570_v6 = vld [vmem:[%s10203_s5 + $0x60] sm:$0xff] }
0x1029   : > { %7328 = vrcp.f32 %v4216_v53  ;;  %4340 = vmatpush.bf16.msrb.mxu3 %v9570_v6 }
0x102a   : > { %v4064_v63 = vpack.c.bf16 %v4060_v15, %v4059_v8 }
0x102c   : > { %4088 = vmatmul.bf16.gmra.mxu3 %v4064_v63 }
0x102f   : > { %v7329_v20 = vpop.eup %7328 }
0x1030   : > { %v4233_v38 = vmul.f32 %v7329_v20, %v9526_v33 }
0x106f   : > { %v4218_v50 = vpop.xlane.xlu2 %4217 }
0x1070   : > { %7330 = vrcp.f32 %v4218_v50 }
0x1076   : > { %v7331_v46 = vpop.eup %7330 }
0x1077   : > { %v4234_v60 = vmul.f32 %v7331_v46, %v9532_v24 }
0x1079   : > { %v4238_v16 = vpack.c.bf16 %v4234_v60, %v4233_v38 }
0x107b   : > { %4262 = vmatmul.bf16.gmra.mxu1 %v4238_v16 }
0x107f   : > { %v4074_v56 = vpop.f32.mrf.mxu3 }
0x1080   : > { %v4094_v28 = vmul.f32 %v4074_v56, %v8065_v40 }
0x1081   : > { %v4248_v42 = vpop.f32.mrf.mxu1 }
0x1082   : > { %v4268_v37 = vmul.f32 %v4248_v42, %v8069_v25 }
0x1084   : > { %v4276_v43 = vadd.f32 %v4268_v37, %v4094_v28 }
0x1087   : > { %v4076_v30 = vpop.f32.mrf.mxu3 }
0x1088   : > { %v4095_v26 = vmul.f32 %v4076_v30, %v8065_v40 }
0x1089   : > { %v4250_v39 = vpop.f32.mrf.mxu1 }
0x108a   : > { %v4269_v45 = vmul.f32 %v4250_v39, %v8069_v25 }
0x108c   : > { %v4277_v0 = vadd.f32 %v4269_v45, %v4095_v26 }
0x108e   : > { %v4284_v48 = vpack.c.bf16 %v4277_v0, %v4276_v43 }
0x108f   : > { %v4079_v33 = vpop.f32.mrf.mxu3 }
0x1090   : > { %6716 = vmatmul.msk.bf16.vlgmr.msrb.gmra.mxu3 %vm611_vm1, %v4284_v48  ;;  %v4096_v13 = vmul.f32 %v4079_v33, %v8065_v40 }
0x1091   : > { %v4253_v24 = vpop.f32.mrf.mxu1 }
0x1092   : > { %v4270_v36 = vmul.f32 %v4253_v24, %v8069_v25 }
0x1094   : > { %v4278_v23 = vadd.f32 %v4270_v36, %v4096_v13 }
0x1097   : > { %v4081_v49 = vpop.f32.mrf.mxu3 }
0x1098   : > { %v4097_v17 = vmul.f32 %v4081_v49, %v8065_v40 }
0x1099   : > { %v4255_v7 = vpop.f32.mrf.mxu1 }
0x109a   : > { %v4271_v57 = vmul.f32 %v4255_v7, %v8069_v25 }
0x109c   : > { %v4279_v62 = vadd.f32 %v4271_v57, %v4097_v17 }
0x109e   : > { %v4285_v59 = vpack.c.bf16 %v4279_v62, %v4278_v23 }
0x109f   : > { %v4084_v47 = vpop.f32.mrf.mxu3 }
0x10a0   : > { %6717 = vmatmul.msk.bf16.gmra.mxu3 %vm611_vm1, %v4285_v59  ;;  %v4098_v22 = vmul.f32 %v4084_v47, %v8065_v40 }
0x10a1   : > { %v4258_v32 = vpop.f32.mrf.mxu1 }
0x10a2   : > { %v4272_v19 = vmul.f32 %v4258_v32, %v8069_v25 }
0x10a4   : > { %v4280_v1 = vadd.f32 %v4272_v19, %v4098_v22 }
0x10a7   : > { %v4086_v54 = vpop.f32.mrf.mxu3 }
0x10a8   : > { %v4099_v55 = vmul.f32 %v4086_v54, %v8065_v40 }
0x10a9   : > { %v4260_v5 = vpop.f32.mrf.mxu1 }
0x10aa   : > { %v4273_v41 = vmul.f32 %v4260_v5, %v8069_v25 }
0x10ac   : > { %v4281_v35 = vadd.f32 %v4273_v41, %v4099_v55 }
0x10ae   : > { %v4286_v8 = vpack.c.bf16 %v4281_v35, %v4280_v1 }
0x10af   : > { %v4089_v15 = vpop.f32.mrf.mxu3 }
0x10b0   : > { %6718 = vmatmul.msk.bf16.gmra.mxu3 %vm611_vm1, %v4286_v8  ;;  %v4100_v46 = vmul.f32 %v4089_v15, %v8065_v40 }
0x10b7   : > { %v4091_v53 = vpop.f32.mrf.mxu3 }
0x10b8   : > { %v4101_v38 = vmul.f32 %v4091_v53, %v8065_v40 }
0x10f8   : > { %v4263_v63 = vpop.f32.mrf.mxu1 }
0x10f9   : > { %v4274_v50 = vmul.f32 %v4263_v63, %v8069_v25 }
0x10fb   : > { %v4282_v16 = vadd.f32 %v4274_v50, %v4100_v46 }
0x1100   : > { %v4265_v20 = vpop.f32.mrf.mxu1 }
0x1101   : > { %v4275_v60 = vmul.f32 %v4265_v20, %v8069_v25 }
0x1103   : > { %v4283_v56 = vadd.f32 %v4275_v60, %v4101_v38 }
0x1105   : > { %v4287_v42 = vpack.c.bf16 %v4283_v56, %v4282_v16 }
0x1107   : > { %6719 = vmatmul.msk.bf16.gmra.mxu3 %vm611_vm1, %v4287_v42 }
0x1113   : > { %v4342_v30 = vpop.f32.mrf.mxu3 }
0x111b   : > { %v4344_v37 = vpop.f32.mrf.mxu3 }
0x1123   : > { %v4347_v39 = vpop.f32.mrf.mxu3 }
0x1124   : > { %v4348_v23 = vadd.f32 %v4347_v39, %v9392_v21 }
0x112b   : > { %v4349_v28 = vpop.f32.mrf.mxu3 }
0x112c   : > { %v4350_v0 = vadd.f32 %v4349_v28, %v9396_v4  ;;  %v4343_v4 = vadd.f32 %v4342_v30, %v9384_v11 }
0x112e   : > { %v4371_v48 = vsel %vm440_vm0, %v4350_v0, 0.0  ;;  %v4362_v62 = vsel %vm440_vm0, %v4343_v4, 0.0 }
0x1133   : > { %v4352_v26 = vpop.f32.mrf.mxu3 }
0x1134   : > { %v4353_v45 = vadd.f32 %v4352_v26, %v9401_v18 }
0x1136   : > { %v4374_v43 = vsel %vm440_vm0, %v4353_v45, 0.0 }
0x1137   : > { %4375 = vadd.xlane.f32.xlu2 %v4374_v43 }
0x113b   : > { %v4354_v33 = vpop.f32.mrf.mxu3 }
0x113c   : > { %v4355_v7 = vadd.f32 %v4354_v33, %v9405_v44  ;;  %v4345_v44 = vadd.f32 %v4344_v37, %v9387_v27 }
0x113e   : > { %v4377_v57 = vsel %vm440_vm0, %v4355_v7, 0.0 }
0x113f   : > { %4372 = vadd.xlane.f32.xlu2 %v4371_v48 }
0x118a   : > { %v4357_v24 = vpop.f32.mrf.mxu3 }
0x118b   : > { %v4358_v49 = vadd.f32 %v4357_v24, %v9410_v58  ;;  %v4368_v58 = vsel %vm440_vm0, %v4348_v23, 0.0 }
0x118d   : > { %v4380_v36 = vsel %vm440_vm0, %v4358_v49, 0.0 }
0x118e   : > { %4381 = vadd.xlane.f32.xlu0 %v4380_v36 }
0x1192   : > { %v4359_v13 = vpop.f32.mrf.mxu3 }
0x1193   : > { %v4360_v18 = vadd.f32 %v4359_v13, %v9414_v14  ;;  %v4365_v14 = vsel %vm440_vm0, %v4345_v44, 0.0 }
0x1195   : > { %v4383_v17 = vsel %vm440_vm0, %v4360_v18, 0.0 }
0x1196   : > { %4384 = vadd.xlane.f32.xlu1 %v4383_v17  ;;  %4378 = vadd.xlane.f32.xlu0 %v4377_v57 }
0x119e   : > { %4369 = vadd.xlane.f32.xlu1 %v4368_v58  ;;  %4363 = vadd.xlane.f32.xlu0 %v4362_v62 }
0x11a6   : > { %4366 = vadd.xlane.f32.xlu1 %v4365_v14 }
0x11aa   : > { %v4376_v59 = vpop.xlane.xlu2 %4375 }
0x11ab   : > { %v4390_v47 = vmul.f32 %v4376_v59, %v8357_v34 }
0x11ad   : > { %v9612_v32 = vsub.f32 %v4353_v45, %v4390_v47 }
0x11af   : > { %v4406_v11 = vmul.f32 %v9612_v32, %v9612_v32 }
0x11b1   : > { %v4422_v21 = vsel %vm440_vm0, %v4406_v11, 0.0 }
0x11b2   : > { %4423 = vadd.xlane.f32.xlu1 %v4422_v21  ;;  %v4373_v54 = vpop.xlane.xlu2 %4372 }
0x11b3   : > { %v4389_v19 = vmul.f32 %v4373_v54, %v8357_v34 }
0x11b5   : > { %v9618_v5 = vsub.f32 %v4350_v0, %v4389_v19 }
0x11b7   : > { %v4405_v27 = vmul.f32 %v9618_v5, %v9618_v5 }
0x11b9   : > { %v4419_v22 = vsel %vm440_vm0, %v4405_v27, 0.0 }
0x11ba   : > { %4420 = vadd.xlane.f32.xlu1 %v4419_v22 }
0x1201   : > { %v4382_v55 = vpop.xlane.xlu0 %4381 }
0x1202   : > { %v4392_v41 = vmul.f32 %v4382_v55, %v8357_v34 }
0x1204   : > { %v9624_v1 = vsub.f32 %v4358_v49, %v4392_v41 }
0x1206   : > { %v4408_v35 = vmul.f32 %v9624_v1, %v9624_v1 }
0x1208   : > { %v4428_v8 = vsel %vm440_vm0, %v4408_v35, 0.0 }
0x1209   : > { %v4385_v15 = vpop.xlane.xlu1 %4384  ;;  %4429 = vadd.xlane.f32.xlu2 %v4428_v8  ;;  %v4379_v63 = vpop.xlane.xlu0 %4378 }
0x120a   : > { %v4393_v53 = vmul.f32 %v4385_v15, %v8357_v34  ;;  %v4391_v50 = vmul.f32 %v4379_v63, %v8357_v34 }
0x120c   : > { %v9631_v20 = vsub.f32 %v4360_v18, %v4393_v53  ;;  %v9633_v46 = vsub.f32 %v4355_v7, %v4391_v50 }
0x120e   : > { %v4409_v38 = vmul.f32 %v9631_v20, %v9631_v20  ;;  %v4407_v60 = vmul.f32 %v9633_v46, %v9633_v46 }
0x1210   : > { %v4431_v16 = vsel %vm440_vm0, %v4409_v38, 0.0  ;;  %v4425_v56 = vsel %vm440_vm0, %v4407_v60, 0.0 }
0x1211   : > { %v4370_v42 = vpop.xlane.xlu1 %4369  ;;  %4432 = vadd.xlane.f32.xlu0 %v4431_v16  ;;  %4426 = vadd.xlane.f32.xlu2 %v4425_v56  ;;  %v4364_v30 = vpop.xlane.xlu0 %4363 }
0x1212   : > { %v4388_v37 = vmul.f32 %v4370_v42, %v8357_v34  ;;  %v4386_v39 = vmul.f32 %v4364_v30, %v8357_v34 }
0x1214   : > { %v9643_v28 = vsub.f32 %v4348_v23, %v4388_v37  ;;  %v9645_v26 = vsub.f32 %v4343_v4, %v4386_v39 }
0x1216   : > { %v4404_v45 = vmul.f32 %v9643_v28, %v9643_v28  ;;  %v4402_v43 = vmul.f32 %v9645_v26, %v9645_v26 }
0x1218   : > { %v4416_v0 = vsel %vm440_vm0, %v4404_v45, 0.0  ;;  %v4410_v48 = vsel %vm440_vm0, %v4402_v43, 0.0 }
0x1219   : > { %v4367_v33 = vpop.xlane.xlu1 %4366  ;;  %4417 = vadd.xlane.f32.xlu0 %v4416_v0  ;;  %4411 = vadd.xlane.f32.xlu2 %v4410_v48 }
0x121a   : > { %v4387_v24 = vmul.f32 %v4367_v33, %v8357_v34 }
0x121c   : > { %v9654_v49 = vsub.f32 %v4345_v44, %v4387_v24 }
0x121e   : > { %v4403_v36 = vmul.f32 %v9654_v49, %v9654_v49 }
0x1220   : > { %v4413_v7 = vsel %vm440_vm0, %v4403_v36, 0.0 }
0x1221   : > { %4414 = vadd.xlane.f32.xlu0 %v4413_v7 }
0x1225   : > { %v4424_v13 = vpop.xlane.xlu1 %4423 }
0x1226   : > { %v4438_v18 = vmul.f32 %v4424_v13, %v8357_v34 }
0x1228   : > { %v4446_v57 = vadd.f32 1e-05, %v4438_v18 }
0x122a   : > { %7332 = vrsqrt.f32 %v4446_v57  ;;  %vm4496_vm5 = vweird.f32 %v4446_v57 }
0x122d   : > { %v4421_v17 = vpop.xlane.xlu1 %4420 }
0x122e   : > { %v4437_v4 = vmul.f32 %v4421_v17, %v8357_v34 }
0x1230   : > { %v9661_v23 = vadd.f32 1e-05, %v4437_v4  ;;  %v9664_v44 = vpop.eup %7332 }
0x1231   : > { %v4491_v59 = vmul.f32 %v9664_v44, %v4446_v57  ;;  %vm4497_vm2 = vweird.f32 %v9664_v44 }
0x1232   : > { %7334 = vrsqrt.f32 %v9661_v23  ;;  %vm9690_vm6 = vmor %vm4496_vm5, %vm4497_vm2  ;;  %vm4486_vm13 = vweird.f32 %v9661_v23 }
0x1233   : > { %v4492_v27 = vmul.f32 %v9664_v44, %v4491_v59 }
0x1235   : > { %v4493_v15 = vmul.f32 0.5, %v4492_v27 }
0x1237   : > { %v4494_v42 = vsub.f32 1.5, %v4493_v15 }
0x1238   : > { %v9668_v21 = vpop.eup %7334 }
0x1239   : > { %v4481_v35 = vmul.f32 %v9668_v21, %v9661_v23  ;;  %v4495_v36 = vmul.f32 %v9664_v44, %v4494_v42  ;;  %vm4487_vm7 = vweird.f32 %v9668_v21 }
0x123b   : > { %v4482_v53 = vmul.f32 %v9668_v21, %v4481_v35 }
0x123d   : > { %v4483_v0 = vmul.f32 0.5, %v4482_v53 }
0x123f   : > { %v4484_v18 = vsub.f32 1.5, %v4483_v0  ;;  %v9731_v0 = vld [vmem:[%s10205_s7 + $0x3] ss:$0 sm:$0xff] }
0x1241   : > { %v4485_v35 = vmul.f32 %v9668_v21, %v4484_v18 }
0x127c   : > { %v4430_v58 = vpop.xlane.xlu2 %4429 }
0x127d   : > { %v4440_v62 = vmul.f32 %v4430_v58, %v8357_v34 }
0x127f   : > { %v4448_v14 = vadd.f32 1e-05, %v4440_v62 }
0x1281   : > { %7336 = vrsqrt.f32 %v4448_v14  ;;  %vm4516_vm3 = vweird.f32 %v4448_v14 }
0x1284   : > { %v4433_v47 = vpop.xlane.xlu0 %4432  ;;  %v4427_v11 = vpop.xlane.xlu2 %4426 }
0x1285   : > { %v4441_v54 = vmul.f32 %v4433_v47, %v8357_v34  ;;  %v4439_v19 = vmul.f32 %v4427_v11, %v8357_v34 }
0x1287   : > { %v7337_v22 = vpop.eup %7336  ;;  %v4449_v55 = vadd.f32 1e-05, %v4441_v54  ;;  %v9673_v41 = vadd.f32 1e-05, %v4439_v19 }
0x1288   : > { %v4511_v8 = vmul.f32 %v7337_v22, %v4448_v14  ;;  %vm4517_vm15 = vweird.f32 %v7337_v22  ;;  %v4499_v14 = vsel %vm9690_vm6, %v9664_v44, %v4495_v36 }
0x1289   : > { %7338 = vrsqrt.f32 %v4449_v55  ;;  %vm4518_vm4 = vmor %vm4516_vm3, %vm4517_vm15  ;;  %vm4526_vm10 = vweird.f32 %v4449_v55  ;;  %vm4506_vm12 = vweird.f32 %v9673_v41  ;;  %v4534_v53 = vmul.f32 %v4499_v14, %v9612_v32 }
0x128a   : > { %v4512_v63 = vmul.f32 %v7337_v22, %v4511_v8  ;;  %7340 = vrsqrt.f32 %v9673_v41  ;;  %vm9717_vm15 = vmor %vm4486_vm13, %vm4487_vm7 }
0x128b   : > { %v4489_v32 = vsel %vm9717_vm15, %v9668_v21, %v4485_v35 }
0x128c   : > { %v4513_v50 = vmul.f32 0.5, %v4512_v63  ;;  %v4418_v38 = vpop.xlane.xlu0 %4417  ;;  %v4412_v60 = vpop.xlane.xlu2 %4411  ;;  %v4533_v21 = vmul.f32 %v4489_v32, %v9618_v5 }
0x128d   : > { %v4436_v16 = vmul.f32 %v4418_v38, %v8357_v34  ;;  %v4434_v56 = vmul.f32 %v4412_v60, %v8357_v34 }
0x128e   : > { %v4514_v30 = vsub.f32 1.5, %v4513_v50 }
0x128f   : > { %v7339_v37 = vpop.eup %7338  ;;  %v9681_v39 = vadd.f32 1e-05, %v4436_v16  ;;  %v9683_v45 = vadd.f32 1e-05, %v4434_v56 }
0x1290   : > { %v7341_v43 = vpop.eup %7340  ;;  %v4515_v48 = vmul.f32 %v7337_v22, %v4514_v30  ;;  %v4521_v33 = vmul.f32 %v7339_v37, %v4449_v55  ;;  %vm4527_vm8 = vweird.f32 %v7339_v37 }
0x1291   : > { %v4501_v24 = vmul.f32 %v7341_v43, %v9673_v41  ;;  %7342 = vrsqrt.f32 %v9681_v39  ;;  %vm4507_vm9 = vweird.f32 %v7341_v43  ;;  %vm4528_vm11 = vmor %vm4526_vm10, %vm4527_vm8  ;;  %vm4476_vm3 = vweird.f32 %v9681_v39 }
0x1292   : > { %v4522_v7 = vmul.f32 %v7339_v37, %v4521_v33  ;;  %7344 = vrsqrt.f32 %v9683_v45  ;;  %v4519_v17 = vsel %vm4518_vm4, %v7337_v22, %v4515_v48  ;;  %vm4508_vm14 = vmor %vm4506_vm12, %vm4507_vm9  ;;  %vm4456_vm6 = vweird.f32 %v9683_v45 }
0x1293   : > { %v4502_v13 = vmul.f32 %v7341_v43, %v4501_v24  ;;  %v4536_v54 = vmul.f32 %v4519_v17, %v9624_v1  ;;  %v9710_v1 = vld [vmem:[%s10204_s6 + $0x3] ss:$0 sm:$0xff] }
0x1294   : > { %v4523_v4 = vmul.f32 0.5, %v4522_v7  ;;  %v4415_v58 = vpop.xlane.xlu0 %4414 }
0x1295   : > { %v4503_v59 = vmul.f32 0.5, %v4502_v13  ;;  %v4435_v47 = vmul.f32 %v4415_v58, %v8357_v34  ;;  %v4549_v56 = vmul.f32 %v9710_v1, %v4536_v54 }
0x1296   : > { %v4524_v11 = vsub.f32 1.5, %v4523_v4 }
0x1297   : > { %v7343_v57 = vpop.eup %7342  ;;  %v4504_v19 = vsub.f32 1.5, %v4503_v59  ;;  %v9700_v27 = vadd.f32 1e-05, %v4435_v47 }
0x1298   : > { %v7345_v22 = vpop.eup %7344  ;;  %v4525_v8 = vmul.f32 %v7339_v37, %v4524_v11  ;;  %v4471_v15 = vmul.f32 %v7343_v57, %v9681_v39  ;;  %vm4477_vm2 = vweird.f32 %v7343_v57  ;;  %v4546_v39 = vmul.f32 %v9710_v1, %v4533_v21 }
0x1299   : > { %v4505_v44 = vmul.f32 %v7341_v43, %v4504_v19  ;;  %v4451_v63 = vmul.f32 %v7345_v22, %v9683_v45  ;;  %7346 = vrsqrt.f32 %v9700_v27  ;;  %vm4457_vm4 = vweird.f32 %v7345_v22  ;;  %vm4478_vm5 = vmor %vm4476_vm3, %vm4477_vm2 }
0x129a   : > { %v4529_v55 = vsel %vm4528_vm11, %v7339_v37, %v4525_v8  ;;  %v4472_v50 = vmul.f32 %v7343_v57, %v4471_v15  ;;  %vm4458_vm7 = vmor %vm4456_vm6, %vm4457_vm4  ;;  %vm4466_vm9 = vweird.f32 %v9700_v27 }
0x129b   : > { %v4537_v38 = vmul.f32 %v4529_v55, %v9631_v20  ;;  %v4509_v60 = vsel %vm4508_vm14, %v7341_v43, %v4505_v44  ;;  %v4452_v16 = vmul.f32 %v7345_v22, %v4451_v63  ;;  %v4547_v43 = vmul.f32 %v9710_v1, %v4534_v53 }
0x129c   : > { %v4535_v23 = vmul.f32 %v4509_v60, %v9633_v46  ;;  %v4473_v42 = vmul.f32 0.5, %v4472_v50  ;;  %v4562_v46 = vadd.f32 %v9731_v0, %v4549_v56 }
0x129d   : > { %v4453_v30 = vmul.f32 0.5, %v4452_v16  ;;  %v4550_v37 = vmul.f32 %v9710_v1, %v4537_v38  ;;  %v4560_v59 = vadd.f32 %v9731_v0, %v4547_v43 }
0x129e   : > { %v4474_v20 = vsub.f32 1.5, %v4473_v42  ;;  %v4548_v48 = vmul.f32 %v9710_v1, %v4535_v23 }
0x129f   : > { %v7347_v33 = vpop.eup %7346  ;;  %v4454_v24 = vsub.f32 1.5, %v4453_v30  ;;  %v4563_v36 = vadd.f32 %v9731_v0, %v4550_v37 }
0x12a0   : > { %v4475_v7 = vmul.f32 %v7343_v57, %v4474_v20  ;;  %v4461_v13 = vmul.f32 %v7347_v33, %v9700_v27  ;;  %v4561_v4 = vadd.f32 %v9731_v0, %v4548_v48  ;;  %vm4467_vm8 = vweird.f32 %v7347_v33 }
0x12a1   : > { %v4455_v18 = vmul.f32 %v7345_v22, %v4454_v24  ;;  %v4567_v17 = vpack.c.bf16 %v4563_v36, %v4562_v46  ;;  %vm4468_vm10 = vmor %vm4466_vm9, %vm4467_vm8 }
0x12a2   : > { %v4479_v58 = vsel %vm4478_vm5, %v7343_v57, %v4475_v7  ;;  %v4462_v5 = vmul.f32 %v7347_v33, %v4461_v13  ;;  %v4566_v11 = vpack.c.bf16 %v4561_v4, %v4560_v59 }
0x12a3   : > { %v4532_v62 = vmul.f32 %v4479_v58, %v9643_v28  ;;  %4578 = vmatpush.bf16.msrb.mxu2 %v4567_v17  ;;  %v4459_v47 = vsel %vm4458_vm7, %v7345_v22, %v4455_v18  ;;  %v4559_v28 = vadd.f32 %v9731_v0, %v4546_v39 }
0x12a4   : > { %v4463_v14 = vmul.f32 0.5, %v4462_v5  ;;  %v4530_v57 = vmul.f32 %v4459_v47, %v9645_v26 }
0x12a5   : > { %v4545_v54 = vmul.f32 %v9710_v1, %v4532_v62 }
0x12a6   : > { %v4464_v19 = vsub.f32 1.5, %v4463_v14  ;;  %v4543_v44 = vmul.f32 %v9710_v1, %v4530_v57 }
0x12a7   : > { %4579 = vmatpush.bf16.msrb.mxu2 %v4566_v11  ;;  %v4558_v45 = vadd.f32 %v9731_v0, %v4545_v54 }
0x12a8   : > { %v4465_v35 = vmul.f32 %v7347_v33, %v4464_v19  ;;  %v4556_v26 = vadd.f32 %v9731_v0, %v4543_v44 }
0x12a9   : > { %v4565_v8 = vpack.c.bf16 %v4559_v28, %v4558_v45 }
0x12aa   : > { %v4469_v15 = vsel %vm4468_vm10, %v7347_v33, %v4465_v35 }
0x12ab   : > { %v4531_v22 = vmul.f32 %v4469_v15, %v9654_v49  ;;  %4580 = vmatpush.bf16.msrb.mxu2 %v4565_v8 }
0x12ad   : > { %v4544_v63 = vmul.f32 %v9710_v1, %v4531_v22 }
0x12af   : > { %v4557_v53 = vadd.f32 %v9731_v0, %v4544_v63 }
0x12b1   : > { %v4564_v55 = vpack.c.bf16 %v4557_v53, %v4556_v26 }
0x12b3   : > { %4581 = vmatpush.bf16.msrb.mxu2 %v4564_v55  ;;  %6726 = vmatmul.msk.bf16.vlgmr.msrb.gmra.mxu1 %vm440_vm0, %v4564_v55 }
0x12b6   : > { %6722 = vmatmul.msk.bf16.vlgmr.msrb.gmra.mxu2 %vm611_vm1, %v9301_v51 }
0x12c3   : > { %6727 = vmatmul.msk.bf16.gmra.mxu1 %vm440_vm0, %v4565_v8 }
0x12c6   : > { %6723 = vmatmul.msk.bf16.gmra.mxu2 %vm611_vm1, %v3712_v10 }
0x12d3   : > { %6728 = vmatmul.msk.bf16.gmra.mxu1 %vm440_vm0, %v4566_v11 }
0x12e3   : > { %6729 = vmatmul.msk.bf16.gmra.mxu1 %vm440_vm0, %v4567_v17 }
0x1330   : > { %v4641_v49 = vpop.f32.mrf.mxu1 }
0x1338   : > { %v4643_v27 = vpop.f32.mrf.mxu1 }
0x1339   : > { %v9765_v50 = vpop.f32.mrf.mxu2  ;;  %v4661_v33 = vpack.c.bf16 %v4643_v27, %v4641_v49 }
0x133b   : > { %v4678_v24 = vsel %vm611_vm1, %v4661_v33, 0 }
0x1340   : > { %v4646_v41 = vpop.f32.mrf.mxu1 }
0x1341   : > { %v9767_v38 = vpop.f32.mrf.mxu2 }
0x1342   : > { %v4593_v60 = vpack.c.bf16 %v9767_v38, %v9765_v50 }
0x1344   : > { %6724 = vmatmul.msk.bf16.vlgmr.msrb.gmra.mxu0 %vm440_vm0, %v4593_v60 }
0x1348   : > { %v4648_v16 = vpop.f32.mrf.mxu1 }
0x1349   : > { %v9772_v52 = vpop.f32.mrf.mxu2  ;;  %v4662_v43 = vpack.c.bf16 %v4648_v16, %v4646_v41 }
0x134b   : > { %v4681_v21 = vsel %vm611_vm1, %v4662_v43, 0 }
0x1350   : > { %v4651_v29 = vpop.f32.mrf.mxu1 }
0x1351   : > { %v9774_v10 = vpop.f32.mrf.mxu2 }
0x1352   : > { %v4594_v56 = vpack.c.bf16 %v9774_v10, %v9772_v52 }
0x1354   : > { %6725 = vmatmul.msk.bf16.gmra.mxu0 %vm440_vm0, %v4594_v56 }
0x1358   : > { %v4653_v32 = vpop.f32.mrf.mxu1 }
0x1359   : > { %v4663_v20 = vpack.c.bf16 %v4653_v32, %v4651_v29 }
0x135b   : > { %v4684_v48 = vsel %vm611_vm1, %v4663_v20, 0 }
0x1360   : > { %v4656_v23 = vpop.f32.mrf.mxu1 }
0x1368   : > { %v4658_v42 = vpop.f32.mrf.mxu1 }
0x1369   : > { %v4664_v30 = vpack.c.bf16 %v4658_v42, %v4656_v23 }
0x136b   : > { %4764 = vmatpush.bf16.msra.mxu3 %v4664_v30  ;;  %v4687_v37 = vsel %vm611_vm1, %v4664_v30, 0 }
0x136c   : > { %4693 = vmatpush.bf16.xpose.msra.mxu2 %v4687_v37  ;;  %4803 = vmatpush.bf16.xpose.msra.mxu0 %v4687_v37 }
0x136f   : > { %4765 = vmatpush.bf16.msra.mxu3 %v4663_v20 }
0x1373   : > { %4766 = vmatpush.bf16.msra.mxu3 %v4662_v43 }
0x1374   : > { %4694 = vmatpush.bf16.xpose.msra.mxu2 %v4684_v48  ;;  %4804 = vmatpush.bf16.xpose.msra.mxu0 %v4684_v48 }
0x1377   : > { %4767 = vmatpush.bf16.msra.mxu3 %v4661_v33 }
0x137b   : > { %4909 = vmatpush.bf16.msrb.mxu3 %v9552_v31 }
0x137c   : > { %4695 = vmatpush.bf16.xpose.msra.mxu2 %v4681_v21  ;;  %4805 = vmatpush.bf16.xpose.msra.mxu0 %v4681_v21 }
0x137f   : > { %4910 = vmatpush.bf16.msrb.mxu3 %v9558_v9 }
0x1383   : > { %4911 = vmatpush.bf16.msrb.mxu3 %v9564_v61 }
0x1384   : > { %4696 = vmatpush.bf16.xpose.msra.mxu2 %v4678_v24  ;;  %4806 = vmatpush.bf16.xpose.msra.mxu0 %v4678_v24 }
0x1387   : > { %4912 = vmatpush.bf16.msrb.mxu3 %v9570_v6 }
0x138c   : > { %4874 = vmatpush.bf16.msrb.mxu2 %v4664_v30 }
0x1390   : > { %4875 = vmatpush.bf16.msrb.mxu2 %v4663_v20 }
0x1394   : > { %4876 = vmatpush.bf16.msrb.mxu2 %v4662_v43 }
0x1398   : > { %4877 = vmatpush.bf16.msrb.mxu2 %v4661_v33 }
0x13c1   : > { %v4610_v46 = vpop.f32.mrf.mxu0 }
0x13c2   : > { %v4665_v36 = vmul.f32 %v4610_v46, %v7631_v2  ;;  %v4787_v7 = vmul.f32 %v4610_v46, %v7634_v3 }
0x13c9   : > { %v4612_v31 = vpop.f32.mrf.mxu0 }
0x13ca   : > { %v4666_v9 = vmul.f32 %v4612_v31, %v7631_v2  ;;  %v4788_v61 = vmul.f32 %v4612_v31, %v7634_v3 }
0x13cc   : > { %v4669_v13 = vpack.c.bf16 %v4666_v9, %v4665_v36  ;;  %v4791_v18 = vpack.c.bf16 %v4788_v61, %v4787_v7 }
0x13ce   : > { %6730 = vmatmul.msk.bf16.vlgmr.msra.gmra.mxu2 %vm611_vm1, %v4669_v13  ;;  %6734 = vmatmul.msk.bf16.vlgmr.msra.gmra.mxu0 %vm611_vm1, %v4791_v18 }
0x13d1   : > { %v4615_v6 = vpop.f32.mrf.mxu0 }
0x13d2   : > { %v4667_v4 = vmul.f32 %v4615_v6, %v7631_v2  ;;  %v4789_v58 = vmul.f32 %v4615_v6, %v7634_v3 }
0x13d9   : > { %v4617_v17 = vpop.f32.mrf.mxu0 }
0x13da   : > { %v4668_v5 = vmul.f32 %v4617_v17, %v7631_v2  ;;  %v4790_v62 = vmul.f32 %v4617_v17, %v7634_v3 }
0x13dc   : > { %v4670_v59 = vpack.c.bf16 %v4668_v5, %v4667_v4  ;;  %v4792_v39 = vpack.c.bf16 %v4790_v62, %v4789_v58 }
0x13de   : > { %6731 = vmatmul.msk.bf16.gmra.mxu2 %vm611_vm1, %v4670_v59  ;;  %6735 = vmatmul.msk.bf16.gmra.mxu0 %vm611_vm1, %v4792_v39 }
0x144b   : > { %v4808_v47 = vpop.f32.mrf.mxu0 }
0x144c   : > { %v4818_v14 = vsel %vm611_vm1, %v4808_v47, -inf }
0x144d   : > { %4819 = vmax.xlane.f32.xlu0 %v4818_v14 }
0x1451   : > { %v4698_v11 = vpop.f32.mrf.mxu2 }
0x1452   : > { %v4708_v54 = vsel %vm611_vm1, %v4698_v11, -inf }
0x1453   : > { %4709 = vmax.xlane.f32.xlu1 %v4708_v54  ;;  %v4810_v19 = vpop.f32.mrf.mxu0 }
0x1454   : > { %v4821_v28 = vsel %vm611_vm1, %v4810_v19, -inf }
0x1459   : > { %v4700_v57 = vpop.f32.mrf.mxu2 }
0x145a   : > { %v4711_v45 = vsel %vm611_vm1, %v4700_v57, -inf }
0x145b   : > { %4712 = vmax.xlane.f32.xlu2 %v4711_v45  ;;  %4822 = vmax.xlane.f32.xlu1 %v4821_v28  ;;  %v4813_v35 = vpop.f32.mrf.mxu0 }
0x145c   : > { %v4824_v15 = vsel %vm611_vm1, %v4813_v35, -inf }
0x1461   : > { %v4703_v8 = vpop.f32.mrf.mxu2 }
0x1462   : > { %v4714_v22 = vsel %vm611_vm1, %v4703_v8, -inf }
0x1463   : > { %4825 = vmax.xlane.f32.xlu1 %v4824_v15  ;;  %4715 = vmax.xlane.f32.xlu2 %v4714_v22  ;;  %v4815_v44 = vpop.f32.mrf.mxu0 }
0x1464   : > { %v4827_v26 = vsel %vm611_vm1, %v4815_v44, -inf }
0x1469   : > { %v4705_v63 = vpop.f32.mrf.mxu2 }
0x146a   : > { %v4717_v53 = vsel %vm611_vm1, %v4705_v63, -inf }
0x146b   : > { %4828 = vmax.xlane.f32.xlu2 %v4827_v26  ;;  %4718 = vmax.xlane.f32.xlu0 %v4717_v53 }
0x14c0   : > { %v4820_v55 = vpop.xlane.xlu0 %4819 }
0x14c1   : > { %v4830_v49 = vsub.f32 %v4808_v47, %v4820_v55 }
0x14c3   : > { %v4834_v27 = vmul.f32 1.442695, %v4830_v49 }
0x14c5   : > { %7348 = vpow2.f32 %v4834_v27 }
0x14c6   : > { %v4710_v41 = vpop.xlane.xlu1 %4709 }
0x14c7   : > { %v4720_v60 = vsub.f32 %v4698_v11, %v4710_v41 }
0x14c9   : > { %v4724_v16 = vmul.f32 1.442695, %v4720_v60 }
0x14cb   : > { %v9807_v29 = vpop.eup %7348  ;;  %7350 = vpow2.f32 %v4724_v16 }
0x14cc   : > { %v4842_v56 = vsel %vm611_vm1, %v9807_v29, 0.0 }
0x14cd   : > { %4843 = vadd.xlane.f32.xlu2 %v4842_v56 }
0x14ce   : > { %v4713_v32 = vpop.xlane.xlu2 %4712  ;;  %v4823_v23 = vpop.xlane.xlu1 %4822 }
0x14cf   : > { %v4721_v42 = vsub.f32 %v4700_v57, %v4713_v32  ;;  %v4831_v30 = vsub.f32 %v4810_v19, %v4823_v23 }
0x14d1   : > { %v7351_v37 = vpop.eup %7350  ;;  %v4726_v20 = vmul.f32 1.442695, %v4721_v42  ;;  %v4836_v43 = vmul.f32 1.442695, %v4831_v30 }
0x14d2   : > { %v4732_v48 = vsel %vm611_vm1, %v7351_v37, 0.0 }
0x14d3   : > { %7352 = vpow2.f32 %v4726_v20  ;;  %4733 = vadd.xlane.f32.xlu0 %v4732_v48 }
0x14d4   : > { %7354 = vpow2.f32 %v4836_v43 }
0x14d6   : > { %v4826_v33 = vpop.xlane.xlu1 %4825  ;;  %v4716_v21 = vpop.xlane.xlu2 %4715 }
0x14d7   : > { %v4832_v24 = vsub.f32 %v4813_v35, %v4826_v33  ;;  %v4722_v46 = vsub.f32 %v4703_v8, %v4716_v21 }
0x14d9   : > { %v7353_v31 = vpop.eup %7352  ;;  %v4838_v36 = vmul.f32 1.442695, %v4832_v24  ;;  %v4728_v7 = vmul.f32 1.442695, %v4722_v46 }
0x14da   : > { %v7355_v9 = vpop.eup %7354  ;;  %v4735_v61 = vsel %vm611_vm1, %v7353_v31, 0.0 }
0x14db   : > { %7356 = vpow2.f32 %v4838_v36  ;;  %4736 = vadd.xlane.f32.xlu1 %v4735_v61  ;;  %v4845_v13 = vsel %vm611_vm1, %v7355_v9, 0.0 }
0x14dc   : > { %7358 = vpow2.f32 %v4728_v7  ;;  %4846 = vadd.xlane.f32.xlu0 %v4845_v13 }
0x14de   : > { %v4829_v18 = vpop.xlane.xlu2 %4828  ;;  %v4719_v6 = vpop.xlane.xlu0 %4718 }
0x14df   : > { %v4833_v17 = vsub.f32 %v4815_v44, %v4829_v18  ;;  %v4723_v4 = vsub.f32 %v4705_v63, %v4719_v6 }
0x14e1   : > { %v7357_v58 = vpop.eup %7356  ;;  %v4840_v5 = vmul.f32 1.442695, %v4833_v17  ;;  %v4730_v62 = vmul.f32 1.442695, %v4723_v4 }
0x14e2   : > { %v7359_v59 = vpop.eup %7358  ;;  %v4848_v39 = vsel %vm611_vm1, %v7357_v58, 0.0 }
0x14e3   : > { %7360 = vpow2.f32 %v4840_v5  ;;  %v4738_v47 = vsel %vm611_vm1, %v7359_v59, 0.0 }
0x14e4   : > { %7362 = vpow2.f32 %v4730_v62  ;;  %4739 = vadd.xlane.f32.xlu1 %v4738_v47  ;;  %4849 = vadd.xlane.f32.xlu0 %v4848_v39 }
0x14e9   : > { %v7361_v14 = vpop.eup %7360 }
0x14ea   : > { %v7363_v11 = vpop.eup %7362  ;;  %v4851_v54 = vsel %vm611_vm1, %v7361_v14, 0.0 }
0x14eb   : > { %v4741_v19 = vsel %vm611_vm1, %v7363_v11, 0.0 }
0x14ec   : > { %4852 = vadd.xlane.f32.xlu1 %v4851_v54  ;;  %4742 = vadd.xlane.f32.xlu2 %v4741_v19 }
0x1540   : > { %v4844_v45 = vpop.xlane.xlu2 %4843 }
0x1546   : > { %v4734_v57 = vpop.xlane.xlu0 %4733 }
0x1547   : > { %7364 = vrcp.f32 %v4734_v57 }
0x1548   : > { %7366 = vrcp.f32 %v4844_v45 }
0x154d   : > { %v7365_v8 = vpop.eup %7364 }
0x154e   : > { %v4737_v28 = vpop.xlane.xlu1 %4736  ;;  %v7367_v15 = vpop.eup %7366  ;;  %v4748_v63 = vmul.f32 %v7365_v8, %v7351_v37 }
0x154f   : > { %7368 = vrcp.f32 %v4737_v28  ;;  %v4847_v35 = vpop.xlane.xlu0 %4846  ;;  %v4858_v53 = vmul.f32 %v7367_v15, %v9807_v29 }
0x1550   : > { %7370 = vrcp.f32 %v4847_v35 }
0x1555   : > { %v7369_v22 = vpop.eup %7368 }
0x1556   : > { %v7371_v44 = vpop.eup %7370  ;;  %v4749_v26 = vmul.f32 %v7369_v22, %v7353_v31 }
0x1557   : > { %v4859_v55 = vmul.f32 %v7371_v44, %v7355_v9  ;;  %v4740_v49 = vpop.xlane.xlu1 %4739  ;;  %v4850_v60 = vpop.xlane.xlu0 %4849 }
0x1558   : > { %v4752_v27 = vpack.c.bf16 %v4749_v26, %v4748_v63  ;;  %7372 = vrcp.f32 %v4850_v60 }
0x1559   : > { %v4862_v41 = vpack.c.bf16 %v4859_v55, %v4858_v53  ;;  %7374 = vrcp.f32 %v4740_v49 }
0x155a   : > { %6732 = vmatmul.msk.bf16.vlgmr.msra.gmra.mxu3 %vm611_vm1, %v4752_v27 }
0x155b   : > { %6736 = vmatmul.msk.bf16.vlgmr.msrb.gmra.mxu2 %vm611_vm1, %v4862_v41 }
0x155e   : > { %v7373_v32 = vpop.eup %7372 }
0x155f   : > { %v4853_v16 = vpop.xlane.xlu1 %4852  ;;  %v4743_v56 = vpop.xlane.xlu2 %4742  ;;  %v4860_v29 = vmul.f32 %v7373_v32, %v7357_v58 }
0x1560   : > { %7376 = vrcp.f32 %v4853_v16  ;;  %v7375_v23 = vpop.eup %7374 }
0x1561   : > { %7378 = vrcp.f32 %v4743_v56  ;;  %v4750_v20 = vmul.f32 %v7375_v23, %v7359_v59 }
0x1566   : > { %v7377_v42 = vpop.eup %7376 }
0x1567   : > { %v7379_v30 = vpop.eup %7378  ;;  %v4861_v37 = vmul.f32 %v7377_v42, %v7361_v14 }
0x1568   : > { %v4751_v43 = vmul.f32 %v7379_v30, %v7363_v11 }
0x1569   : > { %v4863_v48 = vpack.c.bf16 %v4861_v37, %v4860_v29 }
0x156a   : > { %v4753_v33 = vpack.c.bf16 %v4751_v43, %v4750_v20 }
0x156b   : > { %6737 = vmatmul.msk.bf16.gmra.mxu2 %vm611_vm1, %v4863_v48 }
0x156c   : > { %6733 = vmatmul.msk.bf16.gmra.mxu3 %vm611_vm1, %v4753_v33 }
0x15dd   : > { %v4769_v21 = vpop.f32.mrf.mxu3 }
0x15de   : > { %v4879_v24 = vpop.f32.mrf.mxu2  ;;  %v4779_v46 = vmul.f32 %v4769_v21, %v8065_v40 }
0x15df   : > { %v4889_v31 = vmul.f32 %v4879_v24, %v8069_v25 }
0x15e1   : > { %v4893_v13 = vadd.f32 %v4889_v31, %v4779_v46 }
0x15e5   : > { %v4771_v36 = vpop.f32.mrf.mxu3 }
0x15e6   : > { %v4780_v7 = vmul.f32 %v4771_v36, %v8065_v40  ;;  %v4881_v9 = vpop.f32.mrf.mxu2 }
0x15e7   : > { %v4890_v61 = vmul.f32 %v4881_v9, %v8069_v25 }
0x15e9   : > { %v4894_v18 = vadd.f32 %v4890_v61, %v4780_v7 }
0x15eb   : > { %v4897_v6 = vpack.c.bf16 %v4894_v18, %v4893_v13 }
0x15ed   : > { %6738 = vmatmul.msk.bf16.vlgmr.msrb.gmra.mxu3 %vm611_vm1, %v4897_v6 }
0x15ee   : > { %v4884_v17 = vpop.f32.mrf.mxu2 }
0x15ef   : > { %v4774_v4 = vpop.f32.mrf.mxu3  ;;  %v4891_v5 = vmul.f32 %v4884_v17, %v8069_v25 }
0x15f0   : > { %v4781_v58 = vmul.f32 %v4774_v4, %v8065_v40 }
0x15f2   : > { %v4895_v14 = vadd.f32 %v4891_v5, %v4781_v58 }
0x15f6   : > { %v4886_v62 = vpop.f32.mrf.mxu2 }
0x15f7   : > { %v4776_v59 = vpop.f32.mrf.mxu3  ;;  %v4892_v39 = vmul.f32 %v4886_v62, %v8069_v25 }
0x15f8   : > { %v4782_v47 = vmul.f32 %v4776_v59, %v8065_v40 }
0x15fa   : > { %v4896_v11 = vadd.f32 %v4892_v39, %v4782_v47 }
0x15fc   : > { %v4898_v54 = vpack.c.bf16 %v4896_v11, %v4895_v14 }
0x15fe   : > { %6739 = vmatmul.msk.bf16.gmra.mxu3 %vm611_vm1, %v4898_v54 }
0x1670   : > { %v4914_v19 = vpop.f32.mrf.mxu3 }
0x1671   : > { %v4915_v57 = vadd.f32 %v4914_v19, %v9765_v50 }
0x1673   : > { %v4924_v45 = vsel %vm440_vm0, %v4915_v57, 0.0 }
0x1674   : > { %4925 = vadd.xlane.f32.xlu1 %v4924_v45 }
0x1678   : > { %v4916_v28 = vpop.f32.mrf.mxu3 }
0x1679   : > { %v4917_v22 = vadd.f32 %v4916_v28, %v9767_v38 }
0x167b   : > { %v4927_v53 = vsel %vm440_vm0, %v4917_v22, 0.0 }
0x1681   : > { %v4919_v35 = vpop.f32.mrf.mxu3 }
0x1682   : > { %v4920_v8 = vadd.f32 %v4919_v35, %v9772_v52 }
0x1684   : > { %v4930_v15 = vsel %vm440_vm0, %v4920_v8, 0.0 }
0x1685   : > { %4931 = vadd.xlane.f32.xlu2 %v4930_v15 }
0x1689   : > { %v4921_v44 = vpop.f32.mrf.mxu3 }
0x168a   : > { %v4922_v63 = vadd.f32 %v4921_v44, %v9774_v10 }
0x168c   : > { %v4933_v26 = vsel %vm440_vm0, %v4922_v63, 0.0 }
0x168d   : > { %4934 = vadd.xlane.f32.xlu0 %v4933_v26  ;;  %4928 = vadd.xlane.f32.xlu2 %v4927_v53 }
0x16e7   : > { %v4926_v50 = vpop.xlane.xlu1 %4925 }
0x16e8   : > { %v4936_v55 = vmul.f32 %v4926_v50, %v8357_v34 }
0x16ea   : > { %v9842_v49 = vsub.f32 %v4915_v57, %v4936_v55 }
0x16ec   : > { %v4944_v52 = vmul.f32 %v9842_v49, %v9842_v49 }
0x16ee   : > { %v4948_v27 = vsel %vm440_vm0, %v4944_v52, 0.0 }
0x16ef   : > { %4949 = vadd.xlane.f32.xlu2 %v4948_v27 }
0x16f8   : > { %v4932_v38 = vpop.xlane.xlu2 %4931 }
0x16f9   : > { %v4938_v10 = vmul.f32 %v4932_v38, %v8357_v34 }
0x16fb   : > { %v4942_v41 = vsub.f32 %v4920_v8, %v4938_v10 }
0x16fd   : > { %v4946_v60 = vmul.f32 %v4942_v41, %v4942_v41 }
0x16ff   : > { %v4954_v16 = vsel %vm440_vm0, %v4946_v60, 0.0 }
0x1700   : > { %v4935_v56 = vpop.xlane.xlu0 %4934  ;;  %4955 = vadd.xlane.f32.xlu0 %v4954_v16  ;;  %v4929_v32 = vpop.xlane.xlu2 %4928 }
0x1701   : > { %v4939_v23 = vmul.f32 %v4935_v56, %v8357_v34  ;;  %v4937_v42 = vmul.f32 %v4929_v32, %v8357_v34 }
0x1703   : > { %v9851_v30 = vsub.f32 %v4922_v63, %v4939_v23  ;;  %v9853_v29 = vsub.f32 %v4917_v22, %v4937_v42 }
0x1705   : > { %v4947_v37 = vmul.f32 %v9851_v30, %v9851_v30  ;;  %v4945_v20 = vmul.f32 %v9853_v29, %v9853_v29 }
0x1707   : > { %v4957_v43 = vsel %vm440_vm0, %v4947_v37, 0.0  ;;  %v4951_v48 = vsel %vm440_vm0, %v4945_v20, 0.0 }
0x1708   : > { %4958 = vadd.xlane.f32.xlu1 %v4957_v43  ;;  %4952 = vadd.xlane.f32.xlu0 %v4951_v48 }
0x1762   : > { %v4950_v33 = vpop.xlane.xlu2 %4949 }
0x1763   : > { %v4960_v21 = vmul.f32 %v4950_v33, %v8357_v34  ;;  %v9899_v33 = vld [vmem:[%s10201_s3 + $0x30] sm:$0xff] }
0x1765   : > { %v4964_v24 = vadd.f32 1e-05, %v4960_v21 }
0x1767   : > { %7380 = vrsqrt.f32 %v4964_v24  ;;  %vm4974_vm15 = vweird.f32 %v4964_v24 }
0x176d   : > { %v7381_v7 = vpop.eup %7380 }
0x176e   : > { %v4969_v9 = vmul.f32 %v7381_v7, %v4964_v24  ;;  %vm4975_vm14 = vweird.f32 %v7381_v7 }
0x176f   : > { %vm4976_vm3 = vmor %vm4974_vm15, %vm4975_vm14  ;;  %vm5285_vm15 = vcmask 130048  }
0x1770   : > { %v4970_v5 = vmul.f32 %v7381_v7, %v4969_v9 }
0x1772   : > { %v4971_v39 = vmul.f32 0.5, %v4970_v5 }
0x1773   : > { %v4956_v46 = vpop.xlane.xlu0 %4955 }
0x1774   : > { %v4962_v31 = vmul.f32 %v4956_v46, %v8357_v34  ;;  %v4972_v19 = vsub.f32 1.5, %v4971_v39 }
0x1776   : > { %v4966_v36 = vadd.f32 1e-05, %v4962_v31  ;;  %v4973_v15 = vmul.f32 %v7381_v7, %v4972_v19 }
0x1778   : > { %7382 = vrsqrt.f32 %v4966_v36  ;;  %vm4994_vm12 = vweird.f32 %v4966_v36  ;;  %v4977_v55 = vsel %vm4976_vm3, %v7381_v7, %v4973_v15 }
0x1779   : > { %v5008_v10 = vmul.f32 %v4977_v55, %v9842_v49 }
0x177b   : > { %v4959_v61 = vpop.xlane.xlu1 %4958  ;;  %v4953_v13 = vpop.xlane.xlu0 %4952  ;;  %v5012_v20 = vmul.f32 %v9710_v1, %v5008_v10 }
0x177c   : > { %v4963_v18 = vmul.f32 %v4959_v61, %v8357_v34  ;;  %v4961_v6 = vmul.f32 %v4953_v13, %v8357_v34 }
0x177e   : > { %v7383_v17 = vpop.eup %7382  ;;  %v4967_v4 = vadd.f32 1e-05, %v4963_v18  ;;  %v4965_v58 = vadd.f32 1e-05, %v4961_v6  ;;  %v9915_v18 = vld [vmem:[%s10203_s5 + $0x78] sm:$0xff] }
0x177f   : > { %v4989_v62 = vmul.f32 %v7383_v17, %v4966_v36  ;;  %vm4995_vm11 = vweird.f32 %v7383_v17 }
0x1780   : > { %7384 = vrsqrt.f32 %v4967_v4  ;;  %vm4996_vm13 = vmor %vm4994_vm12, %vm4995_vm11  ;;  %vm5004_vm5 = vweird.f32 %v4967_v4  ;;  %vm4984_vm7 = vweird.f32 %v4965_v58 }
0x1781   : > { %v4990_v59 = vmul.f32 %v7383_v17, %v4989_v62  ;;  %7386 = vrsqrt.f32 %v4965_v58 }
0x1783   : > { %v4991_v47 = vmul.f32 0.5, %v4990_v59 }
0x1785   : > { %v4992_v14 = vsub.f32 1.5, %v4991_v47 }
0x1786   : > { %v7385_v11 = vpop.eup %7384 }
0x1787   : > { %v7387_v54 = vpop.eup %7386  ;;  %v4993_v57 = vmul.f32 %v7383_v17, %v4992_v14  ;;  %v4999_v45 = vmul.f32 %v7385_v11, %v4967_v4  ;;  %vm5005_vm2 = vweird.f32 %v7385_v11  ;;  %v9928_v4 = vld [vmem:[%s10203_s5 + $0x68] sm:$0xff] }
0x1788   : > { %v4979_v28 = vmul.f32 %v7387_v54, %v4965_v58  ;;  %vm4985_vm4 = vweird.f32 %v7387_v54  ;;  %vm5006_vm6 = vmor %vm5004_vm5, %vm5005_vm2  ;;  %v9934_v58 = vld [vmem:[%s10203_s5 + $0x60] sm:$0xff]  ;;  %vm5481_vm5 = vcmask 1043456  }
0x1789   : > { %v5000_v35 = vmul.f32 %v7385_v11, %v4999_v45  ;;  %v4997_v22 = vsel %vm4996_vm13, %v7383_v17, %v4993_v57  ;;  %vm4986_vm8 = vmor %vm4984_vm7, %vm4985_vm4  ;;  %v9922_v17 = vld [vmem:[%s10203_s5 + $0x70] sm:$0xff]  ;;  %vm5552_vm7 = vcmask 60416  }
0x178a   : > { %v4980_v8 = vmul.f32 %v7387_v54, %v4979_v28  ;;  %v5010_v53 = vmul.f32 %v4997_v22, %v4942_v41 }
0x178b   : > { %v5001_v44 = vmul.f32 0.5, %v5000_v35 }
0x178c   : > { %v4981_v63 = vmul.f32 0.5, %v4980_v8  ;;  %v5014_v56 = vmul.f32 %v9710_v1, %v5010_v53 }
0x178d   : > { %v5002_v26 = vsub.f32 1.5, %v5001_v44 }
0x178e   : > { %v4982_v50 = vsub.f32 1.5, %v4981_v63  ;;  %v5018_v42 = vadd.f32 %v9731_v0, %v5014_v56 }
0x178f   : > { %v5003_v52 = vmul.f32 %v7385_v11, %v5002_v26 }
0x1790   : > { %v4983_v27 = vmul.f32 %v7387_v54, %v4982_v50 }
0x1791   : > { %v5007_v38 = vsel %vm5006_vm6, %v7385_v11, %v5003_v52  ;;  %vm5478_vm6 = vcmask 64512  }
0x1792   : > { %v5011_v60 = vmul.f32 %v5007_v38, %v9851_v30  ;;  %v4987_v16 = vsel %vm4986_vm8, %v7387_v54, %v4983_v27  ;;  %v5016_v30 = vadd.f32 %v9731_v0, %v5012_v20  ;;  %vm5650_vm8 = vcmask 257024  }
0x1793   : > { %v5009_v32 = vmul.f32 %v4987_v16, %v9853_v29  ;;  %v9879_v29 = vld [vmem:[%s10202_s4 + $0x38] sm:$0xff] }
0x1794   : > { %v5015_v41 = vmul.f32 %v9710_v1, %v5011_v60 }
0x1795   : > { %v5013_v23 = vmul.f32 %v9710_v1, %v5009_v32  ;;  %v9887_v1 = vld [vmem:[%s10202_s4 + $0x30] sm:$0xff] }
0x1796   : > { %v5019_v37 = vadd.f32 %v9731_v0, %v5015_v41 }
0x1797   : > { %v5017_v49 = vadd.f32 %v9731_v0, %v5013_v23  ;;  %v9893_v0 = vld [vmem:[%s10201_s3 + $0x38] sm:$0xff] }
0x1798   : > { %v5021_v43 = vpack.c.bf16 %v5019_v37, %v5018_v42 }
0x1799   : > { %v5020_v48 = vpack.c.bf16 %v5017_v49, %v5016_v30 }
0x179a   : > { %5030 = vmatpush.bf16.msrb.mxu0 %v5021_v43 }
0x179e   : > { %5031 = vmatpush.bf16.msrb.mxu0 %v5020_v48 }
0x17a1   : > { %6740 = vmatmul.msk.bf16.vlgmr.msrb.gmra.mxu0 %vm440_vm0, %v9301_v51 }
0x17a2   : > { %5068 = vmatpush.bf16.msra.mxu0 %v9879_v29 }
0x17a6   : > { %5069 = vmatpush.bf16.msra.mxu0 %v9887_v1 }
0x17aa   : > { %5312 = vmatpush.bf16.msrb.mxu0 %v9893_v0 }
0x17ae   : > { %5313 = vmatpush.bf16.msrb.mxu0 %v9899_v33 }
0x17b1   : > { %6742 = vmatmul.msk.bf16.vlgmr.msra.gmra.mxu0 %vm440_vm0, %v5020_v48 }
0x17c1   : > { %6743 = vmatmul.msk.bf16.gmra.mxu0 %vm440_vm0, %v5021_v43 }
0x181e   : > { %v9904_v51 = vpop.f32.mrf.mxu0 }
0x1826   : > { %v9906_v21 = vpop.f32.mrf.mxu0 }
0x1827   : > { %v5038_v24 = vpack.c.bf16 %v9906_v21, %v9904_v51 }
0x1829   : > { %6741 = vmatmul.msk.bf16.vlgmr.msra.gmra.mxu1 %vm440_vm0, %v5038_v24 }
0x182e   : > { %v5071_v46 = vpop.f32.mrf.mxu0 }
0x1836   : > { %v5073_v31 = vpop.f32.mrf.mxu0 }
0x1837   : > { %v5081_v13 = vpack.c.bf16 %v5073_v31, %v5071_v46 }
0x1839   : > { %v5090_v6 = vsel %vm611_vm1, %v5081_v13, 0 }
0x183e   : > { %v5076_v36 = vpop.f32.mrf.mxu0 }
0x1846   : > { %v5078_v7 = vpop.f32.mrf.mxu0 }
0x1847   : > { %v5082_v9 = vpack.c.bf16 %v5078_v7, %v5076_v36 }
0x1849   : > { %5141 = vmatpush.bf16.msra.mxu2 %v5082_v9  ;;  %v5093_v61 = vsel %vm611_vm1, %v5082_v9, 0 }
0x184a   : > { %5101 = vmatpush.bf16.xpose.msrb.mxu1 %v5093_v61  ;;  %5165 = vmatpush.bf16.xpose.msra.mxu3 %v5093_v61 }
0x184d   : > { %5142 = vmatpush.bf16.msra.mxu2 %v5081_v13 }
0x1851   : > { %5225 = vmatpush.bf16.msrb.mxu2 %v9915_v18 }
0x1852   : > { %5102 = vmatpush.bf16.xpose.msrb.mxu1 %v5090_v6  ;;  %5166 = vmatpush.bf16.xpose.msra.mxu3 %v5090_v6 }
0x1855   : > { %5226 = vmatpush.bf16.msrb.mxu2 %v9922_v17 }
0x1859   : > { %5227 = vmatpush.bf16.msrb.mxu2 %v9928_v4 }
0x185a   : > { %5205 = vmatpush.bf16.msra.mxu1 %v5082_v9 }
0x185d   : > { %5228 = vmatpush.bf16.msrb.mxu2 %v9934_v58 }
0x185e   : > { %5206 = vmatpush.bf16.msra.mxu1 %v5081_v13 }
0x18a6   : > { %v5051_v5 = vpop.f32.mrf.mxu1 }
0x18a7   : > { %v5083_v59 = vmul.f32 %v5051_v5, %v7631_v2  ;;  %v5153_v39 = vmul.f32 %v5051_v5, %v7634_v3 }
0x18ae   : > { %v5053_v62 = vpop.f32.mrf.mxu1 }
0x18af   : > { %v5084_v47 = vmul.f32 %v5053_v62, %v7631_v2  ;;  %v5154_v14 = vmul.f32 %v5053_v62, %v7634_v3 }
0x18b1   : > { %v5085_v11 = vpack.c.bf16 %v5084_v47, %v5083_v59  ;;  %v5155_v54 = vpack.c.bf16 %v5154_v14, %v5153_v39 }
0x18b3   : > { %6744 = vmatmul.msk.bf16.vlgmr.msrb.gmra.mxu1 %vm611_vm1, %v5085_v11  ;;  %6746 = vmatmul.msk.bf16.vlgmr.msra.gmra.mxu3 %vm611_vm1, %v5155_v54 }
0x18b4   : > { %5328 = vmatpush.bf16.msrb.mxu1 %v9879_v29 }
0x18b8   : > { %5329 = vmatpush.bf16.msrb.mxu1 %v9887_v1 }
0x1930   : > { %v5104_v19 = vpop.f32.mrf.mxu1 }
0x1931   : > { %v5109_v57 = vsel %vm440_vm0, %v5104_v19, -inf }
0x1932   : > { %5110 = vmax.xlane.f32.xlu1 %v5109_v57 }
0x1936   : > { %v5168_v45 = vpop.f32.mrf.mxu3 }
0x1937   : > { %v5173_v28 = vsel %vm440_vm0, %v5168_v45, -inf }
0x1938   : > { %5174 = vmax.xlane.f32.xlu0 %v5173_v28  ;;  %v5106_v35 = vpop.f32.mrf.mxu1 }
0x1939   : > { %v5112_v8 = vsel %vm440_vm0, %v5106_v35, -inf }
0x193a   : > { %5113 = vmax.xlane.f32.xlu2 %v5112_v8 }
0x193e   : > { %v5170_v15 = vpop.f32.mrf.mxu3 }
0x193f   : > { %v5176_v22 = vsel %vm440_vm0, %v5170_v15, -inf }
0x1940   : > { %5177 = vmax.xlane.f32.xlu1 %v5176_v22 }
0x19a5   : > { %v5111_v44 = vpop.xlane.xlu1 %5110 }
0x19a6   : > { %v5115_v63 = vsub.f32 %v5104_v19, %v5111_v44 }
0x19a8   : > { %v5117_v26 = vmul.f32 1.442695, %v5115_v63 }
0x19aa   : > { %7388 = vpow2.f32 %v5117_v26 }
0x19ab   : > { %v5175_v53 = vpop.xlane.xlu0 %5174 }
0x19ac   : > { %v5179_v50 = vsub.f32 %v5168_v45, %v5175_v53 }
0x19ad   : > { %v5114_v55 = vpop.xlane.xlu2 %5113 }
0x19ae   : > { %v5181_v52 = vmul.f32 1.442695, %v5179_v50  ;;  %v5116_v27 = vsub.f32 %v5106_v35, %v5114_v55 }
0x19b0   : > { %v7389_v38 = vpop.eup %7388  ;;  %7390 = vpow2.f32 %v5181_v52  ;;  %v5119_v10 = vmul.f32 1.442695, %v5116_v27 }
0x19b1   : > { %v5121_v60 = vsel %vm440_vm0, %v7389_v38, 0.0 }
0x19b2   : > { %7392 = vpow2.f32 %v5119_v10  ;;  %5122 = vadd.xlane.f32.xlu2 %v5121_v60 }
0x19b3   : > { %v5178_v16 = vpop.xlane.xlu1 %5177 }
0x19b4   : > { %v5180_v56 = vsub.f32 %v5170_v15, %v5178_v16 }
0x19b6   : > { %v7391_v32 = vpop.eup %7390  ;;  %v5183_v41 = vmul.f32 1.442695, %v5180_v56 }
0x19b7   : > { %v5185_v23 = vsel %vm440_vm0, %v7391_v32, 0.0 }
0x19b8   : > { %v7393_v42 = vpop.eup %7392  ;;  %7394 = vpow2.f32 %v5183_v41  ;;  %5186 = vadd.xlane.f32.xlu1 %v5185_v23 }
0x19b9   : > { %v5124_v37 = vsel %vm440_vm0, %v7393_v42, 0.0 }
0x19ba   : > { %5125 = vadd.xlane.f32.xlu0 %v5124_v37 }
0x19be   : > { %v7395_v20 = vpop.eup %7394 }
0x19bf   : > { %v5188_v43 = vsel %vm440_vm0, %v7395_v20, 0.0 }
0x19c0   : > { %5189 = vadd.xlane.f32.xlu2 %v5188_v43 }
0x1a25   : > { %v5123_v49 = vpop.xlane.xlu2 %5122 }
0x1a26   : > { %7396 = vrcp.f32 %v5123_v49 }
0x1a2b   : > { %v5187_v48 = vpop.xlane.xlu1 %5186 }
0x1a2c   : > { %v7397_v24 = vpop.eup %7396 }
0x1a2d   : > { %v5126_v30 = vpop.xlane.xlu0 %5125  ;;  %v5129_v36 = vmul.f32 %v7397_v24, %v7389_v38 }
0x1a2e   : > { %7398 = vrcp.f32 %v5126_v30 }
0x1a2f   : > { %7400 = vrcp.f32 %v5187_v48 }
0x1a33   : > { %v5190_v46 = vpop.xlane.xlu2 %5189 }
0x1a34   : > { %v7399_v31 = vpop.eup %7398  ;;  %7402 = vrcp.f32 %v5190_v46 }
0x1a35   : > { %v5130_v7 = vmul.f32 %v7399_v31, %v7393_v42  ;;  %v7401_v61 = vpop.eup %7400 }
0x1a36   : > { %v5193_v6 = vmul.f32 %v7401_v61, %v7391_v32 }
0x1a37   : > { %v5131_v9 = vpack.c.bf16 %v5130_v7, %v5129_v36 }
0x1a39   : > { %6745 = vmatmul.msk.bf16.vlgmr.msra.gmra.mxu2 %vm440_vm0, %v5131_v9 }
0x1a3a   : > { %v7403_v13 = vpop.eup %7402 }
0x1a3b   : > { %v5194_v5 = vmul.f32 %v7403_v13, %v7395_v20 }
0x1a3d   : > { %v5195_v62 = vpack.c.bf16 %v5194_v5, %v5193_v6 }
0x1a3f   : > { %6747 = vmatmul.msk.bf16.vlgmr.msra.gmra.mxu1 %vm440_vm0, %v5195_v62  ;;  %v9973_v62 = vld [vmem:[%s10204_s6 + $0x3] ss:$0 sm:$0xff] }
0x1abc   : > { %v5144_v59 = vpop.f32.mrf.mxu2  ;;  %v5208_v39 = vpop.f32.mrf.mxu1 }
0x1abd   : > { %v5149_v47 = vmul.f32 %v5144_v59, %v8065_v40  ;;  %v5213_v14 = vmul.f32 %v5208_v39, %v8069_v25 }
0x1abf   : > { %v5215_v45 = vadd.f32 %v5213_v14, %v5149_v47  ;;  %v9980_v47 = vld [vmem:[%s10205_s7 + $0x3] ss:$0 sm:$0xff] }
0x1ac4   : > { %v5146_v11 = vpop.f32.mrf.mxu2  ;;  %v5210_v54 = vpop.f32.mrf.mxu1 }
0x1ac5   : > { %v5150_v19 = vmul.f32 %v5146_v11, %v8065_v40  ;;  %v5214_v57 = vmul.f32 %v5210_v54, %v8069_v25 }
0x1ac7   : > { %v5216_v28 = vadd.f32 %v5214_v57, %v5150_v19  ;;  %v9986_v19 = vpack.c.bf16 %v9292_v12, %v9292_v12 }
0x1ac9   : > { %v5217_v35 = vpack.c.bf16 %v5216_v28, %v5215_v45 }
0x1acb   : > { %6748 = vmatmul.msk.bf16.vlgmr.msrb.gmra.mxu2 %vm611_vm1, %v5217_v35 }
0x1b4e   : > { %v5230_v8 = vpop.f32.mrf.mxu2 }
0x1b4f   : > { %v5231_v15 = vadd.f32 %v5230_v8, %v9904_v51 }
0x1b51   : > { %v5235_v22 = vsel %vm440_vm0, %v5231_v15, 0.0 }
0x1b52   : > { %5236 = vadd.xlane.f32.xlu0 %v5235_v22 }
0x1b56   : > { %v5232_v44 = vpop.f32.mrf.mxu2 }
0x1b57   : > { %v5233_v63 = vadd.f32 %v5232_v44, %v9906_v21 }
0x1b59   : > { %v5238_v26 = vsel %vm440_vm0, %v5233_v63, 0.0 }
0x1b5a   : > { %5239 = vadd.xlane.f32.xlu1 %v5238_v26 }
0x1bc5   : > { %v5237_v53 = vpop.xlane.xlu0 %5236 }
0x1bc6   : > { %v5241_v50 = vmul.f32 %v5237_v53, %v8357_v34 }
0x1bc8   : > { %v5243_v55 = vsub.f32 %v5231_v15, %v5241_v50 }
0x1bca   : > { %v5245_v52 = vmul.f32 %v5243_v55, %v5243_v55 }
0x1bcc   : > { %v5247_v27 = vsel %vm440_vm0, %v5245_v52, 0.0 }
0x1bcd   : > { %v5240_v38 = vpop.xlane.xlu1 %5239  ;;  %5248 = vadd.xlane.f32.xlu2 %v5247_v27 }
0x1bce   : > { %v5242_v51 = vmul.f32 %v5240_v38, %v8357_v34 }
0x1bd0   : > { %v5244_v10 = vsub.f32 %v5233_v63, %v5242_v51 }
0x1bd2   : > { %v5246_v60 = vmul.f32 %v5244_v10, %v5244_v10 }
0x1bd4   : > { %v5250_v16 = vsel %vm440_vm0, %v5246_v60, 0.0 }
0x1bd5   : > { %5251 = vadd.xlane.f32.xlu0 %v5250_v16 }
0x1c40   : > { %v5249_v21 = vpop.xlane.xlu2 %5248 }
0x1c41   : > { %v5253_v56 = vmul.f32 %v5249_v21, %v8357_v34 }
0x1c43   : > { %v5255_v32 = vadd.f32 1e-05, %v5253_v56 }
0x1c45   : > { %7404 = vrsqrt.f32 %v5255_v32  ;;  %vm5263_vm10 = vweird.f32 %v5255_v32 }
0x1c48   : > { %v5252_v41 = vpop.xlane.xlu0 %5251 }
0x1c49   : > { %v5254_v23 = vmul.f32 %v5252_v41, %v8357_v34 }
0x1c4b   : > { %v7405_v42 = vpop.eup %7404  ;;  %v5256_v37 = vadd.f32 1e-05, %v5254_v23 }
0x1c4c   : > { %v5258_v20 = vmul.f32 %v7405_v42, %v5255_v32  ;;  %vm5264_vm9 = vweird.f32 %v7405_v42 }
0x1c4d   : > { %7406 = vrsqrt.f32 %v5256_v37  ;;  %vm5265_vm11 = vmor %vm5263_vm10, %vm5264_vm9  ;;  %vm5273_vm13 = vweird.f32 %v5256_v37 }
0x1c4e   : > { %v5259_v43 = vmul.f32 %v7405_v42, %v5258_v20 }
0x1c50   : > { %v5260_v49 = vmul.f32 0.5, %v5259_v43 }
0x1c52   : > { %v5261_v30 = vsub.f32 1.5, %v5260_v49 }
0x1c53   : > { %v7407_v48 = vpop.eup %7406 }
0x1c54   : > { %v5262_v24 = vmul.f32 %v7405_v42, %v5261_v30  ;;  %v5268_v46 = vmul.f32 %v7407_v48, %v5256_v37  ;;  %vm5274_vm12 = vweird.f32 %v7407_v48 }
0x1c55   : > { %vm5275_vm14 = vmor %vm5273_vm13, %vm5274_vm12  ;;  %vm5679_vm12 = vcmask 1041408   ;;  %vm5676_vm13 = vcmask 31744  }
0x1c56   : > { %v5269_v31 = vmul.f32 %v7407_v48, %v5268_v46  ;;  %v5266_v36 = vsel %vm5265_vm11, %v7405_v42, %v5262_v24 }
0x1c57   : > { %v5277_v61 = vmul.f32 %v5266_v36, %v5243_v55 }
0x1c58   : > { %v5270_v7 = vmul.f32 0.5, %v5269_v31 }
0x1c59   : > { %v5279_v59 = vmul.f32 %v9973_v62, %v5277_v61 }
0x1c5a   : > { %v5271_v9 = vsub.f32 1.5, %v5270_v7 }
0x1c5b   : > { %v5281_v14 = vadd.f32 %v9980_v47, %v5279_v59 }
0x1c5c   : > { %v5272_v13 = vmul.f32 %v7407_v48, %v5271_v9 }
0x1c5e   : > { %v5276_v6 = vsel %vm5275_vm14, %v7407_v48, %v5272_v13  ;;  %vm5750_vm14 = vcmask 25600  }
0x1c5f   : > { %v5278_v5 = vmul.f32 %v5276_v6, %v5244_v10 }
0x1c61   : > { %v5280_v39 = vmul.f32 %v9973_v62, %v5278_v5 }
0x1c63   : > { %v5282_v11 = vadd.f32 %v9980_v47, %v5280_v39 }
0x1c65   : > { %v5284_v54 = vpack.c.bf16 %v5282_v11, %v5281_v14 }
0x1c67   : > { %5296 = vmatpush.bf16.msrb.mxu3 %v5284_v54  ;;  %6751 = vmatmul.msk.bf16.vlgmr.msrb.gmra.mxu1 %vm440_vm0, %v5284_v54 }
0x1c6a   : > { %6749 = vmatmul.msk.bf16.vlgmr.msrb.gmra.mxu3 %vm5285_vm15, %v9986_v19 }
0x1ce4   : > { %v5331_v57 = vpop.f32.mrf.mxu1 }
0x1cec   : > { %v5333_v45 = vpop.f32.mrf.mxu1 }
0x1ced   : > { %v5336_v28 = vpack.c.bf16 %v5333_v45, %v5331_v57  ;;  %v9991_v35 = vpop.f32.mrf.mxu3 }
0x1cee   : > { %v5302_v8 = vpack.c.bf16 %v9991_v35, %v9991_v35 }
0x1cef   : > { %5380 = vmatpush.bf16.msra.mxu3 %v5336_v28  ;;  %5428 = vmatpush.bf16.msra.mxu1 %v5336_v28  ;;  %v5343_v12 = vsel %vm611_vm1, %v5336_v28, 0 }
0x1cf0   : > { %6750 = vmatmul.msk.bf16.vlgmr.msrb.gmra.mxu0 %vm440_vm0, %v5302_v8  ;;  %5352 = vmatpush.bf16.xpose.msra.mxu2 %v5343_v12 }
0x1cf1   : > { %5400 = vmatpush.bf16.xpose.msra.mxu0 %v5343_v12 }
0x1cf3   : > { %5523 = vmatpush.bf16.msrb.mxu1 %v9879_v29 }
0x1cf5   : > { %v5300_v15 = vpop.f32.mrf.mxu3 }
0x1cf7   : > { %5524 = vmatpush.bf16.msrb.mxu1 %v9887_v1 }
0x1cf8   : > { %5444 = vmatpush.bf16.msrb.mxu2 %v9915_v18 }
0x1cf9   : > { %5508 = vmatpush.bf16.msrb.mxu0 %v9893_v0 }
0x1cfc   : > { %5445 = vmatpush.bf16.msrb.mxu2 %v9922_v17 }
0x1cfd   : > { %5509 = vmatpush.bf16.msrb.mxu0 %v9899_v33 }
0x1d00   : > { %5446 = vmatpush.bf16.msrb.mxu2 %v9928_v4 }
0x1d04   : > { %5447 = vmatpush.bf16.msrb.mxu2 %v9934_v58 }
0x1d6d   : > { %v5315_v22 = vpop.f32.mrf.mxu0 }
0x1d6e   : > { %v5337_v44 = vmul.f32 %v5315_v22, %v7631_v2  ;;  %v5388_v63 = vmul.f32 %v5315_v22, %v7634_v3 }
0x1d70   : > { %v5338_v26 = vpack.c.bf16 %v5337_v44, %v5337_v44  ;;  %v5389_v53 = vpack.c.bf16 %v5388_v63, %v5388_v63 }
0x1d72   : > { %6752 = vmatmul.msk.bf16.vlgmr.msra.gmra.mxu2 %vm611_vm1, %v5338_v26  ;;  %6754 = vmatmul.msk.bf16.vlgmr.msra.gmra.mxu0 %vm611_vm1, %v5389_v53 }
0x1d75   : > { %v5317_v50 = vpop.f32.mrf.mxu0 }
0x1def   : > { %v5402_v55 = vpop.f32.mrf.mxu0 }
0x1df0   : > { %v5406_v52 = vsel %vm5285_vm15, %v5402_v55, -inf }
0x1df1   : > { %5407 = vmax.xlane.f32.xlu2 %v5406_v52 }
0x1df5   : > { %v5354_v27 = vpop.f32.mrf.mxu2 }
0x1df6   : > { %v5358_v38 = vsel %vm5285_vm15, %v5354_v27, -inf }
0x1df7   : > { %5359 = vmax.xlane.f32.xlu1 %v5358_v38  ;;  %v5404_v51 = vpop.f32.mrf.mxu0 }
0x1dfd   : > { %v5356_v10 = vpop.f32.mrf.mxu2 }
0x1e64   : > { %v5408_v60 = vpop.xlane.xlu2 %5407 }
0x1e65   : > { %v5409_v16 = vsub.f32 %v5402_v55, %v5408_v60 }
0x1e67   : > { %v5410_v21 = vmul.f32 1.442695, %v5409_v16 }
0x1e69   : > { %7408 = vpow2.f32 %v5410_v21 }
0x1e6a   : > { %v5360_v56 = vpop.xlane.xlu1 %5359 }
0x1e6b   : > { %v5361_v32 = vsub.f32 %v5354_v27, %v5360_v56 }
0x1e6d   : > { %v5362_v41 = vmul.f32 1.442695, %v5361_v32 }
0x1e6f   : > { %v7409_v23 = vpop.eup %7408  ;;  %7410 = vpow2.f32 %v5362_v41 }
0x1e70   : > { %v5412_v42 = vsel %vm5285_vm15, %v7409_v23, 0.0 }
0x1e71   : > { %5413 = vadd.xlane.f32.xlu1 %v5412_v42 }
0x1e75   : > { %v7411_v37 = vpop.eup %7410 }
0x1e76   : > { %v5364_v20 = vsel %vm5285_vm15, %v7411_v37, 0.0 }
0x1e77   : > { %5365 = vadd.xlane.f32.xlu0 %v5364_v20 }
0x1ee4   : > { %v5414_v43 = vpop.xlane.xlu1 %5413 }
0x1ee5   : > { %7412 = vrcp.f32 %v5414_v43 }
0x1eea   : > { %v5366_v49 = vpop.xlane.xlu0 %5365 }
0x1eeb   : > { %v7413_v30 = vpop.eup %7412  ;;  %7414 = vrcp.f32 %v5366_v49 }
0x1eec   : > { %v5416_v48 = vmul.f32 %v7413_v30, %v7409_v23 }
0x1eee   : > { %v5417_v24 = vpack.c.bf16 %v5416_v48, %v5416_v48 }
0x1ef0   : > { %6755 = vmatmul.msk.bf16.vlgmr.msra.gmra.mxu1 %vm5285_vm15, %v5417_v24 }
0x1ef1   : > { %v7415_v46 = vpop.eup %7414 }
0x1ef2   : > { %v5368_v31 = vmul.f32 %v7415_v46, %v7411_v37 }
0x1ef4   : > { %v5369_v36 = vpack.c.bf16 %v5368_v31, %v5368_v31 }
0x1ef6   : > { %6753 = vmatmul.msk.bf16.vlgmr.msra.gmra.mxu3 %vm5285_vm15, %v5369_v36  ;;  %vm5848_vm15 = vcmask 254976  }
0x1f6d   : > { %v5430_v7 = vpop.f32.mrf.mxu1 }
0x1f6e   : > { %v5434_v13 = vmul.f32 %v5430_v7, %v8069_v25 }
0x1f75   : > { %v5432_v9 = vpop.f32.mrf.mxu1 }
0x1f79   : > { %v5382_v61 = vpop.f32.mrf.mxu3 }
0x1f7a   : > { %v5386_v6 = vmul.f32 %v5382_v61, %v8065_v40 }
0x1f7c   : > { %v5435_v5 = vadd.f32 %v5434_v13, %v5386_v6 }
0x1f7e   : > { %v5436_v59 = vpack.c.bf16 %v5435_v5, %v5435_v5 }
0x1f80   : > { %6756 = vmatmul.msk.bf16.vlgmr.msrb.gmra.mxu2 %vm611_vm1, %v5436_v59 }
0x1f81   : > { %v5384_v39 = vpop.f32.mrf.mxu3 }
0x2003   : > { %v5449_v14 = vpop.f32.mrf.mxu2 }
0x2004   : > { %v5450_v11 = vadd.f32 %v5449_v14, %v9991_v35 }
0x2006   : > { %v5453_v54 = vsel %vm440_vm0, %v5450_v11, 0.0 }
0x2007   : > { %5454 = vadd.xlane.f32.xlu2 %v5453_v54 }
0x200b   : > { %v5451_v57 = vpop.f32.mrf.mxu2 }
0x207a   : > { %v5455_v45 = vpop.xlane.xlu2 %5454 }
0x207b   : > { %v5456_v28 = vmul.f32 %v5455_v45, %v8357_v34 }
0x207d   : > { %v5457_v8 = vsub.f32 %v5450_v11, %v5456_v28 }
0x207f   : > { %v5458_v12 = vmul.f32 %v5457_v8, %v5457_v8 }
0x2081   : > { %v5459_v15 = vsel %vm440_vm0, %v5458_v12, 0.0 }
0x2082   : > { %5460 = vadd.xlane.f32.xlu0 %v5459_v15 }
0x20f5   : > { %v5461_v22 = vpop.xlane.xlu0 %5460 }
0x20f6   : > { %v5462_v44 = vmul.f32 %v5461_v22, %v8357_v34 }
0x20f8   : > { %v5463_v63 = vadd.f32 1e-05, %v5462_v44 }
0x20fa   : > { %7416 = vrsqrt.f32 %v5463_v63  ;;  %vm5470_vm3 = vweird.f32 %v5463_v63 }
0x2100   : > { %v7417_v26 = vpop.eup %7416 }
0x2101   : > { %v5465_v53 = vmul.f32 %v7417_v26, %v5463_v63  ;;  %vm5471_vm2 = vweird.f32 %v7417_v26 }
0x2102   : > { %vm5472_vm4 = vmor %vm5470_vm3, %vm5471_vm2 }
0x2103   : > { %v5466_v35 = vmul.f32 %v7417_v26, %v5465_v53 }
0x2105   : > { %v5467_v50 = vmul.f32 0.5, %v5466_v35 }
0x2107   : > { %v5468_v55 = vsub.f32 1.5, %v5467_v50 }
0x2109   : > { %v5469_v52 = vmul.f32 %v7417_v26, %v5468_v55 }
0x210b   : > { %v5473_v27 = vsel %vm5472_vm4, %v7417_v26, %v5469_v52 }
0x210c   : > { %v5474_v38 = vmul.f32 %v5473_v27, %v5457_v8 }
0x210e   : > { %v5475_v51 = vmul.f32 %v9973_v62, %v5474_v38 }
0x2110   : > { %v5476_v10 = vadd.f32 %v9980_v47, %v5475_v51 }
0x2112   : > { %v5477_v60 = vpack.c.bf16 %v5476_v10, %v5476_v10 }
0x2114   : > { %6759 = vmatmul.msk.bf16.vlgmr.msrb.gmra.mxu1 %vm440_vm0, %v5477_v60  ;;  %v5483_v16 = vsel %vm5481_vm5, %v5477_v60, 0 }
0x2115   : > { %5492 = vmatpush.bf16.msrb.mxu3 %v5483_v16 }
0x2118   : > { %6757 = vmatmul.msk.bf16.vlgmr.msrb.gmra.mxu3 %vm5478_vm6, %v9986_v19 }
0x2191   : > { %v5526_v21 = vpop.f32.mrf.mxu1 }
0x2192   : > { %v5530_v56 = vpack.c.bf16 %v5526_v21, %v5526_v21 }
0x2194   : > { %v5537_v32 = vsel %vm611_vm1, %v5530_v56, 0  ;;  %v5568_v41 = vsel %vm5481_vm5, %v5530_v56, 0  ;;  %vm5877_vm5 = vcmask 1040384  }
0x2195   : > { %5546 = vmatpush.bf16.xpose.msra.mxu2 %v5537_v32  ;;  %5577 = vmatpush.bf16.msra.mxu3 %v5568_v41 }
0x2196   : > { %5597 = vmatpush.bf16.xpose.msra.mxu0 %v5537_v32  ;;  %5625 = vmatpush.bf16.msra.mxu1 %v5568_v41 }
0x2199   : > { %v5528_v23 = vpop.f32.mrf.mxu1 }
0x219a   : > { %5721 = vmatpush.bf16.msrb.mxu1 %v9879_v29 }
0x219b   : > { %v10031_v42 = vpop.f32.mrf.mxu3 }
0x219c   : > { %v5498_v37 = vpack.c.bf16 %v10031_v42, %v10031_v42 }
0x219d   : > { %5641 = vmatpush.bf16.msrb.mxu2 %v9915_v18 }
0x219e   : > { %5722 = vmatpush.bf16.msrb.mxu1 %v9887_v1  ;;  %6758 = vmatmul.msk.bf16.vlgmr.msrb.gmra.mxu0 %vm440_vm0, %v5498_v37 }
0x219f   : > { %5706 = vmatpush.bf16.msrb.mxu0 %v9893_v0 }
0x21a1   : > { %5642 = vmatpush.bf16.msrb.mxu2 %v9922_v17 }
0x21a3   : > { %v5496_v20 = vpop.f32.mrf.mxu3  ;;  %5707 = vmatpush.bf16.msrb.mxu0 %v9899_v33 }
0x21a5   : > { %5643 = vmatpush.bf16.msrb.mxu2 %v9928_v4 }
0x21a9   : > { %5644 = vmatpush.bf16.msrb.mxu2 %v9934_v58 }
0x221b   : > { %v5511_v43 = vpop.f32.mrf.mxu0 }
0x221c   : > { %v5531_v49 = vmul.f32 %v5511_v43, %v7631_v2  ;;  %v5585_v30 = vmul.f32 %v5511_v43, %v7634_v3 }
0x221e   : > { %v5532_v48 = vpack.c.bf16 %v5531_v49, %v5531_v49  ;;  %v5586_v24 = vpack.c.bf16 %v5585_v30, %v5585_v30 }
0x2220   : > { %6760 = vmatmul.msk.bf16.vlgmr.msra.gmra.mxu2 %vm611_vm1, %v5532_v48  ;;  %6762 = vmatmul.msk.bf16.vlgmr.msra.gmra.mxu0 %vm611_vm1, %v5586_v24 }
0x2223   : > { %v5513_v46 = vpop.f32.mrf.mxu0 }
0x229d   : > { %v5599_v31 = vpop.f32.mrf.mxu0 }
0x229e   : > { %v5603_v36 = vsel %vm5552_vm7, %v5599_v31, -inf }
0x229f   : > { %5604 = vmax.xlane.f32.xlu2 %v5603_v36 }
0x22a3   : > { %v5548_v7 = vpop.f32.mrf.mxu2 }
0x22a4   : > { %v5553_v9 = vsel %vm5552_vm7, %v5548_v7, -inf }
0x22a5   : > { %5554 = vmax.xlane.f32.xlu1 %v5553_v9  ;;  %v5601_v61 = vpop.f32.mrf.mxu0 }
0x22ab   : > { %v5550_v13 = vpop.f32.mrf.mxu2 }
0x2312   : > { %v5605_v6 = vpop.xlane.xlu2 %5604 }
0x2313   : > { %v5606_v5 = vsub.f32 %v5599_v31, %v5605_v6 }
0x2315   : > { %v5607_v59 = vmul.f32 1.442695, %v5606_v5 }
0x2317   : > { %7418 = vpow2.f32 %v5607_v59 }
0x2318   : > { %v5555_v39 = vpop.xlane.xlu1 %5554 }
0x2319   : > { %v5556_v14 = vsub.f32 %v5548_v7, %v5555_v39 }
0x231b   : > { %v5557_v11 = vmul.f32 1.442695, %v5556_v14 }
0x231d   : > { %v7419_v54 = vpop.eup %7418  ;;  %7420 = vpow2.f32 %v5557_v11 }
0x231e   : > { %v5609_v57 = vsel %vm5552_vm7, %v7419_v54, 0.0 }
0x231f   : > { %5610 = vadd.xlane.f32.xlu1 %v5609_v57 }
0x2323   : > { %v7421_v45 = vpop.eup %7420 }
0x2324   : > { %v5559_v28 = vsel %vm5552_vm7, %v7421_v45, 0.0  ;;  %vm5948_vm7 = vcmask 8192  }
0x2325   : > { %5560 = vadd.xlane.f32.xlu0 %v5559_v28 }
0x2392   : > { %v5611_v8 = vpop.xlane.xlu1 %5610 }
0x2393   : > { %7422 = vrcp.f32 %v5611_v8 }
0x2398   : > { %v5561_v12 = vpop.xlane.xlu0 %5560 }
0x2399   : > { %v7423_v15 = vpop.eup %7422  ;;  %7424 = vrcp.f32 %v5561_v12 }
0x239a   : > { %v5613_v22 = vmul.f32 %v7423_v15, %v7419_v54 }
0x239c   : > { %v5614_v44 = vpack.c.bf16 %v5613_v22, %v5613_v22 }
0x239e   : > { %6763 = vmatmul.msk.bf16.vlgmr.msra.gmra.mxu1 %vm5478_vm6, %v5614_v44 }
0x239f   : > { %v7425_v63 = vpop.eup %7424 }
0x23a0   : > { %v5563_v26 = vmul.f32 %v7425_v63, %v7421_v45 }
0x23a2   : > { %v5564_v53 = vpack.c.bf16 %v5563_v26, %v5563_v26 }
0x23a4   : > { %6761 = vmatmul.msk.bf16.vlgmr.msra.gmra.mxu3 %vm5478_vm6, %v5564_v53  ;;  %vm5874_vm6 = vcmask 15360  }
0x241b   : > { %v5627_v35 = vpop.f32.mrf.mxu1 }
0x241c   : > { %v5631_v52 = vmul.f32 %v5627_v35, %v8069_v25 }
0x2423   : > { %v5629_v50 = vpop.f32.mrf.mxu1 }
0x2427   : > { %v5579_v55 = vpop.f32.mrf.mxu3 }
0x2428   : > { %v5583_v27 = vmul.f32 %v5579_v55, %v8065_v40 }
0x242a   : > { %v5632_v38 = vadd.f32 %v5631_v52, %v5583_v27 }
0x242c   : > { %v5633_v51 = vpack.c.bf16 %v5632_v38, %v5632_v38 }
0x242e   : > { %6764 = vmatmul.msk.bf16.vlgmr.msrb.gmra.mxu2 %vm611_vm1, %v5633_v51 }
0x242f   : > { %v5581_v10 = vpop.f32.mrf.mxu3 }
0x24b1   : > { %v5646_v60 = vpop.f32.mrf.mxu2 }
0x24b2   : > { %v5647_v16 = vadd.f32 %v5646_v60, %v10031_v42 }
0x24b4   : > { %v5651_v21 = vsel %vm5650_vm8, %v5647_v16, 0.0 }
0x24b5   : > { %5652 = vadd.xlane.f32.xlu2 %v5651_v21 }
0x24b9   : > { %v5648_v56 = vpop.f32.mrf.mxu2 }
0x2528   : > { %v5653_v32 = vpop.xlane.xlu2 %5652 }
0x2529   : > { %v5654_v41 = vmul.f32 %v5653_v32, %v8357_v34 }
0x252b   : > { %v5655_v23 = vsub.f32 %v5647_v16, %v5654_v41 }
0x252d   : > { %v5656_v37 = vmul.f32 %v5655_v23, %v5655_v23 }
0x252f   : > { %v5657_v20 = vsel %vm5650_vm8, %v5656_v37, 0.0  ;;  %vm6046_vm8 = vcmask 253952  }
0x2530   : > { %5658 = vadd.xlane.f32.xlu0 %v5657_v20 }
0x25a3   : > { %v5659_v43 = vpop.xlane.xlu0 %5658 }
0x25a4   : > { %v5660_v49 = vmul.f32 %v5659_v43, %v8357_v34 }
0x25a6   : > { %v5661_v30 = vadd.f32 1e-05, %v5660_v49 }
0x25a8   : > { %7426 = vrsqrt.f32 %v5661_v30  ;;  %vm5668_vm10 = vweird.f32 %v5661_v30 }
0x25ae   : > { %v7427_v48 = vpop.eup %7426 }
0x25af   : > { %v5663_v24 = vmul.f32 %v7427_v48, %v5661_v30  ;;  %vm5669_vm9 = vweird.f32 %v7427_v48 }
0x25b0   : > { %vm5670_vm11 = vmor %vm5668_vm10, %vm5669_vm9  ;;  %vm6153_vm9 = vcmask 7168  }
0x25b1   : > { %v5664_v46 = vmul.f32 %v7427_v48, %v5663_v24 }
0x25b3   : > { %v5665_v31 = vmul.f32 0.5, %v5664_v46 }
0x25b5   : > { %v5666_v42 = vsub.f32 1.5, %v5665_v31 }
0x25b7   : > { %v5667_v36 = vmul.f32 %v7427_v48, %v5666_v42 }
0x25b9   : > { %v5671_v7 = vsel %vm5670_vm11, %v7427_v48, %v5667_v36 }
0x25ba   : > { %v5672_v9 = vmul.f32 %v5671_v7, %v5655_v23 }
0x25bc   : > { %v5673_v61 = vmul.f32 %v9973_v62, %v5672_v9 }
0x25be   : > { %v5674_v13 = vadd.f32 %v9980_v47, %v5673_v61 }
0x25c0   : > { %v5675_v6 = vpack.c.bf16 %v5674_v13, %v5674_v13 }
0x25c2   : > { %6767 = vmatmul.msk.bf16.vlgmr.msrb.gmra.mxu1 %vm440_vm0, %v5675_v6  ;;  %v5681_v5 = vsel %vm5679_vm12, %v5675_v6, 0 }
0x25c3   : > { %5690 = vmatpush.bf16.msrb.mxu3 %v5681_v5 }
0x25c6   : > { %6765 = vmatmul.msk.bf16.vlgmr.msrb.gmra.mxu3 %vm5676_vm13, %v9986_v19 }
0x263f   : > { %v5724_v59 = vpop.f32.mrf.mxu1 }
0x2640   : > { %v5728_v39 = vpack.c.bf16 %v5724_v59, %v5724_v59 }
0x2642   : > { %v5735_v14 = vsel %vm611_vm1, %v5728_v39, 0  ;;  %v5766_v11 = vsel %vm5679_vm12, %v5728_v39, 0 }
0x2643   : > { %5744 = vmatpush.bf16.xpose.msra.mxu2 %v5735_v14  ;;  %5775 = vmatpush.bf16.msra.mxu3 %v5766_v11 }
0x2644   : > { %5795 = vmatpush.bf16.xpose.msra.mxu0 %v5735_v14  ;;  %5823 = vmatpush.bf16.msra.mxu1 %v5766_v11 }
0x2647   : > { %v5726_v54 = vpop.f32.mrf.mxu1 }
0x2648   : > { %5919 = vmatpush.bf16.msrb.mxu1 %v9879_v29 }
0x2649   : > { %v10066_v57 = vpop.f32.mrf.mxu3 }
0x264a   : > { %v5696_v45 = vpack.c.bf16 %v10066_v57, %v10066_v57 }
0x264b   : > { %5839 = vmatpush.bf16.msrb.mxu2 %v9915_v18 }
0x264c   : > { %5920 = vmatpush.bf16.msrb.mxu1 %v9887_v1  ;;  %6766 = vmatmul.msk.bf16.vlgmr.msrb.gmra.mxu0 %vm440_vm0, %v5696_v45 }
0x264d   : > { %5904 = vmatpush.bf16.msrb.mxu0 %v9893_v0 }
0x264f   : > { %5840 = vmatpush.bf16.msrb.mxu2 %v9922_v17 }
0x2651   : > { %v5694_v28 = vpop.f32.mrf.mxu3  ;;  %5905 = vmatpush.bf16.msrb.mxu0 %v9899_v33 }
0x2653   : > { %5841 = vmatpush.bf16.msrb.mxu2 %v9928_v4 }
0x2657   : > { %5842 = vmatpush.bf16.msrb.mxu2 %v9934_v58 }
0x26c9   : > { %v5709_v29 = vpop.f32.mrf.mxu0 }
0x26ca   : > { %v5729_v8 = vmul.f32 %v5709_v29, %v7631_v2  ;;  %v5783_v12 = vmul.f32 %v5709_v29, %v7634_v3 }
0x26cc   : > { %v5730_v1 = vpack.c.bf16 %v5729_v8, %v5729_v8  ;;  %v5784_v15 = vpack.c.bf16 %v5783_v12, %v5783_v12 }
0x26ce   : > { %6768 = vmatmul.msk.bf16.vlgmr.msra.gmra.mxu2 %vm611_vm1, %v5730_v1  ;;  %6770 = vmatmul.msk.bf16.vlgmr.msra.gmra.mxu0 %vm611_vm1, %v5784_v15 }
0x26d1   : > { %v5711_v22 = vpop.f32.mrf.mxu0 }
0x274b   : > { %v5797_v44 = vpop.f32.mrf.mxu0 }
0x274c   : > { %v5801_v0 = vsel %vm5750_vm14, %v5797_v44, -inf }
0x274d   : > { %5802 = vmax.xlane.f32.xlu2 %v5801_v0 }
0x2751   : > { %v5746_v63 = vpop.f32.mrf.mxu2 }
0x2752   : > { %v5751_v33 = vsel %vm5750_vm14, %v5746_v63, -inf }
0x2753   : > { %5752 = vmax.xlane.f32.xlu1 %v5751_v33  ;;  %v5799_v26 = vpop.f32.mrf.mxu0 }
0x2759   : > { %v5748_v53 = vpop.f32.mrf.mxu2 }
0x27c0   : > { %v5803_v35 = vpop.xlane.xlu2 %5802 }
0x27c1   : > { %v5804_v50 = vsub.f32 %v5797_v44, %v5803_v35 }
0x27c3   : > { %v5805_v55 = vmul.f32 1.442695, %v5804_v50 }
0x27c5   : > { %7428 = vpow2.f32 %v5805_v55 }
0x27c6   : > { %v5753_v52 = vpop.xlane.xlu1 %5752 }
0x27c7   : > { %v5754_v27 = vsub.f32 %v5746_v63, %v5753_v52 }
0x27c9   : > { %v5755_v38 = vmul.f32 1.442695, %v5754_v27 }
0x27cb   : > { %v7429_v51 = vpop.eup %7428  ;;  %7430 = vpow2.f32 %v5755_v38 }
0x27cc   : > { %v5807_v10 = vsel %vm5750_vm14, %v7429_v51, 0.0 }
0x27cd   : > { %5808 = vadd.xlane.f32.xlu1 %v5807_v10 }
0x27d1   : > { %v7431_v60 = vpop.eup %7430 }
0x27d2   : > { %v5757_v16 = vsel %vm5750_vm14, %v7431_v60, 0.0 }
0x27d3   : > { %5758 = vadd.xlane.f32.xlu0 %v5757_v16 }
0x2840   : > { %v5809_v21 = vpop.xlane.xlu1 %5808 }
0x2841   : > { %7432 = vrcp.f32 %v5809_v21 }
0x2846   : > { %v5759_v56 = vpop.xlane.xlu0 %5758 }
0x2847   : > { %v7433_v32 = vpop.eup %7432  ;;  %7434 = vrcp.f32 %v5759_v56 }
0x2848   : > { %v5811_v41 = vmul.f32 %v7433_v32, %v7429_v51 }
0x284a   : > { %v5812_v23 = vpack.c.bf16 %v5811_v41, %v5811_v41 }
0x284c   : > { %6771 = vmatmul.msk.bf16.vlgmr.msra.gmra.mxu1 %vm5676_vm13, %v5812_v23 }
0x284d   : > { %v7435_v37 = vpop.eup %7434 }
0x284e   : > { %v5761_v20 = vmul.f32 %v7435_v37, %v7431_v60 }
0x2850   : > { %v5762_v43 = vpack.c.bf16 %v5761_v20, %v5761_v20 }
0x2852   : > { %6769 = vmatmul.msk.bf16.vlgmr.msra.gmra.mxu3 %vm5676_vm13, %v5762_v43 }
0x28c9   : > { %v5825_v49 = vpop.f32.mrf.mxu1 }
0x28ca   : > { %v5829_v24 = vmul.f32 %v5825_v49, %v8069_v25 }
0x28d1   : > { %v5827_v30 = vpop.f32.mrf.mxu1 }
0x28d5   : > { %v5777_v48 = vpop.f32.mrf.mxu3 }
0x28d6   : > { %v5781_v46 = vmul.f32 %v5777_v48, %v8065_v40 }
0x28d8   : > { %v5830_v31 = vadd.f32 %v5829_v24, %v5781_v46  ;;  %v6873_v24 = vld [vmem:[%s10201_s3 + $0x48] sm:$0xff]  ;;  %v6872_v46 = vld [vmem:[%s10201_s3 + $0x40] sm:$0xff] }
0x28da   : > { %v5831_v42 = vpack.c.bf16 %v5830_v31, %v5830_v31  ;;  %v6875_v31 = vld [vmem:[%s10202_s4 + $0x48] sm:$0xff] }
0x28dc   : > { %6772 = vmatmul.msk.bf16.vlgmr.msrb.gmra.mxu2 %vm611_vm1, %v5831_v42  ;;  %v10131_v42 = vld [vmem:[%s365_s28] sm:$0x1]  ;;  %s368_s28 = scalar_lea.vmem %s10206_s8, %s10221_s10 }
0x28dd   : > { %v5779_v36 = vpop.f32.mrf.mxu3 }
0x28de   : > { %v6874_v36 = vld [vmem:[%s10202_s4 + $0x40] sm:$0xff] }
0x295f   : > { %v5844_v7 = vpop.f32.mrf.mxu2 }
0x2960   : > { %v5845_v9 = vadd.f32 %v5844_v7, %v10066_v57  ;;  %v6072_v7 = vpack.c.bf16 %v10131_v42, %v10131_v42 }
0x2962   : > { %v5849_v61 = vsel %vm5848_vm15, %v5845_v9, 0.0 }
0x2963   : > { %5850 = vadd.xlane.f32.xlu2 %v5849_v61 }
0x2967   : > { %v5846_v13 = vpop.f32.mrf.mxu2 }
0x29d6   : > { %v5851_v6 = vpop.xlane.xlu2 %5850 }
0x29d7   : > { %v5852_v5 = vmul.f32 %v5851_v6, %v8357_v34 }
0x29d9   : > { %v5853_v59 = vsub.f32 %v5845_v9, %v5852_v5 }
0x29db   : > { %v5854_v39 = vmul.f32 %v5853_v59, %v5853_v59 }
0x29dd   : > { %v5855_v14 = vsel %vm5848_vm15, %v5854_v39, 0.0 }
0x29de   : > { %5856 = vadd.xlane.f32.xlu0 %v5855_v14 }
0x2a51   : > { %v5857_v11 = vpop.xlane.xlu0 %5856 }
0x2a52   : > { %v5858_v54 = vmul.f32 %v5857_v11, %v8357_v34 }
0x2a54   : > { %v5859_v45 = vadd.f32 1e-05, %v5858_v54 }
0x2a56   : > { %7436 = vrsqrt.f32 %v5859_v45  ;;  %vm5866_vm3 = vweird.f32 %v5859_v45 }
0x2a5c   : > { %v7437_v28 = vpop.eup %7436 }
0x2a5d   : > { %v5861_v29 = vmul.f32 %v7437_v28, %v5859_v45  ;;  %vm5867_vm2 = vweird.f32 %v7437_v28 }
0x2a5e   : > { %vm5868_vm4 = vmor %vm5866_vm3, %vm5867_vm2 }
0x2a5f   : > { %v5862_v8 = vmul.f32 %v7437_v28, %v5861_v29  ;;  %v7503_v29 = vmov 0  }
0x2a61   : > { %v5863_v12 = vmul.f32 0.5, %v5862_v8  ;;  %v6158_v8 = vsel %vm5877_vm5, 65535, %v7503_v29 }
0x2a63   : > { %v5864_v57 = vsub.f32 1.5, %v5863_v12 }
0x2a65   : > { %v5865_v1 = vmul.f32 %v7437_v28, %v5864_v57 }
0x2a67   : > { %v5869_v15 = vsel %vm5868_vm4, %v7437_v28, %v5865_v1 }
0x2a68   : > { %v5870_v22 = vmul.f32 %v5869_v15, %v5853_v59 }
0x2a6a   : > { %v5871_v44 = vmul.f32 %v9973_v62, %v5870_v22 }
0x2a6c   : > { %v5872_v0 = vadd.f32 %v9980_v47, %v5871_v44 }
0x2a6e   : > { %v5873_v63 = vpack.c.bf16 %v5872_v0, %v5872_v0 }
0x2a70   : > { %6775 = vmatmul.msk.bf16.vlgmr.msrb.gmra.mxu1 %vm440_vm0, %v5873_v63  ;;  %v5879_v33 = vsel %vm5877_vm5, %v5873_v63, 0 }
0x2a71   : > { %5888 = vmatpush.bf16.msrb.mxu3 %v5879_v33 }
0x2a74   : > { %6773 = vmatmul.msk.bf16.vlgmr.msrb.gmra.mxu3 %vm5874_vm6, %v9986_v19 }
0x2aed   : > { %v5922_v26 = vpop.f32.mrf.mxu1 }
0x2aee   : > { %v5926_v53 = vpack.c.bf16 %v5922_v26, %v5922_v26 }
0x2af0   : > { %v5933_v35 = vsel %vm611_vm1, %v5926_v53, 0  ;;  %v5964_v50 = vsel %vm5877_vm5, %v5926_v53, 0 }
0x2af1   : > { %5942 = vmatpush.bf16.xpose.msra.mxu2 %v5933_v35  ;;  %5973 = vmatpush.bf16.msra.mxu3 %v5964_v50 }
0x2af2   : > { %5993 = vmatpush.bf16.xpose.msra.mxu0 %v5933_v35  ;;  %6021 = vmatpush.bf16.msra.mxu1 %v5964_v50 }
0x2af5   : > { %v5924_v62 = vpop.f32.mrf.mxu1  ;;  %6099 = vmatpush.bf16.msrb.mxu3 %v6873_v24 }
0x2af7   : > { %v10102_v47 = vpop.f32.mrf.mxu3 }
0x2af8   : > { %v5894_v19 = vpack.c.bf16 %v10102_v47, %v10102_v47 }
0x2af9   : > { %6037 = vmatpush.bf16.msrb.mxu2 %v9915_v18  ;;  %6100 = vmatpush.bf16.msrb.mxu3 %v6872_v46 }
0x2afa   : > { %6774 = vmatmul.msk.bf16.vlgmr.msrb.gmra.mxu0 %vm440_vm0, %v5894_v19 }
0x2afb   : > { %6129 = vmatpush.bf16.msrb.mxu0 %v6875_v31 }
0x2afd   : > { %6038 = vmatpush.bf16.msrb.mxu2 %v9922_v17 }
0x2aff   : > { %v5892_v55 = vpop.f32.mrf.mxu3  ;;  %6130 = vmatpush.bf16.msrb.mxu0 %v6874_v36 }
0x2b01   : > { %6039 = vmatpush.bf16.msrb.mxu2 %v9928_v4 }
0x2b05   : > { %6040 = vmatpush.bf16.msrb.mxu2 %v9934_v58 }
0x2b77   : > { %v5907_v52 = vpop.f32.mrf.mxu0 }
0x2b78   : > { %v5927_v27 = vmul.f32 %v5907_v52, %v7631_v2  ;;  %v5981_v18 = vmul.f32 %v5907_v52, %v7634_v3 }
0x2b7a   : > { %v5928_v38 = vpack.c.bf16 %v5927_v27, %v5927_v27  ;;  %v5982_v51 = vpack.c.bf16 %v5981_v18, %v5981_v18 }
0x2b7c   : > { %6776 = vmatmul.msk.bf16.vlgmr.msra.gmra.mxu2 %vm611_vm1, %v5928_v38  ;;  %6778 = vmatmul.msk.bf16.vlgmr.msra.gmra.mxu0 %vm611_vm1, %v5982_v51 }
0x2b7f   : > { %v5909_v17 = vpop.f32.mrf.mxu0 }
0x2b8c   : > { %6806 = vmatmul.msk.bf16.vlgmr.msrb.gmra.mxu0 %vm440_vm0, %v6072_v7 }
0x2bf9   : > { %v5995_v10 = vpop.f32.mrf.mxu0 }
0x2bfa   : > { %v5999_v60 = vsel %vm5948_vm7, %v5995_v10, -inf }
0x2bfb   : > { %6000 = vmax.xlane.f32.xlu0 %v5999_v60 }
0x2bff   : > { %v5944_v4 = vpop.f32.mrf.mxu2 }
0x2c00   : > { %v5949_v58 = vsel %vm5948_vm7, %v5944_v4, -inf }
0x2c01   : > { %5950 = vmax.xlane.f32.xlu1 %v5949_v58  ;;  %v5997_v16 = vpop.f32.mrf.mxu0 }
0x2c07   : > { %v5946_v21 = vpop.f32.mrf.mxu2 }
0x2c09   : > { %v6132_v11 = vpop.f32.mrf.mxu0 }
0x2c0a   : > { %v6136_v28 = vpack.c.bf16 %v6132_v11, %v6132_v11 }
0x2c0c   : > { %v6160_v12 = vand.u32 %v6158_v8, %v6136_v28  ;;  %v6140_v62 = vunpack.c.l.bf16 %v6136_v28 }
0x2c0e   : > { %6169 = vmatpush.bf16.msrb.mxu1 %v6160_v12  ;;  %6201 = vmatpush.bf16.msra.mxu2 %v6160_v12 }
0x2c11   : > { %v6134_v54 = vpop.f32.mrf.mxu0 }
0x2c6e   : > { %v6001_v56 = vpop.xlane.xlu0 %6000 }
0x2c6f   : > { %v6002_v32 = vsub.f32 %v5995_v10, %v6001_v56 }
0x2c71   : > { %v6003_v41 = vmul.f32 1.442695, %v6002_v32 }
0x2c73   : > { %7438 = vpow2.f32 %v6003_v41 }
0x2c74   : > { %v5951_v23 = vpop.xlane.xlu1 %5950 }
0x2c75   : > { %v5952_v37 = vsub.f32 %v5944_v4, %v5951_v23 }
0x2c77   : > { %v5953_v20 = vmul.f32 1.442695, %v5952_v37 }
0x2c79   : > { %v7439_v43 = vpop.eup %7438  ;;  %7440 = vpow2.f32 %v5953_v20 }
0x2c7a   : > { %v6005_v49 = vsel %vm5948_vm7, %v7439_v43, 0.0 }
0x2c7b   : > { %6006 = vadd.xlane.f32.xlu1 %v6005_v49 }
0x2c7f   : > { %v7441_v30 = vpop.eup %7440 }
0x2c80   : > { %v5955_v48 = vsel %vm5948_vm7, %v7441_v30, 0.0 }
0x2c81   : > { %5956 = vadd.xlane.f32.xlu2 %v5955_v48  ;;  %v6878_v48 = vld [vmem:[%s10203_s5 + $0x90] sm:$0xff] }
0x2cee   : > { %v6007_v9 = vpop.xlane.xlu1 %6006 }
0x2cef   : > { %7442 = vrcp.f32 %v6007_v9 }
0x2cf4   : > { %v5957_v61 = vpop.xlane.xlu2 %5956 }
0x2cf5   : > { %v7443_v13 = vpop.eup %7442  ;;  %7444 = vrcp.f32 %v5957_v61  ;;  %v6876_v61 = vld [vmem:[%s10203_s5 + $0x80] sm:$0xff] }
0x2cf6   : > { %v6009_v6 = vmul.f32 %v7443_v13, %v7439_v43 }
0x2cf8   : > { %v6010_v5 = vpack.c.bf16 %v6009_v6, %v6009_v6 }
0x2cfa   : > { %6779 = vmatmul.msk.bf16.vlgmr.msra.gmra.mxu1 %vm5874_vm6, %v6010_v5 }
0x2cfb   : > { %v7445_v59 = vpop.eup %7444 }
0x2cfc   : > { %v5959_v39 = vmul.f32 %v7445_v59, %v7441_v30  ;;  %v6879_v30 = vld [vmem:[%s10203_s5 + $0x98] sm:$0xff] }
0x2cfe   : > { %v5960_v14 = vpack.c.bf16 %v5959_v39, %v5959_v39 }
0x2d00   : > { %6777 = vmatmul.msk.bf16.vlgmr.msra.gmra.mxu3 %vm5874_vm6, %v5960_v14 }
0x2d01   : > { %6250 = vmatpush.bf16.msra.mxu3 %v6879_v30 }
0x2d05   : > { %6251 = vmatpush.bf16.msra.mxu3 %v6878_v48 }
0x2d10   : > { %6793 = vmatmul.msk.bf16.vlgmr.msrb.gmra.mxu3 %vm440_vm0, %v6072_v7  ;;  %vm6142_vm0 = vcmask 516096   ;;  %v6877_v7 = vld [vmem:[%s10203_s5 + $0x88] sm:$0xff] }
0x2d11   : > { %6252 = vmatpush.bf16.msra.mxu3 %v6877_v7 }
0x2d15   : > { %6253 = vmatpush.bf16.msra.mxu3 %v6876_v61 }
0x2d77   : > { %v6023_v45 = vpop.f32.mrf.mxu1 }
0x2d78   : > { %v6027_v15 = vmul.f32 %v6023_v45, %v8069_v25 }
0x2d7f   : > { %v6025_v57 = vpop.f32.mrf.mxu1 }
0x2d83   : > { %v5975_v1 = vpop.f32.mrf.mxu3 }
0x2d84   : > { %v5979_v22 = vmul.f32 %v5975_v1, %v8065_v40 }
0x2d86   : > { %v6028_v44 = vadd.f32 %v6027_v15, %v5979_v22 }
0x2d88   : > { %v6029_v0 = vpack.c.bf16 %v6028_v44, %v6028_v44 }
0x2d8a   : > { %6780 = vmatmul.msk.bf16.vlgmr.msrb.gmra.mxu2 %vm611_vm1, %v6029_v0  ;;  %v6721_v0 = vld [vmem:[%s10205_s7 + $0x3] sm:$0x1] }
0x2d8b   : > { %v5977_v63 = vpop.f32.mrf.mxu3 }
0x2d93   : > { %v6102_v33 = vpop.f32.mrf.mxu3 }
0x2d94   : > { %v6137_v26 = vmul.f32 %v6102_v33, %v7631_v2  ;;  %v6177_v53 = vmul.f32 %v6102_v33, %v7634_v3 }
0x2d96   : > { %v6138_v35 = vpack.c.bf16 %v6137_v26, %v6137_v26  ;;  %v6178_v50 = vpack.c.bf16 %v6177_v53, %v6177_v53 }
0x2d98   : > { %v6139_v19 = vunpack.c.l.bf16 %v6138_v35  ;;  %v6179_v55 = vunpack.c.l.bf16 %v6178_v50 }
0x2d9a   : > { %v6180_v52 = vmul.f32 %v6179_v55, %v6140_v62  ;;  %v6141_v27 = vmul.f32 %v6140_v62, %v6139_v19 }
0x2d9b   : > { %v6104_v18 = vpop.f32.mrf.mxu3 }
0x2d9c   : > { %v6181_v38 = vsel %vm6142_vm0, %v6180_v52, 0.0  ;;  %v6143_v51 = vsel %vm6142_vm0, %v6141_v27, 0.0 }
0x2d9d   : > { %6182 = vadd.xlane.f32.xlu2 %v6181_v38  ;;  %6144 = vadd.xlane.f32.xlu0 %v6143_v51 }
0x2e0d   : > { %v6042_v17 = vpop.f32.mrf.mxu2 }
0x2e0e   : > { %v6043_v10 = vadd.f32 %v6042_v17, %v10102_v47 }
0x2e10   : > { %v6183_v2 = vpop.xlane.xlu2 %6182  ;;  %v6047_v3 = vsel %vm6046_vm8, %v6043_v10, 0.0  ;;  %v6145_v60 = vpop.xlane.xlu0 %6144 }
0x2e11   : > { %v6184_v4 = vsub.f32 %v6183_v2, %v6183_v2  ;;  %6048 = vadd.xlane.f32.xlu1 %v6047_v3  ;;  %v6146_v58 = vsub.f32 %v6145_v60, %v6145_v60 }
0x2e13   : > { %v6185_v16 = vmul.f32 1.442695, %v6184_v4  ;;  %v6147_v21 = vmul.f32 1.442695, %v6146_v58  ;;  %v6834_v4 = vld [vmem:[%s10204_s6 + $0x4] sm:$0x1] }
0x2e15   : > { %7446 = vpow2.f32 %v6185_v16  ;;  %v6044_v56 = vpop.f32.mrf.mxu2 }
0x2e16   : > { %7448 = vpow2.f32 %v6147_v21 }
0x2e1b   : > { %v7447_v32 = vpop.eup %7446 }
0x2e1c   : > { %v7449_v41 = vpop.eup %7448  ;;  %7450 = vrcp.f32 %v7447_v32 }
0x2e1d   : > { %7452 = vrcp.f32 %v7449_v41 }
0x2e22   : > { %v7451_v23 = vpop.eup %7450 }
0x2e23   : > { %v7453_v37 = vpop.eup %7452  ;;  %v6189_v20 = vmul.f32 %v7451_v23, %v7447_v32 }
0x2e24   : > { %v6151_v47 = vmul.f32 %v7453_v37, %v7449_v41 }
0x2e25   : > { %v6190_v43 = vpack.c.bf16 %v6189_v20, %v6189_v20 }
0x2e26   : > { %v6152_v49 = vpack.c.bf16 %v6151_v47, %v6151_v47 }
0x2e27   : > { %6808 = vmatmul.msk.bf16.vlgmr.msra.gmra.mxu2 %vm6153_vm9, %v6190_v43 }
0x2e28   : > { %6807 = vmatmul.msk.bf16.vlgmr.msrb.gmra.mxu1 %vm6153_vm9, %v6152_v49 }
0x2e84   : > { %v6049_v24 = vpop.xlane.xlu1 %6048 }
0x2e85   : > { %v6050_v46 = vmul.f32 %v6049_v24, %v8357_v34 }
0x2e87   : > { %v6051_v31 = vsub.f32 %v6043_v10, %v6050_v46 }
0x2e89   : > { %v6052_v36 = vmul.f32 %v6051_v31, %v6051_v31 }
0x2e8b   : > { %v6053_v9 = vsel %vm6046_vm8, %v6052_v36, 0.0 }
0x2e8c   : > { %6054 = vadd.xlane.f32.xlu0 %v6053_v9 }
0x2ea5   : > { %v6171_v13 = vpop.f32.mrf.mxu1 }
0x2ea6   : > { %v6175_v5 = vmul.f32 %v6171_v13, %v8065_v40 }
0x2eaa   : > { %v6203_v6 = vpop.f32.mrf.mxu2 }
0x2eab   : > { %v6207_v59 = vmul.f32 %v6203_v6, %v8069_v25  ;;  %v6720_v25 = vld [vmem:[%s10204_s6 + $0x3] sm:$0x1] }
0x2ead   : > { %v6208_v39 = vadd.f32 %v6207_v59, %v6175_v5  ;;  %v6173_v14 = vpop.f32.mrf.mxu1 }
0x2eaf   : > { %v6209_v11 = vpack.c.bf16 %v6208_v39, %v6208_v39 }
0x2eb1   : > { %6833 = vmatmul.msk.bf16.vlgmr.msra.gmra.mxu3 %vm611_vm1, %v6209_v11 }
0x2eb2   : > { %v6205_v54 = vpop.f32.mrf.mxu2 }
0x2eff   : > { %v6055_v45 = vpop.xlane.xlu0 %6054 }
0x2f00   : > { %v6056_v28 = vmul.f32 %v6055_v45, %v8357_v34 }
0x2f02   : > { %v6057_v29 = vadd.f32 1e-05, %v6056_v28 }
0x2f04   : > { %7454 = vrsqrt.f32 %v6057_v29  ;;  %vm6064_vm11 = vweird.f32 %v6057_v29 }
0x2f0a   : > { %v7455_v8 = vpop.eup %7454 }
0x2f0b   : > { %v6059_v12 = vmul.f32 %v7455_v8, %v6057_v29  ;;  %vm6065_vm10 = vweird.f32 %v7455_v8 }
0x2f0c   : > { %vm6066_vm12 = vmor %vm6064_vm11, %vm6065_vm10 }
0x2f0d   : > { %v6060_v57 = vmul.f32 %v7455_v8, %v6059_v12 }
0x2f0f   : > { %v6061_v1 = vmul.f32 0.5, %v6060_v57 }
0x2f11   : > { %v6062_v15 = vsub.f32 1.5, %v6061_v1 }
0x2f13   : > { %v6063_v40 = vmul.f32 %v7455_v8, %v6062_v15 }
0x2f15   : > { %v6067_v22 = vsel %vm6066_vm12, %v7455_v8, %v6063_v40 }
0x2f16   : > { %v6068_v44 = vmul.f32 %v6067_v22, %v6051_v31 }
0x2f18   : > { %v6069_v63 = vmul.f32 %v6720_v25, %v6068_v44 }
0x2f1a   : > { %v6070_v33 = vadd.f32 %v6721_v0, %v6069_v63 }
0x2f1c   : > { %6071 = vst.msk [vmem:[%s368_s28] sm:$0x1] %vm6046_vm8, %v6070_v33 }
0x2f34   : > { %v6255_v26 = vpop.f32.mrf.mxu3 }
0x2f35   : > { %v6256_v53 = vadd.f32 %v6255_v26, %v10131_v42 }
0x2f37   : > { %v6259_v35 = vsel %vm6046_vm8, %v6256_v53, 0.0 }
0x2f38   : > { %6260 = vadd.xlane.f32.xlu2 %v6259_v35 }
0x2f3c   : > { %v6257_v50 = vpop.f32.mrf.mxu3 }
0x2fab   : > { %v6261_v62 = vpop.xlane.xlu2 %6260 }
0x2fac   : > { %v6262_v19 = vmul.f32 %v6261_v62, %v8357_v34 }
0x2fae   : > { %v6263_v55 = vsub.f32 %v6256_v53, %v6262_v19 }
0x2fb0   : > { %v6264_v52 = vmul.f32 %v6263_v55, %v6263_v55 }
0x2fb2   : > { %v6265_v27 = vsel %vm6046_vm8, %v6264_v52, 0.0 }
0x2fb3   : > { %6266 = vadd.xlane.f32.xlu1 %v6265_v27 }
0x3026   : > { %v6267_v18 = vpop.xlane.xlu1 %6266 }
0x3027   : > { %v6268_v38 = vmul.f32 %v6267_v18, %v8357_v34  ;;  %v6835_v34 = vld [vmem:[%s10205_s7 + $0x4] sm:$0x1] }
0x3029   : > { %v6269_v51 = vadd.f32 1e-05, %v6268_v38 }
0x302b   : > { %7456 = vrsqrt.f32 %v6269_v51  ;;  %vm6276_vm13 = vweird.f32 %v6269_v51 }
0x3031   : > { %v7457_v17 = vpop.eup %7456 }
0x3032   : > { %v6271_v42 = vmul.f32 %v7457_v17, %v6269_v51  ;;  %vm6277_vm1 = vweird.f32 %v7457_v17 }
0x3033   : > { %vm6278_vm14 = vmor %vm6276_vm13, %vm6277_vm1 }
0x3034   : > { %v6272_v10 = vmul.f32 %v7457_v17, %v6271_v42 }
0x3036   : > { %v6273_v2 = vmul.f32 0.5, %v6272_v10 }
0x3038   : > { %v6274_v3 = vsub.f32 1.5, %v6273_v2 }
0x303a   : > { %v6275_v60 = vmul.f32 %v7457_v17, %v6274_v3 }
0x303c   : > { %v6279_v58 = vsel %vm6278_vm14, %v7457_v17, %v6275_v60 }
0x303d   : > { %v6280_v16 = vmul.f32 %v6279_v58, %v6263_v55 }
0x303f   : > { %v6283_v21 = vmul.f32 %v6834_v4, %v6280_v16 }
0x3041   : > { %v6286_v56 = vadd.f32 %v6835_v34, %v6283_v21 }
0x3043   : > { %6287 = vst.msk [vmem:[%s371_s15] sm:$0x1] %vm6046_vm8, %v6286_v56 }
0x3044 PF: > { %s20_s30 = sadd.s32 1, %s7498_s30  }
0x3045   : > { %p17_p4 = scmp.ge.s32.totalorder %s20_s30, 4  }
0x3047   :  { %19 = sbr.rel (!%p17_p4) target bundleno = 1 (0x1), region = 118 }

</bundles_post_ra>
